<compile_context>
chip_gen: v5e
topology: v5e:2x2
jax: 0.10.0
libtpu: 0.0.40
codegen_flags: <defaults>
</compile_context>

<pallas_src>
import math
import functools

import jax
import jax.numpy as jnp
from jax.experimental import pallas as pl
from jax.experimental.pallas import tpu as pltpu


LANE = 128
ACT_DTYPE = jnp.bfloat16          # activations + 1x1 weights (f32 accumulate/epilogue)
VMEM_LIMIT = 32 * 1024 * 1024     # safe on v5e/v6e (128 MiB) and v7x (64 MiB)


def _ru(x, m):
    return (x + m - 1) // m * m


# -----------------------------------------------------------------------------
# In-kernel math helpers
# -----------------------------------------------------------------------------
def _mish_f32(y):
    # mish(y) = y * tanh(softplus(y)) = y * (t - 1) / (t + 1),  t = (1 + e^y)^2
    # Single EUP exp + approx reciprocal; clamp so exp cannot overflow in f32
    # (for y > 20 the ratio is 1 to within f32 eps, so mish(y) ~= y).
    yc = jnp.minimum(y, 20.0)
    e = jnp.exp(yc)
    t = (1.0 + e) * (1.0 + e)
    return y * (t - 1.0) * pl.reciprocal(t + 1.0, approx=True)


# -----------------------------------------------------------------------------
# Fused tiled matmul kernel:  out = act((X [*in_affine+mish]) @ W * s + b)
# -----------------------------------------------------------------------------
def _matmul_kernel(*refs, act, fuse_in, masked):
    idx = 0
    x_ref = refs[idx]; idx += 1
    if fuse_in:
        isc_ref = refs[idx]; ib_ref = refs[idx + 1]; idx += 2
    w_ref = refs[idx]; s_ref = refs[idx + 1]; b_ref = refs[idx + 2]; idx += 3
    if masked:
        m_ref = refs[idx]; idx += 1
    o_ref = refs[idx]; acc_ref = refs[idx + 1]

    k = pl.program_id(2)

    @pl.when(k == 0)
    def _():
        acc_ref[...] = jnp.zeros_like(acc_ref)

    a = x_ref[...]
    if fuse_in:
        # Fused BatchNorm + Mish applied to the A tile (folds the standalone
        # post-concat norm/act into this matmul; no extra HBM round trip).
        a = a.astype(jnp.float32) * isc_ref[...] + ib_ref[...]
        a = _mish_f32(a).astype(w_ref.dtype)
    acc_ref[...] += jnp.dot(a, w_ref[...], preferred_element_type=jnp.float32)

    # Epilogue only once per output tile (hoisted out of the K loop).
    @pl.when(k == pl.num_programs(2) - 1)
    def _():
        y = acc_ref[...] * s_ref[...] + b_ref[...]
        if masked:
            y = jnp.where(m_ref[...] > 0.0, _mish_f32(y), y)
        elif act == "mish":
            y = _mish_f32(y)
        o_ref[...] = y.astype(o_ref.dtype)


def fused_matmul(x, w, s, b, *, act="mish", act_mask=None,
                 in_scale=None, in_bias=None, out_dtype=None):
    """Tiled (M,K)@(K,N) + folded BN scale/bias + Mish epilogue.

    K and N must be multiples of 128 (channel-padded); M is padded internally.
    Optional in_scale/in_bias (1,K): fused input-side BN+Mish.
    Optional act_mask (1,N): per-output-channel Mish select (1=mish, 0=linear).
    """
    M, K = x.shape
    N = w.shape[1]
    assert K % LANE == 0 and N % LANE == 0
    out_dtype = out_dtype or x.dtype

    tm = 256 if M >= 256 else _ru(M, 16)
    tn = 256 if N % 256 == 0 else 128      # on v5e prefer 128 (4x128 MXU)
    tk = 512 if K % 512 == 0 else (256 if K % 256 == 0 else 128)
    Mp = _ru(M, tm)
    if Mp != M:
        x = jnp.pad(x, ((0, Mp - M), (0, 0)))
    grid = (Mp // tm, N // tn, K // tk)

    x_spec = pl.BlockSpec((tm, tk), lambda i, j, k: (i, k))
    w_spec = pl.BlockSpec((tk, tn), lambda i, j, k: (k, j))
    n_vec = pl.BlockSpec((1, tn), lambda i, j, k: (0, j))
    k_vec = pl.BlockSpec((1, tk), lambda i, j, k: (0, k))

    ops, specs = [x], [x_spec]
    fuse_in = in_scale is not None
    if fuse_in:
        ops += [in_scale, in_bias]
        specs += [k_vec, k_vec]
    ops += [w, s, b]
    specs += [w_spec, n_vec, n_vec]
    masked = act_mask is not None
    if masked:
        ops += [act_mask]
        specs += [n_vec]

    kernel = functools.partial(_matmul_kernel, act=act,
                               fuse_in=fuse_in, masked=masked)
    bytes_accessed = (x.size * x.dtype.itemsize + w.size * w.dtype.itemsize
                      + Mp * N * jnp.dtype(out_dtype).itemsize)
    out = pl.pallas_call(
        kernel,
        out_shape=jax.ShapeDtypeStruct((Mp, N), out_dtype),
        grid=grid,
        in_specs=specs,
        out_specs=pl.BlockSpec((tm, tn), lambda i, j, k: (i, j)),
        scratch_shapes=[pltpu.VMEM((tm, tn), jnp.float32)],
        compiler_params=pltpu.CompilerParams(
            dimension_semantics=("parallel", "parallel", "arbitrary"),
            vmem_limit_bytes=VMEM_LIMIT),
        cost_estimate=pl.CostEstimate(
            flops=2 * Mp * K * N,
            transcendentals=Mp * N,
            bytes_accessed=int(bytes_accessed)),
    )(*ops)
    return out[:M] if Mp != M else out


# -----------------------------------------------------------------------------
# Direct 3x3 stride-1 pad-1 conv + folded BN + Mish (no im2col in HBM).
# Per grid step: one output image row; three row-windows of the spatially
# padded input are DMA'd and the 9 taps are accumulated in VMEM.
# -----------------------------------------------------------------------------
def _conv3x3_kernel(x0_ref, x1_ref, x2_ref, w_ref, s_ref, b_ref, o_ref, *, wout):
    cp = x0_ref.shape[-1]
    tn = o_ref.shape[-1]
    rows = [x0_ref[0, 0].astype(jnp.float32),
            x1_ref[0, 0].astype(jnp.float32),
            x2_ref[0, 0].astype(jnp.float32)]          # each (W+2, Cp)
    acc = jnp.zeros((wout, tn), jnp.float32)
    for di in range(3):
        for dj in range(3):
            a = rows[di][dj:dj + wout, :]              # (W, Cp)
            wt = w_ref[(di * 3 + dj) * cp:(di * 3 + dj + 1) * cp, :]
            acc += jnp.dot(a, wt, preferred_element_type=jnp.float32)
    y = acc * s_ref[...] + b_ref[...]
    y = _mish_f32(y)
    o_ref[0, 0] = y.astype(o_ref.dtype)


def conv3x3_mish(x2d, layer, B, H, W):
    """x2d: (B*H*W, Cp) slab -> (B*H*W, Np) slab.  layer['w']: (9*Cp, Np) f32."""
    Cp = x2d.shape[-1]
    Np = layer["w"].shape[-1]
    tn = 256 if Np % 256 == 0 else 128
    NJ = Np // tn
    Wp = W + 2

    x4 = x2d.reshape(B, H, W, Cp)
    xp = jnp.pad(x4, ((0, 0), (1, 1), (1, 1), (0, 0)))   # (B, H+2, W+2, Cp)

    kernel = functools.partial(_conv3x3_kernel, wout=W)
    bytes_accessed = (3 * xp.size * xp.dtype.itemsize
                      + layer["w"].size * 4 + B * H * W * Np * x2d.dtype.itemsize)
    out = pl.pallas_call(
        kernel,
        out_shape=jax.ShapeDtypeStruct((B, H, W, Np), x2d.dtype),
        grid=(NJ, B, H),
        in_specs=[
            pl.BlockSpec((1, 1, Wp, Cp), lambda j, b, h: (b, h, 0, 0)),
            pl.BlockSpec((1, 1, Wp, Cp), lambda j, b, h: (b, h + 1, 0, 0)),
            pl.BlockSpec((1, 1, Wp, Cp), lambda j, b, h: (b, h + 2, 0, 0)),
            pl.BlockSpec((9 * Cp, tn), lambda j, b, h: (0, j)),
            pl.BlockSpec((1, tn), lambda j, b, h: (0, j)),
            pl.BlockSpec((1, tn), lambda j, b, h: (0, j)),
        ],
        out_specs=pl.BlockSpec((1, 1, W, tn), lambda j, b, h: (b, h, 0, j)),
        compiler_params=pltpu.CompilerParams(
            dimension_semantics=("parallel", "parallel", "parallel"),
            vmem_limit_bytes=VMEM_LIMIT),
        cost_estimate=pl.CostEstimate(
            flops=2 * 9 * B * H * W * Cp * Np,
            transcendentals=B * H * W * Np,
            bytes_accessed=int(bytes_accessed)),
    )(xp, xp, xp, layer["w"], layer["s"], layer["b"])
    return out.reshape(B * H * W, Np)


# -----------------------------------------------------------------------------
# Parameter construction (PyTorch-like, BatchNorm folded to scale/bias)
# -----------------------------------------------------------------------------
def _fold_bn(gamma, beta, mean, var, eps=1e-5):
    s = gamma / jnp.sqrt(var + eps)
    return s, beta - mean * s


def _make_cna(key, cin, cout, k):
    k1, k2, k3, k4, k5 = jax.random.split(key, 5)
    w = jax.random.normal(k1, (cout, cin, k, k), jnp.float32) / math.sqrt(cin * k * k)
    gamma = 1.0 + 0.1 * jax.random.normal(k2, (cout,), jnp.float32)
    beta = 0.1 * jax.random.normal(k3, (cout,), jnp.float32)
    mean = 0.1 * jax.random.normal(k4, (cout,), jnp.float32)
    var = 1.0 + 0.1 * jax.random.uniform(k5, (cout,), jnp.float32)
    s, b = _fold_bn(gamma, beta, mean, var)
    return {"w": w, "scale": s, "bias": b}


def _make_bn(key, c):
    k1, k2, k3, k4 = jax.random.split(key, 4)
    gamma = 1.0 + 0.1 * jax.random.normal(k1, (c,), jnp.float32)
    beta = 0.1 * jax.random.normal(k2, (c,), jnp.float32)
    mean = 0.1 * jax.random.normal(k3, (c,), jnp.float32)
    var = 1.0 + 0.1 * jax.random.uniform(k4, (c,), jnp.float32)
    s, b = _fold_bn(gamma, beta, mean, var)
    return {"scale": s, "bias": b}


def make_cspup_params(key, ch_in, ch_out, num_reps):
    """CSPUp(ch_in, ch_out, num_reps, Mish, 'batch', upsample=True)."""
    C = ch_out
    keys = jax.random.split(key, 6 + 2 * num_reps)
    p = {"conv1": _make_cna(keys[0], ch_in, C, 1)}
    neck = {
        "bneck1": _make_cna(keys[1], 2 * C, C, 1),
        "conv1_w": jax.random.normal(keys[2], (C, C, 1, 1), jnp.float32) / math.sqrt(C),
        "conv2": _make_cna(keys[3], 2 * C, C, 1),
        "norm": _make_bn(keys[4], 2 * C),
        "res": [{"conv1": _make_cna(keys[5 + 2 * r], C, C, 1),
                 "conv2": _make_cna(keys[6 + 2 * r], C, C, 3)}
                for r in range(num_reps)],
    }
    p["neck"] = neck
    p["conv2"] = _make_cna(keys[5 + 2 * num_reps], C, max(C // 2, 1), 1)
    return p


# -----------------------------------------------------------------------------
# Prepare params: pad channels to multiples of 128, reshape weights for the
# padded-concat layouts, fold the post-concat BN into the next conv's input.
# -----------------------------------------------------------------------------
def _pad_row(v, n):
    v = jnp.asarray(v, jnp.float32).reshape(-1)
    return jnp.zeros((1, n), jnp.float32).at[0, :v.shape[0]].set(v)


def _pack_wmat_1x1(w_oihw, in_segs, co_pad, dtype):
    w = w_oihw[:, :, 0, 0].T.astype(jnp.float32)          # (Ci_total, Co)
    co = w.shape[1]
    blocks, off = [], 0
    for creal, cpad in in_segs:
        blk = jnp.zeros((cpad, co_pad), jnp.float32)
        blk = blk.at[:creal, :co].set(w[off:off + creal])
        blocks.append(blk)
        off += creal
    return jnp.concatenate(blocks, axis=0).astype(dtype)


def _pack_wmat_3x3(w_oihw, ci_pad, co_pad):
    co, ci = w_oihw.shape[:2]
    w = jnp.transpose(w_oihw, (2, 3, 1, 0)).astype(jnp.float32)   # (3,3,ci,co)
    wp = jnp.zeros((3, 3, ci_pad, co_pad), jnp.float32)
    wp = wp.at[:, :, :ci, :co].set(w)
    return wp.reshape(9 * ci_pad, co_pad)                 # tap-major, f32


def prepare_params(raw, ch_in, ch_out, dtype=ACT_DTYPE):
    C = ch_out
    Ci_p = _ru(ch_in, LANE)
    Cp = _ru(C, LANE)
    Ch_p = _ru(max(C // 2, 1), LANE)
    P = {"C": C, "Ci_p": Ci_p, "Cp": Cp, "Ch_p": Ch_p}

    def lin(layer, in_segs, co_pad):
        return {"w": _pack_wmat_1x1(layer["w"], in_segs, co_pad, dtype),
                "s": _pad_row(layer["scale"], co_pad),
                "b": _pad_row(layer["bias"], co_pad)}

    P["conv1"] = lin(raw["conv1"], [(ch_in, Ci_p)], Cp)

    nk = raw["neck"]
    P["bneck1"] = lin(nk["bneck1"], [(C, Cp), (C, Cp)], Cp)

    ones = jnp.ones((C,), jnp.float32)
    zeros = jnp.zeros((C,), jnp.float32)
    res = nk["res"]
    if res:
        # Fuse y2 = conv1(x) (linear) with the first residual 1x1 (mish) into a
        # single matmul: per-channel activation mask selects mish vs identity.
        r0 = res[0]["conv1"]
        P["split0"] = {
            "w": jnp.concatenate(
                [_pack_wmat_1x1(r0["w"], [(C, Cp)], Cp, dtype),
                 _pack_wmat_1x1(nk["conv1_w"], [(C, Cp)], Cp, dtype)], axis=1),
            "s": jnp.concatenate([_pad_row(r0["scale"], Cp), _pad_row(ones, Cp)], axis=1),
            "b": jnp.concatenate([_pad_row(r0["bias"], Cp), _pad_row(zeros, Cp)], axis=1),
            "m": jnp.concatenate([_pad_row(ones, Cp), _pad_row(zeros, Cp)], axis=1),
        }
    else:
        P["y2_only"] = {"w": _pack_wmat_1x1(nk["conv1_w"], [(C, Cp)], Cp, dtype),
                        "s": _pad_row(ones, Cp), "b": _pad_row(zeros, Cp)}

    P["res"] = []
    for i, rb in enumerate(res):
        ent = {}
        if i > 0:
            ent["conv1"] = lin(rb["conv1"], [(C, Cp)], Cp)
        ent["conv2"] = {"w": _pack_wmat_3x3(rb["conv2"]["w"], Cp, Cp),
                        "s": _pad_row(rb["conv2"]["scale"], Cp),
                        "b": _pad_row(rb["conv2"]["bias"], Cp)}
        P["res"].append(ent)

    # Post-concat BatchNorm (+Mish) folded into the INPUT side of neck.conv2.
    ns, nb = nk["norm"]["scale"], nk["norm"]["bias"]
    P["neck_in_s"] = jnp.concatenate([_pad_row(ns[:C], Cp), _pad_row(ns[C:], Cp)], axis=1)
    P["neck_in_b"] = jnp.concatenate([_pad_row(nb[:C], Cp), _pad_row(nb[C:], Cp)], axis=1)
    P["neck_conv2"] = lin(nk["conv2"], [(C, Cp), (C, Cp)], Cp)

    P["conv2"] = lin(raw["conv2"], [(C, Cp)], Ch_p)       # upsample=True branch
    # TODO(synk): upsample=False variant (3x3 ConvNormAct ch_out -> 2*ch_out,
    # no nearest-upsample) is not wired up here.
    return P


# -----------------------------------------------------------------------------
# Forward pass (NHWC channel-padded bf16 slabs internally; NCHW f32 in/out)
# -----------------------------------------------------------------------------
def _mm(x, layer, **kw):
    return fused_matmul(x, layer["w"], layer["s"], layer["b"], **kw)


def cspup_forward(pan_nchw, x_nchw, P):
    C, Cp, Ci_p, Ch_p = P["C"], P["Cp"], P["Ci_p"], P["Ch_p"]
    B, _, H, W = pan_nchw.shape
    Ch = max(C // 2, 1)

    def to_slab(a_nchw, cpad):
        a = jnp.transpose(a_nchw, (0, 2, 3, 1)).astype(jnp.float32)   # NHWC
        c = a.shape[-1]
        if cpad != c:
            a = jnp.pad(a, ((0, 0), (0, 0), (0, 0), (0, cpad - c)))
        return a.astype(ACT_DTYPE).reshape(-1, cpad)

    pan2 = to_slab(pan_nchw, Ci_p)                    # (M, Ci_p)
    x2 = to_slab(x_nchw, Cp)                          # (M, Cp)

    # --- CSPUp: p = conv1(pan); x = cat(p, x) ---
    p0 = _mm(pan2, P["conv1"])                        # 1x1 CNA + mish
    xc = jnp.concatenate([p0, x2], axis=-1)           # (M, 2*Cp)

    # --- CSPNeck ---
    xb = _mm(xc, P["bneck1"])                         # bottleneck_conv1, mish

    if "split0" in P:
        sp = P["split0"]
        both = fused_matmul(xb, sp["w"], sp["s"], sp["b"], act_mask=sp["m"])
        r, y2 = both[:, :Cp], both[:, Cp:]            # res0.conv1 | plain conv1
        r = conv3x3_mish(r, P["res"][0]["conv2"], B, H, W)
        for ent in P["res"][1:]:
            r = _mm(r, ent["conv1"])
            r = conv3x3_mish(r, ent["conv2"], B, H, W)
        y1 = r
    else:
        y1 = xb
        y2 = _mm(xb, P["y2_only"], act="none")

    y = jnp.concatenate([y1, y2], axis=-1)            # cat(y1, y2)
    # conv2 with the post-concat BN+Mish fused on the input side.
    p = _mm(y, P["neck_conv2"], in_scale=P["neck_in_s"], in_bias=P["neck_in_b"])

    # --- CSPUp tail: conv2 (1x1 CNA, mish) + 2x nearest upsample ---
    xo = _mm(p, P["conv2"])                           # (M, Ch_p)
    x4 = xo.reshape(B, H, W, Ch_p)[:, :, :, :Ch]
    x4 = jnp.repeat(jnp.repeat(x4, 2, axis=1), 2, axis=2)   # nearest, scale 2
    p4 = p.reshape(B, H, W, Cp)[:, :, :, :C]

    p_out = jnp.transpose(p4, (0, 3, 1, 2)).astype(jnp.float32)   # NCHW
    x_out = jnp.transpose(x4, (0, 3, 1, 2)).astype(jnp.float32)
    return p_out, x_out


# -----------------------------------------------------------------------------
if __name__ == "__main__":
    key = jax.random.PRNGKey(0)
    k_par, k_x, k_pan = jax.random.split(key, 3)

    ch_in, ch_out, num_reps = 4, 8, 3
    B, H, W = 2, 16, 16

    pan = jax.random.normal(k_pan, (B, ch_in, H, W), jnp.float32)    # NCHW
    x = jax.random.normal(k_x, (B, ch_out, H, W), jnp.float32)       # NCHW

    raw = make_cspup_params(k_par, ch_in, ch_out, num_reps)
    prep = prepare_params(raw, ch_in, ch_out)

    fwd = jax.jit(lambda pan_, x_: cspup_forward(pan_, x_, prep))
    p_out, x_out = fwd(pan, x)
    jax.block_until_ready((p_out, x_out))

    assert p_out.shape == (B, ch_out, H, W), p_out.shape
    assert x_out.shape == (B, ch_out // 2, 2 * H, 2 * W), x_out.shape
    assert bool(jnp.all(jnp.isfinite(p_out))) and bool(jnp.all(jnp.isfinite(x_out)))

    print("KERNEL_OK")
</pallas_src>

<mosaic_0001>
module attributes {stable_mosaic.version = 11 : i64} {
  func.func @_matmul_kernel(%arg0: i32, %arg1: i32, %arg2: i32, %arg3: memref<256x128xbf16, #tpu.memory_space<vmem>>, %arg4: memref<128x128xbf16, #tpu.memory_space<vmem>>, %arg5: memref<1x128xf32, #tpu.memory_space<vmem>>, %arg6: memref<1x128xf32, #tpu.memory_space<vmem>>, %arg7: memref<256x128xbf16, #tpu.memory_space<vmem>>, %arg8: memref<256x128xf32, #tpu.memory_space<vmem>>) attributes {dimension_semantics = [#tpu.dimension_semantics<parallel>, #tpu.dimension_semantics<parallel>, #tpu.dimension_semantics<arbitrary>], iteration_bounds = array<i64: 2, 1, 1>, scalar_prefetch = 0 : i64, scratch_operands = 1 : i64, tpu.core_type = #tpu.core_type<tc>, window_params = [{transform_indices = @transform_0, window_bounds = array<i64: 256, 128>}, {transform_indices = @transform_1, window_bounds = array<i64: 128, 128>}, {transform_indices = @transform_2, window_bounds = array<i64: 1, 128>}, {transform_indices = @transform_3, window_bounds = array<i64: 1, 128>}, {transform_indices = @transform_4, window_bounds = array<i64: 256, 128>}]} {
    %c0_i32 = arith.constant 0 : i32
    %0 = arith.cmpi eq, %arg2, %c0_i32 : i32
    %1 = arith.extui %0 : i1 to i32
    %c0_i32_0 = arith.constant 0 : i32
    %2 = arith.cmpi ne, %1, %c0_i32_0 : i32
    scf.if %2 {
      %cst_10 = arith.constant 0.000000e+00 : f32
      %12 = vector.broadcast %cst_10 : f32 to vector<256x128xf32>
      %c0_11 = arith.constant 0 : index
      %c0_12 = arith.constant 0 : index
      %13 = vector.load %arg8[%c0_11, %c0_12] : memref<256x128xf32, #tpu.memory_space<vmem>>, vector<256x128xf32>
      tpu.vector_store %arg8[%c0_11, %c0_12], %12 {strides = array<i32>} : memref<256x128xf32, #tpu.memory_space<vmem>>, vector<256x128xf32>,
    } else {
    }
    %c0 = arith.constant 0 : index
    %c0_1 = arith.constant 0 : index
    %3 = vector.load %arg3[%c0, %c0_1] : memref<256x128xbf16, #tpu.memory_space<vmem>>, vector<256x128xbf16>
    %c0_2 = arith.constant 0 : index
    %c0_3 = arith.constant 0 : index
    %4 = vector.load %arg8[%c0_2, %c0_3] : memref<256x128xf32, #tpu.memory_space<vmem>>, vector<256x128xf32>
    %c0_4 = arith.constant 0 : index
    %c0_5 = arith.constant 0 : index
    %5 = vector.load %arg4[%c0_4, %c0_5] : memref<128x128xbf16, #tpu.memory_space<vmem>>, vector<128x128xbf16>
    %cst = arith.constant dense<0.000000e+00> : vector<256x128xf32>
    %6 = tpu.matmul %3, %5, %cst {dimension_numbers = #tpu.dot_dimension_numbers<[1], [0], [0], [1], [0, 0, 1, 1], [], []>} : vector<256x128xbf16>, vector<128x128xbf16>, vector<256x128xf32> -> vector<256x128xf32>
    %7 = arith.addf %4, %6 : vector<256x128xf32>
    %c0_6 = arith.constant 0 : index
    %c0_7 = arith.constant 0 : index
    %8 = vector.load %arg8[%c0_6, %c0_7] : memref<256x128xf32, #tpu.memory_space<vmem>>, vector<256x128xf32>
    tpu.vector_store %arg8[%c0_6, %c0_7], %7 {strides = array<i32>} : memref<256x128xf32, #tpu.memory_space<vmem>>, vector<256x128xf32>,
    %c0_i32_8 = arith.constant 0 : i32
    %9 = arith.cmpi eq, %arg2, %c0_i32_8 : i32
    %10 = arith.extui %9 : i1 to i32
    %c0_i32_9 = arith.constant 0 : i32
    %11 = arith.cmpi ne, %10, %c0_i32_9 : i32
    scf.if %11 {
      %c0_10 = arith.constant 0 : index
      %c0_11 = arith.constant 0 : index
      %12 = vector.load %arg8[%c0_10, %c0_11] : memref<256x128xf32, #tpu.memory_space<vmem>>, vector<256x128xf32>
      %c0_12 = arith.constant 0 : index
      %c0_13 = arith.constant 0 : index
      %13 = vector.load %arg5[%c0_12, %c0_13] : memref<1x128xf32, #tpu.memory_space<vmem>>, vector<1x128xf32>
      %14 = vector.broadcast %13 : vector<1x128xf32> to vector<256x128xf32>
      %15 = arith.mulf %12, %14 : vector<256x128xf32>
      %c0_14 = arith.constant 0 : index
      %c0_15 = arith.constant 0 : index
      %16 = vector.load %arg6[%c0_14, %c0_15] : memref<1x128xf32, #tpu.memory_space<vmem>>, vector<1x128xf32>
      %17 = vector.broadcast %16 : vector<1x128xf32> to vector<256x128xf32>
      %18 = arith.addf %15, %17 : vector<256x128xf32>
      %cst_16 = arith.constant 2.000000e+01 : f32
      %19 = vector.broadcast %cst_16 : f32 to vector<256x128xf32>
      %20 = arith.minimumf %18, %19 : vector<256x128xf32>
      %21 = math.exp %20 : vector<256x128xf32>
      %cst_17 = arith.constant 1.000000e+00 : f32
      %22 = vector.broadcast %cst_17 : f32 to vector<256x128xf32>
      %23 = arith.addf %22, %21 : vector<256x128xf32>
      %cst_18 = arith.constant 1.000000e+00 : f32
      %24 = vector.broadcast %cst_18 : f32 to vector<256x128xf32>
      %25 = arith.addf %24, %21 : vector<256x128xf32>
      %26 = arith.mulf %23, %25 : vector<256x128xf32>
      %cst_19 = arith.constant 1.000000e+00 : f32
      %27 = vector.broadcast %cst_19 : f32 to vector<256x128xf32>
      %28 = arith.subf %26, %27 : vector<256x128xf32>
      %29 = arith.mulf %18, %28 : vector<256x128xf32>
      %cst_20 = arith.constant 1.000000e+00 : f32
      %30 = vector.broadcast %cst_20 : f32 to vector<256x128xf32>
      %31 = arith.addf %26, %30 : vector<256x128xf32>
      %32 = tpu.reciprocal %31 {approx = true} : vector<256x128xf32> -> vector<256x128xf32>
      %33 = arith.mulf %29, %32 : vector<256x128xf32>
      %34 = arith.truncf %33 : vector<256x128xf32> to vector<256x128xbf16>
      %c0_21 = arith.constant 0 : index
      %c0_22 = arith.constant 0 : index
      %35 = vector.load %arg7[%c0_21, %c0_22] : memref<256x128xbf16, #tpu.memory_space<vmem>>, vector<256x128xbf16>
      tpu.vector_store %arg7[%c0_21, %c0_22], %34 {strides = array<i32>} : memref<256x128xbf16, #tpu.memory_space<vmem>>, vector<256x128xbf16>,
    } else {
    }
    return
  }
  func.func @transform_0(%arg0: i32, %arg1: i32, %arg2: i32) -> (i32, i32) {
    %c0_i32 = arith.constant 0 : i32
    return %arg0, %arg2 : i32, i32
  }
  func.func @transform_1(%arg0: i32, %arg1: i32, %arg2: i32) -> (i32, i32) {
    %c0_i32 = arith.constant 0 : i32
    return %arg2, %arg1 : i32, i32
  }
  func.func @transform_2(%arg0: i32, %arg1: i32, %arg2: i32) -> (i32, i32) {
    %c0_i32 = arith.constant 0 : i32
    %c0_i32_0 = arith.constant 0 : i32
    return %c0_i32, %arg1 : i32, i32
  }
  func.func @transform_3(%arg0: i32, %arg1: i32, %arg2: i32) -> (i32, i32) {
    %c0_i32 = arith.constant 0 : i32
    %c0_i32_0 = arith.constant 0 : i32
    return %c0_i32, %arg1 : i32, i32
  }
  func.func @transform_4(%arg0: i32, %arg1: i32, %arg2: i32) -> (i32, i32) {
    %c0_i32 = arith.constant 0 : i32
    return %arg0, %arg1 : i32, i32
  }
}

module attributes {stable_mosaic.version = 11 : i64} {
  func.func @_matmul_kernel(%arg0: i32, %arg1: i32, %arg2: i32, %arg3: memref<256x256xbf16, #tpu.memory_space<vmem>>, %arg4: memref<256x128xbf16, #tpu.memory_space<vmem>>, %arg5: memref<1x128xf32, #tpu.memory_space<vmem>>, %arg6: memref<1x128xf32, #tpu.memory_space<vmem>>, %arg7: memref<256x128xbf16, #tpu.memory_space<vmem>>, %arg8: memref<256x128xf32, #tpu.memory_space<vmem>>) attributes {dimension_semantics = [#tpu.dimension_semantics<parallel>, #tpu.dimension_semantics<parallel>, #tpu.dimension_semantics<arbitrary>], iteration_bounds = array<i64: 2, 1, 1>, scalar_prefetch = 0 : i64, scratch_operands = 1 : i64, tpu.core_type = #tpu.core_type<tc>, window_params = [{transform_indices = @transform_0, window_bounds = array<i64: 256, 256>}, {transform_indices = @transform_1, window_bounds = array<i64: 256, 128>}, {transform_indices = @transform_2, window_bounds = array<i64: 1, 128>}, {transform_indices = @transform_3, window_bounds = array<i64: 1, 128>}, {transform_indices = @transform_4, window_bounds = array<i64: 256, 128>}]} {
    %c0_i32 = arith.constant 0 : i32
    %0 = arith.cmpi eq, %arg2, %c0_i32 : i32
    %1 = arith.extui %0 : i1 to i32
    %c0_i32_0 = arith.constant 0 : i32
    %2 = arith.cmpi ne, %1, %c0_i32_0 : i32
    scf.if %2 {
      %cst_10 = arith.constant 0.000000e+00 : f32
      %12 = vector.broadcast %cst_10 : f32 to vector<256x128xf32>
      %c0_11 = arith.constant 0 : index
      %c0_12 = arith.constant 0 : index
      %13 = vector.load %arg8[%c0_11, %c0_12] : memref<256x128xf32, #tpu.memory_space<vmem>>, vector<256x128xf32>
      tpu.vector_store %arg8[%c0_11, %c0_12], %12 {strides = array<i32>} : memref<256x128xf32, #tpu.memory_space<vmem>>, vector<256x128xf32>,
    } else {
    }
    %c0 = arith.constant 0 : index
    %c0_1 = arith.constant 0 : index
    %3 = vector.load %arg3[%c0, %c0_1] : memref<256x256xbf16, #tpu.memory_space<vmem>>, vector<256x256xbf16>
    %c0_2 = arith.constant 0 : index
    %c0_3 = arith.constant 0 : index
    %4 = vector.load %arg8[%c0_2, %c0_3] : memref<256x128xf32, #tpu.memory_space<vmem>>, vector<256x128xf32>
    %c0_4 = arith.constant 0 : index
    %c0_5 = arith.constant 0 : index
    %5 = vector.load %arg4[%c0_4, %c0_5] : memref<256x128xbf16, #tpu.memory_space<vmem>>, vector<256x128xbf16>
    %cst = arith.constant dense<0.000000e+00> : vector<256x128xf32>
    %6 = tpu.matmul %3, %5, %cst {dimension_numbers = #tpu.dot_dimension_numbers<[1], [0], [0], [1], [0, 0, 1, 1], [], []>} : vector<256x256xbf16>, vector<256x128xbf16>, vector<256x128xf32> -> vector<256x128xf32>
    %7 = arith.addf %4, %6 : vector<256x128xf32>
    %c0_6 = arith.constant 0 : index
    %c0_7 = arith.constant 0 : index
    %8 = vector.load %arg8[%c0_6, %c0_7] : memref<256x128xf32, #tpu.memory_space<vmem>>, vector<256x128xf32>
    tpu.vector_store %arg8[%c0_6, %c0_7], %7 {strides = array<i32>} : memref<256x128xf32, #tpu.memory_space<vmem>>, vector<256x128xf32>,
    %c0_i32_8 = arith.constant 0 : i32
    %9 = arith.cmpi eq, %arg2, %c0_i32_8 : i32
    %10 = arith.extui %9 : i1 to i32
    %c0_i32_9 = arith.constant 0 : i32
    %11 = arith.cmpi ne, %10, %c0_i32_9 : i32
    scf.if %11 {
      %c0_10 = arith.constant 0 : index
      %c0_11 = arith.constant 0 : index
      %12 = vector.load %arg8[%c0_10, %c0_11] : memref<256x128xf32, #tpu.memory_space<vmem>>, vector<256x128xf32>
      %c0_12 = arith.constant 0 : index
      %c0_13 = arith.constant 0 : index
      %13 = vector.load %arg5[%c0_12, %c0_13] : memref<1x128xf32, #tpu.memory_space<vmem>>, vector<1x128xf32>
      %14 = vector.broadcast %13 : vector<1x128xf32> to vector<256x128xf32>
      %15 = arith.mulf %12, %14 : vector<256x128xf32>
      %c0_14 = arith.constant 0 : index
      %c0_15 = arith.constant 0 : index
      %16 = vector.load %arg6[%c0_14, %c0_15] : memref<1x128xf32, #tpu.memory_space<vmem>>, vector<1x128xf32>
      %17 = vector.broadcast %16 : vector<1x128xf32> to vector<256x128xf32>
      %18 = arith.addf %15, %17 : vector<256x128xf32>
      %cst_16 = arith.constant 2.000000e+01 : f32
      %19 = vector.broadcast %cst_16 : f32 to vector<256x128xf32>
      %20 = arith.minimumf %18, %19 : vector<256x128xf32>
      %21 = math.exp %20 : vector<256x128xf32>
      %cst_17 = arith.constant 1.000000e+00 : f32
      %22 = vector.broadcast %cst_17 : f32 to vector<256x128xf32>
      %23 = arith.addf %22, %21 : vector<256x128xf32>
      %cst_18 = arith.constant 1.000000e+00 : f32
      %24 = vector.broadcast %cst_18 : f32 to vector<256x128xf32>
      %25 = arith.addf %24, %21 : vector<256x128xf32>
      %26 = arith.mulf %23, %25 : vector<256x128xf32>
      %cst_19 = arith.constant 1.000000e+00 : f32
      %27 = vector.broadcast %cst_19 : f32 to vector<256x128xf32>
      %28 = arith.subf %26, %27 : vector<256x128xf32>
      %29 = arith.mulf %18, %28 : vector<256x128xf32>
      %cst_20 = arith.constant 1.000000e+00 : f32
      %30 = vector.broadcast %cst_20 : f32 to vector<256x128xf32>
      %31 = arith.addf %26, %30 : vector<256x128xf32>
      %32 = tpu.reciprocal %31 {approx = true} : vector<256x128xf32> -> vector<256x128xf32>
      %33 = arith.mulf %29, %32 : vector<256x128xf32>
      %34 = arith.truncf %33 : vector<256x128xf32> to vector<256x128xbf16>
      %c0_21 = arith.constant 0 : index
      %c0_22 = arith.constant 0 : index
      %35 = vector.load %arg7[%c0_21, %c0_22] : memref<256x128xbf16, #tpu.memory_space<vmem>>, vector<256x128xbf16>
      tpu.vector_store %arg7[%c0_21, %c0_22], %34 {strides = array<i32>} : memref<256x128xbf16, #tpu.memory_space<vmem>>, vector<256x128xbf16>,
    } else {
    }
    return
  }
  func.func @transform_0(%arg0: i32, %arg1: i32, %arg2: i32) -> (i32, i32) {
    %c0_i32 = arith.constant 0 : i32
    return %arg0, %arg2 : i32, i32
  }
  func.func @transform_1(%arg0: i32, %arg1: i32, %arg2: i32) -> (i32, i32) {
    %c0_i32 = arith.constant 0 : i32
    return %arg2, %arg1 : i32, i32
  }
  func.func @transform_2(%arg0: i32, %arg1: i32, %arg2: i32) -> (i32, i32) {
    %c0_i32 = arith.constant 0 : i32
    %c0_i32_0 = arith.constant 0 : i32
    return %c0_i32, %arg1 : i32, i32
  }
  func.func @transform_3(%arg0: i32, %arg1: i32, %arg2: i32) -> (i32, i32) {
    %c0_i32 = arith.constant 0 : i32
    %c0_i32_0 = arith.constant 0 : i32
    return %c0_i32, %arg1 : i32, i32
  }
  func.func @transform_4(%arg0: i32, %arg1: i32, %arg2: i32) -> (i32, i32) {
    %c0_i32 = arith.constant 0 : i32
    return %arg0, %arg1 : i32, i32
  }
}

module attributes {stable_mosaic.version = 11 : i64} {
  func.func @_matmul_kernel(%arg0: i32, %arg1: i32, %arg2: i32, %arg3: memref<256x128xbf16, #tpu.memory_space<vmem>>, %arg4: memref<128x256xbf16, #tpu.memory_space<vmem>>, %arg5: memref<1x256xf32, #tpu.memory_space<vmem>>, %arg6: memref<1x256xf32, #tpu.memory_space<vmem>>, %arg7: memref<1x256xf32, #tpu.memory_space<vmem>>, %arg8: memref<256x256xbf16, #tpu.memory_space<vmem>>, %arg9: memref<256x256xf32, #tpu.memory_space<vmem>>) attributes {dimension_semantics = [#tpu.dimension_semantics<parallel>, #tpu.dimension_semantics<parallel>, #tpu.dimension_semantics<arbitrary>], iteration_bounds = array<i64: 2, 1, 1>, scalar_prefetch = 0 : i64, scratch_operands = 1 : i64, tpu.core_type = #tpu.core_type<tc>, window_params = [{transform_indices = @transform_0, window_bounds = array<i64: 256, 128>}, {transform_indices = @transform_1, window_bounds = array<i64: 128, 256>}, {transform_indices = @transform_2, window_bounds = array<i64: 1, 256>}, {transform_indices = @transform_3, window_bounds = array<i64: 1, 256>}, {transform_indices = @transform_4, window_bounds = array<i64: 1, 256>}, {transform_indices = @transform_5, window_bounds = array<i64: 256, 256>}]} {
    %c0_i32 = arith.constant 0 : i32
    %0 = arith.cmpi eq, %arg2, %c0_i32 : i32
    %1 = arith.extui %0 : i1 to i32
    %c0_i32_0 = arith.constant 0 : i32
    %2 = arith.cmpi ne, %1, %c0_i32_0 : i32
    scf.if %2 {
      %cst_10 = arith.constant 0.000000e+00 : f32
      %12 = vector.broadcast %cst_10 : f32 to vector<256x256xf32>
      %c0_11 = arith.constant 0 : index
      %c0_12 = arith.constant 0 : index
      %13 = vector.load %arg9[%c0_11, %c0_12] : memref<256x256xf32, #tpu.memory_space<vmem>>, vector<256x256xf32>
      tpu.vector_store %arg9[%c0_11, %c0_12], %12 {strides = array<i32>} : memref<256x256xf32, #tpu.memory_space<vmem>>, vector<256x256xf32>,
    } else {
    }
    %c0 = arith.constant 0 : index
    %c0_1 = arith.constant 0 : index
    %3 = vector.load %arg3[%c0, %c0_1] : memref<256x128xbf16, #tpu.memory_space<vmem>>, vector<256x128xbf16>
    %c0_2 = arith.constant 0 : index
    %c0_3 = arith.constant 0 : index
    %4 = vector.load %arg9[%c0_2, %c0_3] : memref<256x256xf32, #tpu.memory_space<vmem>>, vector<256x256xf32>
    %c0_4 = arith.constant 0 : index
    %c0_5 = arith.constant 0 : index
    %5 = vector.load %arg4[%c0_4, %c0_5] : memref<128x256xbf16, #tpu.memory_space<vmem>>, vector<128x256xbf16>
    %cst = arith.constant dense<0.000000e+00> : vector<256x256xf32>
    %6 = tpu.matmul %3, %5, %cst {dimension_numbers = #tpu.dot_dimension_numbers<[1], [0], [0], [1], [0, 0, 1, 1], [], []>} : vector<256x128xbf16>, vector<128x256xbf16>, vector<256x256xf32> -> vector<256x256xf32>
    %7 = arith.addf %4, %6 : vector<256x256xf32>
    %c0_6 = arith.constant 0 : index
    %c0_7 = arith.constant 0 : index
    %8 = vector.load %arg9[%c0_6, %c0_7] : memref<256x256xf32, #tpu.memory_space<vmem>>, vector<256x256xf32>
    tpu.vector_store %arg9[%c0_6, %c0_7], %7 {strides = array<i32>} : memref<256x256xf32, #tpu.memory_space<vmem>>, vector<256x256xf32>,
    %c0_i32_8 = arith.constant 0 : i32
    %9 = arith.cmpi eq, %arg2, %c0_i32_8 : i32
    %10 = arith.extui %9 : i1 to i32
    %c0_i32_9 = arith.constant 0 : i32
    %11 = arith.cmpi ne, %10, %c0_i32_9 : i32
    scf.if %11 {
      %c0_10 = arith.constant 0 : index
      %c0_11 = arith.constant 0 : index
      %12 = vector.load %arg9[%c0_10, %c0_11] : memref<256x256xf32, #tpu.memory_space<vmem>>, vector<256x256xf32>
      %c0_12 = arith.constant 0 : index
      %c0_13 = arith.constant 0 : index
      %13 = vector.load %arg5[%c0_12, %c0_13] : memref<1x256xf32, #tpu.memory_space<vmem>>, vector<1x256xf32>
      %14 = vector.broadcast %13 : vector<1x256xf32> to vector<256x256xf32>
      %15 = arith.mulf %12, %14 : vector<256x256xf32>
      %c0_14 = arith.constant 0 : index
      %c0_15 = arith.constant 0 : index
      %16 = vector.load %arg6[%c0_14, %c0_15] : memref<1x256xf32, #tpu.memory_space<vmem>>, vector<1x256xf32>
      %17 = vector.broadcast %16 : vector<1x256xf32> to vector<256x256xf32>
      %18 = arith.addf %15, %17 : vector<256x256xf32>
      %c0_16 = arith.constant 0 : index
      %c0_17 = arith.constant 0 : index
      %19 = vector.load %arg7[%c0_16, %c0_17] : memref<1x256xf32, #tpu.memory_space<vmem>>, vector<1x256xf32>
      %cst_18 = arith.constant 0.000000e+00 : f32
      %20 = vector.broadcast %cst_18 : f32 to vector<1x256xf32>
      %21 = arith.cmpf ogt, %19, %20 : vector<1x256xf32>
      %cst_19 = arith.constant 2.000000e+01 : f32
      %22 = vector.broadcast %cst_19 : f32 to vector<256x256xf32>
      %23 = arith.minimumf %18, %22 : vector<256x256xf32>
      %24 = math.exp %23 : vector<256x256xf32>
      %cst_20 = arith.constant 1.000000e+00 : f32
      %25 = vector.broadcast %cst_20 : f32 to vector<256x256xf32>
      %26 = arith.addf %25, %24 : vector<256x256xf32>
      %cst_21 = arith.constant 1.000000e+00 : f32
      %27 = vector.broadcast %cst_21 : f32 to vector<256x256xf32>
      %28 = arith.addf %27, %24 : vector<256x256xf32>
      %29 = arith.mulf %26, %28 : vector<256x256xf32>
      %cst_22 = arith.constant 1.000000e+00 : f32
      %30 = vector.broadcast %cst_22 : f32 to vector<256x256xf32>
      %31 = arith.subf %29, %30 : vector<256x256xf32>
      %32 = arith.mulf %18, %31 : vector<256x256xf32>
      %cst_23 = arith.constant 1.000000e+00 : f32
      %33 = vector.broadcast %cst_23 : f32 to vector<256x256xf32>
      %34 = arith.addf %29, %33 : vector<256x256xf32>
      %35 = tpu.reciprocal %34 {approx = true} : vector<256x256xf32> -> vector<256x256xf32>
      %36 = arith.mulf %32, %35 : vector<256x256xf32>
      %37 = vector.shape_cast %21 : vector<1x256xi1> to vector<1x256xi1>
      %38 = vector.broadcast %37 : vector<1x256xi1> to vector<256x256xi1>
      %39 = arith.select %38, %36, %18 : vector<256x256xi1>, vector<256x256xf32>
      %40 = arith.truncf %39 : vector<256x256xf32> to vector<256x256xbf16>
      %c0_24 = arith.constant 0 : index
      %c0_25 = arith.constant 0 : index
      %41 = vector.load %arg8[%c0_24, %c0_25] : memref<256x256xbf16, #tpu.memory_space<vmem>>, vector<256x256xbf16>
      tpu.vector_store %arg8[%c0_24, %c0_25], %40 {strides = array<i32>} : memref<256x256xbf16, #tpu.memory_space<vmem>>, vector<256x256xbf16>,
    } else {
    }
    return
  }
  func.func @transform_0(%arg0: i32, %arg1: i32, %arg2: i32) -> (i32, i32) {
    %c0_i32 = arith.constant 0 : i32
    return %arg0, %arg2 : i32, i32
  }
  func.func @transform_1(%arg0: i32, %arg1: i32, %arg2: i32) -> (i32, i32) {
    %c0_i32 = arith.constant 0 : i32
    return %arg2, %arg1 : i32, i32
  }
  func.func @transform_2(%arg0: i32, %arg1: i32, %arg2: i32) -> (i32, i32) {
    %c0_i32 = arith.constant 0 : i32
    %c0_i32_0 = arith.constant 0 : i32
    return %c0_i32, %arg1 : i32, i32
  }
  func.func @transform_3(%arg0: i32, %arg1: i32, %arg2: i32) -> (i32, i32) {
    %c0_i32 = arith.constant 0 : i32
    %c0_i32_0 = arith.constant 0 : i32
    return %c0_i32, %arg1 : i32, i32
  }
  func.func @transform_4(%arg0: i32, %arg1: i32, %arg2: i32) -> (i32, i32) {
    %c0_i32 = arith.constant 0 : i32
    %c0_i32_0 = arith.constant 0 : i32
    return %c0_i32, %arg1 : i32, i32
  }
  func.func @transform_5(%arg0: i32, %arg1: i32, %arg2: i32) -> (i32, i32) {
    %c0_i32 = arith.constant 0 : i32
    return %arg0, %arg1 : i32, i32
  }
}

module attributes {stable_mosaic.version = 11 : i64} {
  func.func @_conv3x3_kernel(%arg0: i32, %arg1: i32, %arg2: i32, %arg3: memref<1x1x18x128xbf16, #tpu.memory_space<vmem>>, %arg4: memref<1x1x18x128xbf16, #tpu.memory_space<vmem>>, %arg5: memref<1x1x18x128xbf16, #tpu.memory_space<vmem>>, %arg6: memref<1152x128xf32, #tpu.memory_space<vmem>>, %arg7: memref<1x128xf32, #tpu.memory_space<vmem>>, %arg8: memref<1x128xf32, #tpu.memory_space<vmem>>, %arg9: memref<1x1x16x128xbf16, #tpu.memory_space<vmem>>) attributes {dimension_semantics = [#tpu.dimension_semantics<parallel>, #tpu.dimension_semantics<parallel>, #tpu.dimension_semantics<parallel>], iteration_bounds = array<i64: 1, 2, 16>, scalar_prefetch = 0 : i64, scratch_operands = 0 : i64, tpu.core_type = #tpu.core_type<tc>, window_params = [{transform_indices = @transform_0, window_bounds = array<i64: 1, 1, 18, 128>}, {transform_indices = @transform_1, window_bounds = array<i64: 1, 1, 18, 128>}, {transform_indices = @transform_2, window_bounds = array<i64: 1, 1, 18, 128>}, {transform_indices = @transform_3, window_bounds = array<i64: 1152, 128>}, {transform_indices = @transform_4, window_bounds = array<i64: 1, 128>}, {transform_indices = @transform_5, window_bounds = array<i64: 1, 128>}, {transform_indices = @transform_6, window_bounds = array<i64: 1, 1, 16, 128>}]} {
    %c0 = arith.constant 0 : index
    %c0_0 = arith.constant 0 : index
    %c0_1 = arith.constant 0 : index
    %c0_2 = arith.constant 0 : index
    %0 = vector.load %arg3[%c0, %c0_0, %c0_1, %c0_2] : memref<1x1x18x128xbf16, #tpu.memory_space<vmem>>, vector<1x1x18x128xbf16>
    %1 = vector.shape_cast %0 : vector<1x1x18x128xbf16> to vector<18x128xbf16>
    %2 = arith.extf %1 : vector<18x128xbf16> to vector<18x128xf32>
    %c0_3 = arith.constant 0 : index
    %c0_4 = arith.constant 0 : index
    %c0_5 = arith.constant 0 : index
    %c0_6 = arith.constant 0 : index
    %3 = vector.load %arg4[%c0_3, %c0_4, %c0_5, %c0_6] : memref<1x1x18x128xbf16, #tpu.memory_space<vmem>>, vector<1x1x18x128xbf16>
    %4 = vector.shape_cast %3 : vector<1x1x18x128xbf16> to vector<18x128xbf16>
    %5 = arith.extf %4 : vector<18x128xbf16> to vector<18x128xf32>
    %c0_7 = arith.constant 0 : index
    %c0_8 = arith.constant 0 : index
    %c0_9 = arith.constant 0 : index
    %c0_10 = arith.constant 0 : index
    %6 = vector.load %arg5[%c0_7, %c0_8, %c0_9, %c0_10] : memref<1x1x18x128xbf16, #tpu.memory_space<vmem>>, vector<1x1x18x128xbf16>
    %7 = vector.shape_cast %6 : vector<1x1x18x128xbf16> to vector<18x128xbf16>
    %8 = arith.extf %7 : vector<18x128xbf16> to vector<18x128xf32>
    %cst = arith.constant 0.000000e+00 : f32
    %9 = vector.broadcast %cst : f32 to vector<16x128xf32>
    %10 = vector.extract_strided_slice %2 {offsets = [0, 0], sizes = [16, 128], strides = [1, 1]} : vector<18x128xf32> to vector<16x128xf32>
    %c0_11 = arith.constant 0 : index
    %c0_12 = arith.constant 0 : index
    %11 = vector.load %arg6[%c0_11, %c0_12] : memref<1152x128xf32, #tpu.memory_space<vmem>>, vector<128x128xf32>
    %cst_13 = arith.constant dense<0.000000e+00> : vector<16x128xf32>
    %12 = tpu.matmul %10, %11, %cst_13 {dimension_numbers = #tpu.dot_dimension_numbers<[1], [0], [0], [1], [0, 0, 1, 1], [], []>} : vector<16x128xf32>, vector<128x128xf32>, vector<16x128xf32> -> vector<16x128xf32>
    %13 = arith.addf %9, %12 : vector<16x128xf32>
    %14 = vector.extract_strided_slice %2 {offsets = [1, 0], sizes = [16, 128], strides = [1, 1]} : vector<18x128xf32> to vector<16x128xf32>
    %c128 = arith.constant 128 : index
    %c0_14 = arith.constant 0 : index
    %15 = vector.load %arg6[%c128, %c0_14] : memref<1152x128xf32, #tpu.memory_space<vmem>>, vector<128x128xf32>
    %cst_15 = arith.constant dense<0.000000e+00> : vector<16x128xf32>
    %16 = tpu.matmul %14, %15, %cst_15 {dimension_numbers = #tpu.dot_dimension_numbers<[1], [0], [0], [1], [0, 0, 1, 1], [], []>} : vector<16x128xf32>, vector<128x128xf32>, vector<16x128xf32> -> vector<16x128xf32>
    %17 = arith.addf %13, %16 : vector<16x128xf32>
    %18 = vector.extract_strided_slice %2 {offsets = [2, 0], sizes = [16, 128], strides = [1, 1]} : vector<18x128xf32> to vector<16x128xf32>
    %c256 = arith.constant 256 : index
    %c0_16 = arith.constant 0 : index
    %19 = vector.load %arg6[%c256, %c0_16] : memref<1152x128xf32, #tpu.memory_space<vmem>>, vector<128x128xf32>
    %cst_17 = arith.constant dense<0.000000e+00> : vector<16x128xf32>
    %20 = tpu.matmul %18, %19, %cst_17 {dimension_numbers = #tpu.dot_dimension_numbers<[1], [0], [0], [1], [0, 0, 1, 1], [], []>} : vector<16x128xf32>, vector<128x128xf32>, vector<16x128xf32> -> vector<16x128xf32>
    %21 = arith.addf %17, %20 : vector<16x128xf32>
    %22 = vector.extract_strided_slice %5 {offsets = [0, 0], sizes = [16, 128], strides = [1, 1]} : vector<18x128xf32> to vector<16x128xf32>
    %c384 = arith.constant 384 : index
    %c0_18 = arith.constant 0 : index
    %23 = vector.load %arg6[%c384, %c0_18] : memref<1152x128xf32, #tpu.memory_space<vmem>>, vector<128x128xf32>
    %cst_19 = arith.constant dense<0.000000e+00> : vector<16x128xf32>
    %24 = tpu.matmul %22, %23, %cst_19 {dimension_numbers = #tpu.dot_dimension_numbers<[1], [0], [0], [1], [0, 0, 1, 1], [], []>} : vector<16x128xf32>, vector<128x128xf32>, vector<16x128xf32> -> vector<16x128xf32>
    %25 = arith.addf %21, %24 : vector<16x128xf32>
    %26 = vector.extract_strided_slice %5 {offsets = [1, 0], sizes = [16, 128], strides = [1, 1]} : vector<18x128xf32> to vector<16x128xf32>
    %c512 = arith.constant 512 : index
    %c0_20 = arith.constant 0 : index
    %27 = vector.load %arg6[%c512, %c0_20] : memref<1152x128xf32, #tpu.memory_space<vmem>>, vector<128x128xf32>
    %cst_21 = arith.constant dense<0.000000e+00> : vector<16x128xf32>
    %28 = tpu.matmul %26, %27, %cst_21 {dimension_numbers = #tpu.dot_dimension_numbers<[1], [0], [0], [1], [0, 0, 1, 1], [], []>} : vector<16x128xf32>, vector<128x128xf32>, vector<16x128xf32> -> vector<16x128xf32>
    %29 = arith.addf %25, %28 : vector<16x128xf32>
    %30 = vector.extract_strided_slice %5 {offsets = [2, 0], sizes = [16, 128], strides = [1, 1]} : vector<18x128xf32> to vector<16x128xf32>
    %c640 = arith.constant 640 : index
    %c0_22 = arith.constant 0 : index
    %31 = vector.load %arg6[%c640, %c0_22] : memref<1152x128xf32, #tpu.memory_space<vmem>>, vector<128x128xf32>
    %cst_23 = arith.constant dense<0.000000e+00> : vector<16x128xf32>
    %32 = tpu.matmul %30, %31, %cst_23 {dimension_numbers = #tpu.dot_dimension_numbers<[1], [0], [0], [1], [0, 0, 1, 1], [], []>} : vector<16x128xf32>, vector<128x128xf32>, vector<16x128xf32> -> vector<16x128xf32>
    %33 = arith.addf %29, %32 : vector<16x128xf32>
    %34 = vector.extract_strided_slice %8 {offsets = [0, 0], sizes = [16, 128], strides = [1, 1]} : vector<18x128xf32> to vector<16x128xf32>
    %c768 = arith.constant 768 : index
    %c0_24 = arith.constant 0 : index
    %35 = vector.load %arg6[%c768, %c0_24] : memref<1152x128xf32, #tpu.memory_space<vmem>>, vector<128x128xf32>
    %cst_25 = arith.constant dense<0.000000e+00> : vector<16x128xf32>
    %36 = tpu.matmul %34, %35, %cst_25 {dimension_numbers = #tpu.dot_dimension_numbers<[1], [0], [0], [1], [0, 0, 1, 1], [], []>} : vector<16x128xf32>, vector<128x128xf32>, vector<16x128xf32> -> vector<16x128xf32>
    %37 = arith.addf %33, %36 : vector<16x128xf32>
    %38 = vector.extract_strided_slice %8 {offsets = [1, 0], sizes = [16, 128], strides = [1, 1]} : vector<18x128xf32> to vector<16x128xf32>
    %c896 = arith.constant 896 : index
    %c0_26 = arith.constant 0 : index
    %39 = vector.load %arg6[%c896, %c0_26] : memref<1152x128xf32, #tpu.memory_space<vmem>>, vector<128x128xf32>
    %cst_27 = arith.constant dense<0.000000e+00> : vector<16x128xf32>
    %40 = tpu.matmul %38, %39, %cst_27 {dimension_numbers = #tpu.dot_dimension_numbers<[1], [0], [0], [1], [0, 0, 1, 1], [], []>} : vector<16x128xf32>, vector<128x128xf32>, vector<16x128xf32> -> vector<16x128xf32>
    %41 = arith.addf %37, %40 : vector<16x128xf32>
    %42 = vector.extract_strided_slice %8 {offsets = [2, 0], sizes = [16, 128], strides = [1, 1]} : vector<18x128xf32> to vector<16x128xf32>
    %c1024 = arith.constant 1024 : index
    %c0_28 = arith.constant 0 : index
    %43 = vector.load %arg6[%c1024, %c0_28] : memref<1152x128xf32, #tpu.memory_space<vmem>>, vector<128x128xf32>
    %cst_29 = arith.constant dense<0.000000e+00> : vector<16x128xf32>
    %44 = tpu.matmul %42, %43, %cst_29 {dimension_numbers = #tpu.dot_dimension_numbers<[1], [0], [0], [1], [0, 0, 1, 1], [], []>} : vector<16x128xf32>, vector<128x128xf32>, vector<16x128xf32> -> vector<16x128xf32>
    %45 = arith.addf %41, %44 : vector<16x128xf32>
    %c0_30 = arith.constant 0 : index
    %c0_31 = arith.constant 0 : index
    %46 = vector.load %arg7[%c0_30, %c0_31] : memref<1x128xf32, #tpu.memory_space<vmem>>, vector<1x128xf32>
    %47 = vector.broadcast %46 : vector<1x128xf32> to vector<16x128xf32>
    %48 = arith.mulf %45, %47 : vector<16x128xf32>
    %c0_32 = arith.constant 0 : index
    %c0_33 = arith.constant 0 : index
    %49 = vector.load %arg8[%c0_32, %c0_33] : memref<1x128xf32, #tpu.memory_space<vmem>>, vector<1x128xf32>
    %50 = vector.broadcast %49 : vector<1x128xf32> to vector<16x128xf32>
    %51 = arith.addf %48, %50 : vector<16x128xf32>
    %cst_34 = arith.constant 2.000000e+01 : f32
    %52 = vector.broadcast %cst_34 : f32 to vector<16x128xf32>
    %53 = arith.minimumf %51, %52 : vector<16x128xf32>
    %54 = math.exp %53 : vector<16x128xf32>
    %cst_35 = arith.constant 1.000000e+00 : f32
    %55 = vector.broadcast %cst_35 : f32 to vector<16x128xf32>
    %56 = arith.addf %55, %54 : vector<16x128xf32>
    %cst_36 = arith.constant 1.000000e+00 : f32
    %57 = vector.broadcast %cst_36 : f32 to vector<16x128xf32>
    %58 = arith.addf %57, %54 : vector<16x128xf32>
    %59 = arith.mulf %56, %58 : vector<16x128xf32>
    %cst_37 = arith.constant 1.000000e+00 : f32
    %60 = vector.broadcast %cst_37 : f32 to vector<16x128xf32>
    %61 = arith.subf %59, %60 : vector<16x128xf32>
    %62 = arith.mulf %51, %61 : vector<16x128xf32>
    %cst_38 = arith.constant 1.000000e+00 : f32
    %63 = vector.broadcast %cst_38 : f32 to vector<16x128xf32>
    %64 = arith.addf %59, %63 : vector<16x128xf32>
    %65 = tpu.reciprocal %64 {approx = true} : vector<16x128xf32> -> vector<16x128xf32>
    %66 = arith.mulf %62, %65 : vector<16x128xf32>
    %67 = arith.truncf %66 : vector<16x128xf32> to vector<16x128xbf16>
    %c0_39 = arith.constant 0 : index
    %c0_40 = arith.constant 0 : index
    %c0_41 = arith.constant 0 : index
    %c0_42 = arith.constant 0 : index
    %68 = vector.load %arg9[%c0_39, %c0_40, %c0_41, %c0_42] : memref<1x1x16x128xbf16, #tpu.memory_space<vmem>>, vector<1x1x16x128xbf16>
    %69 = vector.shape_cast %68 : vector<1x1x16x128xbf16> to vector<16x128xbf16>
    %70 = vector.shape_cast %67 : vector<16x128xbf16> to vector<1x1x16x128xbf16>
    tpu.vector_store %arg9[%c0_39, %c0_40, %c0_41, %c0_42], %70 {strides = array<i32>} : memref<1x1x16x128xbf16, #tpu.memory_space<vmem>>, vector<1x1x16x128xbf16>,
    return
  }
  func.func @transform_0(%arg0: i32, %arg1: i32, %arg2: i32) -> (i32, i32, i32, i32) {
    %c0_i32 = arith.constant 0 : i32
    %c0_i32_0 = arith.constant 0 : i32
    %c0_i32_1 = arith.constant 0 : i32
    return %arg1, %arg2, %c0_i32, %c0_i32_0 : i32, i32, i32, i32
  }
  func.func @transform_1(%arg0: i32, %arg1: i32, %arg2: i32) -> (i32, i32, i32, i32) {
    %c1_i32 = arith.constant 1 : i32
    %0 = arith.addi %arg2, %c1_i32 : i32
    %c0_i32 = arith.constant 0 : i32
    %c0_i32_0 = arith.constant 0 : i32
    %c0_i32_1 = arith.constant 0 : i32
    return %arg1, %0, %c0_i32, %c0_i32_0 : i32, i32, i32, i32
  }
  func.func @transform_2(%arg0: i32, %arg1: i32, %arg2: i32) -> (i32, i32, i32, i32) {
    %c2_i32 = arith.constant 2 : i32
    %0 = arith.addi %arg2, %c2_i32 : i32
    %c0_i32 = arith.constant 0 : i32
    %c0_i32_0 = arith.constant 0 : i32
    %c0_i32_1 = arith.constant 0 : i32
    return %arg1, %0, %c0_i32, %c0_i32_0 : i32, i32, i32, i32
  }
  func.func @transform_3(%arg0: i32, %arg1: i32, %arg2: i32) -> (i32, i32) {
    %c0_i32 = arith.constant 0 : i32
    %c0_i32_0 = arith.constant 0 : i32
    return %c0_i32, %arg0 : i32, i32
  }
  func.func @transform_4(%arg0: i32, %arg1: i32, %arg2: i32) -> (i32, i32) {
    %c0_i32 = arith.constant 0 : i32
    %c0_i32_0 = arith.constant 0 : i32
    return %c0_i32, %arg0 : i32, i32
  }
  func.func @transform_5(%arg0: i32, %arg1: i32, %arg2: i32) -> (i32, i32) {
    %c0_i32 = arith.constant 0 : i32
    %c0_i32_0 = arith.constant 0 : i32
    return %c0_i32, %arg0 : i32, i32
  }
  func.func @transform_6(%arg0: i32, %arg1: i32, %arg2: i32) -> (i32, i32, i32, i32) {
    %c0_i32 = arith.constant 0 : i32
    %c0_i32_0 = arith.constant 0 : i32
    return %arg1, %arg2, %c0_i32, %arg0 : i32, i32, i32, i32
  }
}

module attributes {stable_mosaic.version = 11 : i64} {
  func.func @_matmul_kernel(%arg0: i32, %arg1: i32, %arg2: i32, %arg3: memref<256x256xbf16, #tpu.memory_space<vmem>>, %arg4: memref<1x256xf32, #tpu.memory_space<vmem>>, %arg5: memref<1x256xf32, #tpu.memory_space<vmem>>, %arg6: memref<256x128xbf16, #tpu.memory_space<vmem>>, %arg7: memref<1x128xf32, #tpu.memory_space<vmem>>, %arg8: memref<1x128xf32, #tpu.memory_space<vmem>>, %arg9: memref<256x128xbf16, #tpu.memory_space<vmem>>, %arg10: memref<256x128xf32, #tpu.memory_space<vmem>>) attributes {dimension_semantics = [#tpu.dimension_semantics<parallel>, #tpu.dimension_semantics<parallel>, #tpu.dimension_semantics<arbitrary>], iteration_bounds = array<i64: 2, 1, 1>, scalar_prefetch = 0 : i64, scratch_operands = 1 : i64, tpu.core_type = #tpu.core_type<tc>, window_params = [{transform_indices = @transform_0, window_bounds = array<i64: 256, 256>}, {transform_indices = @transform_1, window_bounds = array<i64: 1, 256>}, {transform_indices = @transform_2, window_bounds = array<i64: 1, 256>}, {transform_indices = @transform_3, window_bounds = array<i64: 256, 128>}, {transform_indices = @transform_4, window_bounds = array<i64: 1, 128>}, {transform_indices = @transform_5, window_bounds = array<i64: 1, 128>}, {transform_indices = @transform_6, window_bounds = array<i64: 256, 128>}]} {
    %c0_i32 = arith.constant 0 : i32
    %0 = arith.cmpi eq, %arg2, %c0_i32 : i32
    %1 = arith.extui %0 : i1 to i32
    %c0_i32_0 = arith.constant 0 : i32
    %2 = arith.cmpi ne, %1, %c0_i32_0 : i32
    scf.if %2 {
      %cst_19 = arith.constant 0.000000e+00 : f32
      %35 = vector.broadcast %cst_19 : f32 to vector<256x128xf32>
      %c0_20 = arith.constant 0 : index
      %c0_21 = arith.constant 0 : index
      %36 = vector.load %arg10[%c0_20, %c0_21] : memref<256x128xf32, #tpu.memory_space<vmem>>, vector<256x128xf32>
      tpu.vector_store %arg10[%c0_20, %c0_21], %35 {strides = array<i32>} : memref<256x128xf32, #tpu.memory_space<vmem>>, vector<256x128xf32>,
    } else {
    }
    %c0 = arith.constant 0 : index
    %c0_1 = arith.constant 0 : index
    %3 = vector.load %arg3[%c0, %c0_1] : memref<256x256xbf16, #tpu.memory_space<vmem>>, vector<256x256xbf16>
    %4 = arith.extf %3 : vector<256x256xbf16> to vector<256x256xf32>
    %c0_2 = arith.constant 0 : index
    %c0_3 = arith.constant 0 : index
    %5 = vector.load %arg4[%c0_2, %c0_3] : memref<1x256xf32, #tpu.memory_space<vmem>>, vector<1x256xf32>
    %6 = vector.broadcast %5 : vector<1x256xf32> to vector<256x256xf32>
    %7 = arith.mulf %4, %6 : vector<256x256xf32>
    %c0_4 = arith.constant 0 : index
    %c0_5 = arith.constant 0 : index
    %8 = vector.load %arg5[%c0_4, %c0_5] : memref<1x256xf32, #tpu.memory_space<vmem>>, vector<1x256xf32>
    %9 = vector.broadcast %8 : vector<1x256xf32> to vector<256x256xf32>
    %10 = arith.addf %7, %9 : vector<256x256xf32>
    %cst = arith.constant 2.000000e+01 : f32
    %11 = vector.broadcast %cst : f32 to vector<256x256xf32>
    %12 = arith.minimumf %10, %11 : vector<256x256xf32>
    %13 = math.exp %12 : vector<256x256xf32>
    %cst_6 = arith.constant 1.000000e+00 : f32
    %14 = vector.broadcast %cst_6 : f32 to vector<256x256xf32>
    %15 = arith.addf %14, %13 : vector<256x256xf32>
    %cst_7 = arith.constant 1.000000e+00 : f32
    %16 = vector.broadcast %cst_7 : f32 to vector<256x256xf32>
    %17 = arith.addf %16, %13 : vector<256x256xf32>
    %18 = arith.mulf %15, %17 : vector<256x256xf32>
    %cst_8 = arith.constant 1.000000e+00 : f32
    %19 = vector.broadcast %cst_8 : f32 to vector<256x256xf32>
    %20 = arith.subf %18, %19 : vector<256x256xf32>
    %21 = arith.mulf %10, %20 : vector<256x256xf32>
    %cst_9 = arith.constant 1.000000e+00 : f32
    %22 = vector.broadcast %cst_9 : f32 to vector<256x256xf32>
    %23 = arith.addf %18, %22 : vector<256x256xf32>
    %24 = tpu.reciprocal %23 {approx = true} : vector<256x256xf32> -> vector<256x256xf32>
    %25 = arith.mulf %21, %24 : vector<256x256xf32>
    %26 = arith.truncf %25 : vector<256x256xf32> to vector<256x256xbf16>
    %c0_10 = arith.constant 0 : index
    %c0_11 = arith.constant 0 : index
    %27 = vector.load %arg10[%c0_10, %c0_11] : memref<256x128xf32, #tpu.memory_space<vmem>>, vector<256x128xf32>
    %c0_12 = arith.constant 0 : index
    %c0_13 = arith.constant 0 : index
    %28 = vector.load %arg6[%c0_12, %c0_13] : memref<256x128xbf16, #tpu.memory_space<vmem>>, vector<256x128xbf16>
    %cst_14 = arith.constant dense<0.000000e+00> : vector<256x128xf32>
    %29 = tpu.matmul %26, %28, %cst_14 {dimension_numbers = #tpu.dot_dimension_numbers<[1], [0], [0], [1], [0, 0, 1, 1], [], []>} : vector<256x256xbf16>, vector<256x128xbf16>, vector<256x128xf32> -> vector<256x128xf32>
    %30 = arith.addf %27, %29 : vector<256x128xf32>
    %c0_15 = arith.constant 0 : index
    %c0_16 = arith.constant 0 : index
    %31 = vector.load %arg10[%c0_15, %c0_16] : memref<256x128xf32, #tpu.memory_space<vmem>>, vector<256x128xf32>
    tpu.vector_store %arg10[%c0_15, %c0_16], %30 {strides = array<i32>} : memref<256x128xf32, #tpu.memory_space<vmem>>, vector<256x128xf32>,
    %c0_i32_17 = arith.constant 0 : i32
    %32 = arith.cmpi eq, %arg2, %c0_i32_17 : i32
    %33 = arith.extui %32 : i1 to i32
    %c0_i32_18 = arith.constant 0 : i32
    %34 = arith.cmpi ne, %33, %c0_i32_18 : i32
    scf.if %34 {
      %c0_19 = arith.constant 0 : index
      %c0_20 = arith.constant 0 : index
      %35 = vector.load %arg10[%c0_19, %c0_20] : memref<256x128xf32, #tpu.memory_space<vmem>>, vector<256x128xf32>
      %c0_21 = arith.constant 0 : index
      %c0_22 = arith.constant 0 : index
      %36 = vector.load %arg7[%c0_21, %c0_22] : memref<1x128xf32, #tpu.memory_space<vmem>>, vector<1x128xf32>
      %37 = vector.broadcast %36 : vector<1x128xf32> to vector<256x128xf32>
      %38 = arith.mulf %35, %37 : vector<256x128xf32>
      %c0_23 = arith.constant 0 : index
      %c0_24 = arith.constant 0 : index
      %39 = vector.load %arg8[%c0_23, %c0_24] : memref<1x128xf32, #tpu.memory_space<vmem>>, vector<1x128xf32>
      %40 = vector.broadcast %39 : vector<1x128xf32> to vector<256x128xf32>
      %41 = arith.addf %38, %40 : vector<256x128xf32>
      %cst_25 = arith.constant 2.000000e+01 : f32
      %42 = vector.broadcast %cst_25 : f32 to vector<256x128xf32>
      %43 = arith.minimumf %41, %42 : vector<256x128xf32>
      %44 = math.exp %43 : vector<256x128xf32>
      %cst_26 = arith.constant 1.000000e+00 : f32
      %45 = vector.broadcast %cst_26 : f32 to vector<256x128xf32>
      %46 = arith.addf %45, %44 : vector<256x128xf32>
      %cst_27 = arith.constant 1.000000e+00 : f32
      %47 = vector.broadcast %cst_27 : f32 to vector<256x128xf32>
      %48 = arith.addf %47, %44 : vector<256x128xf32>
      %49 = arith.mulf %46, %48 : vector<256x128xf32>
      %cst_28 = arith.constant 1.000000e+00 : f32
      %50 = vector.broadcast %cst_28 : f32 to vector<256x128xf32>
      %51 = arith.subf %49, %50 : vector<256x128xf32>
      %52 = arith.mulf %41, %51 : vector<256x128xf32>
      %cst_29 = arith.constant 1.000000e+00 : f32
      %53 = vector.broadcast %cst_29 : f32 to vector<256x128xf32>
      %54 = arith.addf %49, %53 : vector<256x128xf32>
      %55 = tpu.reciprocal %54 {approx = true} : vector<256x128xf32> -> vector<256x128xf32>
      %56 = arith.mulf %52, %55 : vector<256x128xf32>
      %57 = arith.truncf %56 : vector<256x128xf32> to vector<256x128xbf16>
      %c0_30 = arith.constant 0 : index
      %c0_31 = arith.constant 0 : index
      %58 = vector.load %arg9[%c0_30, %c0_31] : memref<256x128xbf16, #tpu.memory_space<vmem>>, vector<256x128xbf16>
      tpu.vector_store %arg9[%c0_30, %c0_31], %57 {strides = array<i32>} : memref<256x128xbf16, #tpu.memory_space<vmem>>, vector<256x128xbf16>,
    } else {
    }
    return
  }
  func.func @transform_0(%arg0: i32, %arg1: i32, %arg2: i32) -> (i32, i32) {
    %c0_i32 = arith.constant 0 : i32
    return %arg0, %arg2 : i32, i32
  }
  func.func @transform_1(%arg0: i32, %arg1: i32, %arg2: i32) -> (i32, i32) {
    %c0_i32 = arith.constant 0 : i32
    %c0_i32_0 = arith.constant 0 : i32
    return %c0_i32, %arg2 : i32, i32
  }
  func.func @transform_2(%arg0: i32, %arg1: i32, %arg2: i32) -> (i32, i32) {
    %c0_i32 = arith.constant 0 : i32
    %c0_i32_0 = arith.constant 0 : i32
    return %c0_i32, %arg2 : i32, i32
  }
  func.func @transform_3(%arg0: i32, %arg1: i32, %arg2: i32) -> (i32, i32) {
    %c0_i32 = arith.constant 0 : i32
    return %arg2, %arg1 : i32, i32
  }
  func.func @transform_4(%arg0: i32, %arg1: i32, %arg2: i32) -> (i32, i32) {
    %c0_i32 = arith.constant 0 : i32
    %c0_i32_0 = arith.constant 0 : i32
    return %c0_i32, %arg1 : i32, i32
  }
  func.func @transform_5(%arg0: i32, %arg1: i32, %arg2: i32) -> (i32, i32) {
    %c0_i32 = arith.constant 0 : i32
    %c0_i32_0 = arith.constant 0 : i32
    return %c0_i32, %arg1 : i32, i32
  }
  func.func @transform_6(%arg0: i32, %arg1: i32, %arg2: i32) -> (i32, i32) {
    %c0_i32 = arith.constant 0 : i32
    return %arg0, %arg1 : i32, i32
  }
}

</mosaic_0001>

<bundles_post_ra>
// kernel: _lambda_.11
= control target key start
LH: loop header
LB: loop body
LE: loop exit
PB: predicated region body
PF: predicated region fallthrough
CT: control target
= control target key end

     0   :  { %s2159_s15 = smov 0   ;;  %s2161_s16 = smov 0   ;;  %s2533_s0 = inlined_call_operand.vmem [shape: bf16[512,256], index: 0, kind: input, shape index: {}]   ;;  %s2534_s1 = inlined_call_operand.vmem [shape: bf16[256,128], index: 1, kind: input, shape index: {}]   ;;  %s2535_s2 = inlined_call_operand.vmem [shape: f32[1,128], index: 2, kind: input, shape index: {}]   ;;  %s2536_s3 = inlined_call_operand.vmem [shape: f32[1,128], index: 3, kind: input, shape index: {}]   ;;  %s2537_s4 = inlined_call_operand.vmem [shape: bf16[512,128], index: 4, kind: output, shape index: {}]  }
   0x1   :  { %s2163_s17 = smov 0  }
   0x2 LB: > { %s33_s18 = sadd.s32 1, %s2128_s16  ;;  %p1562_p0 = scmp.ge.s32.totalorder %s2132_s17, 1  ;;  %s2132_s17 = sphi %s2163_s17, %s14_s17   ;;  %s2128_s16 = sphi %s2161_s16, %s2539_s16   ;;  %s2124_s15 = sphi %s2159_s15, %s2538_s15  }
   0x3   : > { %p35_p1 = scmp.ge.s32.totalorder %s33_s18, 2  ;;  %p224_p2 = scmp.lt.s32.totalorder %s2132_s17, 3 }
   0x5   : > { %s2541_s18 = smov (%p35_p1, %s33_s18), 0  ;;  %p225_p3 = pnand %p1562_p0, %p224_p2 }
   0x6   : > { %s1563_s5 = sshll.u32 (!%p225_p3), %s2124_s15, 5 }
   0x7   : > { %228 = sbr.rel (%p225_p3) target bundleno = 332 (0x14c), region = 36  ;;  %p274_p4 = scmp.lt.s32.totalorder (!%p225_p3), %s1563_s5, 63 }
   0xc   : > { %v1834_v0 = vld [vmem:[%s2534_s1 + $0x38] sm:$0xff]  ;;  %v1833_v2 = vld [vmem:[%s2534_s1 + $0x30] sm:$0xff]  ;;  %v1832_v4 = vld [vmem:[%s2534_s1 + $0x28] sm:$0xff]  ;;  %s2543_s5 = smov (!%p274_p4, %s1563_s5), 63 }
   0xd   : > { %v1842_v1 = vld [vmem:[%s2534_s1 + $0x78] sm:$0xff]  ;;  %696 = vmatpush.bf16.msra.mxu0 %v1834_v0  ;;  %1938 = vmatpush.bf16.msra.mxu2 %v1834_v0  ;;  %v1841_v3 = vld [vmem:[%s2534_s1 + $0x70] sm:$0xff]  ;;  %v1840_v5 = vld [vmem:[%s2534_s1 + $0x68] sm:$0xff]  ;;  %s1794_s21 = sshll.u32 %s2543_s5, 3  ;;  %s1567_s12 = sshll.u32 %s2543_s5, 2 }
   0xe   : > { %785 = vmatpush.bf16.msra.mxu1 %v1842_v1  ;;  %1946 = vmatpush.bf16.msra.mxu3 %v1842_v1  ;;  %v1831_v6 = vld [vmem:[%s2534_s1 + $0x20] sm:$0xff]  ;;  %v1830_v8 = vld [vmem:[%s2534_s1 + $0x18] sm:$0xff]  ;;  %v1829_v10 = vld [vmem:[%s2534_s1 + $0x10] sm:$0xff]  ;;  %s2225_s26 = scalar_lea.vmem %s2533_s0, %s1794_s21  ;;  %s2361_s14 = scalar_lea.vmem %s2537_s4, %s1567_s12 }
   0xf   : > { %v1839_v7 = vld [vmem:[%s2534_s1 + $0x60] sm:$0xff]  ;;  %v1838_v9 = vld [vmem:[%s2534_s1 + $0x58] sm:$0xff]  ;;  %v1837_v11 = vld [vmem:[%s2534_s1 + $0x50] sm:$0xff] }
  0x10   : > { %v1828_v12 = vld [vmem:[%s2534_s1 + $0x8] sm:$0xff]  ;;  %v1827_v14 = vld [vmem:[%s2534_s1] sm:$0xff]  ;;  %v1578_v28 = vld [vmem:[%s2225_s26 + $0x10] sm:$0xf] }
  0x11   : > { %697 = vmatpush.bf16.msra.mxu0 %v1833_v2  ;;  %1939 = vmatpush.bf16.msra.mxu2 %v1833_v2  ;;  %v1836_v13 = vld [vmem:[%s2534_s1 + $0x48] sm:$0xff]  ;;  %v1835_v15 = vld [vmem:[%s2534_s1 + $0x40] sm:$0xff]  ;;  %v1798_v29 = vld [vmem:[%s2225_s26 + $0x14] sm:$0xf0] }
  0x12   : > { %786 = vmatpush.bf16.msra.mxu1 %v1841_v3  ;;  %1947 = vmatpush.bf16.msra.mxu3 %v1841_v3  ;;  %v1570_v16 = vld [vmem:[%s2225_s26] sm:$0xf]  ;;  %v1796_v17 = vld [vmem:[%s2225_s26 + $0x4] sm:$0xf0]  ;;  %v1795_v20 = vld [vmem:[%s2225_s26 + $0x4] sm:$0xf]  ;;  %v1579_v36 = vor.u32 %v1798_v29, %v1578_v28 }
  0x13   : > { %v1634_v18 = vld [vmem:[%s2225_s26 + $0x80] sm:$0xf]  ;;  %v1812_v19 = vld [vmem:[%s2225_s26 + $0x84] sm:$0xf0]  ;;  %v1572_v21 = vld [vmem:[%s2225_s26 + $0x8] sm:$0xf0]  ;;  %v1571_v24 = vor.u32 %v1796_v17, %v1570_v16 }
  0x14   : > { %v1811_v22 = vld [vmem:[%s2225_s26 + $0x84] sm:$0xf]  ;;  %v1636_v23 = vld [vmem:[%s2225_s26 + $0x88] sm:$0xf0]  ;;  %v1635_v25 = vor.u32 %v1812_v19, %v1634_v18  ;;  %v1575_v26 = vor.u32 %v1795_v20, %v1572_v21  ;;  %v1642_v30 = vld [vmem:[%s2225_s26 + $0x90] sm:$0xf] }
  0x15   : > { %698 = vmatpush.bf16.msra.mxu0 %v1832_v4  ;;  %1940 = vmatpush.bf16.msra.mxu2 %v1832_v4  ;;  %v1639_v27 = vor.u32 %v1811_v22, %v1636_v23  ;;  %v1814_v31 = vld [vmem:[%s2225_s26 + $0x94] sm:$0xf0]  ;;  %v1797_v32 = vld [vmem:[%s2225_s26 + $0x14] sm:$0xf]  ;;  %v1580_v33 = vld [vmem:[%s2225_s26 + $0x18] sm:$0xf0] }
  0x16   : > { %787 = vmatpush.bf16.msra.mxu1 %v1840_v5  ;;  %1948 = vmatpush.bf16.msra.mxu3 %v1840_v5  ;;  %v1813_v34 = vld [vmem:[%s2225_s26 + $0x94] sm:$0xf]  ;;  %v1644_v35 = vld [vmem:[%s2225_s26 + $0x98] sm:$0xf0]  ;;  %v1643_v37 = vor.u32 %v1814_v31, %v1642_v30  ;;  %v1583_v38 = vor.u32 %v1797_v32, %v1580_v33  ;;  %v1586_v40 = vld [vmem:[%s2225_s26 + $0x20] sm:$0xf] }
  0x17   : > { %v1647_v39 = vor.u32 %v1813_v34, %v1644_v35  ;;  %v1800_v41 = vld [vmem:[%s2225_s26 + $0x24] sm:$0xf0]  ;;  %v1650_v42 = vld [vmem:[%s2225_s26 + $0xa0] sm:$0xf]  ;;  %v1799_v44 = vld [vmem:[%s2225_s26 + $0x24] sm:$0xf] }
  0x18   : > { %v1816_v43 = vld [vmem:[%s2225_s26 + $0xa4] sm:$0xf0]  ;;  %v1588_v45 = vld [vmem:[%s2225_s26 + $0x28] sm:$0xf0]  ;;  %v1815_v46 = vld [vmem:[%s2225_s26 + $0xa4] sm:$0xf]  ;;  %v1587_v48 = vor.u32 %v1800_v41, %v1586_v40 }
  0x19   : > { %699 = vmatpush.bf16.msra.mxu0 %v1831_v6  ;;  %1941 = vmatpush.bf16.msra.mxu2 %v1831_v6  ;;  %v1652_v47 = vld [vmem:[%s2225_s26 + $0xa8] sm:$0xf0]  ;;  %v1651_v49 = vor.u32 %v1816_v43, %v1650_v42  ;;  %v1591_v50 = vor.u32 %v1799_v44, %v1588_v45  ;;  %v1594_v52 = vld [vmem:[%s2225_s26 + $0x30] sm:$0xf]  ;;  %v1802_v53 = vld [vmem:[%s2225_s26 + $0x34] sm:$0xf0] }
  0x1a   : > { %788 = vmatpush.bf16.msra.mxu1 %v1839_v7  ;;  %1949 = vmatpush.bf16.msra.mxu3 %v1839_v7  ;;  %v1655_v51 = vor.u32 %v1815_v46, %v1652_v47  ;;  %v1658_v54 = vld [vmem:[%s2225_s26 + $0xb0] sm:$0xf]  ;;  %v1818_v55 = vld [vmem:[%s2225_s26 + $0xb4] sm:$0xf0]  ;;  %v1801_v56 = vld [vmem:[%s2225_s26 + $0x34] sm:$0xf]  ;;  %v1595_v60 = vor.u32 %v1802_v53, %v1594_v52 }
  0x1b   : > { %v1596_v57 = vld [vmem:[%s2225_s26 + $0x38] sm:$0xf0]  ;;  %v1817_v58 = vld [vmem:[%s2225_s26 + $0xb4] sm:$0xf]  ;;  %v1659_v61 = vor.u32 %v1818_v55, %v1658_v54  ;;  %v1602_v0 = vld [vmem:[%s2225_s26 + $0x40] sm:$0xf] }
  0x1c   : > { %v1660_v59 = vld [vmem:[%s2225_s26 + $0xb8] sm:$0xf0]  ;;  %v1599_v62 = vor.u32 %v1801_v56, %v1596_v57  ;;  %v1804_v1 = vld [vmem:[%s2225_s26 + $0x44] sm:$0xf0]  ;;  %v1666_v2 = vld [vmem:[%s2225_s26 + $0xc0] sm:$0xf] }
  0x1d   : > { %700 = vmatpush.bf16.msra.mxu0 %v1830_v8  ;;  %1942 = vmatpush.bf16.msra.mxu2 %v1830_v8  ;;  %v1663_v63 = vor.u32 %v1817_v58, %v1660_v59  ;;  %v1820_v3 = vld [vmem:[%s2225_s26 + $0xc4] sm:$0xf0]  ;;  %v1803_v4 = vld [vmem:[%s2225_s26 + $0x44] sm:$0xf]  ;;  %v1604_v5 = vld [vmem:[%s2225_s26 + $0x48] sm:$0xf0]  ;;  %v1603_v8 = vor.u32 %v1804_v1, %v1602_v0 }
  0x1e   : > { %789 = vmatpush.bf16.msra.mxu1 %v1838_v9  ;;  %1950 = vmatpush.bf16.msra.mxu3 %v1838_v9  ;;  %v1819_v6 = vld [vmem:[%s2225_s26 + $0xc4] sm:$0xf]  ;;  %v1668_v7 = vld [vmem:[%s2225_s26 + $0xc8] sm:$0xf0]  ;;  %v1667_v9 = vor.u32 %v1820_v3, %v1666_v2  ;;  %v1805_v16 = vld [vmem:[%s2225_s26 + $0x54] sm:$0xf] }
  0x1f   : > { %v1612_v17 = vld [vmem:[%s2225_s26 + $0x58] sm:$0xf0]  ;;  %v1821_v18 = vld [vmem:[%s2225_s26 + $0xd4] sm:$0xf]  ;;  %v1807_v28 = vld [vmem:[%s2225_s26 + $0x64] sm:$0xf] }
  0x20   : > { %v1676_v19 = vld [vmem:[%s2225_s26 + $0xd8] sm:$0xf0]  ;;  %v1615_v22 = vor.u32 %v1805_v16, %v1612_v17  ;;  %v1620_v29 = vld [vmem:[%s2225_s26 + $0x68] sm:$0xf0]  ;;  %v1823_v30 = vld [vmem:[%s2225_s26 + $0xe4] sm:$0xf] }
  0x21   : > { %701 = vmatpush.bf16.msra.mxu0 %v1829_v10  ;;  %1943 = vmatpush.bf16.msra.mxu2 %v1829_v10  ;;  %v1607_v10 = vor.u32 %v1803_v4, %v1604_v5  ;;  %v1679_v23 = vor.u32 %v1821_v18, %v1676_v19  ;;  %v1684_v31 = vld [vmem:[%s2225_s26 + $0xe8] sm:$0xf0]  ;;  %v1623_v34 = vor.u32 %v1807_v28, %v1620_v29  ;;  %v1809_v40 = vld [vmem:[%s2225_s26 + $0x74] sm:$0xf]  ;;  %v1628_v41 = vld [vmem:[%s2225_s26 + $0x78] sm:$0xf0] }
  0x22   : > { %790 = vmatpush.bf16.msra.mxu1 %v1837_v11  ;;  %1951 = vmatpush.bf16.msra.mxu3 %v1837_v11  ;;  %v1671_v11 = vor.u32 %v1819_v6, %v1668_v7  ;;  %v1687_v35 = vor.u32 %v1823_v30, %v1684_v31  ;;  %v1825_v42 = vld [vmem:[%s2225_s26 + $0xf4] sm:$0xf]  ;;  %v1692_v43 = vld [vmem:[%s2225_s26 + $0xf8] sm:$0xf0]  ;;  %v1631_v46 = vor.u32 %v1809_v40, %v1628_v41  ;;  %v2308_v52 = vld [vmem:[%s2536_s3] ss:$0 sm:$0xff] }
  0x23   : > { %v1695_v47 = vor.u32 %v1825_v42, %v1692_v43 }
  0x25   : > { %702 = vmatpush.bf16.msra.mxu0 %v1828_v12  ;;  %1944 = vmatpush.bf16.msra.mxu2 %v1828_v12  ;;  %v1610_v12 = vld [vmem:[%s2225_s26 + $0x50] sm:$0xf] }
  0x26   : > { %791 = vmatpush.bf16.msra.mxu1 %v1836_v13  ;;  %1952 = vmatpush.bf16.msra.mxu3 %v1836_v13  ;;  %v1806_v13 = vld [vmem:[%s2225_s26 + $0x54] sm:$0xf0] }
  0x27   : > { %v1611_v20 = vor.u32 %v1806_v13, %v1610_v12 }
  0x29   : > { %703 = vmatpush.bf16.msra.mxu0 %v1827_v14  ;;  %1945 = vmatpush.bf16.msra.mxu2 %v1827_v14  ;;  %v1674_v14 = vld [vmem:[%s2225_s26 + $0xd0] sm:$0xf] }
  0x2a   : > { %792 = vmatpush.bf16.msra.mxu1 %v1835_v15  ;;  %1953 = vmatpush.bf16.msra.mxu3 %v1835_v15  ;;  %v1822_v15 = vld [vmem:[%s2225_s26 + $0xd4] sm:$0xf0] }
  0x2b   : > { %v1675_v21 = vor.u32 %v1822_v15, %v1674_v14 }
  0x2c   : > { %704 = vmatmul.bf16.vlgmr.msra.gmra.mxu0 %v1571_v24  ;;  %744 = vmatmul.bf16.vlgmr.msra.gmra.mxu2 %v1635_v25  ;;  %v1618_v24 = vld [vmem:[%s2225_s26 + $0x60] sm:$0xf]  ;;  %v1808_v25 = vld [vmem:[%s2225_s26 + $0x64] sm:$0xf0] }
  0x2d   : > { %793 = vmatmul.bf16.vlgmr.msra.gmra.mxu1 %v1575_v26  ;;  %833 = vmatmul.bf16.vlgmr.msra.gmra.mxu3 %v1639_v27  ;;  %v1682_v26 = vld [vmem:[%s2225_s26 + $0xe0] sm:$0xf]  ;;  %v1824_v27 = vld [vmem:[%s2225_s26 + $0xe4] sm:$0xf0]  ;;  %v1619_v32 = vor.u32 %v1808_v25, %v1618_v24 }
  0x2e   : > { %v1683_v33 = vor.u32 %v1824_v27, %v1682_v26 }
  0x3c   : > { %709 = vmatmul.bf16.gmra.mxu0 %v1579_v36  ;;  %749 = vmatmul.bf16.gmra.mxu2 %v1643_v37  ;;  %v1626_v36 = vld [vmem:[%s2225_s26 + $0x70] sm:$0xf]  ;;  %v1810_v37 = vld [vmem:[%s2225_s26 + $0x74] sm:$0xf0] }
  0x3d   : > { %798 = vmatmul.bf16.gmra.mxu1 %v1583_v38  ;;  %838 = vmatmul.bf16.gmra.mxu3 %v1647_v39  ;;  %v1690_v38 = vld [vmem:[%s2225_s26 + $0xf0] sm:$0xf]  ;;  %v1826_v39 = vld [vmem:[%s2225_s26 + $0xf4] sm:$0xf0]  ;;  %v1627_v44 = vor.u32 %v1810_v37, %v1626_v36 }
  0x3e   : > { %v1691_v45 = vor.u32 %v1826_v39, %v1690_v38 }
  0x4c   : > { %714 = vmatmul.bf16.gmra.mxu0 %v1587_v48  ;;  %754 = vmatmul.bf16.gmra.mxu2 %v1651_v49  ;;  %v2303_v49 = vld [vmem:[%s2535_s2] ss:$0 sm:$0xff] }
  0x4d   : > { %803 = vmatmul.bf16.gmra.mxu1 %v1591_v50  ;;  %843 = vmatmul.bf16.gmra.mxu3 %v1655_v51 }
  0x5c   : > { %719 = vmatmul.bf16.gmra.mxu0 %v1595_v60  ;;  %759 = vmatmul.bf16.gmra.mxu2 %v1659_v61 }
  0x5d   : > { %808 = vmatmul.bf16.gmra.mxu1 %v1599_v62  ;;  %848 = vmatmul.bf16.gmra.mxu3 %v1663_v63 }
  0x6c   : > { %724 = vmatmul.bf16.gmra.mxu0 %v1603_v8  ;;  %764 = vmatmul.bf16.gmra.mxu2 %v1667_v9 }
  0x6d   : > { %813 = vmatmul.bf16.gmra.mxu1 %v1607_v10  ;;  %853 = vmatmul.bf16.gmra.mxu3 %v1671_v11 }
  0x7c   : > { %729 = vmatmul.bf16.gmra.mxu0 %v1611_v20  ;;  %769 = vmatmul.bf16.gmra.mxu2 %v1675_v21 }
  0x7d   : > { %818 = vmatmul.bf16.gmra.mxu1 %v1615_v22  ;;  %858 = vmatmul.bf16.gmra.mxu3 %v1679_v23 }
  0x8c   : > { %734 = vmatmul.bf16.gmra.mxu0 %v1619_v32  ;;  %774 = vmatmul.bf16.gmra.mxu2 %v1683_v33 }
  0x8d   : > { %823 = vmatmul.bf16.gmra.mxu1 %v1623_v34  ;;  %863 = vmatmul.bf16.gmra.mxu3 %v1687_v35 }
  0x9c   : > { %739 = vmatmul.bf16.gmra.mxu0 %v1627_v44  ;;  %779 = vmatmul.bf16.gmra.mxu2 %v1691_v45 }
  0x9d   : > { %828 = vmatmul.bf16.gmra.mxu1 %v1631_v46  ;;  %868 = vmatmul.bf16.gmra.mxu3 %v1695_v47 }
  0xa9   : > { %v705_v48 = vpop.f32.mrf.mxu0 }
  0xaa   : > { %v794_v50 = vpop.f32.mrf.mxu1 }
  0xab   : > { %v795_v51 = vadd.f32 %v794_v50, %v705_v48 }
  0xad   : > { %v977_v53 = vmul.f32 %v2303_v49, %v795_v51 }
  0xaf   : > { %v2312_v54 = vadd.f32 %v2308_v52, %v977_v53  ;;  %v745_v55 = vpop.f32.mrf.mxu2 }
  0xb0   : > { %v834_v56 = vpop.f32.mrf.mxu3 }
  0xb1   : > { %v1045_v57 = vmin.f32 %v2312_v54, 20.0  ;;  %v835_v58 = vadd.f32 %v834_v56, %v745_v55  ;;  %v707_v59 = vpop.f32.mrf.mxu0 }
  0xb2   : > { %v796_v60 = vpop.f32.mrf.mxu1 }
  0xb3   : > { %v1077_v61 = vmul.f32 1.442695, %v1045_v57  ;;  %v993_v62 = vmul.f32 %v2303_v49, %v835_v58  ;;  %v797_v63 = vadd.f32 %v796_v60, %v707_v59 }
  0xb5   : > { %1980 = vpow2.f32 %v1077_v61  ;;  %v2317_v0 = vadd.f32 %v2308_v52, %v993_v62  ;;  %v978_v1 = vmul.f32 %v2303_v49, %v797_v63 }
  0xb7   : > { %v1061_v2 = vmin.f32 %v2317_v0, 20.0  ;;  %v2322_v3 = vadd.f32 %v2308_v52, %v978_v1  ;;  %v747_v4 = vpop.f32.mrf.mxu2 }
  0xb8   : > { %v836_v5 = vpop.f32.mrf.mxu3 }
  0xb9   : > { %v1109_v6 = vmul.f32 1.442695, %v1061_v2  ;;  %v1046_v7 = vmin.f32 %v2322_v3, 20.0  ;;  %v837_v8 = vadd.f32 %v836_v5, %v747_v4  ;;  %v710_v9 = vpop.f32.mrf.mxu0 }
  0xba   : > { %v799_v10 = vpop.f32.mrf.mxu1 }
  0xbb   : > { %v1981_v11 = vpop.eup %1980  ;;  %1982 = vpow2.f32 %v1109_v6  ;;  %v1079_v12 = vmul.f32 1.442695, %v1046_v7  ;;  %v994_v13 = vmul.f32 %v2303_v49, %v837_v8  ;;  %v800_v14 = vadd.f32 %v799_v10, %v710_v9 }
  0xbc   : > { %v1141_v15 = vadd.f32 1.0, %v1981_v11 }
  0xbd   : > { %1984 = vpow2.f32 %v1079_v12  ;;  %v2327_v16 = vadd.f32 %v2308_v52, %v994_v13  ;;  %v979_v17 = vmul.f32 %v2303_v49, %v800_v14 }
  0xbe   : > { %v1173_v18 = vmul.f32 %v1141_v15, %v1141_v15 }
  0xbf   : > { %v1062_v19 = vmin.f32 %v2327_v16, 20.0  ;;  %v2332_v20 = vadd.f32 %v2308_v52, %v979_v17  ;;  %v750_v21 = vpop.f32.mrf.mxu2 }
  0xc0   : > { %v839_v22 = vpop.f32.mrf.mxu3  ;;  %v1269_v28 = vadd.f32 1.0, %v1173_v18  ;;  %v1760_v46 = vadd.f32 -1.0, %v1173_v18 }
  0xc1   : > { %v1983_v23 = vpop.eup %1982  ;;  %v1111_v24 = vmul.f32 1.442695, %v1062_v19  ;;  %v1047_v25 = vmin.f32 %v2332_v20, 20.0  ;;  %v840_v26 = vadd.f32 %v839_v22, %v750_v21  ;;  %v712_v27 = vpop.f32.mrf.mxu0 }
  0xc2   : > { %v1157_v29 = vadd.f32 1.0, %v1983_v23  ;;  %v801_v30 = vpop.f32.mrf.mxu1  ;;  %v1237_v5 = vmul.f32 %v1760_v46, %v2312_v54 }
  0xc3   : > { %v1985_v31 = vpop.eup %1984  ;;  %1986 = vpow2.f32 %v1111_v24  ;;  %v1081_v32 = vmul.f32 1.442695, %v1047_v25  ;;  %v995_v33 = vmul.f32 %v2303_v49, %v840_v26  ;;  %v802_v34 = vadd.f32 %v801_v30, %v712_v27 }
  0xc4   : > { %v1142_v35 = vadd.f32 1.0, %v1985_v31  ;;  %v1189_v38 = vmul.f32 %v1157_v29, %v1157_v29 }
  0xc5   : > { %1988 = vpow2.f32 %v1081_v32  ;;  %v2337_v36 = vadd.f32 %v2308_v52, %v995_v33  ;;  %v980_v37 = vmul.f32 %v2303_v49, %v802_v34 }
  0xc6   : > { %v1174_v39 = vmul.f32 %v1142_v35, %v1142_v35  ;;  %1990 = vrcp.f32 %v1269_v28  ;;  %v1285_v53 = vadd.f32 1.0, %v1189_v38  ;;  %v1776_v14 = vadd.f32 -1.0, %v1189_v38 }
  0xc7   : > { %v1063_v40 = vmin.f32 %v2337_v36, 20.0  ;;  %v2342_v41 = vadd.f32 %v2308_v52, %v980_v37  ;;  %v752_v42 = vpop.f32.mrf.mxu2 }
  0xc8   : > { %v1270_v43 = vadd.f32 1.0, %v1174_v39  ;;  %v841_v44 = vpop.f32.mrf.mxu3  ;;  %v1761_v55 = vadd.f32 -1.0, %v1174_v39  ;;  %v1253_v33 = vmul.f32 %v1776_v14, %v2317_v0 }
  0xc9   : > { %v1987_v45 = vpop.eup %1986  ;;  %v1113_v47 = vmul.f32 1.442695, %v1063_v40  ;;  %v1048_v48 = vmin.f32 %v2342_v41, 20.0  ;;  %v842_v50 = vadd.f32 %v841_v44, %v752_v42  ;;  %v715_v51 = vpop.f32.mrf.mxu0 }
  0xca   : > { %1992 = vrcp.f32 %v1270_v43  ;;  %v1158_v56 = vadd.f32 1.0, %v1987_v45  ;;  %v804_v57 = vpop.f32.mrf.mxu1  ;;  %v1238_v8 = vmul.f32 %v1761_v55, %v2322_v3 }
  0xcb   : > { %v1989_v58 = vpop.eup %1988  ;;  %1994 = vpow2.f32 %v1113_v47  ;;  %v1083_v59 = vmul.f32 1.442695, %v1048_v48  ;;  %v996_v60 = vmul.f32 %v2303_v49, %v842_v50  ;;  %v805_v61 = vadd.f32 %v804_v57, %v715_v51 }
  0xcc   : > { %v1190_v62 = vmul.f32 %v1158_v56, %v1158_v56  ;;  %v1143_v63 = vadd.f32 1.0, %v1989_v58  ;;  %v1991_v1 = vpop.eup %1990 }
  0xcd   : > { %1996 = vpow2.f32 %v1083_v59  ;;  %v2347_v2 = vadd.f32 %v2308_v52, %v996_v60  ;;  %v981_v4 = vmul.f32 %v2303_v49, %v805_v61  ;;  %v1333_v13 = vmul.f32 %v1991_v1, %v1237_v5 }
  0xce   : > { %1998 = vrcp.f32 %v1285_v53  ;;  %v1286_v6 = vadd.f32 1.0, %v1190_v62  ;;  %v1175_v7 = vmul.f32 %v1143_v63, %v1143_v63  ;;  %v1777_v15 = vadd.f32 -1.0, %v1190_v62 }
  0xcf   : > { %v1064_v9 = vmin.f32 %v2347_v2, 20.0  ;;  %v2355_v10 = vadd.f32 %v2308_v52, %v981_v4  ;;  %v755_v11 = vpop.f32.mrf.mxu2 }
  0xd0   : > { %v1993_v12 = vpop.eup %1992  ;;  %2000 = vrcp.f32 %v1286_v6  ;;  %v844_v17 = vpop.f32.mrf.mxu3  ;;  %v1271_v3 = vadd.f32 1.0, %v1175_v7  ;;  %v1254_v34 = vmul.f32 %v1777_v15, %v2327_v16  ;;  %v1762_v48 = vadd.f32 -1.0, %v1175_v7 }
  0xd1   : > { %v1995_v18 = vpop.eup %1994  ;;  %v1334_v54 = vmul.f32 %v1993_v12, %v1238_v8  ;;  %v1115_v19 = vmul.f32 1.442695, %v1064_v9  ;;  %v1049_v21 = vmin.f32 %v2355_v10, 20.0  ;;  %v845_v22 = vadd.f32 %v844_v17, %v755_v11  ;;  %v717_v23 = vpop.f32.mrf.mxu0 }
  0xd2   : > { %v1159_v24 = vadd.f32 1.0, %v1995_v18  ;;  %v806_v25 = vpop.f32.mrf.mxu1  ;;  %v1239_v5 = vmul.f32 %v1762_v48, %v2332_v20 }
  0xd3   : > { %v1997_v26 = vpop.eup %1996  ;;  %v1846_v27 = vpack.c.bf16 %v1334_v54, %v1333_v13  ;;  %2002 = vpow2.f32 %v1115_v19  ;;  %v1085_v28 = vmul.f32 1.442695, %v1049_v21  ;;  %v997_v29 = vmul.f32 %v2303_v49, %v845_v22 }
  0xd4   : > { %v1999_v30 = vpop.eup %1998  ;;  %v1144_v31 = vadd.f32 1.0, %v1997_v26  ;;  %v807_v32 = vadd.f32 %v806_v25, %v717_v23  ;;  %v1191_v38 = vmul.f32 %v1159_v24, %v1159_v24 }
  0xd5   : > { %1847 = vst [vmem:[%s2361_s14] sm:$0xff] %v1846_v27   ;;  %2004 = vpow2.f32 %v1085_v28  ;;  %v2368_v35 = vadd.f32 %v2308_v52, %v997_v29  ;;  %v1349_v42 = vmul.f32 %v1999_v30, %v1253_v33 }
  0xd6   : > { %v2001_v37 = vpop.eup %2000  ;;  %v1176_v39 = vmul.f32 %v1144_v31, %v1144_v31  ;;  %v982_v40 = vmul.f32 %v2303_v49, %v807_v32  ;;  %2006 = vrcp.f32 %v1271_v3  ;;  %v1287_v55 = vadd.f32 1.0, %v1191_v38 }
  0xd7   : > { %v1350_v43 = vmul.f32 %v2001_v37, %v1254_v34  ;;  %v1065_v44 = vmin.f32 %v2368_v35, 20.0  ;;  %v757_v45 = vpop.f32.mrf.mxu2  ;;  %v1778_v18 = vadd.f32 -1.0, %v1191_v38 }
  0xd8   : > { %v1272_v0 = vadd.f32 1.0, %v1176_v39  ;;  %v846_v46 = vpop.f32.mrf.mxu3  ;;  %v2373_v51 = vadd.f32 %v2308_v52, %v982_v40  ;;  %v1763_v60 = vadd.f32 -1.0, %v1176_v39 }
  0xd9   : > { %v2003_v47 = vpop.eup %2002  ;;  %v1886_v16 = vpack.c.bf16 %v1350_v43, %v1349_v42  ;;  %v1117_v50 = vmul.f32 1.442695, %v1065_v44  ;;  %v720_v53 = vpop.f32.mrf.mxu0  ;;  %v847_v57 = vadd.f32 %v846_v46, %v757_v45  ;;  %v1255_v34 = vmul.f32 %v1778_v18, %v2337_v36 }
  0xda   : > { %2008 = vrcp.f32 %v1272_v0  ;;  %v1160_v56 = vadd.f32 1.0, %v2003_v47  ;;  %v809_v58 = vpop.f32.mrf.mxu1  ;;  %v1050_v61 = vmin.f32 %v2373_v51, 20.0  ;;  %v1240_v12 = vmul.f32 %v1763_v60, %v2342_v41 }
  0xdb   : > { %v2005_v59 = vpop.eup %2004  ;;  %1930 = vst [vmem:[%s2361_s14 + $0x40] sm:$0xff] %v1886_v16   ;;  %2010 = vpow2.f32 %v1117_v50  ;;  %v810_v62 = vadd.f32 %v809_v58, %v720_v53  ;;  %v998_v1 = vmul.f32 %v2303_v49, %v847_v57 }
  0xdc   : > { %v1192_v63 = vmul.f32 %v1160_v56, %v1160_v56  ;;  %v2007_v4 = vpop.eup %2006  ;;  %v1087_v6 = vmul.f32 1.442695, %v1050_v61  ;;  %2012 = vrcp.f32 %v1287_v55  ;;  %v1145_v9 = vadd.f32 1.0, %v2005_v59 }
  0xdd   : > { %v983_v7 = vmul.f32 %v2303_v49, %v810_v62  ;;  %v2381_v11 = vadd.f32 %v2308_v52, %v998_v1  ;;  %v1335_v17 = vmul.f32 %v2007_v4, %v1239_v5 }
  0xde   : > { %v1288_v8 = vadd.f32 1.0, %v1192_v63  ;;  %2014 = vpow2.f32 %v1087_v6  ;;  %v1779_v20 = vadd.f32 -1.0, %v1192_v63  ;;  %v1177_v24 = vmul.f32 %v1145_v9, %v1145_v9 }
  0xdf   : > { %v2385_v13 = vadd.f32 %v2308_v52, %v983_v7  ;;  %v760_v14 = vpop.f32.mrf.mxu2  ;;  %v1066_v22 = vmin.f32 %v2381_v11, 20.0 }
  0xe0   : > { %v2009_v15 = vpop.eup %2008  ;;  %2016 = vrcp.f32 %v1288_v8  ;;  %v849_v54 = vpop.f32.mrf.mxu3  ;;  %v1256_v37 = vmul.f32 %v1779_v20, %v2347_v2  ;;  %v1273_v40 = vadd.f32 1.0, %v1177_v24  ;;  %v1764_v63 = vadd.f32 -1.0, %v1177_v24 }
  0xe1   : > { %v2011_v19 = vpop.eup %2010  ;;  %v1336_v21 = vmul.f32 %v2009_v15, %v1240_v12  ;;  %v1051_v23 = vmin.f32 %v2385_v13, 20.0  ;;  %v850_v3 = vadd.f32 %v849_v54, %v760_v14  ;;  %v722_v41 = vpop.f32.mrf.mxu0  ;;  %v1119_v28 = vmul.f32 1.442695, %v1066_v22 }
  0xe2   : > { %v1161_v25 = vadd.f32 1.0, %v2011_v19  ;;  %v811_v26 = vpop.f32.mrf.mxu1  ;;  %v2013_v31 = vpop.eup %2012  ;;  %v1241_v18 = vmul.f32 %v1764_v63, %v2355_v10 }
  0xe3   : > { %v1851_v27 = vpack.c.bf16 %v1336_v21, %v1335_v17  ;;  %v1089_v29 = vmul.f32 1.442695, %v1051_v23  ;;  %v999_v30 = vmul.f32 %v2303_v49, %v850_v3  ;;  %v812_v32 = vadd.f32 %v811_v26, %v722_v41 }
  0xe4   : > { %v2015_v33 = vpop.eup %2014  ;;  %2018 = vpow2.f32 %v1119_v28  ;;  %v1193_v42 = vmul.f32 %v1161_v25, %v1161_v25  ;;  %v1351_v44 = vmul.f32 %v2013_v31, %v1255_v34 }
  0xe5   : > { %1923 = vst [vmem:[%s2361_s14 + $0x8] sm:$0xff] %v1851_v27   ;;  %v2394_v38 = vadd.f32 %v2308_v52, %v999_v30  ;;  %v1146_v43 = vadd.f32 1.0, %v2015_v33  ;;  %2020 = vpow2.f32 %v1089_v29  ;;  %v984_v46 = vmul.f32 %v2303_v49, %v812_v32 }
  0xe6   : > { %v2017_v39 = vpop.eup %2016  ;;  %2022 = vrcp.f32 %v1273_v40  ;;  %v1289_v55 = vadd.f32 1.0, %v1193_v42  ;;  %v1780_v22 = vadd.f32 -1.0, %v1193_v42 }
  0xe7   : > { %v1352_v45 = vmul.f32 %v2017_v39, %v1256_v37  ;;  %v1067_v0 = vmin.f32 %v2394_v38, 20.0  ;;  %v762_v36 = vpop.f32.mrf.mxu2  ;;  %v1178_v47 = vmul.f32 %v1146_v43, %v1146_v43  ;;  %v2399_v50 = vadd.f32 %v2308_v52, %v984_v46 }
  0xe8   : > { %v851_v16 = vpop.f32.mrf.mxu3  ;;  %v1257_v39 = vmul.f32 %v1780_v22, %v2368_v35 }
  0xe9   : > { %v1891_v2 = vpack.c.bf16 %v1352_v45, %v1351_v44  ;;  %v1121_v48 = vmul.f32 1.442695, %v1067_v0  ;;  %v725_v53 = vpop.f32.mrf.mxu0  ;;  %v1274_v56 = vadd.f32 1.0, %v1178_v47  ;;  %v852_v57 = vadd.f32 %v851_v16, %v762_v36 }
  0xea   : > { %v814_v58 = vpop.f32.mrf.mxu1  ;;  %v2019_v59 = vpop.eup %2018  ;;  %v1052_v60 = vmin.f32 %v2399_v50, 20.0  ;;  %v1765_v5 = vadd.f32 -1.0, %v1178_v47 }
  0xeb   : > { %1931 = vst [vmem:[%s2361_s14 + $0x48] sm:$0xff] %v1891_v2   ;;  %2024 = vpow2.f32 %v1121_v48  ;;  %v815_v61 = vadd.f32 %v814_v58, %v725_v53  ;;  %v2021_v62 = vpop.eup %2020  ;;  %v1162_v1 = vadd.f32 1.0, %v2019_v59  ;;  %v1000_v4 = vmul.f32 %v2303_v49, %v852_v57 }
  0xec   : > { %2026 = vrcp.f32 %v1274_v56  ;;  %v1091_v6 = vmul.f32 1.442695, %v1052_v60  ;;  %v1147_v9 = vadd.f32 1.0, %v2021_v62  ;;  %v2023_v17 = vpop.eup %2022  ;;  %v1242_v23 = vmul.f32 %v1765_v5, %v2373_v51 }
  0xed   : > { %v985_v7 = vmul.f32 %v2303_v49, %v815_v61  ;;  %2028 = vrcp.f32 %v1289_v55  ;;  %v1194_v8 = vmul.f32 %v1162_v1, %v1162_v1  ;;  %v2406_v12 = vadd.f32 %v2308_v52, %v1000_v4 }
  0xee   : > { %2030 = vpow2.f32 %v1091_v6  ;;  %v1179_v26 = vmul.f32 %v1147_v9, %v1147_v9  ;;  %v1337_v30 = vmul.f32 %v2023_v17, %v1241_v18 }
  0xef   : > { %v2409_v14 = vadd.f32 %v2308_v52, %v985_v7  ;;  %v765_v15 = vpop.f32.mrf.mxu2  ;;  %v1290_v20 = vadd.f32 1.0, %v1194_v8  ;;  %v1068_v54 = vmin.f32 %v2406_v12, 20.0  ;;  %v1781_v31 = vadd.f32 -1.0, %v1194_v8 }
  0xf0   : > { %v854_v19 = vpop.f32.mrf.mxu3  ;;  %v1275_v42 = vadd.f32 1.0, %v1179_v26  ;;  %v1766_v55 = vadd.f32 -1.0, %v1179_v26 }
  0xf1   : > { %v2025_v21 = vpop.eup %2024  ;;  %v1053_v3 = vmin.f32 %v2409_v14, 20.0  ;;  %v855_v41 = vadd.f32 %v854_v19, %v765_v15  ;;  %v727_v24 = vpop.f32.mrf.mxu0  ;;  %2032 = vrcp.f32 %v1290_v20  ;;  %v1123_v28 = vmul.f32 1.442695, %v1068_v54 }
  0xf2   : > { %v2027_v25 = vpop.eup %2026  ;;  %v1163_v27 = vadd.f32 1.0, %v2025_v21  ;;  %v816_v29 = vpop.f32.mrf.mxu1  ;;  %v1258_v0 = vmul.f32 %v1781_v31, %v2381_v11  ;;  %v1243_v22 = vmul.f32 %v1766_v55, %v2385_v13 }
  0xf3   : > { %v1338_v10 = vmul.f32 %v2027_v25, %v1242_v23  ;;  %v1093_v32 = vmul.f32 1.442695, %v1053_v3  ;;  %v2029_v33 = vpop.eup %2028  ;;  %2034 = vpow2.f32 %v1123_v28  ;;  %v1001_v34 = vmul.f32 %v2303_v49, %v855_v41 }
  0xf4   : > { %v817_v51 = vadd.f32 %v816_v29, %v727_v24  ;;  %v2031_v37 = vpop.eup %2030  ;;  %v1195_v43 = vmul.f32 %v1163_v27, %v1163_v27  ;;  %v1353_v16 = vmul.f32 %v2029_v33, %v1257_v39 }
  0xf5   : > { %v1856_v40 = vpack.c.bf16 %v1338_v10, %v1337_v30  ;;  %2036 = vpow2.f32 %v1093_v32  ;;  %v1148_v44 = vadd.f32 1.0, %v2031_v37  ;;  %v2418_v45 = vadd.f32 %v2308_v52, %v1001_v34 }
  0xf6   : > { %v986_v46 = vmul.f32 %v2303_v49, %v817_v51  ;;  %2038 = vrcp.f32 %v1275_v42  ;;  %v1291_v11 = vadd.f32 1.0, %v1195_v43  ;;  %v1782_v23 = vadd.f32 -1.0, %v1195_v43 }
  0xf7   : > { %1924 = vst [vmem:[%s2361_s14 + $0x10] sm:$0xff] %v1856_v40   ;;  %v767_v36 = vpop.f32.mrf.mxu2  ;;  %v2033_v47 = vpop.eup %2032  ;;  %v1180_v2 = vmul.f32 %v1148_v44, %v1148_v44  ;;  %v1069_v48 = vmin.f32 %v2418_v45, 20.0 }
  0xf8   : > { %v856_v35 = vpop.f32.mrf.mxu3  ;;  %v1354_v53 = vmul.f32 %v2033_v47, %v1258_v0  ;;  %v2425_v56 = vadd.f32 %v2308_v52, %v986_v46 }
  0xf9   : > { %v857_v57 = vadd.f32 %v856_v35, %v767_v36  ;;  %v730_v58 = vpop.f32.mrf.mxu0  ;;  %v2035_v59 = vpop.eup %2034  ;;  %v1276_v60 = vadd.f32 1.0, %v1180_v2  ;;  %v1125_v61 = vmul.f32 1.442695, %v1069_v48  ;;  %v1767_v7 = vadd.f32 -1.0, %v1180_v2 }
  0xfa   : > { %v819_v62 = vpop.f32.mrf.mxu1  ;;  %v1896_v1 = vpack.c.bf16 %v1354_v53, %v1353_v16  ;;  %v1164_v4 = vadd.f32 1.0, %v2035_v59  ;;  %v1054_v5 = vmin.f32 %v2425_v56, 20.0 }
  0xfb   : > { %v2037_v63 = vpop.eup %2036  ;;  %v1002_v6 = vmul.f32 %v2303_v49, %v857_v57  ;;  %2040 = vrcp.f32 %v1276_v60  ;;  %v820_v9 = vadd.f32 %v819_v62, %v730_v58  ;;  %v1244_v25 = vmul.f32 %v1767_v7, %v2399_v50 }
  0xfc   : > { %v1149_v8 = vadd.f32 1.0, %v2037_v63  ;;  %1932 = vst [vmem:[%s2361_s14 + $0x50] sm:$0xff] %v1896_v1   ;;  %v1196_v15 = vmul.f32 %v1164_v4, %v1164_v4  ;;  %2042 = vpow2.f32 %v1125_v61  ;;  %v1095_v17 = vmul.f32 1.442695, %v1054_v5  ;;  %v2039_v21 = vpop.eup %2038 }
  0xfd   : > { %v2431_v18 = vadd.f32 %v2308_v52, %v1002_v6  ;;  %2044 = vrcp.f32 %v1291_v11  ;;  %v987_v20 = vmul.f32 %v2303_v49, %v820_v9  ;;  %v1339_v33 = vmul.f32 %v2039_v21, %v1243_v22 }
  0xfe   : > { %v1292_v54 = vadd.f32 1.0, %v1196_v15  ;;  %2046 = vpow2.f32 %v1095_v17  ;;  %v1181_v26 = vmul.f32 %v1149_v8, %v1149_v8  ;;  %v1783_v30 = vadd.f32 -1.0, %v1196_v15 }
  0xff   : > { %v770_v19 = vpop.f32.mrf.mxu2  ;;  %v1070_v3 = vmin.f32 %v2431_v18, 20.0  ;;  %v2437_v41 = vadd.f32 %v2308_v52, %v987_v20  ;;  %v1259_v50 = vmul.f32 %v1782_v23, %v2394_v38 }
 0x100   : > { %v859_v24 = vpop.f32.mrf.mxu3  ;;  %2048 = vrcp.f32 %v1292_v54  ;;  %v1277_v0 = vadd.f32 1.0, %v1181_v26  ;;  %v1260_v47 = vmul.f32 %v1783_v30, %v2406_v12  ;;  %v1768_v17 = vadd.f32 -1.0, %v1181_v26 }
 0x101   : > { %v860_v27 = vadd.f32 %v859_v24, %v770_v19  ;;  %v732_v28 = vpop.f32.mrf.mxu0  ;;  %v2041_v29 = vpop.eup %2040  ;;  %v1127_v10 = vmul.f32 1.442695, %v1070_v3  ;;  %v1055_v31 = vmin.f32 %v2437_v41, 20.0 }
 0x102   : > { %v821_v32 = vpop.f32.mrf.mxu1  ;;  %v2043_v13 = vpop.eup %2042  ;;  %v1340_v34 = vmul.f32 %v2041_v29, %v1244_v25  ;;  %v1245_v30 = vmul.f32 %v1768_v17, %v2409_v14 }
 0x103   : > { %v1003_v51 = vmul.f32 %v2303_v49, %v860_v27  ;;  %v822_v37 = vadd.f32 %v821_v32, %v732_v28  ;;  %v2045_v39 = vpop.eup %2044  ;;  %v1165_v40 = vadd.f32 1.0, %v2043_v13  ;;  %2050 = vpow2.f32 %v1127_v10 }
 0x104   : > { %v1097_v42 = vmul.f32 1.442695, %v1055_v31  ;;  %v2047_v43 = vpop.eup %2046  ;;  %v1861_v44 = vpack.c.bf16 %v1340_v34, %v1339_v33  ;;  %v1355_v55 = vmul.f32 %v2045_v39, %v1259_v50 }
 0x105   : > { %v2444_v46 = vadd.f32 %v2308_v52, %v1003_v51  ;;  %v988_v36 = vmul.f32 %v2303_v49, %v822_v37  ;;  %v1197_v16 = vmul.f32 %v1165_v40, %v1165_v40  ;;  %v1150_v2 = vadd.f32 1.0, %v2047_v43 }
 0x106   : > { %2052 = vpow2.f32 %v1097_v42  ;;  %v2049_v48 = vpop.eup %2048  ;;  %1925 = vst [vmem:[%s2361_s14 + $0x18] sm:$0xff] %v1861_v44  }
 0x107   : > { %v1071_v38 = vmin.f32 %v2444_v46, 20.0  ;;  %v2451_v35 = vadd.f32 %v2308_v52, %v988_v36  ;;  %v772_v53 = vpop.f32.mrf.mxu2  ;;  %v1356_v57 = vmul.f32 %v2049_v48, %v1260_v47  ;;  %v1182_v58 = vmul.f32 %v1150_v2, %v1150_v2 }
 0x108   : > { %v861_v59 = vpop.f32.mrf.mxu3  ;;  %2054 = vrcp.f32 %v1277_v0  ;;  %v1293_v1 = vadd.f32 1.0, %v1197_v16  ;;  %v1784_v10 = vadd.f32 -1.0, %v1197_v16 }
 0x109   : > { %v1129_v11 = vmul.f32 1.442695, %v1071_v38  ;;  %v1056_v60 = vmin.f32 %v2451_v35, 20.0  ;;  %v862_v12 = vadd.f32 %v861_v59, %v772_v53  ;;  %v735_v61 = vpop.f32.mrf.mxu0  ;;  %v2051_v62 = vpop.eup %2050  ;;  %v1901_v63 = vpack.c.bf16 %v1356_v57, %v1355_v55 }
 0x10a   : > { %v824_v4 = vpop.f32.mrf.mxu1  ;;  %v1278_v5 = vadd.f32 1.0, %v1182_v58  ;;  %v1166_v6 = vadd.f32 1.0, %v2051_v62  ;;  %v1769_v19 = vadd.f32 -1.0, %v1182_v58  ;;  %v1261_v2 = vmul.f32 %v1784_v10, %v2418_v45 }
 0x10b   : > { %2056 = vpow2.f32 %v1129_v11  ;;  %v1099_v7 = vmul.f32 1.442695, %v1056_v60  ;;  %1933 = vst [vmem:[%s2361_s14 + $0x58] sm:$0xff] %v1901_v63   ;;  %v1004_v9 = vmul.f32 %v2303_v49, %v862_v12  ;;  %v825_v15 = vadd.f32 %v824_v4, %v735_v61 }
 0x10c   : > { %v2053_v8 = vpop.eup %2052  ;;  %2058 = vrcp.f32 %v1278_v5  ;;  %v1198_v20 = vmul.f32 %v1166_v6, %v1166_v6  ;;  %v1246_v32 = vmul.f32 %v1769_v19, %v2425_v56 }
 0x10d   : > { %v1151_v54 = vadd.f32 1.0, %v2053_v8  ;;  %2060 = vpow2.f32 %v1099_v7  ;;  %v2457_v21 = vadd.f32 %v2308_v52, %v1004_v9  ;;  %v989_v22 = vmul.f32 %v2303_v49, %v825_v15 }
 0x10e   : > { %2062 = vrcp.f32 %v1293_v1  ;;  %v1294_v23 = vadd.f32 1.0, %v1198_v20  ;;  %v2055_v24 = vpop.eup %2054  ;;  %v1785_v13 = vadd.f32 -1.0, %v1198_v20 }
 0x10f   : > { %v775_v3 = vpop.f32.mrf.mxu2  ;;  %v1183_v25 = vmul.f32 %v1151_v54, %v1151_v54  ;;  %v1072_v27 = vmin.f32 %v2457_v21, 20.0  ;;  %v2462_v28 = vadd.f32 %v2308_v52, %v989_v22  ;;  %v1341_v43 = vmul.f32 %v2055_v24, %v1245_v30 }
 0x110   : > { %v864_v26 = vpop.f32.mrf.mxu3  ;;  %2064 = vrcp.f32 %v1294_v23  ;;  %v1262_v38 = vmul.f32 %v1785_v13, %v2431_v18 }
 0x111   : > { %v2057_v29 = vpop.eup %2056  ;;  %v737_v31 = vpop.f32.mrf.mxu0  ;;  %v1131_v33 = vmul.f32 1.442695, %v1072_v27  ;;  %v1057_v34 = vmin.f32 %v2462_v28, 20.0  ;;  %v865_v50 = vadd.f32 %v864_v26, %v775_v3  ;;  %v1279_v0 = vadd.f32 1.0, %v1183_v25 }
 0x112   : > { %v826_v51 = vpop.f32.mrf.mxu1  ;;  %v2059_v37 = vpop.eup %2058  ;;  %v1167_v39 = vadd.f32 1.0, %v2057_v29  ;;  %v1770_v4 = vadd.f32 -1.0, %v1183_v25 }
 0x113   : > { %v827_v40 = vadd.f32 %v826_v51, %v737_v31  ;;  %v2061_v42 = vpop.eup %2060  ;;  %v1342_v44 = vmul.f32 %v2059_v37, %v1246_v32  ;;  %v1101_v36 = vmul.f32 1.442695, %v1057_v34  ;;  %2066 = vpow2.f32 %v1131_v33 }
 0x114   : > { %v2063_v14 = vpop.eup %2062  ;;  %v1152_v47 = vadd.f32 1.0, %v2061_v42  ;;  %v1005_v56 = vmul.f32 %v2303_v49, %v865_v50  ;;  %v1199_v55 = vmul.f32 %v1167_v39, %v1167_v39  ;;  %v1247_v26 = vmul.f32 %v1770_v4, %v2437_v41 }
 0x115   : > { %v990_v16 = vmul.f32 %v2303_v49, %v827_v40  ;;  %v1866_v48 = vpack.c.bf16 %v1342_v44, %v1341_v43  ;;  %2068 = vpow2.f32 %v1101_v36  ;;  %v1357_v60 = vmul.f32 %v2063_v14, %v1261_v2 }
 0x116   : > { %v2065_v53 = vpop.eup %2064  ;;  %v1184_v57 = vmul.f32 %v1152_v47, %v1152_v47  ;;  %v2472_v58 = vadd.f32 %v2308_v52, %v1005_v56  ;;  %2070 = vrcp.f32 %v1279_v0  ;;  %v1295_v8 = vadd.f32 1.0, %v1199_v55 }
 0x117   : > { %v2475_v59 = vadd.f32 %v2308_v52, %v990_v16  ;;  %v777_v11 = vpop.f32.mrf.mxu2  ;;  %1926 = vst [vmem:[%s2361_s14 + $0x20] sm:$0xff] %v1866_v48   ;;  %v1358_v12 = vmul.f32 %v2065_v53, %v1262_v38  ;;  %v1786_v51 = vadd.f32 -1.0, %v1199_v55 }
 0x118   : > { %v866_v45 = vpop.f32.mrf.mxu3  ;;  %v1280_v61 = vadd.f32 1.0, %v1184_v57  ;;  %v1073_v18 = vmin.f32 %v2472_v58, 20.0  ;;  %v1771_v9 = vadd.f32 -1.0, %v1184_v57 }
 0x119   : > { %v1058_v62 = vmin.f32 %v2475_v59, 20.0  ;;  %v740_v63 = vpop.f32.mrf.mxu0  ;;  %v1906_v1 = vpack.c.bf16 %v1358_v12, %v1357_v60  ;;  %v867_v5 = vadd.f32 %v866_v45, %v777_v11  ;;  %v2067_v7 = vpop.eup %2066  ;;  %v1263_v55 = vmul.f32 %v1786_v51, %v2444_v46 }
 0x11a   : > { %v829_v6 = vpop.f32.mrf.mxu1  ;;  %2072 = vrcp.f32 %v1280_v61  ;;  %v1133_v15 = vmul.f32 1.442695, %v1073_v18  ;;  %v1168_v20 = vadd.f32 1.0, %v2067_v7  ;;  %v1248_v30 = vmul.f32 %v1771_v9, %v2451_v35 }
 0x11b   : > { %v2069_v17 = vpop.eup %2068  ;;  %1934 = vst [vmem:[%s2361_s14 + $0x60] sm:$0xff] %v1906_v1   ;;  %v1103_v54 = vmul.f32 1.442695, %v1058_v62  ;;  %v1006_v19 = vmul.f32 %v2303_v49, %v867_v5  ;;  %v830_v22 = vadd.f32 %v829_v6, %v740_v63 }
 0x11c   : > { %v1153_v23 = vadd.f32 1.0, %v2069_v17  ;;  %2074 = vpow2.f32 %v1133_v15  ;;  %v2071_v3 = vpop.eup %2070  ;;  %v1200_v24 = vmul.f32 %v1168_v20, %v1168_v20 }
 0x11d   : > { %2076 = vpow2.f32 %v1103_v54  ;;  %v2483_v25 = vadd.f32 %v2308_v52, %v1006_v19  ;;  %v991_v27 = vmul.f32 %v2303_v49, %v830_v22  ;;  %v1343_v34 = vmul.f32 %v2071_v3, %v1247_v26  ;;  %v2108_v22 = vld [vmem:[%s2535_s2] ss:$0 sm:$0xff] }
 0x11e   : > { %2078 = vrcp.f32 %v1295_v8  ;;  %v1296_v10 = vadd.f32 1.0, %v1200_v24  ;;  %v1185_v37 = vmul.f32 %v1153_v23, %v1153_v23  ;;  %v1787_v42 = vadd.f32 -1.0, %v1200_v24 }
 0x11f   : > { %v780_v29 = vpop.f32.mrf.mxu2  ;;  %v1074_v31 = vmin.f32 %v2483_v25, 20.0  ;;  %v2490_v32 = vadd.f32 %v2308_v52, %v991_v27 }
 0x120   : > { %v869_v13 = vpop.f32.mrf.mxu3  ;;  %v2073_v33 = vpop.eup %2072  ;;  %2080 = vrcp.f32 %v1296_v10  ;;  %v1281_v2 = vadd.f32 1.0, %v1185_v37  ;;  %v1264_v57 = vmul.f32 %v1787_v42, %v2457_v21  ;;  %v1772_v6 = vadd.f32 -1.0, %v1185_v37 }
 0x121   : > { %v870_v39 = vadd.f32 %v869_v13, %v780_v29  ;;  %v742_v50 = vpop.f32.mrf.mxu0  ;;  %v1344_v40 = vmul.f32 %v2073_v33, %v1248_v30  ;;  %v1135_v41 = vmul.f32 1.442695, %v1074_v31  ;;  %v1059_v44 = vmin.f32 %v2490_v32, 20.0  ;;  %v2109_v29 = vld [vmem:[%s2536_s3] ss:$0 sm:$0xff] }
 0x122   : > { %v831_v43 = vpop.f32.mrf.mxu1  ;;  %v2075_v35 = vpop.eup %2074  ;;  %v1249_v27 = vmul.f32 %v1772_v6, %v2462_v28 }
 0x123   : > { %v1007_v0 = vmul.f32 %v2303_v49, %v870_v39  ;;  %v2077_v36 = vpop.eup %2076  ;;  %v1871_v14 = vpack.c.bf16 %v1344_v40, %v1343_v34  ;;  %v1169_v47 = vadd.f32 1.0, %v2075_v35  ;;  %2082 = vpow2.f32 %v1135_v41 }
 0x124   : > { %v832_v56 = vadd.f32 %v831_v43, %v742_v50  ;;  %v2079_v16 = vpop.eup %2078  ;;  %v1154_v48 = vadd.f32 1.0, %v2077_v36  ;;  %v1105_v38 = vmul.f32 1.442695, %v1059_v44 }
 0x125   : > { %v2495_v53 = vadd.f32 %v2308_v52, %v1007_v0  ;;  %1927 = vst [vmem:[%s2361_s14 + $0x28] sm:$0xff] %v1871_v14   ;;  %v1201_v60 = vmul.f32 %v1169_v47, %v1169_v47  ;;  %v1359_v18 = vmul.f32 %v2079_v16, %v1263_v55 }
 0x126   : > { %v992_v11 = vmul.f32 %v2303_v49, %v832_v56  ;;  %v1186_v12 = vmul.f32 %v1154_v48, %v1154_v48  ;;  %2084 = vpow2.f32 %v1105_v38  ;;  %v2081_v61 = vpop.eup %2080 }
 0x127   : > { %v1075_v45 = vmin.f32 %v2495_v53, 20.0  ;;  %v1360_v63 = vmul.f32 %v2081_v61, %v1264_v57  ;;  %2086 = vrcp.f32 %v1281_v2  ;;  %v782_v4 = vpop.f32.mrf.mxu2  ;;  %v1297_v8 = vadd.f32 1.0, %v1201_v60 }
 0x128   : > { %v2503_v62 = vadd.f32 %v2308_v52, %v992_v11  ;;  %v1282_v1 = vadd.f32 1.0, %v1186_v12  ;;  %v871_v5 = vpop.f32.mrf.mxu3  ;;  %v1773_v15 = vadd.f32 -1.0, %v1186_v12  ;;  %v1788_v31 = vadd.f32 -1.0, %v1201_v60 }
 0x129   : > { %v1137_v46 = vmul.f32 1.442695, %v1075_v45  ;;  %v2083_v21 = vpop.eup %2082  ;;  %v1911_v7 = vpack.c.bf16 %v1360_v63, %v1359_v18  ;;  %v872_v52 = vadd.f32 %v871_v5, %v782_v4 }
 0x12a   : > { %v1060_v49 = vmin.f32 %v2503_v62, 20.0  ;;  %2088 = vrcp.f32 %v1282_v1  ;;  %v1170_v9 = vadd.f32 1.0, %v2083_v21  ;;  %v1250_v26 = vmul.f32 %v1773_v15, %v2475_v59 }
 0x12b   : > { %2090 = vpow2.f32 %v1137_v46  ;;  %1935 = vst [vmem:[%s2361_s14 + $0x68] sm:$0xff] %v1911_v7   ;;  %v1008_v23 = vmul.f32 %v2108_v22, %v872_v52  ;;  %v1265_v35 = vmul.f32 %v1788_v31, %v2472_v58 }
 0x12c   : > { %v1107_v17 = vmul.f32 1.442695, %v1060_v49  ;;  %v2085_v20 = vpop.eup %2084  ;;  %v1202_v54 = vmul.f32 %v1170_v9, %v1170_v9 }
 0x12d   : > { %v1155_v19 = vadd.f32 1.0, %v2085_v20  ;;  %v2087_v3 = vpop.eup %2086  ;;  %v1044_v30 = vadd.f32 %v2109_v29, %v1008_v23 }
 0x12e   : > { %2092 = vpow2.f32 %v1107_v17  ;;  %v1298_v24 = vadd.f32 1.0, %v1202_v54  ;;  %v1345_v34 = vmul.f32 %v2087_v3, %v1249_v27  ;;  %v1789_v37 = vadd.f32 -1.0, %v1202_v54 }
 0x12f   : > { %2094 = vrcp.f32 %v1297_v8  ;;  %v1187_v13 = vmul.f32 %v1155_v19, %v1155_v19  ;;  %v1076_v39 = vmin.f32 %v1044_v30, 20.0 }
 0x130   : > { %v2089_v10 = vpop.eup %2088  ;;  %2096 = vrcp.f32 %v1298_v24  ;;  %v1266_v44 = vmul.f32 %v1789_v37, %v2483_v25 }
 0x131   : > { %v2091_v33 = vpop.eup %2090  ;;  %v1346_v51 = vmul.f32 %v2089_v10, %v1250_v26  ;;  %v1139_v28 = vmul.f32 1.442695, %v1076_v39  ;;  %v1283_v59 = vadd.f32 1.0, %v1187_v13  ;;  %v1774_v38 = vadd.f32 -1.0, %v1187_v13 }
 0x132   : > { %v1171_v41 = vadd.f32 1.0, %v2091_v33 }
 0x133   : > { %v1876_v40 = vpack.c.bf16 %v1346_v51, %v1345_v34  ;;  %2098 = vpow2.f32 %v1139_v28  ;;  %v1251_v25 = vmul.f32 %v1774_v38, %v2490_v32 }
 0x134   : > { %v2093_v50 = vpop.eup %2092  ;;  %2100 = vrcp.f32 %v1283_v59  ;;  %v1203_v56 = vmul.f32 %v1171_v41, %v1171_v41 }
 0x135   : > { %v2095_v42 = vpop.eup %2094  ;;  %v1156_v43 = vadd.f32 1.0, %v2093_v50  ;;  %1928 = vst [vmem:[%s2361_s14 + $0x30] sm:$0xff] %v1876_v40  }
 0x136   : > { %v2097_v0 = vpop.eup %2096  ;;  %v1361_v14 = vmul.f32 %v2095_v42, %v1265_v35  ;;  %v1299_v57 = vadd.f32 1.0, %v1203_v56  ;;  %v1790_v1 = vadd.f32 -1.0, %v1203_v56 }
 0x137   : > { %v1188_v36 = vmul.f32 %v1156_v43, %v1156_v43  ;;  %v1362_v47 = vmul.f32 %v2097_v0, %v1266_v44 }
 0x138   : > { %v1267_v21 = vmul.f32 %v1790_v1, %v2495_v53 }
 0x139   : > { %v1284_v16 = vadd.f32 1.0, %v1188_v36  ;;  %v1916_v2 = vpack.c.bf16 %v1362_v47, %v1361_v14  ;;  %v2099_v48 = vpop.eup %2098  ;;  %v1775_v55 = vadd.f32 -1.0, %v1188_v36 }
 0x13a   : > { %v1172_v58 = vadd.f32 1.0, %v2099_v48  ;;  %v2101_v11 = vpop.eup %2100 }
 0x13b   : > { %2102 = vrcp.f32 %v1284_v16  ;;  %1936 = vst [vmem:[%s2361_s14 + $0x70] sm:$0xff] %v1916_v2   ;;  %v1252_v12 = vmul.f32 %v1775_v55, %v2503_v62  ;;  %v1347_v18 = vmul.f32 %v2101_v11, %v1251_v25 }
 0x13c   : > { %v1204_v60 = vmul.f32 %v1172_v58, %v1172_v58  ;;  %2104 = vrcp.f32 %v1299_v57 }
 0x13e   : > { %v1300_v61 = vadd.f32 1.0, %v1204_v60  ;;  %v1791_v4 = vadd.f32 -1.0, %v1204_v60 }
 0x140   : > { %2106 = vrcp.f32 %v1300_v61  ;;  %v1268_v6 = vmul.f32 %v1791_v4, %v1044_v30 }
 0x141   : > { %v2103_v45 = vpop.eup %2102 }
 0x142   : > { %v1348_v63 = vmul.f32 %v2103_v45, %v1252_v12  ;;  %v2105_v5 = vpop.eup %2104 }
 0x143   : > { %v1363_v7 = vmul.f32 %v2105_v5, %v1267_v21 }
 0x144   : > { %v1881_v46 = vpack.c.bf16 %v1348_v63, %v1347_v18 }
 0x146   : > { %1929 = vst [vmem:[%s2361_s14 + $0x38] sm:$0xff] %v1881_v46   ;;  %v2107_v49 = vpop.eup %2106 }
 0x147   : > { %v1364_v32 = vmul.f32 %v2107_v49, %v1268_v6 }
 0x149   : > { %v1921_v8 = vpack.c.bf16 %v1364_v32, %v1363_v7 }
 0x14b   : > { %1937 = vst [vmem:[%s2361_s14 + $0x78] sm:$0xff] %v1921_v8  }
 0x14c PF: > { %s14_s17 = sadd.s32 1, %s2132_s17   ;;  %s2538_s15 = smov %s2128_s16 }
 0x14d   : > { %p11_p5 = scmp.ge.s32.totalorder %s14_s17, 4   ;;  %s2539_s16 = smov %s2541_s18 }
 0x14f   :  { %13 = sbr.rel (!%p11_p5) target bundleno = 2 (0x2), region = 83 }

// kernel: _lambda_.10
= control target key start
LH: loop header
LB: loop body
LE: loop exit
PB: predicated region body
PF: predicated region fallthrough
CT: control target
= control target key end

     0   :  { %s1815_s15 = smov 0   ;;  %s1817_s16 = smov 0   ;;  %s2139_s0 = inlined_call_operand.vmem [shape: bf16[512,128], index: 0, kind: input, shape index: {}]   ;;  %s2140_s1 = inlined_call_operand.vmem [shape: bf16[128,128], index: 1, kind: input, shape index: {}]   ;;  %s2141_s2 = inlined_call_operand.vmem [shape: f32[1,128], index: 2, kind: input, shape index: {}]   ;;  %s2142_s3 = inlined_call_operand.vmem [shape: f32[1,128], index: 3, kind: input, shape index: {}]   ;;  %s2143_s4 = inlined_call_operand.vmem [shape: bf16[512,128], index: 4, kind: output, shape index: {}]  }
   0x1   :  { %s1819_s17 = smov 0  }
   0x2 LB: > { %s33_s18 = sadd.s32 1, %s1784_s16  ;;  %p1334_p0 = scmp.ge.s32.totalorder %s1788_s17, 1  ;;  %s1788_s17 = sphi %s1819_s17, %s14_s17   ;;  %s1784_s16 = sphi %s1817_s16, %s2145_s16   ;;  %s1780_s15 = sphi %s1815_s15, %s2144_s15  }
   0x3   : > { %p35_p1 = scmp.ge.s32.totalorder %s33_s18, 2  ;;  %p221_p2 = scmp.lt.s32.totalorder %s1788_s17, 3 }
   0x5   : > { %s2147_s18 = smov (%p35_p1, %s33_s18), 0  ;;  %p222_p3 = pnand %p1334_p0, %p221_p2 }
   0x6   : > { %s1335_s27 = sshll.u32 (!%p222_p3), %s1780_s15, 5 }
   0x7   : > { %225 = sbr.rel (%p222_p3) target bundleno = 290 (0x122), region = 36  ;;  %p268_p4 = scmp.lt.s32.totalorder (!%p222_p3), %s1335_s27, 63 }
   0xc   : > { %v1492_v0 = vld [vmem:[%s2140_s1 + $0x38] sm:$0xff]  ;;  %v1491_v1 = vld [vmem:[%s2140_s1 + $0x30] sm:$0xff]  ;;  %v1490_v2 = vld [vmem:[%s2140_s1 + $0x28] sm:$0xff]  ;;  %s2149_s27 = smov (!%p268_p4, %s1335_s27), 63 }
   0xd   : > { %560 = vmatpush.bf16.msra.mxu0 %v1492_v0  ;;  %1588 = vmatpush.bf16.msra.mxu1 %v1492_v0  ;;  %v1489_v3 = vld [vmem:[%s2140_s1 + $0x20] sm:$0xff]  ;;  %v1488_v4 = vld [vmem:[%s2140_s1 + $0x18] sm:$0xff]  ;;  %v1487_v5 = vld [vmem:[%s2140_s1 + $0x10] sm:$0xff]  ;;  %s1336_s8 = sshll.u32 %s2149_s27, 2 }
   0xe   : > { %1589 = vmatpush.bf16.msra.mxu2 %v1492_v0  ;;  %1590 = vmatpush.bf16.msra.mxu3 %v1492_v0  ;;  %v1486_v6 = vld [vmem:[%s2140_s1 + $0x8] sm:$0xff]  ;;  %v1485_v7 = vld [vmem:[%s2140_s1] sm:$0xff]  ;;  %s1868_s13 = scalar_lea.vmem %s2139_s0, %s1336_s8  ;;  %s1969_s23 = scalar_lea.vmem %s2143_s4, %s1336_s8 }
   0xf   : > { %v1469_v8 = vld [vmem:[%s1868_s13] sm:$0xff]  ;;  %v1470_v12 = vld [vmem:[%s1868_s13 + $0x8] sm:$0xff]  ;;  %v1471_v16 = vld [vmem:[%s1868_s13 + $0x10] sm:$0xff] }
  0x10   : > { %v1473_v9 = vld [vmem:[%s1868_s13 + $0x20] sm:$0xff]  ;;  %v1474_v13 = vld [vmem:[%s1868_s13 + $0x28] sm:$0xff]  ;;  %v1475_v17 = vld [vmem:[%s1868_s13 + $0x30] sm:$0xff] }
  0x11   : > { %561 = vmatpush.bf16.msra.mxu0 %v1491_v1  ;;  %1591 = vmatpush.bf16.msra.mxu1 %v1491_v1  ;;  %v1477_v10 = vld [vmem:[%s1868_s13 + $0x40] sm:$0xff]  ;;  %v1478_v14 = vld [vmem:[%s1868_s13 + $0x48] sm:$0xff]  ;;  %v1479_v18 = vld [vmem:[%s1868_s13 + $0x50] sm:$0xff] }
  0x12   : > { %1592 = vmatpush.bf16.msra.mxu2 %v1491_v1  ;;  %1593 = vmatpush.bf16.msra.mxu3 %v1491_v1  ;;  %v1481_v11 = vld [vmem:[%s1868_s13 + $0x60] sm:$0xff]  ;;  %v1482_v15 = vld [vmem:[%s1868_s13 + $0x68] sm:$0xff]  ;;  %v1483_v19 = vld [vmem:[%s1868_s13 + $0x70] sm:$0xff] }
  0x13   : > { %v1472_v20 = vld [vmem:[%s1868_s13 + $0x18] sm:$0xff]  ;;  %v1889_v24 = vld [vmem:[%s2141_s2] ss:$0 sm:$0xff] }
  0x14   : > { %v1476_v21 = vld [vmem:[%s1868_s13 + $0x38] sm:$0xff]  ;;  %v1894_v25 = vld [vmem:[%s2142_s3] ss:$0 sm:$0xff] }
  0x15   : > { %562 = vmatpush.bf16.msra.mxu0 %v1490_v2  ;;  %1594 = vmatpush.bf16.msra.mxu1 %v1490_v2  ;;  %v1480_v22 = vld [vmem:[%s1868_s13 + $0x58] sm:$0xff] }
  0x16   : > { %1595 = vmatpush.bf16.msra.mxu2 %v1490_v2  ;;  %1596 = vmatpush.bf16.msra.mxu3 %v1490_v2  ;;  %v1484_v23 = vld [vmem:[%s1868_s13 + $0x78] sm:$0xff] }
  0x19   : > { %563 = vmatpush.bf16.msra.mxu0 %v1489_v3  ;;  %1597 = vmatpush.bf16.msra.mxu1 %v1489_v3 }
  0x1a   : > { %1598 = vmatpush.bf16.msra.mxu2 %v1489_v3  ;;  %1599 = vmatpush.bf16.msra.mxu3 %v1489_v3 }
  0x1d   : > { %564 = vmatpush.bf16.msra.mxu0 %v1488_v4  ;;  %1600 = vmatpush.bf16.msra.mxu1 %v1488_v4 }
  0x1e   : > { %1601 = vmatpush.bf16.msra.mxu2 %v1488_v4  ;;  %1602 = vmatpush.bf16.msra.mxu3 %v1488_v4 }
  0x21   : > { %565 = vmatpush.bf16.msra.mxu0 %v1487_v5  ;;  %1603 = vmatpush.bf16.msra.mxu1 %v1487_v5 }
  0x22   : > { %1604 = vmatpush.bf16.msra.mxu2 %v1487_v5  ;;  %1605 = vmatpush.bf16.msra.mxu3 %v1487_v5 }
  0x25   : > { %566 = vmatpush.bf16.msra.mxu0 %v1486_v6  ;;  %1606 = vmatpush.bf16.msra.mxu1 %v1486_v6 }
  0x26   : > { %1607 = vmatpush.bf16.msra.mxu2 %v1486_v6  ;;  %1608 = vmatpush.bf16.msra.mxu3 %v1486_v6 }
  0x29   : > { %567 = vmatpush.bf16.msra.mxu0 %v1485_v7  ;;  %1609 = vmatpush.bf16.msra.mxu1 %v1485_v7 }
  0x2a   : > { %1610 = vmatpush.bf16.msra.mxu2 %v1485_v7  ;;  %1611 = vmatpush.bf16.msra.mxu3 %v1485_v7 }
  0x2c   : > { %568 = vmatmul.bf16.vlgmr.msra.gmra.mxu0 %v1469_v8  ;;  %588 = vmatmul.bf16.vlgmr.msra.gmra.mxu1 %v1473_v9 }
  0x2d   : > { %608 = vmatmul.bf16.vlgmr.msra.gmra.mxu2 %v1477_v10  ;;  %628 = vmatmul.bf16.vlgmr.msra.gmra.mxu3 %v1481_v11 }
  0x3c   : > { %573 = vmatmul.bf16.gmra.mxu0 %v1470_v12  ;;  %593 = vmatmul.bf16.gmra.mxu1 %v1474_v13 }
  0x3d   : > { %613 = vmatmul.bf16.gmra.mxu2 %v1478_v14  ;;  %633 = vmatmul.bf16.gmra.mxu3 %v1482_v15 }
  0x4c   : > { %578 = vmatmul.bf16.gmra.mxu0 %v1471_v16  ;;  %598 = vmatmul.bf16.gmra.mxu1 %v1475_v17 }
  0x4d   : > { %618 = vmatmul.bf16.gmra.mxu2 %v1479_v18  ;;  %638 = vmatmul.bf16.gmra.mxu3 %v1483_v19 }
  0x5c   : > { %583 = vmatmul.bf16.gmra.mxu0 %v1472_v20  ;;  %603 = vmatmul.bf16.gmra.mxu1 %v1476_v21 }
  0x5d   : > { %623 = vmatmul.bf16.gmra.mxu2 %v1480_v22  ;;  %643 = vmatmul.bf16.gmra.mxu3 %v1484_v23 }
  0xa9   : > { %v569_v26 = vpop.f32.mrf.mxu0  ;;  %v589_v27 = vpop.f32.mrf.mxu1 }
  0xaa   : > { %v752_v28 = vmul.f32 %v1889_v24, %v569_v26  ;;  %v760_v29 = vmul.f32 %v1889_v24, %v589_v27 }
  0xac   : > { %v1899_v30 = vadd.f32 %v1894_v25, %v752_v28  ;;  %v1902_v31 = vadd.f32 %v1894_v25, %v760_v29 }
  0xae   : > { %v820_v32 = vmin.f32 %v1899_v30, 20.0  ;;  %v828_v33 = vmin.f32 %v1902_v31, 20.0 }
  0xb0   : > { %v852_v34 = vmul.f32 1.442695, %v820_v32  ;;  %v868_v35 = vmul.f32 1.442695, %v828_v33  ;;  %v609_v36 = vpop.f32.mrf.mxu2  ;;  %v629_v37 = vpop.f32.mrf.mxu3 }
  0xb1   : > { %v768_v38 = vmul.f32 %v1889_v24, %v609_v36  ;;  %v776_v39 = vmul.f32 %v1889_v24, %v629_v37  ;;  %v571_v40 = vpop.f32.mrf.mxu0  ;;  %v591_v41 = vpop.f32.mrf.mxu1 }
  0xb2   : > { %1638 = vpow2.f32 %v852_v34  ;;  %v753_v42 = vmul.f32 %v1889_v24, %v571_v40  ;;  %v761_v43 = vmul.f32 %v1889_v24, %v591_v41 }
  0xb3   : > { %1640 = vpow2.f32 %v868_v35  ;;  %v1911_v44 = vadd.f32 %v1894_v25, %v768_v38  ;;  %v1914_v45 = vadd.f32 %v1894_v25, %v776_v39 }
  0xb4   : > { %v1917_v46 = vadd.f32 %v1894_v25, %v753_v42  ;;  %v1920_v47 = vadd.f32 %v1894_v25, %v761_v43 }
  0xb5   : > { %v836_v48 = vmin.f32 %v1911_v44, 20.0  ;;  %v844_v49 = vmin.f32 %v1914_v45, 20.0 }
  0xb6   : > { %v821_v50 = vmin.f32 %v1917_v46, 20.0  ;;  %v829_v51 = vmin.f32 %v1920_v47, 20.0 }
  0xb7   : > { %v884_v52 = vmul.f32 1.442695, %v836_v48  ;;  %v900_v53 = vmul.f32 1.442695, %v844_v49 }
  0xb8   : > { %v1639_v54 = vpop.eup %1638  ;;  %v854_v55 = vmul.f32 1.442695, %v821_v50  ;;  %v870_v56 = vmul.f32 1.442695, %v829_v51  ;;  %v611_v57 = vpop.f32.mrf.mxu2 }
  0xb9   : > { %v631_v58 = vpop.f32.mrf.mxu3  ;;  %v1641_v59 = vpop.eup %1640  ;;  %v916_v60 = vadd.f32 1.0, %v1639_v54  ;;  %1642 = vpow2.f32 %v884_v52  ;;  %v769_v61 = vmul.f32 %v1889_v24, %v611_v57 }
  0xba   : > { %v777_v62 = vmul.f32 %v1889_v24, %v631_v58  ;;  %v574_v63 = vpop.f32.mrf.mxu0  ;;  %v594_v0 = vpop.f32.mrf.mxu1  ;;  %v924_v1 = vadd.f32 1.0, %v1641_v59  ;;  %1644 = vpow2.f32 %v900_v53 }
  0xbb   : > { %v754_v2 = vmul.f32 %v1889_v24, %v574_v63  ;;  %v762_v3 = vmul.f32 %v1889_v24, %v594_v0  ;;  %v948_v4 = vmul.f32 %v916_v60, %v916_v60  ;;  %1646 = vpow2.f32 %v854_v55 }
  0xbc   : > { %v1931_v5 = vadd.f32 %v1894_v25, %v769_v61  ;;  %v1934_v6 = vadd.f32 %v1894_v25, %v777_v62  ;;  %v956_v7 = vmul.f32 %v924_v1, %v924_v1  ;;  %1648 = vpow2.f32 %v870_v56 }
  0xbd   : > { %v1937_v8 = vadd.f32 %v1894_v25, %v754_v2  ;;  %v1940_v9 = vadd.f32 %v1894_v25, %v762_v3  ;;  %v1044_v10 = vadd.f32 1.0, %v948_v4  ;;  %v1435_v20 = vadd.f32 -1.0, %v948_v4 }
  0xbe   : > { %v837_v11 = vmin.f32 %v1931_v5, 20.0  ;;  %v845_v12 = vmin.f32 %v1934_v6, 20.0  ;;  %v1052_v13 = vadd.f32 1.0, %v956_v7  ;;  %v1443_v33 = vadd.f32 -1.0, %v956_v7 }
  0xbf   : > { %v822_v14 = vmin.f32 %v1937_v8, 20.0  ;;  %v830_v15 = vmin.f32 %v1940_v9, 20.0  ;;  %v1643_v16 = vpop.eup %1642  ;;  %1650 = vrcp.f32 %v1044_v10  ;;  %v1012_v53 = vmul.f32 %v1435_v20, %v1899_v30 }
  0xc0   : > { %v886_v17 = vmul.f32 1.442695, %v837_v11  ;;  %v902_v18 = vmul.f32 1.442695, %v845_v12  ;;  %v1645_v19 = vpop.eup %1644  ;;  %1652 = vrcp.f32 %v1052_v13  ;;  %v932_v21 = vadd.f32 1.0, %v1643_v16  ;;  %v614_v23 = vpop.f32.mrf.mxu2 }
  0xc1   : > { %v856_v22 = vmul.f32 1.442695, %v822_v14  ;;  %v1647_v26 = vpop.eup %1646  ;;  %v940_v27 = vadd.f32 1.0, %v1645_v19  ;;  %v872_v28 = vmul.f32 1.442695, %v830_v15  ;;  %v770_v29 = vmul.f32 %v1889_v24, %v614_v23  ;;  %v634_v36 = vpop.f32.mrf.mxu3 }
  0xc2   : > { %1654 = vpow2.f32 %v886_v17  ;;  %v1649_v32 = vpop.eup %1648  ;;  %v964_v34 = vmul.f32 %v932_v21, %v932_v21  ;;  %v917_v35 = vadd.f32 1.0, %v1647_v26  ;;  %v576_v42 = vpop.f32.mrf.mxu0  ;;  %v778_v51 = vmul.f32 %v1889_v24, %v634_v36 }
  0xc3   : > { %1656 = vpow2.f32 %v902_v18  ;;  %v972_v37 = vmul.f32 %v940_v27, %v940_v27  ;;  %v925_v38 = vadd.f32 1.0, %v1649_v32  ;;  %v1948_v39 = vadd.f32 %v1894_v25, %v770_v29  ;;  %v596_v30 = vpop.f32.mrf.mxu1 }
  0xc4   : > { %1658 = vpow2.f32 %v856_v22  ;;  %v1060_v40 = vadd.f32 1.0, %v964_v34  ;;  %v949_v41 = vmul.f32 %v917_v35, %v917_v35  ;;  %v1020_v55 = vmul.f32 %v1443_v33, %v1902_v31 }
  0xc5   : > { %1660 = vpow2.f32 %v872_v28  ;;  %v1651_v43 = vpop.eup %1650  ;;  %v1068_v48 = vadd.f32 1.0, %v972_v37  ;;  %v957_v49 = vmul.f32 %v925_v38, %v925_v38  ;;  %v838_v50 = vmin.f32 %v1948_v39, 20.0 }
  0xc6   : > { %v1653_v52 = vpop.eup %1652  ;;  %1662 = vrcp.f32 %v1060_v40  ;;  %v1451_v56 = vadd.f32 -1.0, %v964_v34  ;;  %v1045_v57 = vadd.f32 1.0, %v949_v41  ;;  %v1108_v59 = vmul.f32 %v1651_v43, %v1012_v53 }
  0xc7   : > { %1664 = vrcp.f32 %v1068_v48  ;;  %v1459_v60 = vadd.f32 -1.0, %v972_v37  ;;  %v1053_v61 = vadd.f32 1.0, %v957_v49  ;;  %v888_v1 = vmul.f32 1.442695, %v838_v50 }
  0xc8   : > { %v1655_v54 = vpop.eup %1654  ;;  %1666 = vrcp.f32 %v1045_v57  ;;  %v1955_v2 = vadd.f32 %v1894_v25, %v778_v51  ;;  %v1436_v4 = vadd.f32 -1.0, %v949_v41  ;;  %v1444_v10 = vadd.f32 -1.0, %v957_v49  ;;  %v616_v23 = vpop.f32.mrf.mxu2 }
  0xc9   : > { %v1657_v58 = vpop.eup %1656  ;;  %v933_v62 = vadd.f32 1.0, %v1655_v54  ;;  %1668 = vrcp.f32 %v1053_v61  ;;  %v1028_v14 = vmul.f32 %v1451_v56, %v1911_v44  ;;  %v1116_v19 = vmul.f32 %v1653_v52, %v1020_v55  ;;  %v636_v29 = vpop.f32.mrf.mxu3 }
  0xca   : > { %v1659_v63 = vpop.eup %1658  ;;  %v941_v0 = vadd.f32 1.0, %v1657_v58  ;;  %1670 = vpow2.f32 %v888_v1  ;;  %v846_v17 = vmin.f32 %v1955_v2, 20.0  ;;  %v755_v22 = vmul.f32 %v1889_v24, %v576_v42  ;;  %v579_v44 = vpop.f32.mrf.mxu0 }
  0xcb   : > { %v1661_v3 = vpop.eup %1660  ;;  %v965_v31 = vmul.f32 %v933_v62, %v933_v62  ;;  %v918_v7 = vadd.f32 1.0, %v1659_v63  ;;  %v1036_v26 = vmul.f32 %v1459_v60, %v1914_v45  ;;  %v1013_v27 = vmul.f32 %v1436_v4, %v1917_v46  ;;  %v599_v54 = vpop.f32.mrf.mxu1 }
  0xcc   : > { %v973_v11 = vmul.f32 %v941_v0, %v941_v0  ;;  %v926_v12 = vadd.f32 1.0, %v1661_v3  ;;  %v1663_v13 = vpop.eup %1662  ;;  %v1021_v34 = vmul.f32 %v1444_v10, %v1920_v47  ;;  %v904_v41 = vmul.f32 1.442695, %v846_v17 }
  0xcd   : > { %v1452_v15 = vadd.f32 -1.0, %v965_v31  ;;  %v1061_v16 = vadd.f32 1.0, %v965_v31  ;;  %v1665_v18 = vpop.eup %1664  ;;  %v950_v21 = vmul.f32 %v918_v7, %v918_v7  ;;  %v1124_v33 = vmul.f32 %v1663_v13, %v1028_v14 }
  0xce   : > { %v1069_v20 = vadd.f32 1.0, %v973_v11  ;;  %v1460_v28 = vadd.f32 -1.0, %v973_v11  ;;  %v1667_v32 = vpop.eup %1666  ;;  %v958_v35 = vmul.f32 %v926_v12, %v926_v12  ;;  %v1132_v37 = vmul.f32 %v1665_v18, %v1036_v26 }
  0xcf   : > { %1672 = vrcp.f32 %v1061_v16  ;;  %v1669_v36 = vpop.eup %1668  ;;  %v1109_v38 = vmul.f32 %v1667_v32, %v1013_v27  ;;  %v1029_v40 = vmul.f32 %v1452_v15, %v1931_v5  ;;  %v1437_v42 = vadd.f32 -1.0, %v950_v21 }
  0xd0   : > { %1674 = vrcp.f32 %v1069_v20  ;;  %v1671_v45 = vpop.eup %1670  ;;  %v1117_v46 = vmul.f32 %v1669_v36, %v1021_v34  ;;  %v1046_v43 = vadd.f32 1.0, %v950_v21  ;;  %v1972_v47 = vadd.f32 %v1894_v25, %v755_v22  ;;  %v619_v7 = vpop.f32.mrf.mxu2 }
  0xd1   : > { %v1496_v48 = vpack.c.bf16 %v1109_v38, %v1108_v59  ;;  %v1037_v49 = vmul.f32 %v1460_v28, %v1934_v6  ;;  %v934_v5 = vadd.f32 1.0, %v1671_v45  ;;  %v763_v50 = vmul.f32 %v1889_v24, %v596_v30  ;;  %v639_v14 = vpop.f32.mrf.mxu3 }
  0xd2   : > { %v1516_v51 = vpack.c.bf16 %v1117_v46, %v1116_v19  ;;  %1676 = vpow2.f32 %v904_v41  ;;  %v823_v52 = vmin.f32 %v1972_v47, 20.0  ;;  %v771_v53 = vmul.f32 %v1889_v24, %v616_v23  ;;  %v581_v15 = vpop.f32.mrf.mxu0 }
  0xd3   : > { %1497 = vst [vmem:[%s1969_s23] sm:$0xff] %v1496_v48   ;;  %v1054_v56 = vadd.f32 1.0, %v958_v35  ;;  %v966_v57 = vmul.f32 %v934_v5, %v934_v5  ;;  %v1980_v58 = vadd.f32 %v1894_v25, %v763_v50  ;;  %v779_v59 = vmul.f32 %v1889_v24, %v636_v29  ;;  %v601_v45 = vpop.f32.mrf.mxu1 }
  0xd4   : > { %1576 = vst [vmem:[%s1969_s23 + $0x20] sm:$0xff] %v1516_v51   ;;  %1678 = vrcp.f32 %v1046_v43  ;;  %v858_v61 = vmul.f32 1.442695, %v823_v52  ;;  %v1985_v62 = vadd.f32 %v1894_v25, %v771_v53  ;;  %v756_v1 = vmul.f32 %v1889_v24, %v579_v44 }
  0xd5   : > { %v1673_v55 = vpop.eup %1672  ;;  %v831_v0 = vmin.f32 %v1980_v58, 20.0  ;;  %v764_v30 = vmul.f32 %v1889_v24, %v599_v54  ;;  %v1992_v31 = vadd.f32 %v1894_v25, %v779_v59  ;;  %v1014_v11 = vmul.f32 %v1437_v42, %v1937_v8 }
  0xd6   : > { %v1675_v6 = vpop.eup %1674  ;;  %v1125_v60 = vmul.f32 %v1673_v55, %v1029_v40  ;;  %1680 = vpow2.f32 %v858_v61  ;;  %v839_v4 = vmin.f32 %v1985_v62, 20.0  ;;  %v1445_v12 = vadd.f32 -1.0, %v958_v35 }
  0xd7   : > { %v1133_v63 = vmul.f32 %v1675_v6, %v1037_v49  ;;  %v1453_v13 = vadd.f32 -1.0, %v966_v57  ;;  %1682 = vrcp.f32 %v1054_v56  ;;  %v874_v17 = vmul.f32 1.442695, %v831_v0 }
  0xd8   : > { %v1536_v3 = vpack.c.bf16 %v1125_v60, %v1124_v33  ;;  %v1677_v16 = vpop.eup %1676  ;;  %v890_v18 = vmul.f32 1.442695, %v839_v4  ;;  %v847_v19 = vmin.f32 %v1992_v31, 20.0  ;;  %v1999_v21 = vadd.f32 %v1894_v25, %v756_v1 }
  0xd9   : > { %v1556_v10 = vpack.c.bf16 %v1133_v63, %v1132_v37  ;;  %v942_v20 = vadd.f32 1.0, %v1677_v16  ;;  %v2002_v22 = vadd.f32 %v1894_v25, %v764_v30  ;;  %v772_v8 = vmul.f32 %v1889_v24, %v619_v7  ;;  %v621_v63 = vpop.f32.mrf.mxu2 }
  0xda   : > { %1580 = vst [vmem:[%s1969_s23 + $0x40] sm:$0xff] %v1536_v3   ;;  %v1679_v23 = vpop.eup %1678  ;;  %1684 = vpow2.f32 %v874_v17  ;;  %v906_v26 = vmul.f32 1.442695, %v847_v19  ;;  %v780_v27 = vmul.f32 %v1889_v24, %v639_v14  ;;  %v757_v28 = vmul.f32 %v1889_v24, %v581_v15 }
  0xdb   : > { %1584 = vst [vmem:[%s1969_s23 + $0x60] sm:$0xff] %v1556_v10   ;;  %v1062_v29 = vadd.f32 1.0, %v966_v57  ;;  %1686 = vpow2.f32 %v890_v18  ;;  %v824_v44 = vmin.f32 %v1999_v21, 20.0  ;;  %v832_v32 = vmin.f32 %v2002_v22, 20.0 }
  0xdc   : > { %v1681_v33 = vpop.eup %1680  ;;  %1688 = vpow2.f32 %v906_v26  ;;  %v2010_v34 = vadd.f32 %v1894_v25, %v772_v8  ;;  %v2013_v35 = vadd.f32 %v1894_v25, %v780_v27  ;;  %v2016_v36 = vadd.f32 %v1894_v25, %v757_v28 }
  0xdd   : > { %v1022_v37 = vmul.f32 %v1445_v12, %v1940_v9  ;;  %v974_v38 = vmul.f32 %v942_v20, %v942_v20  ;;  %v919_v40 = vadd.f32 1.0, %v1681_v33  ;;  %v860_v41 = vmul.f32 1.442695, %v824_v44  ;;  %v1683_v46 = vpop.eup %1682 }
  0xde   : > { %v2019_v42 = vmul.f32 %v1679_v23, %v1014_v11  ;;  %v876_v43 = vmul.f32 1.442695, %v832_v32  ;;  %v840_v48 = vmin.f32 %v2010_v34, 20.0  ;;  %v848_v49 = vmin.f32 %v2013_v35, 20.0  ;;  %v641_v23 = vpop.f32.mrf.mxu3 }
  0xdf   : > { %v1030_v5 = vmul.f32 %v1453_v13, %v1948_v39  ;;  %1690 = vrcp.f32 %v1062_v29  ;;  %v951_v50 = vmul.f32 %v919_v40, %v919_v40  ;;  %v825_v51 = vmin.f32 %v2016_v36, 20.0 }
  0xe0   : > { %v1685_v52 = vpop.eup %1684  ;;  %1692 = vpow2.f32 %v860_v41  ;;  %v892_v9 = vmul.f32 1.442695, %v840_v48  ;;  %v908_v53 = vmul.f32 1.442695, %v848_v49  ;;  %v765_v54 = vmul.f32 %v1889_v24, %v601_v45 }
  0xe1   : > { %v1687_v55 = vpop.eup %1686  ;;  %v1070_v56 = vadd.f32 1.0, %v974_v38  ;;  %v1047_v57 = vadd.f32 1.0, %v951_v50  ;;  %v927_v59 = vadd.f32 1.0, %v1685_v52  ;;  %1694 = vpow2.f32 %v876_v43 }
  0xe2   : > { %v1689_v6 = vpop.eup %1688  ;;  %v935_v60 = vadd.f32 1.0, %v1687_v55  ;;  %1696 = vpow2.f32 %v892_v9  ;;  %v862_v61 = vmul.f32 1.442695, %v825_v51  ;;  %v2027_v39 = vadd.f32 %v1894_v25, %v765_v54  ;;  %v584_v54 = vpop.f32.mrf.mxu0 }
  0xe3   : > { %v1438_v0 = vadd.f32 -1.0, %v951_v50  ;;  %1698 = vrcp.f32 %v1047_v57  ;;  %v959_v1 = vmul.f32 %v927_v59, %v927_v59  ;;  %v943_v30 = vadd.f32 1.0, %v1689_v6 }
  0xe4   : > { %v2029_v3 = vmul.f32 %v1683_v46, %v1022_v37  ;;  %v967_v4 = vmul.f32 %v935_v60, %v935_v60  ;;  %1700 = vpow2.f32 %v908_v53  ;;  %v833_v7 = vmin.f32 %v2027_v39, 20.0 }
  0xe5   : > { %v1691_v10 = vpop.eup %1690  ;;  %1702 = vrcp.f32 %v1070_v56  ;;  %v1055_v11 = vadd.f32 1.0, %v959_v1  ;;  %v975_v12 = vmul.f32 %v943_v30, %v943_v30  ;;  %v773_v13 = vmul.f32 %v1889_v24, %v621_v63 }
  0xe6   : > { %v1693_v14 = vpop.eup %1692  ;;  %v1461_v15 = vadd.f32 -1.0, %v974_v38  ;;  %v1063_v16 = vadd.f32 1.0, %v967_v4  ;;  %1704 = vpow2.f32 %v862_v61  ;;  %v878_v17 = vmul.f32 1.442695, %v833_v7 }
  0xe7   : > { %v1695_v18 = vpop.eup %1694  ;;  %v1015_v19 = vmul.f32 %v1438_v0, %v1972_v47  ;;  %v1446_v20 = vadd.f32 -1.0, %v959_v1  ;;  %1706 = vrcp.f32 %v1055_v11  ;;  %v1071_v8 = vadd.f32 1.0, %v975_v12 }
  0xe8   : > { %v1697_v26 = vpop.eup %1696  ;;  %v1454_v27 = vadd.f32 -1.0, %v967_v4  ;;  %1708 = vrcp.f32 %v1063_v16  ;;  %v920_v28 = vadd.f32 1.0, %v1693_v14  ;;  %v928_v29 = vadd.f32 1.0, %v1695_v18 }
  0xe9   : > { %v1699_v44 = vpop.eup %1698  ;;  %v1462_v32 = vadd.f32 -1.0, %v975_v12  ;;  %1710 = vrcp.f32 %v1071_v8  ;;  %v936_v33 = vadd.f32 1.0, %v1697_v26  ;;  %v2035_v37 = vadd.f32 %v1894_v25, %v773_v13 }
  0xea   : > { %v1701_v38 = vpop.eup %1700  ;;  %v1111_v40 = vmul.f32 %v1699_v44, %v1015_v19  ;;  %v952_v41 = vmul.f32 %v920_v28, %v920_v28  ;;  %v960_v47 = vmul.f32 %v928_v29, %v928_v29  ;;  %1712 = vpow2.f32 %v878_v17 }
  0xeb   : > { %v1703_v45 = vpop.eup %1702  ;;  %v1126_v46 = vmul.f32 %v1691_v10, %v1030_v5  ;;  %v1038_v43 = vmul.f32 %v1461_v15, %v1955_v2  ;;  %v968_v48 = vmul.f32 %v936_v33, %v936_v33  ;;  %v944_v49 = vadd.f32 1.0, %v1701_v38  ;;  %v604_v2 = vpop.f32.mrf.mxu1 }
  0xec   : > { %v1705_v50 = vpop.eup %1704  ;;  %v1501_v51 = vpack.c.bf16 %v1111_v40, %v2019_v42  ;;  %v1023_v52 = vmul.f32 %v1446_v20, %v1980_v58  ;;  %v1439_v9 = vadd.f32 -1.0, %v952_v41  ;;  %v1048_v53 = vadd.f32 1.0, %v952_v41  ;;  %v624_v42 = vpop.f32.mrf.mxu2 }
  0xed   : > { %v1707_v55 = vpop.eup %1706  ;;  %v1031_v56 = vmul.f32 %v1454_v27, %v1985_v62  ;;  %v1039_v57 = vmul.f32 %v1462_v32, %v1992_v31  ;;  %v1056_v59 = vadd.f32 1.0, %v960_v47  ;;  %v841_v5 = vmin.f32 %v2035_v37, 20.0  ;;  %v644_v15 = vpop.f32.mrf.mxu3 }
  0xee   : > { %v1709_v6 = vpop.eup %1708  ;;  %1573 = vst [vmem:[%s1969_s23 + $0x8] sm:$0xff] %v1501_v51   ;;  %v1119_v60 = vmul.f32 %v1707_v55, %v1023_v52  ;;  %1714 = vrcp.f32 %v1048_v53  ;;  %v2044_v61 = vmul.f32 %v944_v49, %v944_v49  ;;  %v781_v58 = vmul.f32 %v1889_v24, %v641_v23  ;;  %v586_v41 = vpop.f32.mrf.mxu0 }
  0xef   : > { %v1711_v63 = vpop.eup %1710  ;;  %v1134_v0 = vmul.f32 %v1703_v45, %v1038_v43  ;;  %v1127_v1 = vmul.f32 %v1709_v6, %v1031_v56  ;;  %v1447_v62 = vadd.f32 -1.0, %v960_v47  ;;  %v1064_v30 = vadd.f32 1.0, %v968_v48 }
  0xf0   : > { %v1713_v31 = vpop.eup %1712  ;;  %v1521_v4 = vpack.c.bf16 %v1119_v60, %v2029_v3  ;;  %v1135_v7 = vmul.f32 %v1711_v63, %v1039_v57  ;;  %v1016_v10 = vmul.f32 %v1439_v9, %v1999_v21  ;;  %v2049_v11 = vadd.f32 -1.0, %v968_v48 }
  0xf1   : > { %v1541_v12 = vpack.c.bf16 %v1127_v1, %v1126_v46  ;;  %1716 = vrcp.f32 %v1056_v59  ;;  %v921_v13 = vadd.f32 1.0, %v1705_v50  ;;  %v929_v14 = vadd.f32 1.0, %v1713_v31 }
  0xf2   : > { %1577 = vst [vmem:[%s1969_s23 + $0x28] sm:$0xff] %v1521_v4   ;;  %v1561_v16 = vpack.c.bf16 %v1135_v7, %v1134_v0  ;;  %v1072_v17 = vadd.f32 1.0, %v2044_v61  ;;  %v894_v18 = vmul.f32 1.442695, %v841_v5  ;;  %v2054_v19 = vadd.f32 %v1894_v25, %v781_v58 }
  0xf3   : > { %1581 = vst [vmem:[%s1969_s23 + $0x48] sm:$0xff] %v1541_v12   ;;  %1718 = vrcp.f32 %v1064_v30  ;;  %v953_v3 = vmul.f32 %v921_v13, %v921_v13  ;;  %v961_v21 = vmul.f32 %v929_v14, %v929_v14  ;;  %v758_v20 = vmul.f32 %v1889_v24, %v584_v54  ;;  %v606_v48 = vpop.f32.mrf.mxu1 }
  0xf4   : > { %v1715_v8 = vpop.eup %1714  ;;  %1585 = vst [vmem:[%s1969_s23 + $0x68] sm:$0xff] %v1561_v16   ;;  %1720 = vpow2.f32 %v894_v18  ;;  %v849_v23 = vmin.f32 %v2054_v19, 20.0  ;;  %v766_v26 = vmul.f32 %v1889_v24, %v604_v2  ;;  %v774_v27 = vmul.f32 %v1889_v24, %v624_v42  ;;  %v626_v52 = vpop.f32.mrf.mxu2 }
  0xf5   : > { %v1440_v28 = vadd.f32 -1.0, %v953_v3  ;;  %v1049_v29 = vadd.f32 1.0, %v953_v3  ;;  %v1448_v44 = vadd.f32 -1.0, %v961_v21  ;;  %v782_v32 = vmul.f32 %v1889_v24, %v644_v15  ;;  %v646_v60 = vpop.f32.mrf.mxu3 }
  0xf6   : > { %1722 = vrcp.f32 %v1072_v17  ;;  %v1057_v33 = vadd.f32 1.0, %v961_v21  ;;  %v910_v38 = vmul.f32 1.442695, %v849_v23  ;;  %v2064_v40 = vadd.f32 %v1894_v25, %v758_v20 }
  0xf7   : > { %v1717_v47 = vpop.eup %1716  ;;  %v1112_v45 = vmul.f32 %v1715_v8, %v1016_v10  ;;  %v1024_v46 = vmul.f32 %v1447_v62, %v2002_v22  ;;  %v1017_v43 = vmul.f32 %v1440_v28, %v2016_v36  ;;  %1724 = vrcp.f32 %v1049_v29 }
  0xf8   : > { %1726 = vrcp.f32 %v1057_v33  ;;  %v826_v49 = vmin.f32 %v2064_v40, 20.0  ;;  %v2070_v50 = vadd.f32 %v1894_v25, %v766_v26  ;;  %v2073_v51 = vadd.f32 %v1894_v25, %v774_v27 }
  0xf9   : > { %v2075_v9 = vpop.eup %1718  ;;  %v1025_v53 = vmul.f32 %v1448_v44, %v2027_v39  ;;  %1728 = vpow2.f32 %v910_v38  ;;  %v2079_v22 = vadd.f32 %v1894_v25, %v782_v32  ;;  %v759_v36 = vmul.f32 %v1889_v24, %v586_v41 }
  0xfa   : > { %v1721_v54 = vpop.eup %1720  ;;  %v864_v55 = vmul.f32 1.442695, %v826_v49  ;;  %v834_v56 = vmin.f32 %v2070_v50, 20.0  ;;  %v842_v57 = vmin.f32 %v2073_v51, 20.0  ;;  %v767_v59 = vmul.f32 %v1889_v24, %v606_v48 }
  0xfb   : > { %v937_v5 = vadd.f32 1.0, %v1721_v54  ;;  %v850_v2 = vmin.f32 %v2079_v22, 20.0  ;;  %v2087_v6 = vadd.f32 %v1894_v25, %v759_v36  ;;  %v775_v39 = vmul.f32 %v1889_v24, %v626_v52 }
  0xfc   : > { %v2090_v58 = vpop.eup %1722  ;;  %1730 = vpow2.f32 %v864_v55  ;;  %v880_v42 = vmul.f32 1.442695, %v834_v56  ;;  %v896_v63 = vmul.f32 1.442695, %v842_v57  ;;  %v2093_v0 = vadd.f32 %v1894_v25, %v767_v59 }
  0xfd   : > { %v1725_v1 = vpop.eup %1724  ;;  %v969_v62 = vmul.f32 %v937_v5, %v937_v5  ;;  %v912_v30 = vmul.f32 1.442695, %v850_v2  ;;  %v827_v31 = vmin.f32 %v2087_v6, 20.0  ;;  %v2097_v4 = vadd.f32 %v1894_v25, %v775_v39 }
  0xfe   : > { %v1727_v7 = vpop.eup %1726  ;;  %v1113_v10 = vmul.f32 %v1725_v1, %v1017_v43  ;;  %1732 = vpow2.f32 %v880_v42  ;;  %v835_v12 = vmin.f32 %v2093_v0, 20.0  ;;  %v783_v13 = vmul.f32 %v1889_v24, %v646_v60 }
  0xff   : > { %v1729_v14 = vpop.eup %1728  ;;  %v1120_v15 = vmul.f32 %v1717_v47, %v1024_v46  ;;  %v1121_v16 = vmul.f32 %v1727_v7, %v1025_v53  ;;  %v1065_v17 = vadd.f32 1.0, %v969_v62  ;;  %1734 = vpow2.f32 %v896_v63 }
 0x100   : > { %v1506_v18 = vpack.c.bf16 %v1113_v10, %v1112_v45  ;;  %v945_v3 = vadd.f32 1.0, %v1729_v14  ;;  %1736 = vpow2.f32 %v912_v30  ;;  %v866_v21 = vmul.f32 1.442695, %v827_v31 }
 0x101   : > { %v1526_v20 = vpack.c.bf16 %v1121_v16, %v1120_v15  ;;  %v1456_v8 = vadd.f32 -1.0, %v969_v62  ;;  %1738 = vrcp.f32 %v1065_v17  ;;  %v882_v23 = vmul.f32 1.442695, %v835_v12 }
 0x102   : > { %v1731_v26 = vpop.eup %1730  ;;  %1574 = vst [vmem:[%s1969_s23 + $0x10] sm:$0xff] %v1506_v18   ;;  %v977_v27 = vmul.f32 %v945_v3, %v945_v3  ;;  %1740 = vpow2.f32 %v866_v21  ;;  %v843_v24 = vmin.f32 %v2097_v4, 20.0  ;;  %v2104_v28 = vadd.f32 %v1894_v25, %v783_v13 }
 0x103   : > { %1578 = vst [vmem:[%s1969_s23 + $0x30] sm:$0xff] %v1526_v20   ;;  %v922_v29 = vadd.f32 1.0, %v1731_v26  ;;  %1742 = vpow2.f32 %v882_v23  ;;  %v1032_v41 = vmul.f32 %v2049_v11, %v2010_v34  ;;  %v1463_v43 = vadd.f32 -1.0, %v2044_v61 }
 0x104   : > { %v1733_v44 = vpop.eup %1732  ;;  %v1073_v32 = vadd.f32 1.0, %v977_v27  ;;  %v898_v33 = vmul.f32 1.442695, %v843_v24  ;;  %v851_v45 = vmin.f32 %v2104_v28, 20.0  ;;  %v1033_v48 = vmul.f32 %v1456_v8, %v2035_v37 }
 0x105   : > { %v1735_v38 = vpop.eup %1734  ;;  %v930_v47 = vadd.f32 1.0, %v1733_v44  ;;  %v1464_v25 = vadd.f32 -1.0, %v977_v27  ;;  %v954_v52 = vmul.f32 %v922_v29, %v922_v29  ;;  %v1128_v54 = vmul.f32 %v2075_v9, %v1032_v41 }
 0x106   : > { %v1737_v46 = vpop.eup %1736  ;;  %1744 = vrcp.f32 %v1073_v32  ;;  %v938_v53 = vadd.f32 1.0, %v1735_v38  ;;  %v914_v11 = vmul.f32 1.442695, %v851_v45  ;;  %v1040_v57 = vmul.f32 %v1463_v43, %v2013_v35 }
 0x107   : > { %v1739_v49 = vpop.eup %1738  ;;  %v962_v56 = vmul.f32 %v930_v47, %v930_v47  ;;  %1746 = vpow2.f32 %v898_v33  ;;  %v1041_v61 = vmul.f32 %v1464_v25, %v2054_v19  ;;  %v1050_v37 = vadd.f32 1.0, %v954_v52 }
 0x108   : > { %v1741_v36 = vpop.eup %1740  ;;  %v1129_v55 = vmul.f32 %v1739_v49, %v1033_v48  ;;  %v970_v5 = vmul.f32 %v938_v53, %v938_v53  ;;  %v1136_v42 = vmul.f32 %v2090_v58, %v1040_v57  ;;  %v946_v63 = vadd.f32 1.0, %v1737_v46 }
 0x109   : > { %v1743_v34 = vpop.eup %1742  ;;  %v923_v2 = vadd.f32 1.0, %v1741_v36  ;;  %v1058_v9 = vadd.f32 1.0, %v962_v56  ;;  %1748 = vpow2.f32 %v914_v11  ;;  %v1441_v14 = vadd.f32 -1.0, %v954_v52 }
 0x10a   : > { %v1546_v59 = vpack.c.bf16 %v1129_v55, %v1128_v54  ;;  %v931_v39 = vadd.f32 1.0, %v1743_v34  ;;  %1750 = vrcp.f32 %v1050_v37  ;;  %v1066_v7 = vadd.f32 1.0, %v970_v5 }
 0x10b   : > { %v955_v62 = vmul.f32 %v923_v2, %v923_v2  ;;  %1752 = vrcp.f32 %v1058_v9  ;;  %v978_v10 = vmul.f32 %v946_v63, %v946_v63  ;;  %v1449_v17 = vadd.f32 -1.0, %v962_v56 }
 0x10c   : > { %v1745_v60 = vpop.eup %1744  ;;  %1582 = vst [vmem:[%s1969_s23 + $0x50] sm:$0xff] %v1546_v59   ;;  %v963_v30 = vmul.f32 %v931_v39, %v931_v39  ;;  %v1018_v23 = vmul.f32 %v1441_v14, %v2064_v40  ;;  %v1457_v27 = vadd.f32 -1.0, %v970_v5 }
 0x10d   : > { %v1137_v1 = vmul.f32 %v1745_v60, %v1041_v61  ;;  %v1747_v31 = vpop.eup %1746  ;;  %v1051_v19 = vadd.f32 1.0, %v955_v62  ;;  %v1442_v58 = vadd.f32 -1.0, %v955_v62  ;;  %v1074_v3 = vadd.f32 1.0, %v978_v10 }
 0x10e   : > { %v1059_v12 = vadd.f32 1.0, %v963_v30  ;;  %v939_v13 = vadd.f32 1.0, %v1747_v31  ;;  %v1450_v18 = vadd.f32 -1.0, %v963_v30  ;;  %v1026_v32 = vmul.f32 %v1449_v17, %v2070_v50 }
 0x10f   : > { %v1566_v35 = vpack.c.bf16 %v1137_v1, %v1136_v42  ;;  %1754 = vrcp.f32 %v1051_v19  ;;  %v1749_v16 = vpop.eup %1748  ;;  %v1019_v24 = vmul.f32 %v1442_v58, %v2087_v6  ;;  %v1034_v6 = vmul.f32 %v1457_v27, %v2073_v51 }
 0x110   : > { %1756 = vrcp.f32 %v1059_v12  ;;  %v971_v15 = vmul.f32 %v939_v13, %v939_v13  ;;  %v947_v20 = vadd.f32 1.0, %v1749_v16  ;;  %v1751_v8 = vpop.eup %1750  ;;  %v1027_v33 = vmul.f32 %v1450_v18, %v2093_v0 }
 0x111   : > { %1586 = vst [vmem:[%s1969_s23 + $0x70] sm:$0xff] %v1566_v35   ;;  %1758 = vrcp.f32 %v1066_v7  ;;  %v1753_v26 = vpop.eup %1752  ;;  %v1114_v47 = vmul.f32 %v1751_v8, %v1018_v23  ;;  %v1465_v49 = vadd.f32 -1.0, %v978_v10 }
 0x112   : > { %v1067_v21 = vadd.f32 1.0, %v971_v15  ;;  %v979_v29 = vmul.f32 %v947_v20, %v947_v20  ;;  %v1458_v38 = vadd.f32 -1.0, %v971_v15  ;;  %v1122_v40 = vmul.f32 %v1753_v26, %v1026_v32 }
 0x113   : > { %v1042_v56 = vmul.f32 %v1465_v49, %v2079_v22 }
 0x114   : > { %1760 = vrcp.f32 %v1067_v21  ;;  %v1075_v46 = vadd.f32 1.0, %v979_v29  ;;  %v1035_v0 = vmul.f32 %v1458_v38, %v2097_v4  ;;  %v1466_v52 = vadd.f32 -1.0, %v979_v29 }
 0x115   : > { %v1755_v44 = vpop.eup %1754  ;;  %1762 = vrcp.f32 %v1074_v3 }
 0x116   : > { %v1757_v41 = vpop.eup %1756  ;;  %v1115_v45 = vmul.f32 %v1755_v44, %v1019_v24  ;;  %1764 = vrcp.f32 %v1075_v46  ;;  %v1043_v51 = vmul.f32 %v1466_v52, %v2104_v28 }
 0x117   : > { %v1123_v43 = vmul.f32 %v1757_v41, %v1027_v33  ;;  %v1759_v48 = vpop.eup %1758 }
 0x118   : > { %v1511_v25 = vpack.c.bf16 %v1115_v45, %v1114_v47  ;;  %v1130_v36 = vmul.f32 %v1759_v48, %v1034_v6 }
 0x119   : > { %v1531_v50 = vpack.c.bf16 %v1123_v43, %v1122_v40 }
 0x11a   : > { %v1761_v53 = vpop.eup %1760  ;;  %1575 = vst [vmem:[%s1969_s23 + $0x18] sm:$0xff] %v1511_v25  }
 0x11b   : > { %1579 = vst [vmem:[%s1969_s23 + $0x38] sm:$0xff] %v1531_v50   ;;  %v1131_v54 = vmul.f32 %v1761_v53, %v1035_v0  ;;  %v1763_v55 = vpop.eup %1762 }
 0x11c   : > { %v1765_v11 = vpop.eup %1764  ;;  %v1138_v57 = vmul.f32 %v1763_v55, %v1042_v56 }
 0x11d   : > { %v1551_v34 = vpack.c.bf16 %v1131_v54, %v1130_v36  ;;  %v1139_v59 = vmul.f32 %v1765_v11, %v1043_v51 }
 0x11f   : > { %1583 = vst [vmem:[%s1969_s23 + $0x58] sm:$0xff] %v1551_v34   ;;  %v1571_v61 = vpack.c.bf16 %v1139_v59, %v1138_v57 }
 0x121   : > { %1587 = vst [vmem:[%s1969_s23 + $0x78] sm:$0xff] %v1571_v61  }
 0x122 PF: > { %s14_s17 = sadd.s32 1, %s1788_s17   ;;  %s2144_s15 = smov %s1784_s16 }
 0x123   : > { %p11_p5 = scmp.ge.s32.totalorder %s14_s17, 4   ;;  %s2145_s16 = smov %s2147_s18 }
 0x125   :  { %13 = sbr.rel (!%p11_p5) target bundleno = 2 (0x2), region = 83 }

// kernel: _lambda_.13
= control target key start
LH: loop header
LB: loop body
LE: loop exit
PB: predicated region body
PF: predicated region fallthrough
CT: control target
= control target key end

     0   :  { %s1272_s21 = smov 0   ;;  %s1274_s22 = smov 0   ;;  %s1889_s0 = inlined_call_operand.vmem [shape: bf16[2,18,18,128], index: 0, kind: input, shape index: {}, may-alias: {0,1,2}]   ;;  %s1890_s1 = inlined_call_operand.vmem [shape: bf16[2,18,18,128], index: 1, kind: input, shape index: {}, may-alias: {0,1,2}]   ;;  %s1891_s2 = inlined_call_operand.vmem [shape: bf16[2,18,18,128], index: 2, kind: input, shape index: {}, may-alias: {0,1,2}]   ;;  %s1892_s3 = inlined_call_operand.vmem [shape: f32[1152,128], index: 3, kind: input, shape index: {}]   ;;  %s1893_s4 = inlined_call_operand.vmem [shape: f32[1,128], index: 4, kind: input, shape index: {}]   ;;  %s1894_s5 = inlined_call_operand.vmem [shape: f32[1,128], index: 5, kind: input, shape index: {}]   ;;  %s1895_s6 = inlined_call_operand.vmem [shape: bf16[2,16,16,128], index: 6, kind: output, shape index: {}]  }
   0x1   :  { %s1276_s23 = smov 0   ;;  %s1278_s24 = smov 0  }
   0x2   :  { %s1280_s25 = smov 0  }
   0x3 LB: > { %s28_s26 = sadd.s32 1, %s1227_s23  ;;  %s31_s27 = sadd.s32 1, %s1231_s24  ;;  %s1235_s25 = sphi %s1280_s25, %s16_s25   ;;  %s1231_s24 = sphi %s1278_s24, %s1901_s24   ;;  %s1227_s23 = sphi %s1276_s23, %s1900_s23   ;;  %s1223_s22 = sphi %s1274_s22, %s1899_s22   ;;  %s1219_s21 = sphi %s1272_s21, %s1898_s21  }
   0x4   : > { %p29_p0 = scmp.ge.s32.totalorder %s28_s26, 16  ;;  %p1099_p1 = scmp.ge.s32.totalorder %s1235_s25, 1 }
   0x5   : > { %p306_p2 = scmp.lt.s32.totalorder %s1235_s25, 33 }
   0x6   : > { %s1903_s26 = smov (%p29_p0, %s28_s26), 0  ;;  %s1905_s27 = smov (!%p29_p0, %s31_s27), %s1231_s24 }
   0x7   : > { %p307_p3 = pnand %p1099_p1, %p306_p2  ;;  %p33_p4 = scmp.ge.s32.totalorder %s1905_s27, 2 }
   0x8   : > { %p377_p5 = scmp.lt.s32.totalorder (!%p307_p3), %s1223_s22, 1  ;;  %p379_p6 = scmp.lt.s32.totalorder (!%p307_p3), %s1219_s21, 17 }
   0x9   : > { %s1907_s27 = smov (%p33_p4, %s1905_s27), 0  ;;  %310 = sbr.rel (%p307_p3) target bundleno = 275 (0x113), region = 44 }
   0xa   : > { %s386_s19 = sadd.s32 (!%p307_p3), 1, %s1219_s21  ;;  %p420_p9 = scmp.lt.s32.totalorder (!%p307_p3), %s1219_s21, 15 }
   0xb   : > { %p1490_p7 = scmp.lt.s32.totalorder (!%p307_p3), %s386_s19, 17 }
   0xe   : > { %v479_v0 = vld [vmem:[%s1892_s3 + $0xf8] sm:$0xff]  ;;  %v478_v2 = vld [vmem:[%s1892_s3 + $0xf0] sm:$0xff]  ;;  %v477_v5 = vld [vmem:[%s1892_s3 + $0xe8] sm:$0xff]  ;;  %s1909_s22 = smov (!%p377_p5, %s1223_s22), 1  ;;  %s1911_s19 = smov (!%p1490_p7, %s386_s19), 17  ;;  %vm553_vm0 = vcmask 1045504  }
   0xf   : > { %v463_v1 = vld [vmem:[%s1892_s3 + $0x78] sm:$0xff]  ;;  %491 = vmatpush.msra.mxu0 %v479_v0  ;;  %v462_v3 = vld [vmem:[%s1892_s3 + $0x70] sm:$0xff]  ;;  %v461_v6 = vld [vmem:[%s1892_s3 + $0x68] sm:$0xff]  ;;  %s1445_s29 = scalar_select %p379_p6, %s1219_s21, 17  ;;  %vm483_vm1 = vcmask 1046528  }
  0x10   : > { %514 = vmatpush.msra.mxu1 %v463_v1  ;;  %v552_v4 = vld [vmem:[%s1892_s3 + $0x178] sm:$0xff]  ;;  %v551_v7 = vld [vmem:[%s1892_s3 + $0x170] sm:$0xff]  ;;  %v550_v9 = vld [vmem:[%s1892_s3 + $0x168] sm:$0xff]  ;;  %s1466_s18 = smul.u32 54, %s1909_s22 }
  0x11   : > { %561 = vmatpush.msra.mxu2 %v552_v4  ;;  %v601_v8 = vld [vmem:[%s1892_s3 + $0x1f8] sm:$0xff]  ;;  %492 = vmatpush.msra.mxu0 %v478_v2  ;;  %v476_v10 = vld [vmem:[%s1892_s3 + $0xe0] sm:$0xff]  ;;  %v600_v12 = vld [vmem:[%s1892_s3 + $0x1f0] sm:$0xff]  ;;  %s1143_s8 = smul.u32 3, %s1445_s29 }
  0x12   : > { %515 = vmatpush.msra.mxu1 %v462_v3  ;;  %602 = vmatpush.msra.mxu3 %v601_v8  ;;  %v460_v11 = vld [vmem:[%s1892_s3 + $0x60] sm:$0xff]  ;;  %v599_v14 = vld [vmem:[%s1892_s3 + $0x1e8] sm:$0xff]  ;;  %v475_v15 = vld [vmem:[%s1892_s3 + $0xd8] sm:$0xff]  ;;  %s1145_s14 = smul.u32 3, %s1911_s19  ;;  %s397_s19 = sadd.s32 2, %s1219_s21 }
  0x13   : > { %562 = vmatpush.msra.mxu2 %v551_v7  ;;  %493 = vmatpush.msra.mxu0 %v477_v5  ;;  %v549_v13 = vld [vmem:[%s1892_s3 + $0x160] sm:$0xff]  ;;  %v459_v16 = vld [vmem:[%s1892_s3 + $0x58] sm:$0xff]  ;;  %v474_v19 = vld [vmem:[%s1892_s3 + $0xd0] sm:$0xff]  ;;  %s383_s12 = sadd.s32 %s1466_s18, %s1143_s8  ;;  %p1592_p8 = scmp.lt.s32.totalorder %s397_s19, 17 }
  0x14   : > { %516 = vmatpush.msra.mxu1 %v461_v6  ;;  %603 = vmatpush.msra.mxu3 %v600_v12  ;;  %v548_v17 = vld [vmem:[%s1892_s3 + $0x158] sm:$0xff]  ;;  %v598_v18 = vld [vmem:[%s1892_s3 + $0x1e0] sm:$0xff]  ;;  %v458_v20 = vld [vmem:[%s1892_s3 + $0x50] sm:$0xff]  ;;  %s1100_s11 = sshll.u32 %s383_s12, 2  ;;  %s1582_s17 = sadd.s32 %s1145_s14, %s1466_s18 }
  0x15   : > { %563 = vmatpush.msra.mxu2 %v550_v9  ;;  %494 = vmatpush.msra.mxu0 %v476_v10  ;;  %v547_v21 = vld [vmem:[%s1892_s3 + $0x150] sm:$0xff]  ;;  %v597_v22 = vld [vmem:[%s1892_s3 + $0x1d8] sm:$0xff]  ;;  %v473_v23 = vld [vmem:[%s1892_s3 + $0xc8] sm:$0xff]  ;;  %s1552_s13 = scalar_lea.vmem %s1889_s0, %s1100_s11  ;;  %s1101_s20 = sshll.u32 %s1582_s17, 2 }
  0x16   : > { %517 = vmatpush.msra.mxu1 %v460_v11  ;;  %604 = vmatpush.msra.mxu3 %v599_v14  ;;  %v457_v24 = vld [vmem:[%s1892_s3 + $0x48] sm:$0xff]  ;;  %v596_v26 = vld [vmem:[%s1892_s3 + $0x1d0] sm:$0xff]  ;;  %v472_v27 = vld [vmem:[%s1892_s3 + $0xc0] sm:$0xff]  ;;  %s1913_s19 = smov (!%p1592_p8, %s397_s19), 17  ;;  %s1642_s30 = scalar_lea.vmem %s1890_s1, %s1101_s20 }
  0x17   : > { %564 = vmatpush.msra.mxu2 %v549_v13  ;;  %495 = vmatpush.msra.mxu0 %v475_v15  ;;  %v546_v25 = vld [vmem:[%s1892_s3 + $0x148] sm:$0xff]  ;;  %v456_v28 = vld [vmem:[%s1892_s3 + $0x40] sm:$0xff]  ;;  %v471_v31 = vld [vmem:[%s1892_s3 + $0xb8] sm:$0xff]  ;;  %s1146_s11 = smul.u32 3, %s1913_s19  ;;  %s1915_s21 = smov (!%p420_p9, %s1219_s21), 15 }
  0x18   : > { %518 = vmatpush.msra.mxu1 %v459_v16  ;;  %605 = vmatpush.msra.mxu3 %v598_v18  ;;  %v545_v29 = vld [vmem:[%s1892_s3 + $0x140] sm:$0xff]  ;;  %v595_v30 = vld [vmem:[%s1892_s3 + $0x1c8] sm:$0xff]  ;;  %v455_v32 = vld [vmem:[%s1892_s3 + $0x38] sm:$0xff]  ;;  %s1103_s20 = sshll.u32 %s1915_s21, 1  ;;  %s1104_s17 = sshll.u32 %s1909_s22, 5 }
  0x19   : > { %565 = vmatpush.msra.mxu2 %v548_v17  ;;  %496 = vmatpush.msra.mxu0 %v474_v19  ;;  %v544_v33 = vld [vmem:[%s1892_s3 + $0x138] sm:$0xff]  ;;  %v594_v34 = vld [vmem:[%s1892_s3 + $0x1c0] sm:$0xff]  ;;  %v470_v35 = vld [vmem:[%s1892_s3 + $0xb0] sm:$0xff]  ;;  %s404_s29 = sadd.s32 %s1146_s11, %s1466_s18 }
  0x1a   : > { %519 = vmatpush.msra.mxu1 %v458_v20  ;;  %606 = vmatpush.msra.mxu3 %v597_v22  ;;  %v454_v36 = vld [vmem:[%s1892_s3 + $0x30] sm:$0xff]  ;;  %v593_v38 = vld [vmem:[%s1892_s3 + $0x1b8] sm:$0xff]  ;;  %v469_v39 = vld [vmem:[%s1892_s3 + $0xa8] sm:$0xff] }
  0x1b   : > { %566 = vmatpush.msra.mxu2 %v547_v21  ;;  %497 = vmatpush.msra.mxu0 %v473_v23  ;;  %v543_v37 = vld [vmem:[%s1892_s3 + $0x130] sm:$0xff]  ;;  %v453_v40 = vld [vmem:[%s1892_s3 + $0x28] sm:$0xff]  ;;  %v468_v43 = vld [vmem:[%s1892_s3 + $0xa0] sm:$0xff] }
  0x1c   : > { %520 = vmatpush.msra.mxu1 %v457_v24  ;;  %607 = vmatpush.msra.mxu3 %v596_v26  ;;  %v542_v41 = vld [vmem:[%s1892_s3 + $0x128] sm:$0xff]  ;;  %v592_v42 = vld [vmem:[%s1892_s3 + $0x1b0] sm:$0xff]  ;;  %v452_v44 = vld [vmem:[%s1892_s3 + $0x20] sm:$0xff] }
  0x1d   : > { %567 = vmatpush.msra.mxu2 %v546_v25  ;;  %498 = vmatpush.msra.mxu0 %v472_v27  ;;  %v541_v45 = vld [vmem:[%s1892_s3 + $0x120] sm:$0xff]  ;;  %v591_v46 = vld [vmem:[%s1892_s3 + $0x1a8] sm:$0xff]  ;;  %v467_v47 = vld [vmem:[%s1892_s3 + $0x98] sm:$0xff] }
  0x1e   : > { %521 = vmatpush.msra.mxu1 %v456_v28  ;;  %608 = vmatpush.msra.mxu3 %v595_v30  ;;  %v451_v48 = vld [vmem:[%s1892_s3 + $0x18] sm:$0xff]  ;;  %v590_v50 = vld [vmem:[%s1892_s3 + $0x1a0] sm:$0xff]  ;;  %v466_v51 = vld [vmem:[%s1892_s3 + $0x90] sm:$0xff] }
  0x1f   : > { %568 = vmatpush.msra.mxu2 %v545_v29  ;;  %499 = vmatpush.msra.mxu0 %v471_v31  ;;  %v540_v49 = vld [vmem:[%s1892_s3 + $0x118] sm:$0xff]  ;;  %v450_v52 = vld [vmem:[%s1892_s3 + $0x10] sm:$0xff]  ;;  %v465_v55 = vld [vmem:[%s1892_s3 + $0x88] sm:$0xff] }
  0x20   : > { %522 = vmatpush.msra.mxu1 %v455_v32  ;;  %609 = vmatpush.msra.mxu3 %v594_v34  ;;  %v539_v53 = vld [vmem:[%s1892_s3 + $0x110] sm:$0xff]  ;;  %v589_v54 = vld [vmem:[%s1892_s3 + $0x198] sm:$0xff]  ;;  %v449_v56 = vld [vmem:[%s1892_s3 + $0x8] sm:$0xff] }
  0x21   : > { %569 = vmatpush.msra.mxu2 %v544_v33  ;;  %500 = vmatpush.msra.mxu0 %v470_v35  ;;  %v538_v57 = vld [vmem:[%s1892_s3 + $0x108] sm:$0xff]  ;;  %v588_v58 = vld [vmem:[%s1892_s3 + $0x190] sm:$0xff]  ;;  %v464_v59 = vld [vmem:[%s1892_s3 + $0x80] sm:$0xff] }
  0x22   : > { %523 = vmatpush.msra.mxu1 %v454_v36  ;;  %610 = vmatpush.msra.mxu3 %v593_v38  ;;  %v448_v60 = vld [vmem:[%s1892_s3] sm:$0xff]  ;;  %v642_v61 = vld [vmem:[%s1892_s3 + $0x278] sm:$0xff]  ;;  %v587_v0 = vld [vmem:[%s1892_s3 + $0x188] sm:$0xff] }
  0x23   : > { %570 = vmatpush.msra.mxu2 %v543_v37  ;;  %501 = vmatpush.msra.mxu0 %v469_v39  ;;  %v693_v62 = vld [vmem:[%s1892_s3 + $0x2f8] sm:$0xff]  ;;  %v537_v63 = vld [vmem:[%s1892_s3 + $0x100] sm:$0xff]  ;;  %v641_v1 = vld [vmem:[%s1892_s3 + $0x270] sm:$0xff] }
  0x24   : > { %524 = vmatpush.msra.mxu1 %v453_v40  ;;  %611 = vmatpush.msra.mxu3 %v592_v42  ;;  %v692_v2 = vld [vmem:[%s1892_s3 + $0x2f0] sm:$0xff]  ;;  %v741_v3 = vld [vmem:[%s1892_s3 + $0x378] sm:$0xff]  ;;  %v586_v4 = vld [vmem:[%s1892_s3 + $0x180] sm:$0xff] }
  0x25   : > { %571 = vmatpush.msra.mxu2 %v542_v41  ;;  %502 = vmatpush.msra.mxu0 %v468_v43  ;;  %v640_v5 = vld [vmem:[%s1892_s3 + $0x268] sm:$0xff]  ;;  %v740_v7 = vld [vmem:[%s1892_s3 + $0x370] sm:$0xff]  ;;  %v782_v8 = vld [vmem:[%s1892_s3 + $0x3f8] sm:$0xff] }
  0x26   : > { %525 = vmatpush.msra.mxu1 %v452_v44  ;;  %612 = vmatpush.msra.mxu3 %v591_v46  ;;  %v691_v6 = vld [vmem:[%s1892_s3 + $0x2e8] sm:$0xff]  ;;  %v639_v9 = vld [vmem:[%s1892_s3 + $0x260] sm:$0xff]  ;;  %v781_v12 = vld [vmem:[%s1892_s3 + $0x3f0] sm:$0xff] }
  0x27   : > { %572 = vmatpush.msra.mxu2 %v541_v45  ;;  %503 = vmatpush.msra.mxu0 %v467_v47  ;;  %v690_v10 = vld [vmem:[%s1892_s3 + $0x2e0] sm:$0xff]  ;;  %v739_v11 = vld [vmem:[%s1892_s3 + $0x368] sm:$0xff]  ;;  %v638_v14 = vld [vmem:[%s1892_s3 + $0x258] sm:$0xff] }
  0x28   : > { %526 = vmatpush.msra.mxu1 %v451_v48  ;;  %613 = vmatpush.msra.mxu3 %v590_v50  ;;  %v1111_v13 = vld [vmem:[%s1552_s13] sm:$0xff]   ;;  %v689_v15 = vld [vmem:[%s1892_s3 + $0x2d8] sm:$0xff]  ;;  %v780_v17 = vld [vmem:[%s1892_s3 + $0x3e8] sm:$0xff] }
  0x29   : > { %573 = vmatpush.msra.mxu2 %v540_v49  ;;  %504 = vmatpush.msra.mxu0 %v466_v51  ;;  %v738_v16 = vld [vmem:[%s1892_s3 + $0x360] sm:$0xff]  ;;  %v637_v18 = vld [vmem:[%s1892_s3 + $0x250] sm:$0xff]  ;;  %v1602_v20 = vunpack.c.l.bf16 %v1111_v13  ;;  %v1604_v21 = vunpack.c.h.bf16 %v1111_v13  ;;  %v737_v22 = vld [vmem:[%s1892_s3 + $0x358] sm:$0xff] }
  0x2a   : > { %527 = vmatpush.msra.mxu1 %v450_v52  ;;  %614 = vmatpush.msra.mxu3 %v589_v54  ;;  %v688_v19 = vld [vmem:[%s1892_s3 + $0x2d0] sm:$0xff]  ;;  %v779_v23 = vld [vmem:[%s1892_s3 + $0x3e0] sm:$0xff]  ;;  %v636_v24 = vld [vmem:[%s1892_s3 + $0x248] sm:$0xff] }
  0x2b   : > { %574 = vmatpush.msra.mxu2 %v539_v53  ;;  %505 = vmatpush.msra.mxu0 %v465_v55  ;;  %v687_v25 = vld [vmem:[%s1892_s3 + $0x2c8] sm:$0xff]  ;;  %v736_v26 = vld [vmem:[%s1892_s3 + $0x350] sm:$0xff]  ;;  %v778_v27 = vld [vmem:[%s1892_s3 + $0x3d8] sm:$0xff]  ;;  %v554_v30 = vrot.slane %v1602_v20, 2  ;;  %v555_v31 = vrot.slane %v1604_v21, 2  ;;  %v484_v37 = vrot.slane %v1602_v20, 1 }
  0x2c   : > { %528 = vmatpush.msra.mxu1 %v449_v56  ;;  %615 = vmatpush.msra.mxu3 %v588_v58  ;;  %v635_v28 = vld [vmem:[%s1892_s3 + $0x240] sm:$0xff]  ;;  %v735_v32 = vld [vmem:[%s1892_s3 + $0x348] sm:$0xff]  ;;  %v777_v33 = vld [vmem:[%s1892_s3 + $0x3d0] sm:$0xff]  ;;  %v485_v38 = vrot.slane %v1604_v21, 1 }
  0x2d   : > { %575 = vmatpush.msra.mxu2 %v538_v57  ;;  %506 = vmatpush.msra.mxu0 %v464_v59  ;;  %v686_v29 = vld [vmem:[%s1892_s3 + $0x2c0] sm:$0xff]  ;;  %v634_v34 = vld [vmem:[%s1892_s3 + $0x238] sm:$0xff]  ;;  %v776_v39 = vld [vmem:[%s1892_s3 + $0x3c8] sm:$0xff]  ;;  %v556_v42 = vsel %vm553_vm0, %v554_v30, %v555_v31 }
  0x2e   : > { %529 = vmatpush.msra.mxu1 %v448_v60  ;;  %616 = vmatpush.msra.mxu3 %v587_v0  ;;  %v685_v35 = vld [vmem:[%s1892_s3 + $0x2b8] sm:$0xff]  ;;  %v734_v36 = vld [vmem:[%s1892_s3 + $0x340] sm:$0xff]  ;;  %v432_v41 = vld [vmem:[%s1552_s13 + $0x8] sm:$0x1]  ;;  %v486_v47 = vsel %vm483_vm1, %v484_v37, %v485_v38  ;;  %s1102_s13 = sshll.u32 %s404_s29, 2 }
  0x2f   : > { %653 = vmatpush.msrb.mxu0 %v642_v61  ;;  %576 = vmatpush.msra.mxu2 %v537_v63  ;;  %v1115_v40 = vld [vmem:[%s1642_s30] sm:$0xff]   ;;  %v633_v43 = vld [vmem:[%s1892_s3 + $0x230] sm:$0xff]  ;;  %v733_v45 = vld [vmem:[%s1892_s3 + $0x338] sm:$0xff]  ;;  %v435_v49 = vunpack.c.l.bf16 %v432_v41  ;;  %s1729_s9 = scalar_lea.vmem %s1891_s2, %s1102_s13 }
  0x30   : > { %701 = vmatpush.msrb.mxu1 %v693_v62  ;;  %617 = vmatpush.msra.mxu3 %v586_v4  ;;  %v684_v44 = vld [vmem:[%s1892_s3 + $0x2b0] sm:$0xff]  ;;  %v775_v46 = vld [vmem:[%s1892_s3 + $0x3c0] sm:$0xff]  ;;  %v1685_v48 = vunpack.c.l.bf16 %v1115_v40  ;;  %v632_v50 = vld [vmem:[%s1892_s3 + $0x228] sm:$0xff] }
  0x31   : > { %654 = vmatpush.msrb.mxu0 %v641_v1  ;;  %742 = vmatpush.msrb.mxu2 %v741_v3  ;;  %v683_v51 = vld [vmem:[%s1892_s3 + $0x2a8] sm:$0xff]  ;;  %v732_v52 = vld [vmem:[%s1892_s3 + $0x330] sm:$0xff]  ;;  %v774_v53 = vld [vmem:[%s1892_s3 + $0x3b8] sm:$0xff]  ;;  %v557_v56 = vrot.slane %v435_v49, 2  ;;  %v487_v61 = vrot.slane %v435_v49, 1 }
  0x32   : > { %702 = vmatpush.msrb.mxu1 %v692_v2  ;;  %793 = vmatpush.msrb.mxu3 %v782_v8  ;;  %v631_v54 = vld [vmem:[%s1892_s3 + $0x220] sm:$0xff]  ;;  %v731_v57 = vld [vmem:[%s1892_s3 + $0x328] sm:$0xff]  ;;  %v773_v58 = vld [vmem:[%s1892_s3 + $0x3b0] sm:$0xff] }
  0x33   : > { %655 = vmatpush.msrb.mxu0 %v640_v5  ;;  %743 = vmatpush.msrb.mxu2 %v740_v7  ;;  %v682_v55 = vld [vmem:[%s1892_s3 + $0x2a0] sm:$0xff]  ;;  %v630_v59 = vld [vmem:[%s1892_s3 + $0x218] sm:$0xff]  ;;  %v772_v63 = vld [vmem:[%s1892_s3 + $0x3a8] sm:$0xff]  ;;  %v558_v0 = vsel %vm553_vm0, %v555_v31, %v557_v56  ;;  %v488_v5 = vsel %vm483_vm1, %v485_v38, %v487_v61 }
  0x34   : > { %703 = vmatpush.msrb.mxu1 %v691_v6  ;;  %794 = vmatpush.msrb.mxu3 %v781_v12  ;;  %v681_v60 = vld [vmem:[%s1892_s3 + $0x298] sm:$0xff]  ;;  %v730_v62 = vld [vmem:[%s1892_s3 + $0x320] sm:$0xff]  ;;  %v629_v1 = vld [vmem:[%s1892_s3 + $0x210] sm:$0xff]  ;;  %v1749_v6 = vunpack.c.h.bf16 %v1115_v40 }
  0x35   : > { %656 = vmatpush.msrb.mxu0 %v639_v9  ;;  %744 = vmatpush.msrb.mxu2 %v739_v11  ;;  %v680_v2 = vld [vmem:[%s1892_s3 + $0x290] sm:$0xff]  ;;  %v729_v3 = vld [vmem:[%s1892_s3 + $0x318] sm:$0xff]  ;;  %v771_v4 = vld [vmem:[%s1892_s3 + $0x3a0] sm:$0xff] }
  0x36   : > { %704 = vmatpush.msrb.mxu1 %v690_v10  ;;  %795 = vmatpush.msrb.mxu3 %v780_v17  ;;  %v1119_v7 = vld [vmem:[%s1729_s9] sm:$0xff]   ;;  %v628_v8 = vld [vmem:[%s1892_s3 + $0x208] sm:$0xff]  ;;  %v728_v10 = vld [vmem:[%s1892_s3 + $0x310] sm:$0xff]  ;;  %v695_v30 = vrot.slane %v1749_v6, 2 }
  0x37   : > { %657 = vmatpush.msrb.mxu0 %v638_v14  ;;  %745 = vmatpush.msrb.mxu2 %v738_v16  ;;  %v679_v9 = vld [vmem:[%s1892_s3 + $0x288] sm:$0xff]  ;;  %v770_v11 = vld [vmem:[%s1892_s3 + $0x398] sm:$0xff]  ;;  %v1764_v12 = vunpack.c.l.bf16 %v1119_v7  ;;  %v1766_v13 = vunpack.c.h.bf16 %v1119_v7  ;;  %v627_v14 = vld [vmem:[%s1892_s3 + $0x200] sm:$0xff] }
  0x38   : > { %705 = vmatpush.msrb.mxu1 %v689_v15  ;;  %796 = vmatpush.msrb.mxu3 %v779_v23  ;;  %v678_v15 = vld [vmem:[%s1892_s3 + $0x280] sm:$0xff]  ;;  %v727_v16 = vld [vmem:[%s1892_s3 + $0x308] sm:$0xff]  ;;  %v769_v17 = vld [vmem:[%s1892_s3 + $0x390] sm:$0xff]  ;;  %v647_v23 = vrot.slane %v1749_v6, 1 }
  0x39   : > { %658 = vmatpush.msrb.mxu0 %v637_v18  ;;  %746 = vmatpush.msrb.mxu2 %v737_v22  ;;  %v833_v18 = vld [vmem:[%s1892_s3 + $0x478] sm:$0xff]  ;;  %v646_v22 = vrot.slane %v1685_v48, 1  ;;  %v831_v31 = vld [vmem:[%s1892_s3 + $0x468] sm:$0xff]  ;;  %v828_v41 = vld [vmem:[%s1892_s3 + $0x450] sm:$0xff] }
  0x3a   : > { %706 = vmatpush.msrb.mxu1 %v688_v19  ;;  %797 = vmatpush.msrb.mxu3 %v778_v27  ;;  %v726_v19 = vld [vmem:[%s1892_s3 + $0x300] sm:$0xff]  ;;  %v1800_v27 = vld [vmem:[%s1729_s9 + $0x8] sm:$0x1]  ;;  %v829_v38 = vld [vmem:[%s1892_s3 + $0x458] sm:$0xff] }
  0x3b   : > { %659 = vmatpush.msrb.mxu0 %v636_v24  ;;  %747 = vmatpush.msrb.mxu2 %v736_v26  ;;  %v787_v24 = vrot.slane %v1766_v13, 1  ;;  %v832_v26 = vld [vmem:[%s1892_s3 + $0x470] sm:$0xff] }
  0x3c   : > { %707 = vmatpush.msrb.mxu1 %v687_v25  ;;  %798 = vmatpush.msrb.mxu3 %v777_v33  ;;  %v438_v25 = vld [vmem:[%s1642_s30 + $0x8] sm:$0x1]  ;;  %v824_v49 = vld [vmem:[%s1892_s3 + $0x430] sm:$0xff]  ;;  %s427_s30 = sadd.s32 %s1104_s17, %s1103_s20 }
  0x3d   : > { %660 = vmatpush.msrb.mxu0 %v635_v28  ;;  %748 = vmatpush.msrb.mxu2 %v735_v32  ;;  %v767_v28 = vld [vmem:[%s1892_s3 + $0x380] sm:$0xff]  ;;  %v648_v32 = vsel %vm483_vm1, %v646_v22, %v647_v23  ;;  %s1105_s15 = sshll.u32 %s427_s30, 2 }
  0x3e   : > { %708 = vmatpush.msrb.mxu1 %v686_v29  ;;  %799 = vmatpush.msrb.mxu3 %v776_v39  ;;  %v694_v29 = vrot.slane %v1685_v48, 2  ;;  %s429_s16 = scalar_lea.vmem %s1895_s6, %s1105_s15 }
  0x3f   : > { %661 = vmatpush.msrb.mxu0 %v634_v34  ;;  %749 = vmatpush.msrb.mxu2 %v734_v36  ;;  %v441_v34 = vunpack.c.l.bf16 %v438_v25  ;;  %v830_v36 = vld [vmem:[%s1892_s3 + $0x460] sm:$0xff] }
  0x40   : > { %709 = vmatpush.msrb.mxu1 %v685_v35  ;;  %577 = vmatmul.f32.vlgmr.msra.gmra.mxu2 %v556_v42  ;;  %v447_v35 = vunpack.c.l.bf16 %v1800_v27  ;;  %v696_v37 = vsel %vm553_vm0, %v694_v29, %v695_v30  ;;  %v1187_v27 = vld [vmem:[%s1893_s4] ss:$0 sm:$0xff] }
  0x41   : > { %662 = vmatpush.msrb.mxu0 %v633_v43  ;;  %750 = vmatpush.msrb.mxu2 %v733_v45  ;;  %v649_v39 = vrot.slane %v441_v34, 1  ;;  %v697_v42 = vrot.slane %v441_v34, 2  ;;  %v827_v43 = vld [vmem:[%s1892_s3 + $0x448] sm:$0xff] }
  0x42   : > { %710 = vmatpush.msrb.mxu1 %v684_v44  ;;  %800 = vmatpush.msrb.mxu3 %v775_v46  ;;  %v789_v40 = vrot.slane %v447_v35, 1  ;;  %v826_v46 = vld [vmem:[%s1892_s3 + $0x440] sm:$0xff]  ;;  %v837_v56 = vrot.slane %v447_v35, 2 }
  0x43   : > { %507 = vmatmul.f32.vlgmr.msra.gmra.mxu0 %v486_v47  ;;  %618 = vmatmul.f32.vlgmr.msra.gmra.mxu3 %v1685_v48  ;;  %v650_v44 = vsel %vm483_vm1, %v647_v23, %v649_v39  ;;  %v698_v47 = vsel %vm553_vm0, %v695_v30, %v697_v42  ;;  %v825_v48 = vld [vmem:[%s1892_s3 + $0x438] sm:$0xff] }
  0x44   : > { %663 = vmatpush.msrb.mxu0 %v632_v50  ;;  %711 = vmatpush.msrb.mxu1 %v683_v51  ;;  %v790_v45 = vsel %vm483_vm1, %v787_v24, %v789_v40  ;;  %v823_v50 = vld [vmem:[%s1892_s3 + $0x428] sm:$0xff]  ;;  %v822_v51 = vld [vmem:[%s1892_s3 + $0x420] sm:$0xff] }
  0x45   : > { %751 = vmatpush.msrb.mxu2 %v732_v52  ;;  %801 = vmatpush.msrb.mxu3 %v774_v53  ;;  %v821_v52 = vld [vmem:[%s1892_s3 + $0x418] sm:$0xff]  ;;  %v820_v53 = vld [vmem:[%s1892_s3 + $0x410] sm:$0xff] }
  0x46   : > { %530 = vmatmul.f32.vlgmr.msra.gmra.mxu1 %v1602_v20  ;;  %664 = vmatpush.msrb.mxu0 %v631_v54  ;;  %v768_v20 = vld [vmem:[%s1892_s3 + $0x388] sm:$0xff]  ;;  %v834_v54 = vrot.slane %v1764_v12, 2 }
  0x47   : > { %712 = vmatpush.msrb.mxu1 %v682_v55  ;;  %752 = vmatpush.msrb.mxu2 %v731_v57  ;;  %v835_v55 = vrot.slane %v1766_v13, 2  ;;  %v819_v57 = vld [vmem:[%s1892_s3 + $0x408] sm:$0xff] }
  0x48   : > { %802 = vmatpush.msrb.mxu3 %v773_v58  ;;  %665 = vmatpush.msrb.mxu0 %v630_v59  ;;  %v818_v58 = vld [vmem:[%s1892_s3 + $0x400] sm:$0xff] }
  0x49   : > { %713 = vmatpush.msrb.mxu1 %v681_v60  ;;  %753 = vmatpush.msrb.mxu2 %v730_v62  ;;  %v836_v59 = vsel %vm553_vm0, %v834_v54, %v835_v55  ;;  %v838_v60 = vsel %vm553_vm0, %v835_v55, %v837_v56 }
  0x4a   : > { %803 = vmatpush.msrb.mxu3 %v772_v63  ;;  %580 = vmatmul.f32.gmra.mxu2 %v558_v0 }
  0x4b   : > { %666 = vmatpush.msrb.mxu0 %v629_v1  ;;  %714 = vmatpush.msrb.mxu1 %v680_v2 }
  0x4c   : > { %754 = vmatpush.msrb.mxu2 %v729_v3  ;;  %804 = vmatpush.msrb.mxu3 %v771_v4 }
  0x4d   : > { %510 = vmatmul.f32.gmra.mxu0 %v488_v5  ;;  %621 = vmatmul.f32.gmra.mxu3 %v1749_v6 }
  0x4e   : > { %667 = vmatpush.msrb.mxu0 %v628_v8  ;;  %715 = vmatpush.msrb.mxu1 %v679_v9 }
  0x4f   : > { %755 = vmatpush.msrb.mxu2 %v728_v10  ;;  %805 = vmatpush.msrb.mxu3 %v770_v11 }
  0x50   : > { %533 = vmatmul.f32.gmra.mxu1 %v1604_v21  ;;  %668 = vmatpush.msrb.mxu0 %v627_v14  ;;  %v786_v21 = vrot.slane %v1764_v12, 1 }
  0x51   : > { %716 = vmatpush.msrb.mxu1 %v678_v15  ;;  %756 = vmatpush.msrb.mxu2 %v727_v16 }
  0x52   : > { %806 = vmatpush.msrb.mxu3 %v769_v17  ;;  %841 = vmatpush.msra.mxu0 %v833_v18  ;;  %v788_v33 = vsel %vm483_vm1, %v786_v21, %v787_v24 }
  0x53   : > { %1127 = vmatpush.msra.mxu1 %v833_v18  ;;  %757 = vmatpush.msrb.mxu2 %v726_v19 }
  0x54   : > { %807 = vmatpush.msrb.mxu3 %v768_v20  ;;  %842 = vmatpush.msra.mxu0 %v832_v26 }
  0x55   : > { %1128 = vmatpush.msra.mxu1 %v832_v26  ;;  %758 = vmatmul.f32.vlgmr.msrb.gmra.mxu2 %v1764_v12 }
  0x56   : > { %808 = vmatpush.msrb.mxu3 %v767_v28  ;;  %843 = vmatpush.msra.mxu0 %v831_v31 }
  0x57   : > { %1129 = vmatpush.msra.mxu1 %v831_v31  ;;  %669 = vmatmul.f32.vlgmr.msrb.gmra.mxu0 %v648_v32  ;;  %v1188_v31 = vld [vmem:[%s1894_s5] ss:$0 sm:$0xff] }
  0x58   : > { %809 = vmatmul.f32.vlgmr.msrb.gmra.mxu3 %v788_v33  ;;  %844 = vmatpush.msra.mxu0 %v830_v36 }
  0x59   : > { %1130 = vmatpush.msra.mxu1 %v830_v36 }
  0x5a   : > { %717 = vmatmul.f32.vlgmr.msrb.gmra.mxu1 %v696_v37  ;;  %845 = vmatpush.msra.mxu0 %v829_v38 }
  0x5b   : > { %1131 = vmatpush.msra.mxu1 %v829_v38 }
  0x5c   : > { %846 = vmatpush.msra.mxu0 %v828_v41 }
  0x5d   : > { %1132 = vmatpush.msra.mxu1 %v828_v41  ;;  %761 = vmatmul.f32.gmra.mxu2 %v1766_v13 }
  0x5e   : > { %847 = vmatpush.msra.mxu0 %v827_v43 }
  0x5f   : > { %1133 = vmatpush.msra.mxu1 %v827_v43  ;;  %672 = vmatmul.f32.gmra.mxu0 %v650_v44 }
  0x60   : > { %812 = vmatmul.f32.gmra.mxu3 %v790_v45  ;;  %848 = vmatpush.msra.mxu0 %v826_v46 }
  0x61   : > { %1134 = vmatpush.msra.mxu1 %v826_v46 }
  0x62   : > { %720 = vmatmul.f32.gmra.mxu1 %v698_v47  ;;  %849 = vmatpush.msra.mxu0 %v825_v48 }
  0x63   : > { %1135 = vmatpush.msra.mxu1 %v825_v48 }
  0x64   : > { %850 = vmatpush.msra.mxu0 %v824_v49 }
  0x65   : > { %1136 = vmatpush.msra.mxu1 %v824_v49 }
  0x66   : > { %851 = vmatpush.msra.mxu0 %v823_v50 }
  0x67   : > { %1137 = vmatpush.msra.mxu1 %v823_v50 }
  0x68   : > { %852 = vmatpush.msra.mxu0 %v822_v51 }
  0x69   : > { %1138 = vmatpush.msra.mxu1 %v822_v51 }
  0x6a   : > { %853 = vmatpush.msra.mxu0 %v821_v52 }
  0x6b   : > { %1139 = vmatpush.msra.mxu1 %v821_v52 }
  0x6c   : > { %854 = vmatpush.msra.mxu0 %v820_v53 }
  0x6d   : > { %1140 = vmatpush.msra.mxu1 %v820_v53 }
  0x6e   : > { %855 = vmatpush.msra.mxu0 %v819_v57 }
  0x6f   : > { %1141 = vmatpush.msra.mxu1 %v819_v57 }
  0x70   : > { %856 = vmatpush.msra.mxu0 %v818_v58 }
  0x71   : > { %1142 = vmatpush.msra.mxu1 %v818_v58  ;;  %857 = vmatmul.f32.vlgmr.msra.gmra.mxu0 %v836_v59 }
  0x72   : > { %860 = vmatmul.f32.vlgmr.msra.gmra.mxu1 %v838_v60 }
  0xc0   : > { %v508_v61 = vpop.f32.mrf.mxu0 }
  0xc3   : > { %v531_v62 = vpop.f32.mrf.mxu1  ;;  %v578_v63 = vpop.f32.mrf.mxu2 }
  0xc4   : > { %v532_v5 = vadd.f32 %v531_v62, %v508_v61 }
  0xc6   : > { %v619_v1 = vpop.f32.mrf.mxu3  ;;  %v584_v9 = vadd.f32 %v578_v63, %v532_v5 }
  0xc8   : > { %v625_v12 = vadd.f32 %v619_v1, %v584_v9 }
  0xca   : > { %v511_v0 = vpop.f32.mrf.mxu0 }
  0xcd   : > { %v534_v2 = vpop.f32.mrf.mxu1  ;;  %v581_v3 = vpop.f32.mrf.mxu2 }
  0xce   : > { %v535_v6 = vadd.f32 %v534_v2, %v511_v0 }
  0xd0   : > { %v622_v7 = vpop.f32.mrf.mxu3  ;;  %v585_v10 = vadd.f32 %v581_v3, %v535_v6 }
  0xd2   : > { %v626_v13 = vadd.f32 %v622_v7, %v585_v10 }
  0xd4   : > { %v670_v4 = vpop.f32.mrf.mxu0 }
  0xd5   : > { %v676_v16 = vadd.f32 %v670_v4, %v625_v12 }
  0xd7   : > { %v718_v8 = vpop.f32.mrf.mxu1 }
  0xd8   : > { %v759_v11 = vpop.f32.mrf.mxu2  ;;  %v724_v19 = vadd.f32 %v718_v8, %v676_v16 }
  0xda   : > { %v765_v23 = vadd.f32 %v759_v11, %v724_v19 }
  0xdb   : > { %v810_v15 = vpop.f32.mrf.mxu3 }
  0xdc   : > { %v673_v14 = vpop.f32.mrf.mxu0  ;;  %v816_v25 = vadd.f32 %v810_v15, %v765_v23 }
  0xdd   : > { %v677_v17 = vadd.f32 %v673_v14, %v626_v13 }
  0xdf   : > { %v721_v18 = vpop.f32.mrf.mxu1 }
  0xe0   : > { %v725_v20 = vadd.f32 %v721_v18, %v677_v17  ;;  %v762_v22 = vpop.f32.mrf.mxu2 }
  0xe2   : > { %v766_v21 = vadd.f32 %v762_v22, %v725_v20 }
  0xe3   : > { %v813_v24 = vpop.f32.mrf.mxu3 }
  0xe4   : > { %v817_v26 = vadd.f32 %v813_v24, %v766_v21 }
  0xee   : > { %v858_v28 = vpop.f32.mrf.mxu0 }
  0xef   : > { %v861_v29 = vpop.f32.mrf.mxu1  ;;  %v864_v30 = vadd.f32 %v858_v28, %v816_v25 }
  0xf0   : > { %v865_v32 = vadd.f32 %v861_v29, %v817_v26 }
  0xf1   : > { %v870_v33 = vmul.f32 %v1187_v27, %v864_v30 }
  0xf2   : > { %v871_v34 = vmul.f32 %v1187_v27, %v865_v32 }
  0xf3   : > { %v876_v35 = vadd.f32 %v1188_v31, %v870_v33 }
  0xf4   : > { %v877_v36 = vadd.f32 %v1188_v31, %v871_v34 }
  0xf5   : > { %v878_v37 = vmin.f32 %v876_v35, 20.0 }
  0xf6   : > { %v879_v38 = vmin.f32 %v877_v36, 20.0 }
  0xf7   : > { %v880_v39 = vmul.f32 1.442695, %v878_v37 }
  0xf8   : > { %v882_v40 = vmul.f32 1.442695, %v879_v38 }
  0xf9   : > { %1189 = vpow2.f32 %v880_v39 }
  0xfa   : > { %1191 = vpow2.f32 %v882_v40 }
  0xff   : > { %v1190_v41 = vpop.eup %1189 }
 0x100   : > { %v1192_v42 = vpop.eup %1191  ;;  %v884_v43 = vadd.f32 1.0, %v1190_v41 }
 0x101   : > { %v885_v44 = vadd.f32 1.0, %v1192_v42 }
 0x102   : > { %v886_v45 = vmul.f32 %v884_v43, %v884_v43 }
 0x103   : > { %v887_v46 = vmul.f32 %v885_v44, %v885_v44 }
 0x104   : > { %v892_v47 = vadd.f32 1.0, %v886_v45  ;;  %v1106_v49 = vadd.f32 -1.0, %v886_v45 }
 0x105   : > { %v893_v48 = vadd.f32 1.0, %v887_v46  ;;  %v1107_v50 = vadd.f32 -1.0, %v887_v46 }
 0x106   : > { %1193 = vrcp.f32 %v892_v47  ;;  %v890_v51 = vmul.f32 %v1106_v49, %v876_v35 }
 0x107   : > { %1195 = vrcp.f32 %v893_v48  ;;  %v891_v53 = vmul.f32 %v1107_v50, %v877_v36 }
 0x10c   : > { %v1194_v52 = vpop.eup %1193 }
 0x10d   : > { %v1196_v54 = vpop.eup %1195  ;;  %v896_v55 = vmul.f32 %v1194_v52, %v890_v51 }
 0x10e   : > { %v897_v56 = vmul.f32 %v1196_v54, %v891_v53 }
 0x110   : > { %v1125_v57 = vpack.c.bf16 %v897_v56, %v896_v55 }
 0x112   : > { %1126 = vst [vmem:[%s429_s16] sm:$0xff] %v1125_v57  }
 0x113 PF: > { %s16_s25 = sadd.s32 1, %s1235_s25   ;;  %s1898_s21 = smov %s1227_s23 }
 0x114   : > { %p13_p10 = scmp.ge.s32.totalorder %s16_s25, 34   ;;  %s1899_s22 = smov %s1231_s24 }
 0x115   : > { %s1900_s23 = smov %s1903_s26  ;;  %s1901_s24 = smov %s1907_s27 }
 0x116   :  { %15 = sbr.rel (!%p13_p10) target bundleno = 3 (0x3), region = 89 }

// kernel: _lambda_.12
= control target key start
LH: loop header
LB: loop body
LE: loop exit
PB: predicated region body
PF: predicated region fallthrough
CT: control target
= control target key end

     0   :  { %s2753_s18 = smov 0   ;;  %s2755_s19 = smov 0   ;;  %s3542_s0 = inlined_call_operand.vmem [shape: bf16[512,128], index: 0, kind: input, shape index: {}]   ;;  %s3543_s1 = inlined_call_operand.vmem [shape: bf16[128,256], index: 1, kind: input, shape index: {}]   ;;  %s3544_s2 = inlined_call_operand.vmem [shape: f32[1,256], index: 2, kind: input, shape index: {}]   ;;  %s3545_s3 = inlined_call_operand.vmem [shape: f32[1,256], index: 3, kind: input, shape index: {}]   ;;  %s3546_s4 = inlined_call_operand.vmem [shape: f32[1,256], index: 4, kind: input, shape index: {}]   ;;  %s3547_s5 = inlined_call_operand.vmem [shape: bf16[512,256], index: 5, kind: output, shape index: {}]  }
   0x1   :  { %s2757_s20 = smov 0  }
   0x2 LB: > { %s34_s21 = sadd.s32 1, %s2716_s19  ;;  %p2168_p0 = scmp.ge.s32.totalorder %s2720_s20, 1  ;;  %s2720_s20 = sphi %s2757_s20, %s15_s20   ;;  %s2716_s19 = sphi %s2755_s19, %s3553_s19   ;;  %s2712_s18 = sphi %s2753_s18, %s3552_s18  }
   0x3   : > { %p36_p1 = scmp.ge.s32.totalorder %s34_s21, 2  ;;  %p263_p2 = scmp.lt.s32.totalorder %s2720_s20, 3 }
   0x5   : > { %s3555_s21 = smov (%p36_p1, %s34_s21), 0  ;;  %p264_p3 = pnand %p2168_p0, %p263_p2 }
   0x6   : > { %s2169_s16 = sshll.u32 (!%p264_p3), %s2712_s18, 5 }
   0x7   : > { %267 = sbr.rel (%p264_p3) target bundleno = 415 (0x19f), region = 40  ;;  %p322_p4 = scmp.lt.s32.totalorder (!%p264_p3), %s2169_s16, 63 }
   0xc   : > { %v2296_v0 = vld [vmem:[%s3543_s1 + $0x70] sm:$0xf]  ;;  %v2400_v1 = vld [vmem:[%s3543_s1 + $0x74] sm:$0xf0]  ;;  %v2399_v2 = vld [vmem:[%s3543_s1 + $0x74] sm:$0xf] }
   0xd   : > { %v2297_v3 = vor.u32 %v2400_v1, %v2296_v0  ;;  %v2298_v4 = vld [vmem:[%s3543_s1 + $0x78] sm:$0xf0]  ;;  %v2288_v5 = vld [vmem:[%s3543_s1 + $0x60] sm:$0xf]  ;;  %v2398_v6 = vld [vmem:[%s3543_s1 + $0x64] sm:$0xf0] }
   0xe   : > { %v2301_v7 = vor.u32 %v2399_v2, %v2298_v4  ;;  %v2397_v8 = vld [vmem:[%s3543_s1 + $0x64] sm:$0xf]  ;;  %v2290_v9 = vld [vmem:[%s3543_s1 + $0x68] sm:$0xf0]  ;;  %v2289_v10 = vor.u32 %v2398_v6, %v2288_v5  ;;  %v2280_v12 = vld [vmem:[%s3543_s1 + $0x50] sm:$0xf] }
   0xf   : > { %725 = vmatpush.bf16.msra.mxu0 %v2297_v3  ;;  %2401 = vmatpush.bf16.msra.mxu2 %v2297_v3  ;;  %v2293_v11 = vor.u32 %v2397_v8, %v2290_v9  ;;  %v2396_v13 = vld [vmem:[%s3543_s1 + $0x54] sm:$0xf0]  ;;  %v2395_v14 = vld [vmem:[%s3543_s1 + $0x54] sm:$0xf]  ;;  %v2282_v15 = vld [vmem:[%s3543_s1 + $0x58] sm:$0xf0] }
  0x10   : > { %814 = vmatpush.bf16.msra.mxu1 %v2301_v7  ;;  %2409 = vmatpush.bf16.msra.mxu3 %v2301_v7  ;;  %v2281_v16 = vor.u32 %v2396_v13, %v2280_v12  ;;  %v2285_v17 = vor.u32 %v2395_v14, %v2282_v15  ;;  %v2272_v18 = vld [vmem:[%s3543_s1 + $0x40] sm:$0xf]  ;;  %v2394_v19 = vld [vmem:[%s3543_s1 + $0x44] sm:$0xf0]  ;;  %v2393_v20 = vld [vmem:[%s3543_s1 + $0x44] sm:$0xf] }
  0x11   : > { %v2274_v21 = vld [vmem:[%s3543_s1 + $0x48] sm:$0xf0]  ;;  %v2273_v22 = vor.u32 %v2394_v19, %v2272_v18  ;;  %v2264_v24 = vld [vmem:[%s3543_s1 + $0x30] sm:$0xf]  ;;  %v2392_v25 = vld [vmem:[%s3543_s1 + $0x34] sm:$0xf0] }
  0x12   : > { %v2277_v23 = vor.u32 %v2393_v20, %v2274_v21  ;;  %v2391_v26 = vld [vmem:[%s3543_s1 + $0x34] sm:$0xf]  ;;  %v2266_v27 = vld [vmem:[%s3543_s1 + $0x38] sm:$0xf0]  ;;  %v2265_v28 = vor.u32 %v2392_v25, %v2264_v24  ;;  %v2256_v30 = vld [vmem:[%s3543_s1 + $0x20] sm:$0xf] }
  0x13   : > { %726 = vmatpush.bf16.msra.mxu0 %v2289_v10  ;;  %2402 = vmatpush.bf16.msra.mxu2 %v2289_v10  ;;  %v2269_v29 = vor.u32 %v2391_v26, %v2266_v27  ;;  %v2390_v31 = vld [vmem:[%s3543_s1 + $0x24] sm:$0xf0]  ;;  %v2389_v32 = vld [vmem:[%s3543_s1 + $0x24] sm:$0xf]  ;;  %v2258_v33 = vld [vmem:[%s3543_s1 + $0x28] sm:$0xf0] }
  0x14   : > { %815 = vmatpush.bf16.msra.mxu1 %v2293_v11  ;;  %2410 = vmatpush.bf16.msra.mxu3 %v2293_v11  ;;  %v2257_v34 = vor.u32 %v2390_v31, %v2256_v30  ;;  %v2261_v35 = vor.u32 %v2389_v32, %v2258_v33  ;;  %v2248_v36 = vld [vmem:[%s3543_s1 + $0x10] sm:$0xf]  ;;  %v2388_v37 = vld [vmem:[%s3543_s1 + $0x14] sm:$0xf0]  ;;  %s3557_s16 = smov (!%p322_p4, %s2169_s16), 63  ;;  %v2722_v27 = vmov 0  }
  0x15   : > { %v2387_v38 = vld [vmem:[%s3543_s1 + $0x14] sm:$0xf]  ;;  %v2250_v39 = vld [vmem:[%s3543_s1 + $0x18] sm:$0xf0]  ;;  %v2249_v40 = vor.u32 %v2388_v37, %v2248_v36  ;;  %v2240_v42 = vld [vmem:[%s3543_s1] sm:$0xf] }
  0x16   : > { %v2253_v41 = vor.u32 %v2387_v38, %v2250_v39  ;;  %v2386_v43 = vld [vmem:[%s3543_s1 + $0x4] sm:$0xf0]  ;;  %s2170_s15 = sshll.u32 %s3557_s16, 2  ;;  %v2385_v44 = vld [vmem:[%s3543_s1 + $0x4] sm:$0xf]  ;;  %s2368_s8 = sshll.u32 %s3557_s16, 3 }
  0x17   : > { %727 = vmatpush.bf16.msra.mxu0 %v2281_v16  ;;  %2403 = vmatpush.bf16.msra.mxu2 %v2281_v16  ;;  %v2242_v45 = vld [vmem:[%s3543_s1 + $0x8] sm:$0xf0]  ;;  %v2241_v46 = vor.u32 %v2386_v43, %v2240_v42  ;;  %s2876_s18 = scalar_lea.vmem %s3542_s0, %s2170_s15  ;;  %v1098_v0 = vld [vmem:[%s3544_s2] sm:$0x3]  ;;  %s2983_s10 = scalar_lea.vmem %s3547_s5, %s2368_s8 }
  0x18   : > { %816 = vmatpush.bf16.msra.mxu1 %v2285_v17  ;;  %2411 = vmatpush.bf16.msra.mxu3 %v2285_v17  ;;  %v2245_v47 = vor.u32 %v2385_v44, %v2242_v45  ;;  %v2369_v48 = vld [vmem:[%s2876_s18] sm:$0xff]  ;;  %v2370_v50 = vld [vmem:[%s2876_s18 + $0x8] sm:$0xff]  ;;  %v2371_v52 = vld [vmem:[%s2876_s18 + $0x10] sm:$0xff]  ;;  %v2900_v2 = vperm.slane %v1098_v0, 0  ;;  %v2902_v3 = vperm.slane %v1098_v0, 1 }
  0x19   : > { %v2377_v49 = vld [vmem:[%s2876_s18 + $0x40] sm:$0xff]  ;;  %v2378_v51 = vld [vmem:[%s2876_s18 + $0x48] sm:$0xff]  ;;  %v2379_v53 = vld [vmem:[%s2876_s18 + $0x50] sm:$0xff] }
  0x1a   : > { %v2372_v54 = vld [vmem:[%s2876_s18 + $0x18] sm:$0xff]  ;;  %v2373_v56 = vld [vmem:[%s2876_s18 + $0x20] sm:$0xff]  ;;  %v2374_v58 = vld [vmem:[%s2876_s18 + $0x28] sm:$0xff] }
  0x1b   : > { %728 = vmatpush.bf16.msra.mxu0 %v2273_v22  ;;  %2404 = vmatpush.bf16.msra.mxu2 %v2273_v22  ;;  %v2380_v55 = vld [vmem:[%s2876_s18 + $0x58] sm:$0xff]  ;;  %v2381_v57 = vld [vmem:[%s2876_s18 + $0x60] sm:$0xff]  ;;  %v2382_v59 = vld [vmem:[%s2876_s18 + $0x68] sm:$0xff] }
  0x1c   : > { %817 = vmatpush.bf16.msra.mxu1 %v2277_v23  ;;  %2412 = vmatpush.bf16.msra.mxu3 %v2277_v23  ;;  %v2375_v60 = vld [vmem:[%s2876_s18 + $0x30] sm:$0xff]  ;;  %v2376_v62 = vld [vmem:[%s2876_s18 + $0x38] sm:$0xff]  ;;  %v1168_v1 = vld [vmem:[%s3545_s3] sm:$0x3] }
  0x1d   : > { %v2383_v61 = vld [vmem:[%s2876_s18 + $0x70] sm:$0xff]  ;;  %v2384_v63 = vld [vmem:[%s2876_s18 + $0x78] sm:$0xff]  ;;  %v2904_v4 = vperm.slane %v1168_v1, 0  ;;  %v2906_v6 = vperm.slane %v1168_v1, 1  ;;  %v1238_v12 = vld [vmem:[%s3546_s4] sm:$0x3] }
  0x1e   : > { %vm1239_vm0 = vcmp.gt.f32.partialorder %v1238_v12, 0.0 }
  0x1f   : > { %729 = vmatpush.bf16.msra.mxu0 %v2265_v28  ;;  %2405 = vmatpush.bf16.msra.mxu2 %v2265_v28  ;;  %v1880_v28 = vsel %vm1239_vm0, 1, %v2722_v27 }
  0x20   : > { %818 = vmatpush.bf16.msra.mxu1 %v2269_v29  ;;  %2413 = vmatpush.bf16.msra.mxu3 %v2269_v29 }
  0x23   : > { %730 = vmatpush.bf16.msra.mxu0 %v2257_v34  ;;  %2406 = vmatpush.bf16.msra.mxu2 %v2257_v34 }
  0x24   : > { %819 = vmatpush.bf16.msra.mxu1 %v2261_v35  ;;  %2414 = vmatpush.bf16.msra.mxu3 %v2261_v35  ;;  %v1881_v35 = vperm.slane %v1880_v28, 0 }
  0x26   : > { %vm2955_vm1 = vcmp.eq.s32.totalorder %v1881_v35, 1 }
  0x27   : > { %731 = vmatpush.bf16.msra.mxu0 %v2249_v40  ;;  %2407 = vmatpush.bf16.msra.mxu2 %v2249_v40  ;;  %v1882_v40 = vperm.slane %v1880_v28, 1 }
  0x28   : > { %820 = vmatpush.bf16.msra.mxu1 %v2253_v41  ;;  %2415 = vmatpush.bf16.msra.mxu3 %v2253_v41 }
  0x29   : > { %vm2963_vm2 = vcmp.eq.s32.totalorder %v1882_v40, 1 }
  0x2b   : > { %732 = vmatpush.bf16.msra.mxu0 %v2241_v46  ;;  %2408 = vmatpush.bf16.msra.mxu2 %v2241_v46 }
  0x2c   : > { %821 = vmatpush.bf16.msra.mxu1 %v2245_v47  ;;  %2416 = vmatpush.bf16.msra.mxu3 %v2245_v47 }
  0x2e   : > { %733 = vmatmul.bf16.vlgmr.msra.gmra.mxu0 %v2369_v48  ;;  %773 = vmatmul.bf16.vlgmr.msra.gmra.mxu2 %v2377_v49 }
  0x2f   : > { %822 = vmatmul.bf16.vlgmr.msra.gmra.mxu1 %v2369_v48  ;;  %862 = vmatmul.bf16.vlgmr.msra.gmra.mxu3 %v2377_v49 }
  0x3e   : > { %738 = vmatmul.bf16.gmra.mxu0 %v2370_v50  ;;  %778 = vmatmul.bf16.gmra.mxu2 %v2378_v51 }
  0x3f   : > { %827 = vmatmul.bf16.gmra.mxu1 %v2370_v50  ;;  %867 = vmatmul.bf16.gmra.mxu3 %v2378_v51 }
  0x4e   : > { %743 = vmatmul.bf16.gmra.mxu0 %v2371_v52  ;;  %783 = vmatmul.bf16.gmra.mxu2 %v2379_v53 }
  0x4f   : > { %832 = vmatmul.bf16.gmra.mxu1 %v2371_v52  ;;  %872 = vmatmul.bf16.gmra.mxu3 %v2379_v53 }
  0x5e   : > { %748 = vmatmul.bf16.gmra.mxu0 %v2372_v54  ;;  %788 = vmatmul.bf16.gmra.mxu2 %v2380_v55 }
  0x5f   : > { %837 = vmatmul.bf16.gmra.mxu1 %v2372_v54  ;;  %877 = vmatmul.bf16.gmra.mxu3 %v2380_v55 }
  0x6e   : > { %753 = vmatmul.bf16.gmra.mxu0 %v2373_v56  ;;  %793 = vmatmul.bf16.gmra.mxu2 %v2381_v57 }
  0x6f   : > { %842 = vmatmul.bf16.gmra.mxu1 %v2373_v56  ;;  %882 = vmatmul.bf16.gmra.mxu3 %v2381_v57 }
  0x7e   : > { %758 = vmatmul.bf16.gmra.mxu0 %v2374_v58  ;;  %798 = vmatmul.bf16.gmra.mxu2 %v2382_v59 }
  0x7f   : > { %847 = vmatmul.bf16.gmra.mxu1 %v2374_v58  ;;  %887 = vmatmul.bf16.gmra.mxu3 %v2382_v59 }
  0x8e   : > { %763 = vmatmul.bf16.gmra.mxu0 %v2375_v60  ;;  %803 = vmatmul.bf16.gmra.mxu2 %v2383_v61 }
  0x8f   : > { %852 = vmatmul.bf16.gmra.mxu1 %v2375_v60  ;;  %892 = vmatmul.bf16.gmra.mxu3 %v2383_v61 }
  0x9e   : > { %768 = vmatmul.bf16.gmra.mxu0 %v2376_v62  ;;  %808 = vmatmul.bf16.gmra.mxu2 %v2384_v63 }
  0x9f   : > { %857 = vmatmul.bf16.gmra.mxu1 %v2376_v62  ;;  %897 = vmatmul.bf16.gmra.mxu3 %v2384_v63 }
  0xab   : > { %v734_v5 = vpop.f32.mrf.mxu0 }
  0xac   : > { %v1104_v7 = vmul.f32 %v2900_v2, %v734_v5  ;;  %v823_v8 = vpop.f32.mrf.mxu1 }
  0xad   : > { %v1105_v9 = vmul.f32 %v2902_v3, %v823_v8 }
  0xae   : > { %v2911_v10 = vadd.f32 %v2904_v4, %v1104_v7 }
  0xaf   : > { %v2914_v11 = vadd.f32 %v2906_v6, %v1105_v9 }
  0xb0   : > { %v1240_v13 = vmin.f32 %v2911_v10, 20.0 }
  0xb1   : > { %v1241_v14 = vmin.f32 %v2914_v11, 20.0  ;;  %v774_v15 = vpop.f32.mrf.mxu2 }
  0xb2   : > { %v1304_v16 = vmul.f32 1.442695, %v1240_v13  ;;  %v1136_v17 = vmul.f32 %v2900_v2, %v774_v15  ;;  %v863_v18 = vpop.f32.mrf.mxu3 }
  0xb3   : > { %v1306_v19 = vmul.f32 1.442695, %v1241_v14  ;;  %v1137_v20 = vmul.f32 %v2902_v3, %v863_v18  ;;  %v736_v21 = vpop.f32.mrf.mxu0 }
  0xb4   : > { %2442 = vpow2.f32 %v1304_v16  ;;  %v2924_v22 = vadd.f32 %v2904_v4, %v1136_v17  ;;  %v1106_v23 = vmul.f32 %v2900_v2, %v736_v21  ;;  %v825_v24 = vpop.f32.mrf.mxu1 }
  0xb5   : > { %2444 = vpow2.f32 %v1306_v19  ;;  %v2928_v25 = vadd.f32 %v2906_v6, %v1137_v20  ;;  %v1107_v26 = vmul.f32 %v2902_v3, %v825_v24 }
  0xb6   : > { %v1272_v29 = vmin.f32 %v2924_v22, 20.0  ;;  %v2933_v30 = vadd.f32 %v2904_v4, %v1106_v23 }
  0xb7   : > { %v1273_v31 = vmin.f32 %v2928_v25, 20.0  ;;  %v2937_v32 = vadd.f32 %v2906_v6, %v1107_v26 }
  0xb8   : > { %v1368_v33 = vmul.f32 1.442695, %v1272_v29  ;;  %v1242_v34 = vmin.f32 %v2933_v30, 20.0 }
  0xb9   : > { %v1370_v36 = vmul.f32 1.442695, %v1273_v31  ;;  %v1243_v37 = vmin.f32 %v2937_v32, 20.0  ;;  %v776_v38 = vpop.f32.mrf.mxu2 }
  0xba   : > { %v2443_v39 = vpop.eup %2442  ;;  %2446 = vpow2.f32 %v1368_v33  ;;  %v1308_v41 = vmul.f32 1.442695, %v1242_v34  ;;  %v1138_v42 = vmul.f32 %v2900_v2, %v776_v38  ;;  %v865_v43 = vpop.f32.mrf.mxu3 }
  0xbb   : > { %v2445_v44 = vpop.eup %2444  ;;  %v1432_v45 = vadd.f32 1.0, %v2443_v39  ;;  %2448 = vpow2.f32 %v1370_v36  ;;  %v1310_v46 = vmul.f32 1.442695, %v1243_v37  ;;  %v1139_v47 = vmul.f32 %v2902_v3, %v865_v43  ;;  %v739_v48 = vpop.f32.mrf.mxu0 }
  0xbc   : > { %v1433_v49 = vadd.f32 1.0, %v2445_v44  ;;  %2450 = vpow2.f32 %v1308_v41  ;;  %v2944_v50 = vadd.f32 %v2904_v4, %v1138_v42  ;;  %v1108_v51 = vmul.f32 %v2900_v2, %v739_v48  ;;  %v828_v52 = vpop.f32.mrf.mxu1 }
  0xbd   : > { %v1496_v53 = vmul.f32 %v1432_v45, %v1432_v45  ;;  %2452 = vpow2.f32 %v1310_v46  ;;  %v2948_v54 = vadd.f32 %v2906_v6, %v1139_v47  ;;  %v1109_v55 = vmul.f32 %v2902_v3, %v828_v52 }
  0xbe   : > { %v1497_v56 = vmul.f32 %v1433_v49, %v1433_v49  ;;  %v1274_v57 = vmin.f32 %v2944_v50, 20.0  ;;  %v2953_v58 = vadd.f32 %v2904_v4, %v1108_v51 }
  0xbf   : > { %v2302_v59 = vadd.f32 -1.0, %v1496_v53  ;;  %v1688_v60 = vadd.f32 1.0, %v1496_v53  ;;  %v1275_v62 = vmin.f32 %v2948_v54, 20.0  ;;  %v2961_v63 = vadd.f32 %v2906_v6, %v1109_v55 }
  0xc0   : > { %v2447_v0 = vpop.eup %2446  ;;  %v2303_v1 = vadd.f32 -1.0, %v1497_v56  ;;  %v1689_v5 = vadd.f32 1.0, %v1497_v56  ;;  %v1372_v8 = vmul.f32 1.442695, %v1274_v57  ;;  %v1244_v9 = vmin.f32 %v2953_v58, 20.0 }
  0xc1   : > { %v2449_v12 = vpop.eup %2448  ;;  %v1624_v13 = vmul.f32 %v2302_v59, %v2911_v10  ;;  %2454 = vrcp.f32 %v1688_v60  ;;  %v1464_v14 = vadd.f32 1.0, %v2447_v0  ;;  %v1374_v15 = vmul.f32 1.442695, %v1275_v62  ;;  %v779_v16 = vpop.f32.mrf.mxu2 }
  0xc2   : > { %v2451_v17 = vpop.eup %2450  ;;  %v1625_v18 = vmul.f32 %v2303_v1, %v2914_v11  ;;  %2456 = vrcp.f32 %v1689_v5  ;;  %v1465_v19 = vadd.f32 1.0, %v2449_v12  ;;  %v1312_v20 = vmul.f32 1.442695, %v1244_v9  ;;  %v868_v47 = vpop.f32.mrf.mxu3 }
  0xc3   : > { %v2453_v21 = vpop.eup %2452  ;;  %v1528_v23 = vmul.f32 %v1464_v14, %v1464_v14  ;;  %v1434_v24 = vadd.f32 1.0, %v2451_v17  ;;  %2458 = vpow2.f32 %v1372_v8  ;;  %v1245_v26 = vmin.f32 %v2961_v63, 20.0  ;;  %v741_v53 = vpop.f32.mrf.mxu0 }
  0xc4   : > { %v1529_v27 = vmul.f32 %v1465_v19, %v1465_v19  ;;  %v1435_v28 = vadd.f32 1.0, %v2453_v21  ;;  %2460 = vpow2.f32 %v1374_v15  ;;  %v1140_v29 = vmul.f32 %v2900_v2, %v779_v16  ;;  %v830_v60 = vpop.f32.mrf.mxu1 }
  0xc5   : > { %v2334_v31 = vadd.f32 -1.0, %v1528_v23  ;;  %v1720_v33 = vadd.f32 1.0, %v1528_v23  ;;  %v1498_v34 = vmul.f32 %v1434_v24, %v1434_v24  ;;  %2462 = vpow2.f32 %v1312_v20 }
  0xc6   : > { %v2335_v35 = vadd.f32 -1.0, %v1529_v27  ;;  %v1721_v36 = vadd.f32 1.0, %v1529_v27  ;;  %v1499_v37 = vmul.f32 %v1435_v28, %v1435_v28  ;;  %v1314_v38 = vmul.f32 1.442695, %v1245_v26 }
  0xc7   : > { %v2455_v39 = vpop.eup %2454  ;;  %v1656_v40 = vmul.f32 %v2334_v31, %v2924_v22  ;;  %2464 = vrcp.f32 %v1720_v33  ;;  %v2304_v41 = vadd.f32 -1.0, %v1498_v34  ;;  %v1690_v42 = vadd.f32 1.0, %v1498_v34 }
  0xc8   : > { %v2457_v43 = vpop.eup %2456  ;;  %v1816_v44 = vmul.f32 %v2455_v39, %v1624_v13  ;;  %v1657_v45 = vmul.f32 %v2335_v35, %v2928_v25  ;;  %2466 = vrcp.f32 %v1721_v36  ;;  %v2305_v46 = vadd.f32 -1.0, %v1499_v37 }
  0xc9   : > { %v2459_v48 = vpop.eup %2458  ;;  %v1817_v49 = vmul.f32 %v2457_v43, %v1625_v18  ;;  %v1626_v51 = vmul.f32 %v2304_v41, %v2933_v30  ;;  %2468 = vrcp.f32 %v1690_v42  ;;  %v1691_v52 = vadd.f32 1.0, %v1499_v37  ;;  %v781_v35 = vpop.f32.mrf.mxu2 }
  0xca   : > { %v2461_v55 = vpop.eup %2460  ;;  %v1885_v56 = vsel %vm2955_vm1, %v1816_v44, %v2911_v10  ;;  %v1627_v57 = vmul.f32 %v2305_v46, %v2937_v32  ;;  %v1466_v59 = vadd.f32 1.0, %v2459_v48  ;;  %2470 = vpow2.f32 %v1314_v38  ;;  %v870_v43 = vpop.f32.mrf.mxu3 }
  0xcb   : > { %v2463_v62 = vpop.eup %2462  ;;  %v1886_v0 = vsel %vm2963_vm2, %v1817_v49, %v2914_v11  ;;  %2472 = vrcp.f32 %v1691_v52  ;;  %v1467_v1 = vadd.f32 1.0, %v2461_v55  ;;  %v2989_v10 = vadd.f32 %v2904_v4, %v1140_v29 }
  0xcc   : > { %v1949_v5 = vpack.c.bf16 %v1886_v0, %v1885_v56  ;;  %v1530_v8 = vmul.f32 %v1466_v59, %v1466_v59  ;;  %v1436_v9 = vadd.f32 1.0, %v2463_v62  ;;  %v1141_v12 = vmul.f32 %v2902_v3, %v868_v47 }
  0xcd   : > { %v2465_v13 = vpop.eup %2464  ;;  %v1531_v14 = vmul.f32 %v1467_v1, %v1467_v1  ;;  %v1276_v15 = vmin.f32 %v2989_v10, 20.0  ;;  %v1110_v16 = vmul.f32 %v2900_v2, %v741_v53  ;;  %v1111_v17 = vmul.f32 %v2902_v3, %v830_v60 }
  0xce   : > { %v2467_v18 = vpop.eup %2466  ;;  %1981 = vst [vmem:[%s2983_s10] sm:$0xff] %v1949_v5  ;;  %v1848_v11 = vmul.f32 %v2465_v13, %v1656_v40  ;;  %v2336_v19 = vadd.f32 -1.0, %v1530_v8  ;;  %v1722_v20 = vadd.f32 1.0, %v1530_v8  ;;  %v1500_v21 = vmul.f32 %v1436_v9, %v1436_v9 }
  0xcf   : > { %v2469_v23 = vpop.eup %2468  ;;  %v1849_v24 = vmul.f32 %v2467_v18, %v1657_v45  ;;  %v2337_v26 = vadd.f32 -1.0, %v1531_v14  ;;  %v1723_v27 = vadd.f32 1.0, %v1531_v14  ;;  %v1376_v28 = vmul.f32 1.442695, %v1276_v15 }
  0xd0   : > { %v2471_v29 = vpop.eup %2470  ;;  %v1917_v31 = vsel %vm2955_vm1, %v1848_v11, %v2924_v22  ;;  %v1818_v33 = vmul.f32 %v2469_v23, %v1626_v51  ;;  %v1658_v34 = vmul.f32 %v2336_v19, %v2944_v50  ;;  %2474 = vrcp.f32 %v1722_v20 }
  0xd1   : > { %v2473_v36 = vpop.eup %2472  ;;  %v1918_v37 = vsel %vm2963_vm2, %v1849_v24, %v2928_v25  ;;  %v1659_v38 = vmul.f32 %v2337_v26, %v2948_v54  ;;  %2476 = vrcp.f32 %v1723_v27  ;;  %v2306_v39 = vadd.f32 -1.0, %v1500_v21  ;;  %v744_v25 = vpop.f32.mrf.mxu0 }
  0xd2   : > { %v1965_v40 = vpack.c.bf16 %v1918_v37, %v1917_v31  ;;  %v1887_v22 = vsel %vm2955_vm1, %v1818_v33, %v2933_v30  ;;  %v1819_v41 = vmul.f32 %v2473_v36, %v1627_v57  ;;  %v1692_v42 = vadd.f32 1.0, %v1500_v21  ;;  %v833_v21 = vpop.f32.mrf.mxu1  ;;  %v784_v23 = vpop.f32.mrf.mxu2 }
  0xd3   : > { %v1628_v44 = vmul.f32 %v2306_v39, %v2953_v58  ;;  %v1437_v45 = vadd.f32 1.0, %v2471_v29  ;;  %2478 = vpow2.f32 %v1376_v28  ;;  %v3009_v46 = vadd.f32 %v2906_v6, %v1141_v12  ;;  %v873_v31 = vpop.f32.mrf.mxu3 }
  0xd4   : > { %1997 = vst [vmem:[%s2983_s10 + $0x80] sm:$0xff] %v1965_v40  ;;  %v1888_v47 = vsel %vm2963_vm2, %v1819_v41, %v2937_v32  ;;  %2480 = vrcp.f32 %v1692_v42  ;;  %v3016_v30 = vadd.f32 %v2904_v4, %v1110_v16  ;;  %v3019_v48 = vadd.f32 %v2906_v6, %v1111_v17 }
  0xd5   : > { %v1950_v49 = vpack.c.bf16 %v1888_v47, %v1887_v22  ;;  %v1501_v51 = vmul.f32 %v1437_v45, %v1437_v45  ;;  %v1277_v52 = vmin.f32 %v3009_v46, 20.0  ;;  %v1142_v53 = vmul.f32 %v2900_v2, %v781_v35 }
  0xd6   : > { %v2475_v55 = vpop.eup %2474  ;;  %v1246_v56 = vmin.f32 %v3016_v30, 20.0  ;;  %v1247_v57 = vmin.f32 %v3019_v48, 20.0  ;;  %v1143_v32 = vmul.f32 %v2902_v3, %v870_v43  ;;  %v1112_v59 = vmul.f32 %v2900_v2, %v744_v25 }
  0xd7   : > { %v2477_v60 = vpop.eup %2476  ;;  %1982 = vst [vmem:[%s2983_s10 + $0x8] sm:$0xff] %v1950_v49  ;;  %v1850_v62 = vmul.f32 %v2475_v55, %v1658_v34  ;;  %v2307_v0 = vadd.f32 -1.0, %v1501_v51  ;;  %v1693_v1 = vadd.f32 1.0, %v1501_v51  ;;  %v1378_v5 = vmul.f32 1.442695, %v1277_v52 }
  0xd8   : > { %v1851_v8 = vmul.f32 %v2477_v60, %v1659_v38  ;;  %v1316_v9 = vmul.f32 1.442695, %v1246_v56  ;;  %v1318_v12 = vmul.f32 1.442695, %v1247_v57  ;;  %v3029_v13 = vadd.f32 %v2904_v4, %v1142_v53 }
  0xd9   : > { %v2479_v14 = vpop.eup %2478  ;;  %v1919_v15 = vsel %vm2955_vm1, %v1850_v62, %v2944_v50  ;;  %v1629_v16 = vmul.f32 %v2307_v0, %v2961_v63  ;;  %2482 = vrcp.f32 %v1693_v1  ;;  %v3036_v17 = vadd.f32 %v2906_v6, %v1143_v32  ;;  %v746_v41 = vpop.f32.mrf.mxu0 }
  0xda   : > { %v2481_v18 = vpop.eup %2480  ;;  %v1920_v11 = vsel %vm2963_vm2, %v1851_v8, %v2948_v54  ;;  %v1468_v19 = vadd.f32 1.0, %v2479_v14  ;;  %2484 = vpow2.f32 %v1378_v5  ;;  %v1278_v20 = vmin.f32 %v3029_v13, 20.0 }
  0xdb   : > { %v1966_v24 = vpack.c.bf16 %v1920_v11, %v1919_v15  ;;  %v1820_v50 = vmul.f32 %v2481_v18, %v1628_v44  ;;  %2486 = vpow2.f32 %v1316_v9  ;;  %v1279_v26 = vmin.f32 %v3036_v17, 20.0 }
  0xdc   : > { %v1532_v27 = vmul.f32 %v1468_v19, %v1468_v19  ;;  %2488 = vpow2.f32 %v1318_v12  ;;  %v1380_v28 = vmul.f32 1.442695, %v1278_v20  ;;  %v3044_v29 = vadd.f32 %v2904_v4, %v1112_v59 }
  0xdd   : > { %1998 = vst [vmem:[%s2983_s10 + $0x88] sm:$0xff] %v1966_v24  ;;  %v1889_v54 = vsel %vm2955_vm1, %v1820_v50, %v2953_v58  ;;  %v1382_v33 = vmul.f32 1.442695, %v1279_v26  ;;  %v1113_v34 = vmul.f32 %v2902_v3, %v833_v21  ;;  %v1144_v35 = vmul.f32 %v2900_v2, %v784_v23 }
  0xde   : > { %v2338_v36 = vadd.f32 -1.0, %v1532_v27  ;;  %v1724_v37 = vadd.f32 1.0, %v1532_v27  ;;  %2490 = vpow2.f32 %v1380_v28  ;;  %v1248_v38 = vmin.f32 %v3044_v29, 20.0 }
  0xdf   : > { %v2483_v39 = vpop.eup %2482  ;;  %2492 = vpow2.f32 %v1382_v33  ;;  %v3054_v40 = vadd.f32 %v2906_v6, %v1113_v34  ;;  %v3057_v22 = vadd.f32 %v2904_v4, %v1144_v35  ;;  %v1145_v58 = vmul.f32 %v2902_v3, %v873_v31  ;;  %v835_v35 = vpop.f32.mrf.mxu1 }
  0xe0   : > { %v2485_v42 = vpop.eup %2484  ;;  %v1821_v43 = vmul.f32 %v2483_v39, %v1629_v16  ;;  %v1660_v44 = vmul.f32 %v2338_v36, %v2989_v10  ;;  %2494 = vrcp.f32 %v1724_v37  ;;  %v1320_v45 = vmul.f32 1.442695, %v1248_v38 }
  0xe1   : > { %v2487_v25 = vpop.eup %2486  ;;  %v1469_v47 = vadd.f32 1.0, %v2485_v42  ;;  %v1249_v49 = vmin.f32 %v3054_v40, 20.0  ;;  %v1280_v51 = vmin.f32 %v3057_v22, 20.0  ;;  %v3064_v52 = vadd.f32 %v2906_v6, %v1145_v58 }
  0xe2   : > { %v2489_v53 = vpop.eup %2488  ;;  %v1890_v55 = vsel %vm2963_vm2, %v1821_v43, %v2961_v63  ;;  %v1438_v56 = vadd.f32 1.0, %v2487_v25  ;;  %2496 = vpow2.f32 %v1320_v45  ;;  %v1114_v57 = vmul.f32 %v2900_v2, %v746_v41 }
  0xe3   : > { %v1951_v32 = vpack.c.bf16 %v1890_v55, %v1889_v54  ;;  %v1533_v59 = vmul.f32 %v1469_v47, %v1469_v47  ;;  %v1439_v60 = vadd.f32 1.0, %v2489_v53  ;;  %v1322_v62 = vmul.f32 1.442695, %v1249_v49 }
  0xe4   : > { %v2491_v0 = vpop.eup %2490  ;;  %v1502_v1 = vmul.f32 %v1438_v56, %v1438_v56  ;;  %v1384_v5 = vmul.f32 1.442695, %v1280_v51  ;;  %v1281_v8 = vmin.f32 %v3064_v52, 20.0  ;;  %v3072_v9 = vadd.f32 %v2904_v4, %v1114_v57  ;;  %v786_v51 = vpop.f32.mrf.mxu2 }
  0xe5   : > { %v2493_v12 = vpop.eup %2492  ;;  %1983 = vst [vmem:[%s2983_s10 + $0x10] sm:$0xff] %v1951_v32  ;;  %v2339_v14 = vadd.f32 -1.0, %v1533_v59  ;;  %v1725_v63 = vadd.f32 1.0, %v1533_v59  ;;  %v1503_v15 = vmul.f32 %v1439_v60, %v1439_v60  ;;  %v1470_v16 = vadd.f32 1.0, %v2491_v0 }
  0xe6   : > { %v2495_v18 = vpop.eup %2494  ;;  %v2308_v11 = vadd.f32 -1.0, %v1502_v1  ;;  %v1694_v19 = vadd.f32 1.0, %v1502_v1  ;;  %v1471_v20 = vadd.f32 1.0, %v2493_v12  ;;  %2498 = vpow2.f32 %v1322_v62 }
  0xe7   : > { %v1852_v21 = vmul.f32 %v2495_v18, %v1660_v44  ;;  %v1661_v23 = vmul.f32 %v2339_v14, %v3009_v46  ;;  %2500 = vrcp.f32 %v1725_v63  ;;  %v2309_v24 = vadd.f32 -1.0, %v1503_v15 }
  0xe8   : > { %v2497_v50 = vpop.eup %2496  ;;  %v1630_v26 = vmul.f32 %v2308_v11, %v3016_v30  ;;  %2502 = vrcp.f32 %v1694_v19  ;;  %v1695_v27 = vadd.f32 1.0, %v1503_v15  ;;  %v1534_v28 = vmul.f32 %v1470_v16, %v1470_v16 }
  0xe9   : > { %v1921_v31 = vsel %vm2955_vm1, %v1852_v21, %v2989_v10  ;;  %v1631_v54 = vmul.f32 %v2309_v24, %v3019_v48  ;;  %v1535_v33 = vmul.f32 %v1471_v20, %v1471_v20  ;;  %v1440_v34 = vadd.f32 1.0, %v2497_v50 }
  0xea   : > { %2504 = vrcp.f32 %v1695_v27  ;;  %v2340_v36 = vadd.f32 -1.0, %v1534_v28  ;;  %v1726_v37 = vadd.f32 1.0, %v1534_v28  ;;  %v1386_v38 = vmul.f32 1.442695, %v1281_v8  ;;  %v875_v8 = vpop.f32.mrf.mxu3 }
  0xeb   : > { %v2341_v39 = vadd.f32 -1.0, %v1535_v33  ;;  %v1727_v58 = vadd.f32 1.0, %v1535_v33  ;;  %v1504_v41 = vmul.f32 %v1440_v34, %v1440_v34  ;;  %2506 = vpow2.f32 %v1384_v5 }
  0xec   : > { %v2499_v42 = vpop.eup %2498  ;;  %v1662_v43 = vmul.f32 %v2340_v36, %v3029_v13  ;;  %2508 = vrcp.f32 %v1726_v37  ;;  %v1250_v44 = vmin.f32 %v3072_v9, 20.0  ;;  %v1115_v10 = vmul.f32 %v2902_v3, %v835_v35 }
  0xed   : > { %v2501_v45 = vpop.eup %2500  ;;  %v1663_v25 = vmul.f32 %v2341_v39, %v3036_v17  ;;  %2510 = vrcp.f32 %v1727_v58  ;;  %v2310_v47 = vadd.f32 -1.0, %v1504_v41  ;;  %v1696_v49 = vadd.f32 1.0, %v1504_v41 }
  0xee   : > { %v2503_v53 = vpop.eup %2502  ;;  %v1853_v55 = vmul.f32 %v2501_v45, %v1661_v23  ;;  %v1441_v56 = vadd.f32 1.0, %v2499_v42  ;;  %2512 = vpow2.f32 %v1386_v38  ;;  %v1324_v57 = vmul.f32 1.442695, %v1250_v44 }
  0xef   : > { %v1822_v32 = vmul.f32 %v2503_v53, %v1630_v26  ;;  %v1632_v59 = vmul.f32 %v2310_v47, %v3044_v29  ;;  %2514 = vrcp.f32 %v1696_v49  ;;  %v3087_v60 = vadd.f32 %v2906_v6, %v1115_v10  ;;  %v749_v26 = vpop.f32.mrf.mxu0  ;;  %v838_v47 = vpop.f32.mrf.mxu1 }
  0xf0   : > { %v2505_v62 = vpop.eup %2504  ;;  %v1922_v0 = vsel %vm2963_vm2, %v1853_v55, %v3009_v46  ;;  %v1505_v1 = vmul.f32 %v1441_v56, %v1441_v56  ;;  %2516 = vpow2.f32 %v1324_v57  ;;  %v1146_v5 = vmul.f32 %v2900_v2, %v786_v51 }
  0xf1   : > { %v2507_v12 = vpop.eup %2506  ;;  %v1967_v14 = vpack.c.bf16 %v1922_v0, %v1921_v31  ;;  %v1891_v63 = vsel %vm2955_vm1, %v1822_v32, %v3016_v30  ;;  %v1823_v15 = vmul.f32 %v2505_v62, %v1631_v54  ;;  %v1251_v16 = vmin.f32 %v3087_v60, 20.0  ;;  %v789_v32 = vpop.f32.mrf.mxu2 }
  0xf2   : > { %v2509_v18 = vpop.eup %2508  ;;  %v2311_v11 = vadd.f32 -1.0, %v1505_v1  ;;  %v1697_v19 = vadd.f32 1.0, %v1505_v1  ;;  %v1472_v20 = vadd.f32 1.0, %v2507_v12  ;;  %v3098_v46 = vadd.f32 %v2904_v4, %v1146_v5  ;;  %v878_v12 = vpop.f32.mrf.mxu3 }
  0xf3   : > { %v2511_v21 = vpop.eup %2510  ;;  %1999 = vst [vmem:[%s2983_s10 + $0x90] sm:$0xff] %v1967_v14  ;;  %v1892_v23 = vsel %vm2963_vm2, %v1823_v15, %v3019_v48  ;;  %v1854_v24 = vmul.f32 %v2509_v18, %v1662_v43  ;;  %v1326_v50 = vmul.f32 1.442695, %v1251_v16  ;;  %v1147_v30 = vmul.f32 %v2902_v3, %v875_v8 }
  0xf4   : > { %v2513_v27 = vpop.eup %2512  ;;  %v1952_v28 = vpack.c.bf16 %v1892_v23, %v1891_v63  ;;  %v1855_v31 = vmul.f32 %v2511_v21, %v1663_v25  ;;  %v1633_v54 = vmul.f32 %v2311_v11, %v3054_v40  ;;  %2518 = vrcp.f32 %v1697_v19 }
  0xf5   : > { %v2515_v33 = vpop.eup %2514  ;;  %v1923_v34 = vsel %vm2955_vm1, %v1854_v24, %v3029_v13  ;;  %v1536_v35 = vmul.f32 %v1472_v20, %v1472_v20  ;;  %v1473_v36 = vadd.f32 1.0, %v2513_v27  ;;  %2520 = vpow2.f32 %v1326_v50 }
  0xf6   : > { %v2517_v48 = vpop.eup %2516  ;;  %1984 = vst [vmem:[%s2983_s10 + $0x18] sm:$0xff] %v1952_v28  ;;  %v1924_v37 = vsel %vm2963_vm2, %v1855_v31, %v3036_v17  ;;  %v1824_v38 = vmul.f32 %v2515_v33, %v1632_v59  ;;  %v1282_v39 = vmin.f32 %v3098_v46, 20.0  ;;  %v3115_v58 = vadd.f32 %v2906_v6, %v1147_v30 }
  0xf7   : > { %v1968_v41 = vpack.c.bf16 %v1924_v37, %v1923_v34  ;;  %v2342_v42 = vadd.f32 -1.0, %v1536_v35  ;;  %v1728_v43 = vadd.f32 1.0, %v1536_v35  ;;  %v1537_v13 = vmul.f32 %v1473_v36, %v1473_v36  ;;  %v751_v18 = vpop.f32.mrf.mxu0 }
  0xf8   : > { %v1893_v44 = vsel %vm2955_vm1, %v1824_v38, %v3044_v29  ;;  %v1442_v10 = vadd.f32 1.0, %v2517_v48  ;;  %v1388_v45 = vmul.f32 1.442695, %v1282_v39  ;;  %v1283_v25 = vmin.f32 %v3115_v58, 20.0 }
  0xf9   : > { %2000 = vst [vmem:[%s2983_s10 + $0x98] sm:$0xff] %v1968_v41  ;;  %v1664_v17 = vmul.f32 %v2342_v42, %v3057_v22  ;;  %2522 = vrcp.f32 %v1728_v43  ;;  %v2343_v49 = vadd.f32 -1.0, %v1537_v13  ;;  %v1729_v51 = vadd.f32 1.0, %v1537_v13 }
  0xfa   : > { %v2519_v53 = vpop.eup %2518  ;;  %v1506_v55 = vmul.f32 %v1442_v10, %v1442_v10  ;;  %2524 = vpow2.f32 %v1388_v45  ;;  %v1390_v56 = vmul.f32 1.442695, %v1283_v25  ;;  %v1116_v57 = vmul.f32 %v2900_v2, %v749_v26  ;;  %v840_v45 = vpop.f32.mrf.mxu1 }
  0xfb   : > { %v2521_v59 = vpop.eup %2520  ;;  %v1825_v29 = vmul.f32 %v2519_v53, %v1633_v54  ;;  %v1665_v62 = vmul.f32 %v2343_v49, %v3064_v52  ;;  %2526 = vrcp.f32 %v1729_v51  ;;  %v1117_v0 = vmul.f32 %v2902_v3, %v838_v47 }
  0xfc   : > { %v2312_v1 = vadd.f32 -1.0, %v1506_v55  ;;  %v1698_v5 = vadd.f32 1.0, %v1506_v55  ;;  %v1443_v8 = vadd.f32 1.0, %v2521_v59  ;;  %2528 = vpow2.f32 %v1390_v56  ;;  %v791_v56 = vpop.f32.mrf.mxu2 }
  0xfd   : > { %v1894_v14 = vsel %vm2963_vm2, %v1825_v29, %v3054_v40  ;;  %v3130_v63 = vadd.f32 %v2904_v4, %v1116_v57  ;;  %v3133_v15 = vadd.f32 %v2906_v6, %v1117_v0  ;;  %v1148_v16 = vmul.f32 %v2900_v2, %v789_v32 }
  0xfe   : > { %v1953_v11 = vpack.c.bf16 %v1894_v14, %v1893_v44  ;;  %v1634_v19 = vmul.f32 %v2312_v1, %v3072_v9  ;;  %2530 = vrcp.f32 %v1698_v5  ;;  %v1507_v20 = vmul.f32 %v1443_v8, %v1443_v8 }
  0xff   : > { %v2523_v21 = vpop.eup %2522  ;;  %v1252_v23 = vmin.f32 %v3130_v63, 20.0  ;;  %v1253_v24 = vmin.f32 %v3133_v15, 20.0  ;;  %v3140_v40 = vadd.f32 %v2904_v4, %v1148_v16  ;;  %v1149_v50 = vmul.f32 %v2902_v3, %v878_v12  ;;  %v754_v29 = vpop.f32.mrf.mxu0 }
 0x100   : > { %v2525_v30 = vpop.eup %2524  ;;  %1985 = vst [vmem:[%s2983_s10 + $0x20] sm:$0xff] %v1953_v11  ;;  %v1856_v26 = vmul.f32 %v2523_v21, %v1664_v17  ;;  %v2313_v27 = vadd.f32 -1.0, %v1507_v20  ;;  %v1699_v28 = vadd.f32 1.0, %v1507_v20  ;;  %v1118_v31 = vmul.f32 %v2900_v2, %v751_v18 }
 0x101   : > { %v2527_v54 = vpop.eup %2526  ;;  %v1474_v33 = vadd.f32 1.0, %v2525_v30  ;;  %v1328_v34 = vmul.f32 1.442695, %v1252_v23  ;;  %v1330_v35 = vmul.f32 1.442695, %v1253_v24  ;;  %v1284_v36 = vmin.f32 %v3140_v40, 20.0 }
 0x102   : > { %v2529_v48 = vpop.eup %2528  ;;  %v1925_v37 = vsel %vm2955_vm1, %v1856_v26, %v3057_v22  ;;  %v1857_v38 = vmul.f32 %v2527_v54, %v1665_v62  ;;  %v1635_v39 = vmul.f32 %v2313_v27, %v3087_v60  ;;  %2532 = vrcp.f32 %v1699_v28 }
 0x103   : > { %v1538_v41 = vmul.f32 %v1474_v33, %v1474_v33  ;;  %v1475_v42 = vadd.f32 1.0, %v2529_v48  ;;  %2534 = vpow2.f32 %v1328_v34  ;;  %v1392_v43 = vmul.f32 1.442695, %v1284_v36 }
 0x104   : > { %v2531_v13 = vpop.eup %2530  ;;  %v1926_v44 = vsel %vm2963_vm2, %v1857_v38, %v3064_v52  ;;  %2536 = vpow2.f32 %v1330_v35  ;;  %v3154_v10 = vadd.f32 %v2906_v6, %v1149_v50  ;;  %v3157_v22 = vadd.f32 %v2904_v4, %v1118_v31  ;;  %v880_v52 = vpop.f32.mrf.mxu3 }
 0x105   : > { %v1969_v25 = vpack.c.bf16 %v1926_v44, %v1925_v37  ;;  %v1826_v47 = vmul.f32 %v2531_v13, %v1634_v19  ;;  %v2344_v17 = vadd.f32 -1.0, %v1538_v41  ;;  %v1730_v49 = vadd.f32 1.0, %v1538_v41 }
 0x106   : > { %v1539_v51 = vmul.f32 %v1475_v42, %v1475_v42  ;;  %2538 = vpow2.f32 %v1392_v43  ;;  %v1285_v53 = vmin.f32 %v3154_v10, 20.0  ;;  %v1254_v55 = vmin.f32 %v3157_v22, 20.0 }
 0x107   : > { %2001 = vst [vmem:[%s2983_s10 + $0xa0] sm:$0xff] %v1969_v25  ;;  %v1895_v57 = vsel %vm2955_vm1, %v1826_v47, %v3072_v9  ;;  %v1666_v32 = vmul.f32 %v2344_v17, %v3098_v46  ;;  %2540 = vrcp.f32 %v1730_v49  ;;  %v1119_v59 = vmul.f32 %v2902_v3, %v840_v45 }
 0x108   : > { %v2533_v62 = vpop.eup %2532  ;;  %v2345_v0 = vadd.f32 -1.0, %v1539_v51  ;;  %v1731_v1 = vadd.f32 1.0, %v1539_v51  ;;  %v1394_v5 = vmul.f32 1.442695, %v1285_v53  ;;  %v1332_v8 = vmul.f32 1.442695, %v1254_v55 }
 0x109   : > { %v2535_v12 = vpop.eup %2534  ;;  %v1827_v14 = vmul.f32 %v2533_v62, %v1635_v39  ;;  %v3168_v16 = vadd.f32 %v2906_v6, %v1119_v59  ;;  %v1150_v18 = vmul.f32 %v2900_v2, %v791_v56  ;;  %v1151_v9 = vmul.f32 %v2902_v3, %v880_v52  ;;  %v843_v56 = vpop.f32.mrf.mxu1 }
 0x10a   : > { %v2537_v11 = vpop.eup %2536  ;;  %v1667_v19 = vmul.f32 %v2345_v0, %v3115_v58  ;;  %2542 = vrcp.f32 %v1731_v1  ;;  %v1444_v20 = vadd.f32 1.0, %v2535_v12  ;;  %v1120_v21 = vmul.f32 %v2900_v2, %v754_v29  ;;  %v794_v52 = vpop.f32.mrf.mxu2 }
 0x10b   : > { %v1896_v23 = vsel %vm2963_vm2, %v1827_v14, %v3087_v60  ;;  %v1445_v24 = vadd.f32 1.0, %v2537_v11  ;;  %2544 = vpow2.f32 %v1394_v5  ;;  %v1255_v50 = vmin.f32 %v3168_v16, 20.0 }
 0x10c   : > { %v2539_v30 = vpop.eup %2538  ;;  %v1954_v26 = vpack.c.bf16 %v1896_v23, %v1895_v57  ;;  %v1508_v27 = vmul.f32 %v1444_v20, %v1444_v20  ;;  %2546 = vpow2.f32 %v1332_v8  ;;  %v3179_v28 = vadd.f32 %v2904_v4, %v1150_v18 }
 0x10d   : > { %v2541_v31 = vpop.eup %2540  ;;  %v1509_v54 = vmul.f32 %v1445_v24, %v1445_v24  ;;  %v1476_v33 = vadd.f32 1.0, %v2539_v30  ;;  %v1334_v34 = vmul.f32 1.442695, %v1255_v50  ;;  %v3182_v35 = vadd.f32 %v2906_v6, %v1151_v9 }
 0x10e   : > { %1986 = vst [vmem:[%s2983_s10 + $0x28] sm:$0xff] %v1954_v26  ;;  %v1858_v60 = vmul.f32 %v2541_v31, %v1666_v32  ;;  %v2314_v36 = vadd.f32 -1.0, %v1508_v27  ;;  %v1700_v48 = vadd.f32 1.0, %v1508_v27  ;;  %v1286_v37 = vmin.f32 %v3179_v28, 20.0 }
 0x10f   : > { %v2315_v38 = vadd.f32 -1.0, %v1509_v54  ;;  %v1701_v39 = vadd.f32 1.0, %v1509_v54  ;;  %v1540_v41 = vmul.f32 %v1476_v33, %v1476_v33  ;;  %2548 = vpow2.f32 %v1334_v34  ;;  %v883_v34 = vpop.f32.mrf.mxu3 }
 0x110   : > { %v2543_v42 = vpop.eup %2542  ;;  %v1927_v43 = vsel %vm2955_vm1, %v1858_v60, %v3098_v46  ;;  %v1636_v13 = vmul.f32 %v2314_v36, %v3130_v63  ;;  %2550 = vrcp.f32 %v1700_v48  ;;  %v1396_v44 = vmul.f32 1.442695, %v1286_v37 }
 0x111   : > { %v2545_v45 = vpop.eup %2544  ;;  %v1859_v25 = vmul.f32 %v2543_v42, %v1667_v19  ;;  %v1637_v47 = vmul.f32 %v2315_v38, %v3133_v15  ;;  %2552 = vrcp.f32 %v1701_v39  ;;  %v2346_v17 = vadd.f32 -1.0, %v1540_v41 }
 0x112   : > { %v2547_v49 = vpop.eup %2546  ;;  %v1732_v51 = vadd.f32 1.0, %v1540_v41  ;;  %v1477_v53 = vadd.f32 1.0, %v2545_v45  ;;  %2554 = vpow2.f32 %v1396_v44  ;;  %v1287_v55 = vmin.f32 %v3182_v35, 20.0 }
 0x113   : > { %v1928_v46 = vsel %vm2963_vm2, %v1859_v25, %v3115_v58  ;;  %v1668_v57 = vmul.f32 %v2346_v17, %v3140_v40  ;;  %v1446_v32 = vadd.f32 1.0, %v2547_v49  ;;  %v3197_v59 = vadd.f32 %v2904_v4, %v1120_v21 }
 0x114   : > { %v1970_v29 = vpack.c.bf16 %v1928_v46, %v1927_v43  ;;  %2556 = vrcp.f32 %v1732_v51  ;;  %v1541_v62 = vmul.f32 %v1477_v53, %v1477_v53  ;;  %v1398_v0 = vmul.f32 1.442695, %v1287_v55 }
 0x115   : > { %v2549_v1 = vpop.eup %2548  ;;  %v1510_v5 = vmul.f32 %v1446_v32, %v1446_v32  ;;  %v1256_v8 = vmin.f32 %v3197_v59, 20.0  ;;  %v1121_v12 = vmul.f32 %v2902_v3, %v843_v56  ;;  %v1152_v14 = vmul.f32 %v2900_v2, %v794_v52 }
 0x116   : > { %v2551_v18 = vpop.eup %2550  ;;  %2002 = vst [vmem:[%s2983_s10 + $0xa8] sm:$0xff] %v1970_v29  ;;  %v2347_v58 = vadd.f32 -1.0, %v1541_v62  ;;  %v1733_v9 = vadd.f32 1.0, %v1541_v62  ;;  %v1447_v11 = vadd.f32 1.0, %v2549_v1  ;;  %2558 = vpow2.f32 %v1398_v0 }
 0x117   : > { %v2553_v19 = vpop.eup %2552  ;;  %v1828_v20 = vmul.f32 %v2551_v18, %v1636_v13  ;;  %v2316_v21 = vadd.f32 -1.0, %v1510_v5  ;;  %v1702_v23 = vadd.f32 1.0, %v1510_v5  ;;  %v1336_v24 = vmul.f32 1.442695, %v1256_v8 }
 0x118   : > { %v2555_v50 = vpop.eup %2554  ;;  %v1829_v30 = vmul.f32 %v2553_v19, %v1637_v47  ;;  %v1669_v26 = vmul.f32 %v2347_v58, %v3154_v10  ;;  %2560 = vrcp.f32 %v1733_v9  ;;  %v1511_v27 = vmul.f32 %v1447_v11, %v1447_v11  ;;  %v796_v58 = vpop.f32.mrf.mxu2 }
 0x119   : > { %v1897_v31 = vsel %vm2955_vm1, %v1828_v20, %v3130_v63  ;;  %v1638_v54 = vmul.f32 %v2316_v21, %v3157_v22  ;;  %2562 = vrcp.f32 %v1702_v23  ;;  %v1478_v33 = vadd.f32 1.0, %v2555_v50  ;;  %v756_v63 = vpop.f32.mrf.mxu0 }
 0x11a   : > { %v2557_v60 = vpop.eup %2556  ;;  %v1898_v36 = vsel %vm2963_vm2, %v1829_v30, %v3133_v15  ;;  %v2317_v48 = vadd.f32 -1.0, %v1511_v27  ;;  %v1703_v37 = vadd.f32 1.0, %v1511_v27  ;;  %2564 = vpow2.f32 %v1336_v24  ;;  %v845_v15 = vpop.f32.mrf.mxu1 }
 0x11b   : > { %v1955_v38 = vpack.c.bf16 %v1898_v36, %v1897_v31  ;;  %v1860_v39 = vmul.f32 %v2557_v60, %v1668_v57  ;;  %v1542_v41 = vmul.f32 %v1478_v33, %v1478_v33  ;;  %v3212_v42 = vadd.f32 %v2906_v6, %v1121_v12 }
 0x11c   : > { %v2559_v43 = vpop.eup %2558  ;;  %v1639_v13 = vmul.f32 %v2317_v48, %v3168_v16  ;;  %2566 = vrcp.f32 %v1703_v37  ;;  %v3216_v44 = vadd.f32 %v2904_v4, %v1152_v14  ;;  %v1153_v45 = vmul.f32 %v2902_v3, %v883_v34 }
 0x11d   : > { %1987 = vst [vmem:[%s2983_s10 + $0x30] sm:$0xff] %v1955_v38  ;;  %v1929_v25 = vsel %vm2955_vm1, %v1860_v39, %v3140_v40  ;;  %v2348_v47 = vadd.f32 -1.0, %v1542_v41  ;;  %v1734_v17 = vadd.f32 1.0, %v1542_v41  ;;  %v1479_v49 = vadd.f32 1.0, %v2559_v43 }
 0x11e   : > { %v2561_v51 = vpop.eup %2560  ;;  %v1257_v53 = vmin.f32 %v3212_v42, 20.0  ;;  %v1288_v55 = vmin.f32 %v3216_v44, 20.0  ;;  %v3226_v56 = vadd.f32 %v2906_v6, %v1153_v45  ;;  %v1122_v52 = vmul.f32 %v2900_v2, %v756_v63 }
 0x11f   : > { %v2563_v46 = vpop.eup %2562  ;;  %v1861_v57 = vmul.f32 %v2561_v51, %v1669_v26  ;;  %v1670_v32 = vmul.f32 %v2348_v47, %v3179_v28  ;;  %2568 = vrcp.f32 %v1734_v17  ;;  %v1543_v29 = vmul.f32 %v1479_v49, %v1479_v49  ;;  %v885_v26 = vpop.f32.mrf.mxu3 }
 0x120   : > { %v2565_v40 = vpop.eup %2564  ;;  %v1830_v62 = vmul.f32 %v2563_v46, %v1638_v54  ;;  %v1338_v0 = vmul.f32 1.442695, %v1257_v53  ;;  %v1400_v1 = vmul.f32 1.442695, %v1288_v55  ;;  %v1289_v5 = vmin.f32 %v3226_v56, 20.0 }
 0x121   : > { %v1930_v8 = vsel %vm2963_vm2, %v1861_v57, %v3154_v10  ;;  %v2349_v12 = vadd.f32 -1.0, %v1543_v29  ;;  %v1735_v14 = vadd.f32 1.0, %v1543_v29  ;;  %v1448_v18 = vadd.f32 1.0, %v2565_v40  ;;  %v759_v33 = vpop.f32.mrf.mxu0 }
 0x122   : > { %v2567_v9 = vpop.eup %2566  ;;  %v1971_v11 = vpack.c.bf16 %v1930_v8, %v1929_v25  ;;  %v1899_v19 = vsel %vm2955_vm1, %v1830_v62, %v3157_v22  ;;  %2570 = vpow2.f32 %v1338_v0  ;;  %v1402_v20 = vmul.f32 1.442695, %v1289_v5  ;;  %v848_v37 = vpop.f32.mrf.mxu1 }
 0x123   : > { %v1831_v21 = vmul.f32 %v2567_v9, %v1639_v13  ;;  %v1671_v23 = vmul.f32 %v2349_v12, %v3182_v35  ;;  %2572 = vrcp.f32 %v1735_v14  ;;  %v1512_v24 = vmul.f32 %v1448_v18, %v1448_v18 }
 0x124   : > { %2003 = vst [vmem:[%s2983_s10 + $0xb0] sm:$0xff] %v1971_v11  ;;  %2574 = vpow2.f32 %v1400_v1  ;;  %v3240_v10 = vadd.f32 %v2904_v4, %v1122_v52  ;;  %v1123_v50 = vmul.f32 %v2902_v3, %v845_v15  ;;  %v1154_v30 = vmul.f32 %v2900_v2, %v796_v58 }
 0x125   : > { %v2569_v27 = vpop.eup %2568  ;;  %v1900_v22 = vsel %vm2963_vm2, %v1831_v21, %v3168_v16  ;;  %v2318_v31 = vadd.f32 -1.0, %v1512_v24  ;;  %v1704_v54 = vadd.f32 1.0, %v1512_v24  ;;  %2576 = vpow2.f32 %v1402_v20 }
 0x126   : > { %v1956_v34 = vpack.c.bf16 %v1900_v22, %v1899_v19  ;;  %v1862_v60 = vmul.f32 %v2569_v27, %v1670_v32  ;;  %v1258_v36 = vmin.f32 %v3240_v10, 20.0  ;;  %v3249_v48 = vadd.f32 %v2906_v6, %v1123_v50 }
 0x127   : > { %v1640_v38 = vmul.f32 %v2318_v31, %v3197_v59  ;;  %2578 = vrcp.f32 %v1704_v54  ;;  %v3253_v39 = vadd.f32 %v2904_v4, %v1154_v30  ;;  %v1155_v16 = vmul.f32 %v2902_v3, %v885_v26  ;;  %v888_v30 = vpop.f32.mrf.mxu3 }
 0x128   : > { %v2571_v41 = vpop.eup %2570  ;;  %1988 = vst [vmem:[%s2983_s10 + $0x38] sm:$0xff] %v1956_v34  ;;  %v1931_v63 = vsel %vm2955_vm1, %v1862_v60, %v3179_v28  ;;  %v1340_v43 = vmul.f32 1.442695, %v1258_v36  ;;  %v1259_v13 = vmin.f32 %v3249_v48, 20.0  ;;  %v1124_v45 = vmul.f32 %v2900_v2, %v759_v33 }
 0x129   : > { %v2573_v15 = vpop.eup %2572  ;;  %v1449_v25 = vadd.f32 1.0, %v2571_v41  ;;  %v1290_v47 = vmin.f32 %v3253_v39, 20.0  ;;  %v3264_v17 = vadd.f32 %v2906_v6, %v1155_v16  ;;  %v1125_v49 = vmul.f32 %v2902_v3, %v848_v37  ;;  %v761_v31 = vpop.f32.mrf.mxu0 }
 0x12a   : > { %v2575_v51 = vpop.eup %2574  ;;  %v1863_v53 = vmul.f32 %v2573_v15, %v1671_v23  ;;  %2580 = vpow2.f32 %v1340_v43  ;;  %v1342_v55 = vmul.f32 1.442695, %v1259_v13  ;;  %v3268_v28 = vadd.f32 %v2904_v4, %v1124_v45  ;;  %v850_v54 = vpop.f32.mrf.mxu1 }
 0x12b   : > { %v2577_v52 = vpop.eup %2576  ;;  %v1513_v46 = vmul.f32 %v1449_v25, %v1449_v25  ;;  %v1480_v57 = vadd.f32 1.0, %v2575_v51  ;;  %v1404_v32 = vmul.f32 1.442695, %v1290_v47  ;;  %v1291_v29 = vmin.f32 %v3264_v17, 20.0 }
 0x12c   : > { %v1932_v40 = vsel %vm2963_vm2, %v1863_v53, %v3182_v35  ;;  %v1481_v62 = vadd.f32 1.0, %v2577_v52  ;;  %2582 = vpow2.f32 %v1342_v55  ;;  %v1260_v0 = vmin.f32 %v3268_v28, 20.0  ;;  %v799_v35 = vpop.f32.mrf.mxu2 }
 0x12d   : > { %v2579_v1 = vpop.eup %2578  ;;  %v1972_v5 = vpack.c.bf16 %v1932_v40, %v1931_v63  ;;  %v2319_v8 = vadd.f32 -1.0, %v1513_v46  ;;  %v1705_v12 = vadd.f32 1.0, %v1513_v46  ;;  %v1544_v14 = vmul.f32 %v1480_v57, %v1480_v57 }
 0x12e   : > { %v1832_v18 = vmul.f32 %v2579_v1, %v1640_v38  ;;  %v1545_v58 = vmul.f32 %v1481_v62, %v1481_v62  ;;  %2584 = vpow2.f32 %v1404_v32  ;;  %v1406_v9 = vmul.f32 1.442695, %v1291_v29 }
 0x12f   : > { %2004 = vst [vmem:[%s2983_s10 + $0xb8] sm:$0xff] %v1972_v5  ;;  %v1641_v11 = vmul.f32 %v2319_v8, %v3212_v42  ;;  %2586 = vrcp.f32 %v1705_v12  ;;  %v2350_v19 = vadd.f32 -1.0, %v1544_v14  ;;  %v1736_v20 = vadd.f32 1.0, %v1544_v14 }
 0x130   : > { %v2581_v21 = vpop.eup %2580  ;;  %v1901_v23 = vsel %vm2955_vm1, %v1832_v18, %v3197_v59  ;;  %v2351_v24 = vadd.f32 -1.0, %v1545_v58  ;;  %v1737_v50 = vadd.f32 1.0, %v1545_v58  ;;  %2588 = vpow2.f32 %v1406_v9 }
 0x131   : > { %v1672_v26 = vmul.f32 %v2350_v19, %v3216_v44  ;;  %2590 = vrcp.f32 %v1736_v20  ;;  %v1450_v27 = vadd.f32 1.0, %v2581_v21  ;;  %v1344_v22 = vmul.f32 1.442695, %v1260_v0 }
 0x132   : > { %v2583_v33 = vpop.eup %2582  ;;  %v1673_v34 = vmul.f32 %v2351_v24, %v3226_v56  ;;  %2592 = vrcp.f32 %v1737_v50  ;;  %v3283_v60 = vadd.f32 %v2906_v6, %v1125_v49  ;;  %v1156_v59 = vmul.f32 %v2900_v2, %v799_v35 }
 0x133   : > { %v1514_v36 = vmul.f32 %v1450_v27, %v1450_v27  ;;  %v1451_v37 = vadd.f32 1.0, %v2583_v33  ;;  %2594 = vpow2.f32 %v1344_v22  ;;  %v1157_v38 = vmul.f32 %v2902_v3, %v888_v30 }
 0x134   : > { %v2585_v16 = vpop.eup %2584  ;;  %v1261_v41 = vmin.f32 %v3283_v60, 20.0  ;;  %v3289_v63 = vadd.f32 %v2904_v4, %v1156_v59  ;;  %v1126_v43 = vmul.f32 %v2900_v2, %v761_v31  ;;  %v1127_v13 = vmul.f32 %v2902_v3, %v850_v54  ;;  %v801_v33 = vpop.f32.mrf.mxu2 }
 0x135   : > { %v2587_v45 = vpop.eup %2586  ;;  %v2320_v15 = vadd.f32 -1.0, %v1514_v36  ;;  %v1706_v25 = vadd.f32 1.0, %v1514_v36  ;;  %v1515_v47 = vmul.f32 %v1451_v37, %v1451_v37  ;;  %v1482_v49 = vadd.f32 1.0, %v2585_v16 }
 0x136   : > { %v2589_v51 = vpop.eup %2588  ;;  %v1833_v53 = vmul.f32 %v2587_v45, %v1641_v11  ;;  %v1346_v55 = vmul.f32 1.442695, %v1261_v41  ;;  %v1292_v52 = vmin.f32 %v3289_v63, 20.0  ;;  %v3295_v46 = vadd.f32 %v2906_v6, %v1157_v38 }
 0x137   : > { %v2591_v57 = vpop.eup %2590  ;;  %v1642_v32 = vmul.f32 %v2320_v15, %v3240_v10  ;;  %2596 = vrcp.f32 %v1706_v25  ;;  %v2321_v29 = vadd.f32 -1.0, %v1515_v47  ;;  %v1707_v40 = vadd.f32 1.0, %v1515_v47 }
 0x138   : > { %v2593_v62 = vpop.eup %2592  ;;  %v1902_v0 = vsel %vm2963_vm2, %v1833_v53, %v3212_v42  ;;  %v1864_v1 = vmul.f32 %v2591_v57, %v1672_v26  ;;  %v1546_v5 = vmul.f32 %v1482_v49, %v1482_v49  ;;  %v1483_v8 = vadd.f32 1.0, %v2589_v51 }
 0x139   : > { %v2595_v12 = vpop.eup %2594  ;;  %v1957_v14 = vpack.c.bf16 %v1902_v0, %v1901_v23  ;;  %v1865_v18 = vmul.f32 %v2593_v62, %v1673_v34  ;;  %v1643_v58 = vmul.f32 %v2321_v29, %v3249_v48  ;;  %2598 = vrcp.f32 %v1707_v40  ;;  %v890_v34 = vpop.f32.mrf.mxu3 }
 0x13a   : > { %v1933_v9 = vsel %vm2955_vm1, %v1864_v1, %v3216_v44  ;;  %v2352_v11 = vadd.f32 -1.0, %v1546_v5  ;;  %v1738_v19 = vadd.f32 1.0, %v1546_v5  ;;  %v1547_v20 = vmul.f32 %v1483_v8, %v1483_v8 }
 0x13b   : > { %1989 = vst [vmem:[%s2983_s10 + $0x40] sm:$0xff] %v1957_v14  ;;  %v1934_v42 = vsel %vm2963_vm2, %v1865_v18, %v3226_v56  ;;  %v1452_v35 = vadd.f32 1.0, %v2595_v12  ;;  %2600 = vpow2.f32 %v1346_v55  ;;  %v1408_v21 = vmul.f32 1.442695, %v1292_v52  ;;  %v764_v55 = vpop.f32.mrf.mxu0  ;;  %v853_v14 = vpop.f32.mrf.mxu1 }
 0x13c   : > { %v1973_v23 = vpack.c.bf16 %v1934_v42, %v1933_v9  ;;  %v1674_v24 = vmul.f32 %v2352_v11, %v3253_v39  ;;  %2602 = vrcp.f32 %v1738_v19  ;;  %v2353_v50 = vadd.f32 -1.0, %v1547_v20 }
 0x13d   : > { %v2597_v30 = vpop.eup %2596  ;;  %v1739_v26 = vadd.f32 1.0, %v1547_v20  ;;  %v1516_v44 = vmul.f32 %v1452_v35, %v1452_v35  ;;  %2604 = vpow2.f32 %v1408_v21  ;;  %v1293_v27 = vmin.f32 %v3295_v46, 20.0 }
 0x13e   : > { %2005 = vst [vmem:[%s2983_s10 + $0xc0] sm:$0xff] %v1973_v23  ;;  %v1834_v22 = vmul.f32 %v2597_v30, %v1642_v32  ;;  %v1675_v31 = vmul.f32 %v2353_v50, %v3264_v17  ;;  %v3314_v56 = vadd.f32 %v2904_v4, %v1126_v43  ;;  %v3317_v54 = vadd.f32 %v2906_v6, %v1127_v13 }
 0x13f   : > { %v2599_v59 = vpop.eup %2598  ;;  %2606 = vrcp.f32 %v1739_v26  ;;  %v2322_v36 = vadd.f32 -1.0, %v1516_v44  ;;  %v1708_v37 = vadd.f32 1.0, %v1516_v44  ;;  %v1410_v38 = vmul.f32 1.442695, %v1293_v27 }
 0x140   : > { %v1903_v16 = vsel %vm2955_vm1, %v1834_v22, %v3240_v10  ;;  %v1835_v41 = vmul.f32 %v2599_v59, %v1643_v58  ;;  %v1262_v45 = vmin.f32 %v3314_v56, 20.0  ;;  %v1263_v43 = vmin.f32 %v3317_v54, 20.0 }
 0x141   : > { %v2601_v15 = vpop.eup %2600  ;;  %v1644_v13 = vmul.f32 %v2322_v36, %v3268_v28  ;;  %2608 = vrcp.f32 %v1708_v37  ;;  %v1158_v25 = vmul.f32 %v2900_v2, %v801_v33  ;;  %v1159_v47 = vmul.f32 %v2902_v3, %v890_v34  ;;  %v804_v34 = vpop.f32.mrf.mxu2 }
 0x142   : > { %v2603_v49 = vpop.eup %2602  ;;  %v1904_v51 = vsel %vm2963_vm2, %v1835_v41, %v3249_v48  ;;  %v1453_v10 = vadd.f32 1.0, %v2601_v15  ;;  %2610 = vpow2.f32 %v1410_v38  ;;  %v1348_v53 = vmul.f32 1.442695, %v1262_v45  ;;  %v893_v45 = vpop.f32.mrf.mxu3 }
 0x143   : > { %v2605_v52 = vpop.eup %2604  ;;  %v1958_v57 = vpack.c.bf16 %v1904_v51, %v1903_v16  ;;  %v1866_v32 = vmul.f32 %v2603_v49, %v1674_v24  ;;  %v1350_v29 = vmul.f32 1.442695, %v1263_v43  ;;  %v3331_v40 = vadd.f32 %v2904_v4, %v1158_v25 }
 0x144   : > { %v1517_v62 = vmul.f32 %v1453_v10, %v1453_v10  ;;  %v1484_v0 = vadd.f32 1.0, %v2605_v52  ;;  %2612 = vpow2.f32 %v1348_v53  ;;  %v3334_v1 = vadd.f32 %v2906_v6, %v1159_v47 }
 0x145   : > { %v2607_v5 = vpop.eup %2606  ;;  %1990 = vst [vmem:[%s2983_s10 + $0x48] sm:$0xff] %v1958_v57  ;;  %v1935_v48 = vsel %vm2955_vm1, %v1866_v32, %v3253_v39  ;;  %2614 = vpow2.f32 %v1350_v29  ;;  %v1294_v8 = vmin.f32 %v3331_v40, 20.0  ;;  %v1128_v12 = vmul.f32 %v2900_v2, %v764_v55 }
 0x146   : > { %v1867_v18 = vmul.f32 %v2607_v5, %v1675_v31  ;;  %v2323_v58 = vadd.f32 -1.0, %v1517_v62  ;;  %v1709_v9 = vadd.f32 1.0, %v1517_v62  ;;  %v1548_v11 = vmul.f32 %v1484_v0, %v1484_v0 }
 0x147   : > { %v2609_v19 = vpop.eup %2608  ;;  %v1412_v20 = vmul.f32 1.442695, %v1294_v8  ;;  %v1295_v42 = vmin.f32 %v3334_v1, 20.0  ;;  %v3344_v35 = vadd.f32 %v2904_v4, %v1128_v12  ;;  %v1129_v24 = vmul.f32 %v2902_v3, %v853_v14  ;;  %v766_v14 = vpop.f32.mrf.mxu0 }
 0x148   : > { %v2611_v21 = vpop.eup %2610  ;;  %v1936_v39 = vsel %vm2963_vm2, %v1867_v18, %v3264_v17  ;;  %v1836_v23 = vmul.f32 %v2609_v19, %v1644_v13  ;;  %2616 = vrcp.f32 %v1709_v9  ;;  %v1645_v30 = vmul.f32 %v2323_v58, %v3283_v60 }
 0x149   : > { %v1974_v50 = vpack.c.bf16 %v1936_v39, %v1935_v48  ;;  %v1740_v26 = vadd.f32 1.0, %v1548_v11  ;;  %v1485_v44 = vadd.f32 1.0, %v2611_v21  ;;  %v2354_v22 = vadd.f32 -1.0, %v1548_v11 }
 0x14a   : > { %v2613_v27 = vpop.eup %2612  ;;  %2618 = vpow2.f32 %v1412_v20  ;;  %v1414_v31 = vmul.f32 1.442695, %v1295_v42  ;;  %v1264_v33 = vmin.f32 %v3344_v35, 20.0  ;;  %v1905_v17 = vsel %vm2955_vm1, %v1836_v23, %v3268_v28 }
 0x14b   : > { %v2615_v59 = vpop.eup %2614  ;;  %2006 = vst [vmem:[%s2983_s10 + $0xc8] sm:$0xff] %v1974_v50  ;;  %2620 = vrcp.f32 %v1740_v26  ;;  %v1549_v36 = vmul.f32 %v1485_v44, %v1485_v44  ;;  %v1454_v37 = vadd.f32 1.0, %v2613_v27  ;;  %v3357_v41 = vadd.f32 %v2906_v6, %v1129_v24 }
 0x14c   : > { %v1455_v38 = vadd.f32 1.0, %v2615_v59  ;;  %2622 = vpow2.f32 %v1414_v31  ;;  %v1352_v16 = vmul.f32 1.442695, %v1264_v33  ;;  %v1160_v25 = vmul.f32 %v2900_v2, %v804_v34 }
 0x14d   : > { %v2355_v43 = vadd.f32 -1.0, %v1549_v36  ;;  %v1741_v15 = vadd.f32 1.0, %v1549_v36  ;;  %v1518_v13 = vmul.f32 %v1454_v37, %v1454_v37  ;;  %v1676_v49 = vmul.f32 %v2354_v22, %v3289_v63 }
 0x14e   : > { %v2617_v47 = vpop.eup %2616  ;;  %v1519_v51 = vmul.f32 %v1455_v38, %v1455_v38  ;;  %2624 = vpow2.f32 %v1352_v16  ;;  %v1265_v28 = vmin.f32 %v3357_v41, 20.0  ;;  %v1161_v55 = vmul.f32 %v2902_v3, %v893_v45 }
 0x14f   : > { %v1837_v10 = vmul.f32 %v2617_v47, %v1645_v30  ;;  %2626 = vrcp.f32 %v1741_v15  ;;  %v2324_v53 = vadd.f32 -1.0, %v1518_v13  ;;  %v1710_v57 = vadd.f32 1.0, %v1518_v13 }
 0x150   : > { %v2619_v52 = vpop.eup %2618  ;;  %v2325_v32 = vadd.f32 -1.0, %v1519_v51  ;;  %v1711_v29 = vadd.f32 1.0, %v1519_v51  ;;  %v1354_v62 = vmul.f32 1.442695, %v1265_v28  ;;  %v1677_v48 = vmul.f32 %v2355_v43, %v3295_v46 }
 0x151   : > { %v2621_v0 = vpop.eup %2620  ;;  %v1906_v5 = vsel %vm2963_vm2, %v1837_v10, %v3283_v60  ;;  %v1486_v8 = vadd.f32 1.0, %v2619_v52  ;;  %v3368_v12 = vadd.f32 %v2904_v4, %v1160_v25  ;;  %v1646_v11 = vmul.f32 %v2324_v53, %v3314_v56  ;;  %v806_v25 = vpop.f32.mrf.mxu2 }
 0x152   : > { %v2623_v18 = vpop.eup %2622  ;;  %v1959_v58 = vpack.c.bf16 %v1906_v5, %v1905_v17  ;;  %v1868_v9 = vmul.f32 %v2621_v0, %v1676_v49  ;;  %2628 = vrcp.f32 %v1710_v57  ;;  %v1647_v60 = vmul.f32 %v2325_v32, %v3317_v54  ;;  %v895_v52 = vpop.f32.mrf.mxu3 }
 0x153   : > { %2630 = vrcp.f32 %v1711_v29  ;;  %v1550_v19 = vmul.f32 %v1486_v8, %v1486_v8  ;;  %v1487_v20 = vadd.f32 1.0, %v2623_v18  ;;  %v1296_v42 = vmin.f32 %v3368_v12, 20.0 }
 0x154   : > { %v2625_v21 = vpop.eup %2624  ;;  %1991 = vst [vmem:[%s2983_s10 + $0x50] sm:$0xff] %v1959_v58  ;;  %2632 = vpow2.f32 %v1354_v62  ;;  %v3375_v39 = vadd.f32 %v2906_v6, %v1161_v55  ;;  %v1130_v23 = vmul.f32 %v2900_v2, %v766_v14  ;;  %v1937_v27 = vsel %vm2955_vm1, %v1868_v9, %v3289_v63  ;;  %v855_v63 = vpop.f32.mrf.mxu1 }
 0x155   : > { %v2627_v24 = vpop.eup %2626  ;;  %v2356_v50 = vadd.f32 -1.0, %v1550_v19  ;;  %v1742_v30 = vadd.f32 1.0, %v1550_v19  ;;  %v1551_v26 = vmul.f32 %v1487_v20, %v1487_v20  ;;  %v1456_v44 = vadd.f32 1.0, %v2625_v21  ;;  %v769_v62 = vpop.f32.mrf.mxu0 }
 0x156   : > { %v1869_v22 = vmul.f32 %v2627_v24, %v1677_v48  ;;  %v1416_v31 = vmul.f32 1.442695, %v1296_v42  ;;  %v1297_v33 = vmin.f32 %v3375_v39, 20.0  ;;  %v3383_v17 = vadd.f32 %v2904_v4, %v1130_v23 }
 0x157   : > { %2634 = vrcp.f32 %v1742_v30  ;;  %v2357_v34 = vadd.f32 -1.0, %v1551_v26  ;;  %v1743_v59 = vadd.f32 1.0, %v1551_v26  ;;  %v1520_v38 = vmul.f32 %v1456_v44, %v1456_v44 }
 0x158   : > { %v2629_v36 = vpop.eup %2628  ;;  %v1938_v37 = vsel %vm2963_vm2, %v1869_v22, %v3295_v46  ;;  %2636 = vpow2.f32 %v1416_v31  ;;  %v1418_v16 = vmul.f32 1.442695, %v1297_v33  ;;  %v1678_v13 = vmul.f32 %v2356_v50, %v3331_v40 }
 0x159   : > { %v2631_v45 = vpop.eup %2630  ;;  %v1975_v43 = vpack.c.bf16 %v1938_v37, %v1937_v27  ;;  %v1838_v15 = vmul.f32 %v2629_v36, %v1646_v11  ;;  %2638 = vrcp.f32 %v1743_v59  ;;  %v2326_v51 = vadd.f32 -1.0, %v1520_v38 }
 0x15a   : > { %v2633_v47 = vpop.eup %2632  ;;  %v1839_v49 = vmul.f32 %v2631_v45, %v1647_v60  ;;  %v1712_v28 = vadd.f32 1.0, %v1520_v38  ;;  %2640 = vpow2.f32 %v1418_v16  ;;  %v1266_v53 = vmin.f32 %v3383_v17, 20.0 }
 0x15b   : > { %2007 = vst [vmem:[%s2983_s10 + $0xd0] sm:$0xff] %v1975_v43  ;;  %v1907_v46 = vsel %vm2955_vm1, %v1838_v15, %v3314_v56  ;;  %v1457_v10 = vadd.f32 1.0, %v2633_v47  ;;  %v1131_v55 = vmul.f32 %v2902_v3, %v855_v63  ;;  %v1679_v32 = vmul.f32 %v2357_v34, %v3334_v1  ;;  %v809_v43 = vpop.f32.mrf.mxu2 }
 0x15c   : > { %v1908_v57 = vsel %vm2963_vm2, %v1839_v49, %v3317_v54  ;;  %2642 = vrcp.f32 %v1712_v28  ;;  %v1162_v29 = vmul.f32 %v2900_v2, %v806_v25  ;;  %v1356_v48 = vmul.f32 1.442695, %v1266_v53 }
 0x15d   : > { %v2635_v0 = vpop.eup %2634  ;;  %v1960_v5 = vpack.c.bf16 %v1908_v57, %v1907_v46  ;;  %v1521_v56 = vmul.f32 %v1457_v10, %v1457_v10  ;;  %v3401_v8 = vadd.f32 %v2906_v6, %v1131_v55  ;;  %v1648_v58 = vmul.f32 %v2326_v51, %v3344_v35 }
 0x15e   : > { %v2637_v14 = vpop.eup %2636  ;;  %v1870_v18 = vmul.f32 %v2635_v0, %v1678_v13  ;;  %v3405_v54 = vadd.f32 %v2904_v4, %v1162_v29  ;;  %v1163_v9 = vmul.f32 %v2902_v3, %v895_v52  ;;  %2644 = vpow2.f32 %v1356_v48  ;;  %v898_v52 = vpop.f32.mrf.mxu3 }
 0x15f   : > { %v2639_v11 = vpop.eup %2638  ;;  %1992 = vst [vmem:[%s2983_s10 + $0x58] sm:$0xff] %v1960_v5  ;;  %v1713_v19 = vadd.f32 1.0, %v1521_v56  ;;  %v1488_v20 = vadd.f32 1.0, %v2637_v14  ;;  %v1132_v42 = vmul.f32 %v2900_v2, %v769_v62  ;;  %v1267_v24 = vmin.f32 %v3401_v8, 20.0 }
 0x160   : > { %v2641_v21 = vpop.eup %2640  ;;  %v1939_v60 = vsel %vm2955_vm1, %v1870_v18, %v3331_v40  ;;  %v1871_v23 = vmul.f32 %v2639_v11, %v1679_v32  ;;  %v1298_v50 = vmin.f32 %v3405_v54, 20.0  ;;  %v2327_v30 = vadd.f32 -1.0, %v1521_v56  ;;  %v858_v40 = vpop.f32.mrf.mxu1 }
 0x161   : > { %2646 = vrcp.f32 %v1713_v19  ;;  %v1552_v26 = vmul.f32 %v1488_v20, %v1488_v20  ;;  %v1489_v44 = vadd.f32 1.0, %v2641_v21  ;;  %v1358_v31 = vmul.f32 1.442695, %v1267_v24  ;;  %v771_v20 = vpop.f32.mrf.mxu0 }
 0x162   : > { %v2643_v27 = vpop.eup %2642  ;;  %v1940_v22 = vsel %vm2963_vm2, %v1871_v23, %v3334_v1  ;;  %v1420_v33 = vmul.f32 1.442695, %v1298_v50  ;;  %v3419_v34 = vadd.f32 %v2906_v6, %v1163_v9  ;;  %v3423_v45 = vadd.f32 %v2904_v4, %v1132_v42 }
 0x163   : > { %v1976_v59 = vpack.c.bf16 %v1940_v22, %v1939_v60  ;;  %v1840_v36 = vmul.f32 %v2643_v27, %v1648_v58  ;;  %v2358_v37 = vadd.f32 -1.0, %v1552_v26  ;;  %v1744_v38 = vadd.f32 1.0, %v1552_v26 }
 0x164   : > { %v1553_v16 = vmul.f32 %v1489_v44, %v1489_v44  ;;  %2648 = vpow2.f32 %v1358_v31  ;;  %v1299_v63 = vmin.f32 %v3419_v34, 20.0  ;;  %v2645_v15 = vpop.eup %2644  ;;  %v1649_v13 = vmul.f32 %v2327_v30, %v3357_v41 }
 0x165   : > { %2008 = vst [vmem:[%s2983_s10 + $0xd8] sm:$0xff] %v1976_v59  ;;  %v1909_v1 = vsel %vm2955_vm1, %v1840_v36, %v3344_v35  ;;  %2650 = vrcp.f32 %v1744_v38  ;;  %v1133_v25 = vmul.f32 %v2902_v3, %v858_v40  ;;  %v1458_v51 = vadd.f32 1.0, %v2645_v15 }
 0x166   : > { %v2359_v47 = vadd.f32 -1.0, %v1553_v16  ;;  %v1745_v49 = vadd.f32 1.0, %v1553_v16  ;;  %2652 = vpow2.f32 %v1420_v33  ;;  %v1422_v46 = vmul.f32 1.442695, %v1299_v63 }
 0x167   : > { %v2647_v28 = vpop.eup %2646  ;;  %v1268_v10 = vmin.f32 %v3423_v45, 20.0  ;;  %v3433_v53 = vadd.f32 %v2906_v6, %v1133_v25  ;;  %v1164_v55 = vmul.f32 %v2900_v2, %v809_v43  ;;  %v1680_v57 = vmul.f32 %v2358_v37, %v3368_v12 }
 0x168   : > { %v1841_v35 = vmul.f32 %v2647_v28, %v1649_v13  ;;  %2654 = vrcp.f32 %v1745_v49  ;;  %v1522_v32 = vmul.f32 %v1458_v51, %v1458_v51  ;;  %v1681_v48 = vmul.f32 %v2359_v47, %v3375_v39  ;;  %v860_v16 = vpop.f32.mrf.mxu1 }
 0x169   : > { %2656 = vpow2.f32 %v1422_v46  ;;  %v1360_v29 = vmul.f32 1.442695, %v1268_v10  ;;  %v1269_v62 = vmin.f32 %v3433_v53, 20.0  ;;  %v3439_v0 = vadd.f32 %v2904_v4, %v1164_v55 }
 0x16a   : > { %v2649_v5 = vpop.eup %2648  ;;  %v1910_v56 = vsel %vm2963_vm2, %v1841_v35, %v3357_v41  ;;  %v1714_v14 = vadd.f32 1.0, %v1522_v32  ;;  %v1165_v18 = vmul.f32 %v2902_v3, %v898_v52  ;;  %v2328_v60 = vadd.f32 -1.0, %v1522_v32 }
 0x16b   : > { %v2651_v58 = vpop.eup %2650  ;;  %v1961_v9 = vpack.c.bf16 %v1910_v56, %v1909_v1  ;;  %v1459_v11 = vadd.f32 1.0, %v2649_v5  ;;  %2658 = vpow2.f32 %v1360_v29  ;;  %v1362_v19 = vmul.f32 1.442695, %v1269_v62  ;;  %v811_v29 = vpop.f32.mrf.mxu2 }
 0x16c   : > { %v2653_v42 = vpop.eup %2652  ;;  %v1872_v21 = vmul.f32 %v2651_v58, %v1680_v57  ;;  %2660 = vrcp.f32 %v1714_v14  ;;  %v1300_v23 = vmin.f32 %v3439_v0, 20.0  ;;  %v3449_v50 = vadd.f32 %v2906_v6, %v1165_v18 }
 0x16d   : > { %1993 = vst [vmem:[%s2983_s10 + $0x60] sm:$0xff] %v1961_v9  ;;  %v1523_v24 = vmul.f32 %v1459_v11, %v1459_v11  ;;  %v1490_v41 = vadd.f32 1.0, %v2653_v42  ;;  %2662 = vpow2.f32 %v1362_v19  ;;  %v1134_v27 = vmul.f32 %v2900_v2, %v771_v20  ;;  %v900_v11 = vpop.f32.mrf.mxu3 }
 0x16e   : > { %v2655_v30 = vpop.eup %2654  ;;  %v1941_v26 = vsel %vm2955_vm1, %v1872_v21, %v3368_v12  ;;  %v1424_v44 = vmul.f32 1.442695, %v1300_v23  ;;  %v1301_v37 = vmin.f32 %v3449_v50, 20.0  ;;  %v1650_v43 = vmul.f32 %v2328_v60, %v3383_v17 }
 0x16f   : > { %v2657_v22 = vpop.eup %2656  ;;  %v1873_v31 = vmul.f32 %v2655_v30, %v1681_v48  ;;  %v2329_v33 = vadd.f32 -1.0, %v1523_v24  ;;  %v1715_v40 = vadd.f32 1.0, %v1523_v24  ;;  %v1554_v59 = vmul.f32 %v1490_v41, %v1490_v41 }
 0x170   : > { %v1491_v36 = vadd.f32 1.0, %v2657_v22  ;;  %2664 = vpow2.f32 %v1424_v44  ;;  %v3457_v38 = vadd.f32 %v2904_v4, %v1134_v27  ;;  %v1426_v28 = vmul.f32 1.442695, %v1301_v37 }
 0x171   : > { %v2659_v63 = vpop.eup %2658  ;;  %v1942_v12 = vsel %vm2963_vm2, %v1873_v31, %v3375_v39  ;;  %2666 = vrcp.f32 %v1715_v40  ;;  %v1746_v13 = vadd.f32 1.0, %v1554_v59  ;;  %v1651_v51 = vmul.f32 %v2329_v33, %v3401_v8 }
 0x172   : > { %v2661_v15 = vpop.eup %2660  ;;  %v1977_v1 = vpack.c.bf16 %v1942_v12, %v1941_v26  ;;  %v1555_v25 = vmul.f32 %v1491_v36, %v1491_v36  ;;  %v1460_v47 = vadd.f32 1.0, %v2659_v63  ;;  %v1270_v46 = vmin.f32 %v3457_v38, 20.0 }
 0x173   : > { %v2663_v49 = vpop.eup %2662  ;;  %v1135_v10 = vmul.f32 %v2902_v3, %v860_v16  ;;  %v1842_v55 = vmul.f32 %v2661_v15, %v1650_v43  ;;  %2668 = vrcp.f32 %v1746_v13  ;;  %v2360_v35 = vadd.f32 -1.0, %v1554_v59 }
 0x174   : > { %2009 = vst [vmem:[%s2983_s10 + $0xe0] sm:$0xff] %v1977_v1  ;;  %v1747_v39 = vadd.f32 1.0, %v1555_v25  ;;  %v1524_v52 = vmul.f32 %v1460_v47, %v1460_v47  ;;  %v1461_v57 = vadd.f32 1.0, %v2663_v49  ;;  %2670 = vpow2.f32 %v1426_v28 }
 0x175   : > { %v1364_v32 = vmul.f32 1.442695, %v1270_v46  ;;  %v2361_v5 = vadd.f32 -1.0, %v1555_v25  ;;  %v3468_v9 = vadd.f32 %v2906_v6, %v1135_v10  ;;  %v1911_v19 = vsel %vm2955_vm1, %v1842_v55, %v3383_v17 }
 0x176   : > { %v2665_v62 = vpop.eup %2664  ;;  %2672 = vrcp.f32 %v1747_v39  ;;  %v2330_v56 = vadd.f32 -1.0, %v1524_v52  ;;  %v1716_v48 = vadd.f32 1.0, %v1524_v52  ;;  %v1525_v18 = vmul.f32 %v1461_v57, %v1461_v57 }
 0x177   : > { %v2667_v14 = vpop.eup %2666  ;;  %v1492_v58 = vadd.f32 1.0, %v2665_v62  ;;  %2674 = vpow2.f32 %v1364_v32  ;;  %v1166_v42 = vmul.f32 %v2900_v2, %v811_v29  ;;  %v1682_v21 = vmul.f32 %v2360_v35, %v3405_v54 }
 0x178   : > { %v1843_v20 = vmul.f32 %v2667_v14, %v1651_v51  ;;  %2676 = vrcp.f32 %v1716_v48  ;;  %v1717_v60 = vadd.f32 1.0, %v1525_v18  ;;  %v1271_v24 = vmin.f32 %v3468_v9, 20.0 }
 0x179   : > { %v1556_v23 = vmul.f32 %v1492_v58, %v1492_v58  ;;  %v2669_v41 = vpop.eup %2668  ;;  %v1683_v26 = vmul.f32 %v2361_v5, %v3419_v34  ;;  %v3481_v17 = vadd.f32 %v2904_v4, %v1166_v42  ;;  %v1167_v44 = vmul.f32 %v2902_v3, %v900_v11 }
 0x17a   : > { %v1912_v30 = vsel %vm2963_vm2, %v1843_v20, %v3401_v8  ;;  %v2671_v2 = vpop.eup %2670  ;;  %v1874_v22 = vmul.f32 %v2669_v41, %v1682_v21  ;;  %v1652_v31 = vmul.f32 %v2330_v56, %v3423_v45  ;;  %2678 = vrcp.f32 %v1717_v60 }
 0x17b   : > { %v1962_v27 = vpack.c.bf16 %v1912_v30, %v1911_v19  ;;  %v2331_v40 = vadd.f32 -1.0, %v1525_v18  ;;  %v1748_v59 = vadd.f32 1.0, %v1556_v23  ;;  %v1493_v36 = vadd.f32 1.0, %v2671_v2 }
 0x17c   : > { %v2673_v33 = vpop.eup %2672  ;;  %v1366_v37 = vmul.f32 1.442695, %v1271_v24  ;;  %v1943_v4 = vsel %vm2955_vm1, %v1874_v22, %v3405_v54  ;;  %v1302_v3 = vmin.f32 %v3481_v17, 20.0  ;;  %v3491_v63 = vadd.f32 %v2906_v6, %v1167_v44 }
 0x17d   : > { %v2675_v16 = vpop.eup %2674  ;;  %1994 = vst [vmem:[%s2983_s10 + $0x68] sm:$0xff] %v1962_v27  ;;  %v1875_v8 = vmul.f32 %v2673_v33, %v1683_v26  ;;  %v2362_v43 = vadd.f32 -1.0, %v1556_v23  ;;  %2680 = vrcp.f32 %v1748_v59  ;;  %v1557_v15 = vmul.f32 %v1493_v36, %v1493_v36 }
 0x17e   : > { %v2677_v12 = vpop.eup %2676  ;;  %v1462_v1 = vadd.f32 1.0, %v2675_v16  ;;  %2682 = vpow2.f32 %v1366_v37  ;;  %v1428_v47 = vmul.f32 1.442695, %v1302_v3  ;;  %v1653_v49 = vmul.f32 %v2331_v40, %v3433_v53 }
 0x17f   : > { %v1944_v13 = vsel %vm2963_vm2, %v1875_v8, %v3419_v34  ;;  %v1844_v25 = vmul.f32 %v2677_v12, %v1652_v31  ;;  %v1749_v51 = vadd.f32 1.0, %v1557_v15  ;;  %v1303_v46 = vmin.f32 %v3491_v63, 20.0 }
 0x180   : > { %v1978_v54 = vpack.c.bf16 %v1944_v13, %v1943_v4  ;;  %v1526_v28 = vmul.f32 %v1462_v1, %v1462_v1  ;;  %v2679_v6 = vpop.eup %2678  ;;  %2684 = vpow2.f32 %v1428_v47  ;;  %v1684_v34 = vmul.f32 %v2362_v43, %v3439_v0 }
 0x181   : > { %v1913_v10 = vsel %vm2955_vm1, %v1844_v25, %v3423_v45  ;;  %v1845_v55 = vmul.f32 %v2679_v6, %v1653_v49  ;;  %2686 = vrcp.f32 %v1749_v51  ;;  %v2363_v39 = vadd.f32 -1.0, %v1557_v15 }
 0x182   : > { %2010 = vst [vmem:[%s2983_s10 + $0xe8] sm:$0xff] %v1978_v54  ;;  %v1718_v52 = vadd.f32 1.0, %v1526_v28  ;;  %v1430_v35 = vmul.f32 1.442695, %v1303_v46 }
 0x183   : > { %v2681_v57 = vpop.eup %2680  ;;  %v1914_v32 = vsel %vm2963_vm2, %v1845_v55, %v3433_v53  ;;  %v1685_v48 = vmul.f32 %v2363_v39, %v3449_v50  ;;  %v2332_v53 = vadd.f32 -1.0, %v1526_v28 }
 0x184   : > { %v2683_v29 = vpop.eup %2682  ;;  %v1963_v62 = vpack.c.bf16 %v1914_v32, %v1913_v10  ;;  %v1876_v5 = vmul.f32 %v2681_v57, %v1684_v34  ;;  %2688 = vrcp.f32 %v1718_v52 }
 0x185   : > { %v1463_v56 = vadd.f32 1.0, %v2683_v29  ;;  %2690 = vpow2.f32 %v1430_v35  ;;  %v1654_v41 = vmul.f32 %v2332_v53, %v3457_v38 }
 0x186   : > { %v2685_v45 = vpop.eup %2684  ;;  %1995 = vst [vmem:[%s2983_s10 + $0x70] sm:$0xff] %v1963_v62  ;;  %v1945_v11 = vsel %vm2955_vm1, %v1876_v5, %v3439_v0 }
 0x187   : > { %v2687_v14 = vpop.eup %2686  ;;  %v1527_v18 = vmul.f32 %v1463_v56, %v1463_v56  ;;  %v1494_v58 = vadd.f32 1.0, %v2685_v45 }
 0x188   : > { %v1877_v19 = vmul.f32 %v2687_v14, %v1685_v48 }
 0x189   : > { %v1719_v20 = vadd.f32 1.0, %v1527_v18  ;;  %v1558_v42 = vmul.f32 %v1494_v58, %v1494_v58  ;;  %v2333_v30 = vadd.f32 -1.0, %v1527_v18 }
 0x18a   : > { %v2689_v21 = vpop.eup %2688  ;;  %v1946_v60 = vsel %vm2963_vm2, %v1877_v19, %v3449_v50 }
 0x18b   : > { %v2691_v23 = vpop.eup %2690  ;;  %v1979_v24 = vpack.c.bf16 %v1946_v60, %v1945_v11  ;;  %2692 = vrcp.f32 %v1719_v20  ;;  %v1750_v26 = vadd.f32 1.0, %v1558_v42  ;;  %v1846_v2 = vmul.f32 %v2689_v21, %v1654_v41 }
 0x18c   : > { %v1495_v44 = vadd.f32 1.0, %v2691_v23  ;;  %v2364_v27 = vadd.f32 -1.0, %v1558_v42  ;;  %v1655_v22 = vmul.f32 %v2333_v30, %v3468_v9 }
 0x18d   : > { %2011 = vst [vmem:[%s2983_s10 + $0xf0] sm:$0xff] %v1979_v24  ;;  %2694 = vrcp.f32 %v1750_v26  ;;  %v1915_v50 = vsel %vm2955_vm1, %v1846_v2, %v3457_v38 }
 0x18e   : > { %v1559_v0 = vmul.f32 %v1495_v44, %v1495_v44  ;;  %v1686_v59 = vmul.f32 %v2364_v27, %v3481_v17 }
 0x190   : > { %v1751_v31 = vadd.f32 1.0, %v1559_v0  ;;  %v2365_v36 = vadd.f32 -1.0, %v1559_v0 }
 0x191   : > { %v2693_v33 = vpop.eup %2692 }
 0x192   : > { %v1847_v40 = vmul.f32 %v2693_v33, %v1655_v22  ;;  %2696 = vrcp.f32 %v1751_v31  ;;  %v1687_v3 = vmul.f32 %v2365_v36, %v3491_v63 }
 0x193   : > { %v2695_v37 = vpop.eup %2694 }
 0x194   : > { %v1916_v16 = vsel %vm2963_vm2, %v1847_v40, %v3468_v9  ;;  %v1878_v8 = vmul.f32 %v2695_v37, %v1686_v59 }
 0x195   : > { %v1964_v4 = vpack.c.bf16 %v1916_v16, %v1915_v50 }
 0x196   : > { %v1947_v38 = vsel %vm2955_vm1, %v1878_v8, %v3481_v17 }
 0x197   : > { %1996 = vst [vmem:[%s2983_s10 + $0x78] sm:$0xff] %v1964_v4 }
 0x198   : > { %v2697_v12 = vpop.eup %2696 }
 0x199   : > { %v1879_v43 = vmul.f32 %v2697_v12, %v1687_v3 }
 0x19b   : > { %v1948_v15 = vsel %vm2963_vm2, %v1879_v43, %v3491_v63 }
 0x19c   : > { %v1980_v1 = vpack.c.bf16 %v1948_v15, %v1947_v38 }
 0x19e   : > { %2012 = vst [vmem:[%s2983_s10 + $0xf8] sm:$0xff] %v1980_v1 }
 0x19f PF: > { %s15_s20 = sadd.s32 1, %s2720_s20   ;;  %s3552_s18 = smov %s2716_s19 }
 0x1a0   : > { %p12_p5 = scmp.ge.s32.totalorder %s15_s20, 4   ;;  %s3553_s19 = smov %s3555_s21 }
 0x1a2   :  { %14 = sbr.rel (!%p12_p5) target bundleno = 2 (0x2), region = 90 }

// kernel: _lambda_.18
= control target key start
LH: loop header
LB: loop body
LE: loop exit
PB: predicated region body
PF: predicated region fallthrough
CT: control target
= control target key end

     0   :  { %s3163_s21 = smov 0   ;;  %s3165_s22 = smov 0   ;;  %s4016_s0 = inlined_call_operand.vmem [shape: bf16[512,256], index: 0, kind: input, shape index: {}]   ;;  %s4017_s1 = inlined_call_operand.vmem [shape: f32[1,256], index: 1, kind: input, shape index: {}]   ;;  %s4018_s2 = inlined_call_operand.vmem [shape: f32[1,256], index: 2, kind: input, shape index: {}]   ;;  %s4019_s3 = inlined_call_operand.vmem [shape: bf16[256,128], index: 3, kind: input, shape index: {}]   ;;  %s4020_s4 = inlined_call_operand.vmem [shape: f32[1,128], index: 4, kind: input, shape index: {}]   ;;  %s4021_s5 = inlined_call_operand.vmem [shape: f32[1,128], index: 5, kind: input, shape index: {}]   ;;  %s4022_s6 = inlined_call_operand.vmem [shape: bf16[512,128], index: 6, kind: output, shape index: {}]  }
   0x1   :  { %s3167_s23 = smov 0  }
   0x2 LB: > { %s35_s24 = sadd.s32 1, %s3122_s22  ;;  %p2396_p0 = scmp.ge.s32.totalorder %s3126_s23, 1  ;;  %s3126_s23 = sphi %s3167_s23, %s16_s23   ;;  %s3122_s22 = sphi %s3165_s22, %s4024_s22   ;;  %s3118_s21 = sphi %s3163_s21, %s4023_s21  }
   0x3   : > { %p37_p1 = scmp.ge.s32.totalorder %s35_s24, 2  ;;  %p294_p2 = scmp.lt.s32.totalorder %s3126_s23, 3 }
   0x5   : > { %s4026_s24 = smov (%p37_p1, %s35_s24), 0  ;;  %p295_p3 = pnand %p2396_p0, %p294_p2 }
   0x6   : > { %s2397_s29 = sshll.u32 (!%p295_p3), %s3118_s21, 5 }
   0x7   : > { %298 = sbr.rel (%p295_p3) target bundleno = 424 (0x1a8), region = 44  ;;  %p356_p4 = scmp.lt.s32.totalorder (!%p295_p3), %s2397_s29, 63 }
   0xc   : > { %v2572_v0 = vld [vmem:[%s4019_s3 + $0x38] sm:$0xff]  ;;  %v2571_v2 = vld [vmem:[%s4019_s3 + $0x30] sm:$0xff]  ;;  %s4028_s29 = smov (!%p356_p4, %s2397_s29), 63  ;;  %v532_v4 = vld [vmem:[%s4017_s1] sm:$0x3] }
   0xd   : > { %v2580_v1 = vld [vmem:[%s4019_s3 + $0x78] sm:$0xff]  ;;  %1504 = vmatpush.bf16.msra.mxu0 %v2572_v0  ;;  %2676 = vmatpush.bf16.msra.mxu2 %v2572_v0  ;;  %v2579_v3 = vld [vmem:[%s4019_s3 + $0x70] sm:$0xff]  ;;  %s2564_s10 = sshll.u32 %s4028_s29, 3  ;;  %v602_v5 = vld [vmem:[%s4018_s2] sm:$0x3]  ;;  %v3213_v8 = vperm.slane %v532_v4, 0 }
   0xe   : > { %1593 = vmatpush.bf16.msra.mxu1 %v2580_v1  ;;  %2684 = vmatpush.bf16.msra.mxu3 %v2580_v1  ;;  %v2570_v6 = vld [vmem:[%s4019_s3 + $0x28] sm:$0xff]  ;;  %s3211_s21 = scalar_lea.vmem %s4016_s0, %s2564_s10  ;;  %v3217_v11 = vperm.slane %v602_v5, 0  ;;  %v3220_v13 = vperm.slane %v532_v4, 1  ;;  %v3222_v14 = vperm.slane %v602_v5, 1  ;;  %v2569_v26 = vld [vmem:[%s4019_s3 + $0x20] sm:$0xff]  ;;  %v2568_v44 = vld [vmem:[%s4019_s3 + $0x18] sm:$0xff] }
   0xf   : > { %v2578_v7 = vld [vmem:[%s4019_s3 + $0x68] sm:$0xff]  ;;  %v436_v9 = vld [vmem:[%s3211_s21] sm:$0xff]  ;;  %v3226_v20 = vld [vmem:[%s3211_s21 + $0x10] sm:$0xff]  ;;  %s2401_s30 = sshll.u32 %s4028_s29, 2 }
  0x10   : > { %v437_v10 = vld [vmem:[%s3211_s21 + $0x8] sm:$0xff]  ;;  %v452_v12 = vld [vmem:[%s3211_s21 + $0x80] sm:$0xff]  ;;  %v468_v15 = vunpack.c.l.bf16 %v436_v9  ;;  %v469_v19 = vunpack.c.h.bf16 %v436_v9  ;;  %v3229_v21 = vld [vmem:[%s3211_s21 + $0x18] sm:$0xff]  ;;  %v472_v30 = vunpack.c.l.bf16 %v3226_v20  ;;  %s3846_s9 = scalar_lea.vmem %s4022_s6, %s2401_s30 }
  0x11   : > { %1505 = vmatpush.bf16.msra.mxu0 %v2571_v2  ;;  %2677 = vmatpush.bf16.msra.mxu2 %v2571_v2  ;;  %v470_v16 = vunpack.c.l.bf16 %v437_v10  ;;  %v453_v17 = vld [vmem:[%s3211_s21 + $0x88] sm:$0xff]  ;;  %v500_v18 = vunpack.c.l.bf16 %v452_v12  ;;  %v471_v23 = vunpack.c.h.bf16 %v437_v10  ;;  %v501_v24 = vunpack.c.h.bf16 %v452_v12  ;;  %v2577_v31 = vld [vmem:[%s4019_s3 + $0x60] sm:$0xff]  ;;  %v2576_v49 = vld [vmem:[%s4019_s3 + $0x58] sm:$0xff] }
  0x12   : > { %1594 = vmatpush.bf16.msra.mxu1 %v2579_v3  ;;  %2685 = vmatpush.bf16.msra.mxu3 %v2579_v3  ;;  %v502_v22 = vunpack.c.l.bf16 %v453_v17  ;;  %v503_v25 = vunpack.c.h.bf16 %v453_v17  ;;  %v538_v27 = vmul.f32 %v3213_v8, %v468_v15  ;;  %v539_v33 = vmul.f32 %v3220_v13, %v469_v19  ;;  %v3284_v54 = vld [vmem:[%s3211_s21 + $0x90] sm:$0xff]  ;;  %v3287_v55 = vld [vmem:[%s3211_s21 + $0x98] sm:$0xff] }
  0x13   : > { %v540_v28 = vmul.f32 %v3213_v8, %v470_v16  ;;  %v570_v29 = vmul.f32 %v3213_v8, %v500_v18  ;;  %v541_v34 = vmul.f32 %v3220_v13, %v471_v23  ;;  %v474_v35 = vunpack.c.l.bf16 %v3229_v21  ;;  %v2567_v0 = vld [vmem:[%s4019_s3 + $0x10] sm:$0xff]  ;;  %v2566_v18 = vld [vmem:[%s4019_s3 + $0x8] sm:$0xff] }
  0x14   : > { %v572_v32 = vmul.f32 %v3213_v8, %v502_v22  ;;  %v3246_v36 = vadd.f32 %v3217_v11, %v538_v27  ;;  %v571_v39 = vmul.f32 %v3220_v13, %v501_v24  ;;  %v3259_v41 = vadd.f32 %v3222_v14, %v539_v33  ;;  %v2575_v4 = vld [vmem:[%s4019_s3 + $0x50] sm:$0xff]  ;;  %v2574_v24 = vld [vmem:[%s4019_s3 + $0x48] sm:$0xff] }
  0x15   : > { %1506 = vmatpush.bf16.msra.mxu0 %v2570_v6  ;;  %2678 = vmatpush.bf16.msra.mxu2 %v2570_v6  ;;  %v3249_v37 = vadd.f32 %v3217_v11, %v540_v28  ;;  %v3252_v38 = vadd.f32 %v3217_v11, %v570_v29  ;;  %v3262_v42 = vadd.f32 %v3222_v14, %v541_v34  ;;  %v504_v6 = vunpack.c.l.bf16 %v3284_v54 }
  0x16   : > { %1595 = vmatpush.bf16.msra.mxu1 %v2578_v7  ;;  %2686 = vmatpush.bf16.msra.mxu3 %v2578_v7  ;;  %v3256_v40 = vadd.f32 %v3217_v11, %v572_v32  ;;  %v573_v43 = vmul.f32 %v3220_v13, %v503_v25  ;;  %v672_v45 = vmin.f32 %v3246_v36, 20.0  ;;  %v3272_v48 = vadd.f32 %v3222_v14, %v571_v39 }
  0x17   : > { %v674_v46 = vmin.f32 %v3249_v37, 20.0  ;;  %v704_v47 = vmin.f32 %v3252_v38, 20.0  ;;  %v673_v51 = vmin.f32 %v3259_v41, 20.0  ;;  %v675_v52 = vmin.f32 %v3262_v42, 20.0 }
  0x18   : > { %v706_v50 = vmin.f32 %v3256_v40, 20.0  ;;  %v3281_v53 = vadd.f32 %v3222_v14, %v573_v43  ;;  %v736_v56 = vmul.f32 1.442695, %v672_v45  ;;  %v542_v59 = vmul.f32 %v3213_v8, %v472_v30 }
  0x19   : > { %1507 = vmatpush.bf16.msra.mxu0 %v2569_v26  ;;  %2679 = vmatpush.bf16.msra.mxu2 %v2569_v26  ;;  %v740_v57 = vmul.f32 1.442695, %v674_v46  ;;  %v800_v58 = vmul.f32 1.442695, %v704_v47  ;;  %v738_v61 = vmul.f32 1.442695, %v673_v51  ;;  %v544_v63 = vmul.f32 %v3213_v8, %v474_v35 }
  0x1a   : > { %1596 = vmatpush.bf16.msra.mxu1 %v2577_v31  ;;  %2687 = vmatpush.bf16.msra.mxu3 %v2577_v31  ;;  %v804_v60 = vmul.f32 1.442695, %v706_v50  ;;  %v742_v62 = vmul.f32 1.442695, %v675_v52  ;;  %2718 = vpow2.f32 %v736_v56  ;;  %v705_v1 = vmin.f32 %v3272_v48, 20.0  ;;  %v2565_v35 = vld [vmem:[%s4019_s3] sm:$0xff] }
  0x1b   : > { %v707_v2 = vmin.f32 %v3281_v53, 20.0  ;;  %v3297_v3 = vadd.f32 %v3217_v11, %v542_v59  ;;  %2720 = vpow2.f32 %v740_v57  ;;  %v3303_v5 = vadd.f32 %v3217_v11, %v544_v63  ;;  %v2573_v46 = vld [vmem:[%s4019_s3 + $0x40] sm:$0xff] }
  0x1c   : > { %v506_v7 = vunpack.c.l.bf16 %v3287_v55  ;;  %2722 = vpow2.f32 %v800_v58  ;;  %v802_v9 = vmul.f32 1.442695, %v705_v1  ;;  %v574_v16 = vmul.f32 %v3213_v8, %v504_v6 }
  0x1d   : > { %1508 = vmatpush.bf16.msra.mxu0 %v2568_v44  ;;  %2680 = vmatpush.bf16.msra.mxu2 %v2568_v44  ;;  %v806_v10 = vmul.f32 1.442695, %v707_v2  ;;  %v676_v12 = vmin.f32 %v3297_v3, 20.0  ;;  %2724 = vpow2.f32 %v804_v60  ;;  %v678_v15 = vmin.f32 %v3303_v5, 20.0 }
  0x1e   : > { %1597 = vmatpush.bf16.msra.mxu1 %v2576_v49  ;;  %2688 = vmatpush.bf16.msra.mxu3 %v2576_v49  ;;  %v576_v17 = vmul.f32 %v3213_v8, %v506_v7  ;;  %2726 = vpow2.f32 %v738_v61  ;;  %v473_v22 = vunpack.c.h.bf16 %v3226_v20  ;;  %v475_v23 = vunpack.c.h.bf16 %v3229_v21 }
  0x1f   : > { %v744_v19 = vmul.f32 1.442695, %v676_v12  ;;  %2728 = vpow2.f32 %v742_v62  ;;  %v748_v25 = vmul.f32 1.442695, %v678_v15  ;;  %v3320_v26 = vadd.f32 %v3217_v11, %v574_v16 }
  0x20   : > { %v3323_v27 = vadd.f32 %v3217_v11, %v576_v17  ;;  %v2719_v28 = vpop.eup %2718  ;;  %2730 = vpow2.f32 %v802_v9  ;;  %v543_v20 = vmul.f32 %v3220_v13, %v473_v22  ;;  %v545_v21 = vmul.f32 %v3220_v13, %v475_v23 }
  0x21   : > { %1509 = vmatpush.bf16.msra.mxu0 %v2567_v0  ;;  %2681 = vmatpush.bf16.msra.mxu2 %v2567_v0  ;;  %v505_v29 = vunpack.c.h.bf16 %v3284_v54  ;;  %v2721_v30 = vpop.eup %2720  ;;  %v864_v31 = vadd.f32 1.0, %v2719_v28  ;;  %2732 = vpow2.f32 %v806_v10  ;;  %v708_v32 = vmin.f32 %v3320_v26, 20.0 }
  0x22   : > { %1598 = vmatpush.bf16.msra.mxu1 %v2575_v4  ;;  %2689 = vmatpush.bf16.msra.mxu3 %v2575_v4  ;;  %v710_v33 = vmin.f32 %v3323_v27, 20.0  ;;  %v2723_v34 = vpop.eup %2722  ;;  %v866_v39 = vadd.f32 1.0, %v2721_v30  ;;  %2734 = vpow2.f32 %v744_v19  ;;  %v3334_v43 = vadd.f32 %v3222_v14, %v543_v20 }
  0x23   : > { %v3337_v44 = vadd.f32 %v3222_v14, %v545_v21  ;;  %v2725_v45 = vpop.eup %2724  ;;  %v928_v47 = vmul.f32 %v864_v31, %v864_v31  ;;  %v896_v49 = vadd.f32 1.0, %v2723_v34  ;;  %2736 = vpow2.f32 %v748_v25 }
  0x24   : > { %v3342_v50 = vmul.f32 1.442695, %v708_v32  ;;  %v2727_v51 = vpop.eup %2726  ;;  %v930_v52 = vmul.f32 %v866_v39, %v866_v39  ;;  %v898_v56 = vadd.f32 1.0, %v2725_v45  ;;  %v3344_v57 = vmul.f32 1.442695, %v710_v33 }
  0x25   : > { %1510 = vmatpush.bf16.msra.mxu0 %v2566_v18  ;;  %2682 = vmatpush.bf16.msra.mxu2 %v2566_v18  ;;  %v677_v58 = vmin.f32 %v3334_v43, 20.0  ;;  %v2729_v59 = vpop.eup %2728  ;;  %v2402_v60 = vadd.f32 -1.0, %v928_v47  ;;  %v1120_v61 = vadd.f32 1.0, %v928_v47  ;;  %v960_v62 = vmul.f32 %v896_v49, %v896_v49 }
  0x26   : > { %1599 = vmatpush.bf16.msra.mxu1 %v2574_v24  ;;  %2690 = vmatpush.bf16.msra.mxu3 %v2574_v24  ;;  %v865_v63 = vadd.f32 1.0, %v2727_v51  ;;  %v2731_v0 = vpop.eup %2730  ;;  %v2404_v1 = vadd.f32 -1.0, %v930_v52  ;;  %v1122_v2 = vadd.f32 1.0, %v930_v52  ;;  %v962_v4 = vmul.f32 %v898_v56, %v898_v56 }
  0x27   : > { %v867_v6 = vadd.f32 1.0, %v2729_v59  ;;  %v2733_v7 = vpop.eup %2732  ;;  %v1056_v9 = vmul.f32 %v2402_v60, %v3246_v36  ;;  %2738 = vrcp.f32 %v1120_v61  ;;  %v2434_v10 = vadd.f32 -1.0, %v960_v62 }
  0x28   : > { %v1152_v12 = vadd.f32 1.0, %v960_v62  ;;  %v2735_v15 = vpop.eup %2734  ;;  %v1058_v16 = vmul.f32 %v2404_v1, %v3249_v37  ;;  %2740 = vrcp.f32 %v1122_v2  ;;  %v2436_v17 = vadd.f32 -1.0, %v962_v4 }
  0x29   : > { %1511 = vmatpush.bf16.msra.mxu0 %v2565_v35  ;;  %2683 = vmatpush.bf16.msra.mxu2 %v2565_v35  ;;  %v1154_v18 = vadd.f32 1.0, %v962_v4  ;;  %v2737_v19 = vpop.eup %2736  ;;  %v1088_v22 = vmul.f32 %v2434_v10, %v3252_v38  ;;  %v929_v23 = vmul.f32 %v865_v63, %v865_v63  ;;  %v931_v24 = vmul.f32 %v867_v6, %v867_v6 }
  0x2a   : > { %1600 = vmatpush.bf16.msra.mxu1 %v2573_v46  ;;  %2691 = vmatpush.bf16.msra.mxu3 %v2573_v46  ;;  %2742 = vrcp.f32 %v1152_v12  ;;  %v1090_v25 = vmul.f32 %v2436_v17, %v3256_v40  ;;  %v897_v28 = vadd.f32 1.0, %v2731_v0  ;;  %v899_v36 = vadd.f32 1.0, %v2733_v7 }
  0x2b   : > { %2744 = vrcp.f32 %v1154_v18  ;;  %v2403_v20 = vadd.f32 -1.0, %v929_v23  ;;  %v2405_v21 = vadd.f32 -1.0, %v931_v24  ;;  %v1121_v30 = vadd.f32 1.0, %v929_v23 }
  0x2c   : > { %v1123_v31 = vadd.f32 1.0, %v931_v24  ;;  %v961_v32 = vmul.f32 %v897_v28, %v897_v28  ;;  %v963_v37 = vmul.f32 %v899_v36, %v899_v36  ;;  %v868_v33 = vadd.f32 1.0, %v2735_v15  ;;  %v3364_v15 = vld [vmem:[%s3211_s21 + $0x28] sm:$0xff] }
  0x2d   : > { %v870_v34 = vadd.f32 1.0, %v2737_v19  ;;  %v2739_v35 = vpop.eup %2738  ;;  %v1057_v39 = vmul.f32 %v2403_v20, %v3259_v41  ;;  %v1059_v38 = vmul.f32 %v2405_v21, %v3262_v42  ;;  %2746 = vrcp.f32 %v1121_v30 }
  0x2e   : > { %v679_v45 = vmin.f32 %v3337_v44, 20.0  ;;  %v2741_v40 = vpop.eup %2740  ;;  %v1248_v46 = vmul.f32 %v2739_v35, %v1056_v9  ;;  %2748 = vrcp.f32 %v1123_v31  ;;  %v2435_v47 = vadd.f32 -1.0, %v961_v32 }
  0x2f   : > { %v2437_v49 = vadd.f32 -1.0, %v963_v37  ;;  %v1250_v52 = vmul.f32 %v2741_v40, %v1058_v16  ;;  %v1153_v56 = vadd.f32 1.0, %v961_v32  ;;  %v1155_v59 = vadd.f32 1.0, %v963_v37  ;;  %v3367_v16 = vld [vmem:[%s3211_s21 + $0xa0] sm:$0xff] }
  0x30   : > { %v2743_v51 = vpop.eup %2742  ;;  %v932_v60 = vmul.f32 %v868_v33, %v868_v33  ;;  %v1089_v63 = vmul.f32 %v2435_v47, %v3272_v48  ;;  %v934_v42 = vmul.f32 %v870_v34, %v870_v34  ;;  %v746_v48 = vmul.f32 1.442695, %v677_v58 }
  0x31   : > { %v2745_v61 = vpop.eup %2744  ;;  %v1280_v62 = vmul.f32 %v2743_v51, %v1088_v22  ;;  %v1091_v41 = vmul.f32 %v2437_v49, %v3281_v53  ;;  %v1312_v0 = vpack.c.bf16 %v1250_v52, %v1248_v46  ;;  %2750 = vrcp.f32 %v1153_v56  ;;  %v3361_v53 = vld [vmem:[%s3211_s21 + $0x20] sm:$0xff] }
  0x32   : > { %v1282_v1 = vmul.f32 %v2745_v61, %v1090_v25  ;;  %v2406_v2 = vadd.f32 -1.0, %v932_v60  ;;  %2752 = vrcp.f32 %v1155_v59  ;;  %v2408_v4 = vadd.f32 -1.0, %v934_v42  ;;  %v3378_v25 = vld [vmem:[%s3211_s21 + $0xa8] sm:$0xff] }
  0x33   : > { %v1124_v6 = vadd.f32 1.0, %v932_v60  ;;  %v1126_v7 = vadd.f32 1.0, %v934_v42  ;;  %v2747_v9 = vpop.eup %2746  ;;  %1512 = vmatmul.bf16.vlgmr.msra.gmra.mxu0 %v1312_v0  ;;  %2754 = vpow2.f32 %v3342_v50  ;;  %v750_v22 = vmul.f32 1.442695, %v679_v45 }
  0x34   : > { %v1328_v10 = vpack.c.bf16 %v1282_v1, %v1280_v62  ;;  %v1060_v12 = vmul.f32 %v2406_v2, %v3297_v3  ;;  %v2749_v17 = vpop.eup %2748  ;;  %v1249_v18 = vmul.f32 %v2747_v9, %v1057_v39  ;;  %v1062_v19 = vmul.f32 %v2408_v4, %v3303_v5 }
  0x35   : > { %2756 = vrcp.f32 %v1124_v6  ;;  %v1251_v3 = vmul.f32 %v2749_v17, %v1059_v38  ;;  %v507_v50 = vunpack.c.h.bf16 %v3287_v55  ;;  %v575_v58 = vmul.f32 %v3220_v13, %v505_v29 }
  0x36   : > { %1552 = vmatmul.bf16.vlgmr.msra.gmra.mxu2 %v1328_v10  ;;  %2758 = vrcp.f32 %v1126_v7  ;;  %v476_v23 = vunpack.c.l.bf16 %v3361_v53  ;;  %v478_v24 = vunpack.c.l.bf16 %v3364_v15  ;;  %v508_v5 = vunpack.c.l.bf16 %v3367_v16 }
  0x37   : > { %2760 = vpow2.f32 %v3344_v57  ;;  %v2751_v28 = vpop.eup %2750  ;;  %v1313_v36 = vpack.c.bf16 %v1251_v3, %v1249_v18  ;;  %v577_v20 = vmul.f32 %v3220_v13, %v507_v50  ;;  %v3383_v55 = vadd.f32 %v3222_v14, %v575_v58 }
  0x38   : > { %2762 = vpow2.f32 %v746_v48  ;;  %v2753_v54 = vpop.eup %2752  ;;  %v1281_v29 = vmul.f32 %v2751_v28, %v1089_v63  ;;  %v546_v57 = vmul.f32 %v3213_v8, %v476_v23  ;;  %v548_v21 = vmul.f32 %v3213_v8, %v478_v24 }
  0x39   : > { %2764 = vpow2.f32 %v750_v22  ;;  %v2755_v30 = vpop.eup %2754  ;;  %1601 = vmatmul.bf16.vlgmr.msra.gmra.mxu1 %v1313_v36  ;;  %v1283_v31 = vmul.f32 %v2753_v54, %v1091_v41  ;;  %v3388_v32 = vadd.f32 %v3222_v14, %v577_v20  ;;  %v709_v37 = vmin.f32 %v3383_v55, 20.0 }
  0x3a   : > { %v510_v33 = vunpack.c.l.bf16 %v3378_v25  ;;  %v900_v35 = vadd.f32 1.0, %v2755_v30  ;;  %v3393_v39 = vadd.f32 %v3217_v11, %v546_v57  ;;  %v3396_v38 = vadd.f32 %v3217_v11, %v548_v21 }
  0x3b   : > { %v2757_v34 = vpop.eup %2756  ;;  %v578_v45 = vmul.f32 %v3213_v8, %v508_v5  ;;  %v1329_v46 = vpack.c.bf16 %v1283_v31, %v1281_v29  ;;  %v711_v49 = vmin.f32 %v3388_v32, 20.0  ;;  %v810_v51 = vmul.f32 1.442695, %v709_v37 }
  0x3c   : > { %v2759_v40 = vpop.eup %2758  ;;  %v1252_v47 = vmul.f32 %v2757_v34, %v1060_v12  ;;  %v964_v59 = vmul.f32 %v900_v35, %v900_v35  ;;  %v680_v60 = vmin.f32 %v3393_v39, 20.0  ;;  %v682_v61 = vmin.f32 %v3396_v38, 20.0 }
  0x3d   : > { %v2761_v52 = vpop.eup %2760  ;;  %v1254_v56 = vmul.f32 %v2759_v40, %v1062_v19  ;;  %1641 = vmatmul.bf16.vlgmr.msra.gmra.mxu3 %v1329_v46  ;;  %2766 = vpow2.f32 %v810_v51  ;;  %v814_v41 = vmul.f32 1.442695, %v711_v49  ;;  %v580_v42 = vmul.f32 %v3213_v8, %v510_v33 }
  0x3e   : > { %v2763_v62 = vpop.eup %2762  ;;  %v902_v63 = vadd.f32 1.0, %v2761_v52  ;;  %v2438_v2 = vadd.f32 -1.0, %v964_v59  ;;  %v1156_v4 = vadd.f32 1.0, %v964_v59  ;;  %v752_v10 = vmul.f32 1.442695, %v680_v60 }
  0x3f   : > { %v2765_v0 = vpop.eup %2764  ;;  %v1314_v1 = vpack.c.bf16 %v1254_v56, %v1252_v47  ;;  %v869_v6 = vadd.f32 1.0, %v2763_v62  ;;  %2768 = vpow2.f32 %v814_v41  ;;  %v756_v17 = vmul.f32 1.442695, %v682_v61 }
  0x40   : > { %v966_v7 = vmul.f32 %v902_v63, %v902_v63  ;;  %v871_v9 = vadd.f32 1.0, %v2765_v0  ;;  %v1092_v12 = vmul.f32 %v2438_v2, %v3320_v26  ;;  %2770 = vrcp.f32 %v1156_v4 }
  0x41   : > { %v933_v48 = vmul.f32 %v869_v6, %v869_v6  ;;  %2772 = vpow2.f32 %v752_v10  ;;  %v3405_v58 = vadd.f32 %v3217_v11, %v578_v45  ;;  %v3410_v20 = vadd.f32 %v3217_v11, %v580_v42 }
  0x42   : > { %v2440_v18 = vadd.f32 -1.0, %v966_v7  ;;  %v1158_v19 = vadd.f32 1.0, %v966_v7  ;;  %v935_v22 = vmul.f32 %v871_v9, %v871_v9  ;;  %2774 = vpow2.f32 %v756_v17  ;;  %v3429_v17 = vld [vmem:[%s3211_s21 + $0x30] sm:$0xff] }
  0x43   : > { %v2407_v3 = vadd.f32 -1.0, %v933_v48  ;;  %v1125_v50 = vadd.f32 1.0, %v933_v48  ;;  %v2767_v23 = vpop.eup %2766  ;;  %1517 = vmatmul.bf16.gmra.mxu0 %v1314_v1  ;;  %v712_v57 = vmin.f32 %v3405_v58, 20.0  ;;  %v477_v21 = vunpack.c.h.bf16 %v3361_v53 }
  0x44   : > { %v1094_v24 = vmul.f32 %v2440_v18, %v3323_v27  ;;  %2776 = vrcp.f32 %v1158_v19  ;;  %v2409_v5 = vadd.f32 -1.0, %v935_v22  ;;  %v1127_v26 = vadd.f32 1.0, %v935_v22  ;;  %v3432_v18 = vld [vmem:[%s3211_s21 + $0x38] sm:$0xff] }
  0x45   : > { %v1061_v28 = vmul.f32 %v2407_v3, %v3334_v43  ;;  %2778 = vrcp.f32 %v1125_v50  ;;  %v901_v36 = vadd.f32 1.0, %v2767_v23  ;;  %v2769_v54 = vpop.eup %2768  ;;  %v714_v37 = vmin.f32 %v3410_v20, 20.0 }
  0x46   : > { %v1063_v29 = vmul.f32 %v2409_v5, %v3337_v44  ;;  %2780 = vrcp.f32 %v1127_v26  ;;  %v2771_v30 = vpop.eup %2770  ;;  %v903_v27 = vadd.f32 1.0, %v2769_v54  ;;  %v479_v43 = vunpack.c.h.bf16 %v3364_v15 }
  0x47   : > { %v965_v31 = vmul.f32 %v901_v36, %v901_v36  ;;  %v2773_v33 = vpop.eup %2772  ;;  %v1284_v34 = vmul.f32 %v2771_v30, %v1092_v12  ;;  %v816_v35 = vmul.f32 1.442695, %v712_v57  ;;  %v547_v45 = vmul.f32 %v3220_v13, %v477_v21 }
  0x48   : > { %v509_v40 = vunpack.c.h.bf16 %v3367_v16  ;;  %v2775_v44 = vpop.eup %2774  ;;  %v967_v46 = vmul.f32 %v903_v27, %v903_v27  ;;  %v872_v51 = vadd.f32 1.0, %v2773_v33  ;;  %v820_v56 = vmul.f32 1.442695, %v714_v37 }
  0x49   : > { %v2439_v47 = vadd.f32 -1.0, %v965_v31  ;;  %v1157_v49 = vadd.f32 1.0, %v965_v31  ;;  %v874_v52 = vadd.f32 1.0, %v2775_v44  ;;  %2782 = vpow2.f32 %v816_v35 }
  0x4a   : > { %v2777_v53 = vpop.eup %2776  ;;  %v549_v59 = vmul.f32 %v3220_v13, %v479_v43  ;;  %v2441_v61 = vadd.f32 -1.0, %v967_v46  ;;  %v1159_v63 = vadd.f32 1.0, %v967_v46  ;;  %v936_v16 = vmul.f32 %v872_v51, %v872_v51  ;;  %v3453_v46 = vld [vmem:[%s3211_s21 + $0xb0] sm:$0xff] }
  0x4b   : > { %v2779_v60 = vpop.eup %2778  ;;  %v1286_v15 = vmul.f32 %v2777_v53, %v1094_v24  ;;  %v1093_v62 = vmul.f32 %v2439_v47, %v3383_v55  ;;  %2784 = vrcp.f32 %v1157_v49  ;;  %v938_v0 = vmul.f32 %v874_v52, %v874_v52  ;;  %v3456_v47 = vld [vmem:[%s3211_s21 + $0xb8] sm:$0xff] }
  0x4c   : > { %v2781_v41 = vpop.eup %2780  ;;  %v1253_v42 = vmul.f32 %v2779_v60, %v1061_v28  ;;  %v1095_v4 = vmul.f32 %v2441_v61, %v3388_v32  ;;  %2786 = vrcp.f32 %v1159_v63  ;;  %v2410_v6 = vadd.f32 -1.0, %v936_v16 }
  0x4d   : > { %v1330_v1 = vpack.c.bf16 %v1286_v15, %v1284_v34  ;;  %v1255_v2 = vmul.f32 %v2781_v41, %v1063_v29  ;;  %v2412_v7 = vadd.f32 -1.0, %v938_v0  ;;  %v1128_v9 = vadd.f32 1.0, %v936_v16 }
  0x4e   : > { %v1130_v10 = vadd.f32 1.0, %v938_v0  ;;  %2788 = vpow2.f32 %v820_v56  ;;  %v3423_v55 = vadd.f32 %v3222_v14, %v547_v45  ;;  %v3426_v48 = vadd.f32 %v3222_v14, %v549_v59 }
  0x4f   : > { %1557 = vmatmul.bf16.gmra.mxu2 %v1330_v1  ;;  %v1315_v12 = vpack.c.bf16 %v1255_v2, %v1253_v42  ;;  %v2783_v19 = vpop.eup %2782  ;;  %v1064_v32 = vmul.f32 %v2410_v6, %v3393_v39  ;;  %v1066_v22 = vmul.f32 %v2412_v7, %v3396_v38  ;;  %2790 = vrcp.f32 %v1128_v9 }
  0x50   : > { %v511_v3 = vunpack.c.h.bf16 %v3378_v25  ;;  %2792 = vrcp.f32 %v1130_v10  ;;  %v904_v50 = vadd.f32 1.0, %v2783_v19  ;;  %v681_v23 = vmin.f32 %v3423_v55, 20.0 }
  0x51   : > { %1606 = vmatmul.bf16.gmra.mxu1 %v1315_v12  ;;  %v683_v24 = vmin.f32 %v3426_v48, 20.0  ;;  %v2785_v5 = vpop.eup %2784  ;;  %v579_v26 = vmul.f32 %v3220_v13, %v509_v40  ;;  %v480_v36 = vunpack.c.l.bf16 %v3429_v17  ;;  %v482_v39 = vunpack.c.l.bf16 %v3432_v18 }
  0x52   : > { %v581_v28 = vmul.f32 %v3220_v13, %v511_v3  ;;  %v2787_v38 = vpop.eup %2786  ;;  %v1285_v54 = vmul.f32 %v2785_v5, %v1093_v62  ;;  %v968_v29 = vmul.f32 %v904_v50, %v904_v50  ;;  %v754_v25 = vmul.f32 1.442695, %v681_v23 }
  0x53   : > { %v758_v57 = vmul.f32 1.442695, %v683_v24  ;;  %v1287_v21 = vmul.f32 %v2787_v38, %v1095_v4  ;;  %v3444_v30 = vadd.f32 %v3222_v14, %v579_v26  ;;  %v550_v31 = vmul.f32 %v3213_v8, %v480_v36 }
  0x54   : > { %v3447_v27 = vadd.f32 %v3222_v14, %v581_v28  ;;  %v2789_v37 = vpop.eup %2788  ;;  %v2442_v43 = vadd.f32 -1.0, %v968_v29  ;;  %v1160_v33 = vadd.f32 1.0, %v968_v29  ;;  %2794 = vpow2.f32 %v754_v25 }
  0x55   : > { %v552_v34 = vmul.f32 %v3213_v8, %v482_v39  ;;  %v2791_v35 = vpop.eup %2790  ;;  %v1331_v45 = vpack.c.bf16 %v1287_v21, %v1285_v54  ;;  %v906_v40 = vadd.f32 1.0, %v2789_v37  ;;  %2796 = vpow2.f32 %v758_v57 }
  0x56   : > { %v713_v44 = vmin.f32 %v3444_v30, 20.0  ;;  %v2793_v49 = vpop.eup %2792  ;;  %v1256_v51 = vmul.f32 %v2791_v35, %v1064_v32  ;;  %v1096_v53 = vmul.f32 %v2442_v43, %v3405_v58  ;;  %2798 = vrcp.f32 %v1160_v33 }
  0x57   : > { %v715_v52 = vmin.f32 %v3447_v27, 20.0  ;;  %1646 = vmatmul.bf16.gmra.mxu3 %v1331_v45  ;;  %v1258_v56 = vmul.f32 %v2793_v49, %v1066_v22  ;;  %v970_v59 = vmul.f32 %v906_v40, %v906_v40  ;;  %v3461_v15 = vadd.f32 %v3217_v11, %v550_v31 }
  0x58   : > { %v818_v60 = vmul.f32 1.442695, %v713_v44  ;;  %v3464_v62 = vadd.f32 %v3217_v11, %v552_v34  ;;  %v512_v63 = vunpack.c.l.bf16 %v3453_v46  ;;  %v514_v41 = vunpack.c.l.bf16 %v3456_v47 }
  0x59   : > { %v822_v61 = vmul.f32 1.442695, %v715_v52  ;;  %v1316_v42 = vpack.c.bf16 %v1258_v56, %v1256_v51  ;;  %v2444_v58 = vadd.f32 -1.0, %v970_v59  ;;  %v1162_v16 = vadd.f32 1.0, %v970_v59 }
  0x5a   : > { %2800 = vpow2.f32 %v818_v60  ;;  %v2795_v0 = vpop.eup %2794  ;;  %v684_v1 = vmin.f32 %v3461_v15, 20.0  ;;  %v686_v2 = vmin.f32 %v3464_v62, 20.0  ;;  %v582_v4 = vmul.f32 %v3213_v8, %v512_v63 }
  0x5b   : > { %2802 = vpow2.f32 %v822_v61  ;;  %v2797_v6 = vpop.eup %2796  ;;  %1522 = vmatmul.bf16.gmra.mxu0 %v1316_v42  ;;  %v1098_v7 = vmul.f32 %v2444_v58, %v3410_v20  ;;  %v873_v9 = vadd.f32 1.0, %v2795_v0  ;;  %v584_v10 = vmul.f32 %v3213_v8, %v514_v41 }
  0x5c   : > { %2804 = vrcp.f32 %v1162_v16  ;;  %v2799_v12 = vpop.eup %2798  ;;  %v875_v19 = vadd.f32 1.0, %v2797_v6  ;;  %v760_v32 = vmul.f32 1.442695, %v684_v1  ;;  %v764_v22 = vmul.f32 1.442695, %v686_v2 }
  0x5d   : > { %v3474_v3 = vadd.f32 %v3217_v11, %v582_v4  ;;  %v1288_v50 = vmul.f32 %v2799_v12, %v1096_v53  ;;  %v937_v23 = vmul.f32 %v873_v9, %v873_v9  ;;  %v3477_v24 = vadd.f32 %v3217_v11, %v584_v10 }
  0x5e   : > { %v481_v5 = vunpack.c.h.bf16 %v3429_v17  ;;  %v939_v26 = vmul.f32 %v875_v19, %v875_v19  ;;  %2806 = vpow2.f32 %v760_v32  ;;  %v483_v28 = vunpack.c.h.bf16 %v3432_v18 }
  0x5f   : > { %v716_v20 = vmin.f32 %v3474_v3, 20.0  ;;  %v2411_v39 = vadd.f32 -1.0, %v937_v23  ;;  %v1129_v38 = vadd.f32 1.0, %v937_v23  ;;  %2808 = vpow2.f32 %v764_v22 }
  0x60   : > { %v2801_v36 = vpop.eup %2800  ;;  %v718_v54 = vmin.f32 %v3477_v24, 20.0  ;;  %v2413_v25 = vadd.f32 -1.0, %v939_v26  ;;  %v1131_v57 = vadd.f32 1.0, %v939_v26  ;;  %v551_v40 = vmul.f32 %v3220_v13, %v481_v5 }
  0x61   : > { %v2803_v29 = vpop.eup %2802  ;;  %v905_v21 = vadd.f32 1.0, %v2801_v36  ;;  %v824_v31 = vmul.f32 1.442695, %v716_v20  ;;  %v1065_v17 = vmul.f32 %v2411_v39, %v3423_v55  ;;  %2810 = vrcp.f32 %v1129_v38 }
  0x62   : > { %v2805_v37 = vpop.eup %2804  ;;  %v907_v43 = vadd.f32 1.0, %v2803_v29  ;;  %v828_v33 = vmul.f32 1.442695, %v718_v54  ;;  %v1067_v18 = vmul.f32 %v2413_v25, %v3426_v48  ;;  %2812 = vrcp.f32 %v1131_v57 }
  0x63   : > { %v1290_v34 = vmul.f32 %v2805_v37, %v1098_v7  ;;  %v969_v35 = vmul.f32 %v905_v21, %v905_v21  ;;  %2814 = vpow2.f32 %v824_v31  ;;  %v553_v44 = vmul.f32 %v3220_v13, %v483_v28 }
  0x64   : > { %v971_v45 = vmul.f32 %v907_v43, %v907_v43  ;;  %v2807_v49 = vpop.eup %2806  ;;  %2816 = vpow2.f32 %v828_v33  ;;  %v3488_v61 = vadd.f32 %v3222_v14, %v551_v40  ;;  %v513_v7 = vunpack.c.h.bf16 %v3453_v46  ;;  %v3510_v43 = vld [vmem:[%s3211_s21 + $0x48] sm:$0xff]  ;;  %v3513_v33 = vld [vmem:[%s3211_s21 + $0xc0] sm:$0xff] }
  0x65   : > { %v1332_v51 = vpack.c.bf16 %v1290_v34, %v1288_v50  ;;  %v2443_v53 = vadd.f32 -1.0, %v969_v35  ;;  %v1161_v52 = vadd.f32 1.0, %v969_v35  ;;  %v2809_v55 = vpop.eup %2808  ;;  %v876_v60 = vadd.f32 1.0, %v2807_v49 }
  0x66   : > { %v2445_v56 = vadd.f32 -1.0, %v971_v45  ;;  %v1163_v59 = vadd.f32 1.0, %v971_v45  ;;  %v878_v63 = vadd.f32 1.0, %v2809_v55  ;;  %v3492_v41 = vadd.f32 %v3222_v14, %v553_v44  ;;  %v3518_v45 = vld [vmem:[%s3211_s21 + $0xc8] sm:$0xff] }
  0x67   : > { %1562 = vmatmul.bf16.gmra.mxu2 %v1332_v51  ;;  %v1097_v48 = vmul.f32 %v2443_v53, %v3444_v30  ;;  %2818 = vrcp.f32 %v1161_v52  ;;  %v2811_v42 = vpop.eup %2810  ;;  %v940_v16 = vmul.f32 %v876_v60, %v876_v60  ;;  %v685_v0 = vmin.f32 %v3488_v61, 20.0 }
  0x68   : > { %v1099_v58 = vmul.f32 %v2445_v56, %v3447_v27  ;;  %2820 = vrcp.f32 %v1163_v59  ;;  %v2813_v1 = vpop.eup %2812  ;;  %v1257_v2 = vmul.f32 %v2811_v42, %v1065_v17  ;;  %v942_v4 = vmul.f32 %v878_v63, %v878_v63 }
  0x69   : > { %v687_v6 = vmin.f32 %v3492_v41, 20.0  ;;  %v2815_v30 = vpop.eup %2814  ;;  %v1259_v9 = vmul.f32 %v2813_v1, %v1067_v18  ;;  %v2414_v10 = vadd.f32 -1.0, %v940_v16  ;;  %v1132_v12 = vadd.f32 1.0, %v940_v16 }
  0x6a   : > { %v762_v19 = vmul.f32 1.442695, %v685_v0  ;;  %v2817_v32 = vpop.eup %2816  ;;  %v2416_v22 = vadd.f32 -1.0, %v942_v4  ;;  %v1134_v50 = vadd.f32 1.0, %v942_v4  ;;  %v908_v27 = vadd.f32 1.0, %v2815_v30 }
  0x6b   : > { %v766_v23 = vmul.f32 1.442695, %v687_v6  ;;  %v1317_v5 = vpack.c.bf16 %v1259_v9, %v1257_v2  ;;  %v1068_v26 = vmul.f32 %v2414_v10, %v3461_v15  ;;  %2822 = vrcp.f32 %v1132_v12  ;;  %v3503_v15 = vld [vmem:[%s3211_s21 + $0x40] sm:$0xff] }
  0x6c   : > { %v910_v20 = vadd.f32 1.0, %v2817_v32  ;;  %v1070_v36 = vmul.f32 %v2416_v22, %v3464_v62  ;;  %2824 = vrcp.f32 %v1134_v50  ;;  %v972_v46 = vmul.f32 %v908_v27, %v908_v27 }
  0x6d   : > { %v2819_v28 = vpop.eup %2818  ;;  %v515_v39 = vunpack.c.h.bf16 %v3456_v47  ;;  %1611 = vmatmul.bf16.gmra.mxu1 %v1317_v5  ;;  %2826 = vpow2.f32 %v762_v19  ;;  %v583_v25 = vmul.f32 %v3220_v13, %v513_v7  ;;  %v484_v35 = vunpack.c.l.bf16 %v3503_v15 }
  0x6e   : > { %v2821_v38 = vpop.eup %2820  ;;  %v1289_v54 = vmul.f32 %v2819_v28, %v1097_v48  ;;  %v974_v29 = vmul.f32 %v910_v20, %v910_v20  ;;  %v2446_v21 = vadd.f32 -1.0, %v972_v46  ;;  %v1164_v31 = vadd.f32 1.0, %v972_v46 }
  0x6f   : > { %v1291_v57 = vmul.f32 %v2821_v38, %v1099_v58  ;;  %2828 = vpow2.f32 %v766_v23  ;;  %v585_v47 = vmul.f32 %v3220_v13, %v515_v39  ;;  %v3507_v17 = vadd.f32 %v3222_v14, %v583_v25 }
  0x70   : > { %v2448_v62 = vadd.f32 -1.0, %v974_v29  ;;  %v1166_v37 = vadd.f32 1.0, %v974_v29  ;;  %v1100_v18 = vmul.f32 %v2446_v21, %v3474_v3  ;;  %2830 = vrcp.f32 %v1164_v31 }
  0x71   : > { %v1333_v34 = vpack.c.bf16 %v1291_v57, %v1289_v54  ;;  %v2823_v40 = vpop.eup %2822  ;;  %v3522_v49 = vadd.f32 %v3222_v14, %v585_v47  ;;  %v717_v51 = vmin.f32 %v3507_v17, 20.0  ;;  %v486_v55 = vunpack.c.l.bf16 %v3510_v43  ;;  %v3554_v47 = vld [vmem:[%s3211_s21 + $0x50] sm:$0xff] }
  0x72   : > { %v1102_v44 = vmul.f32 %v2448_v62, %v3477_v24  ;;  %2832 = vrcp.f32 %v1166_v37  ;;  %v2825_v53 = vpop.eup %2824  ;;  %v1260_v52 = vmul.f32 %v2823_v40, %v1068_v26  ;;  %v554_v3 = vmul.f32 %v3213_v8, %v484_v35 }
  0x73   : > { %1651 = vmatmul.bf16.gmra.mxu3 %v1333_v34  ;;  %v516_v56 = vunpack.c.l.bf16 %v3513_v33  ;;  %v2827_v59 = vpop.eup %2826  ;;  %v1262_v60 = vmul.f32 %v2825_v53, %v1070_v36  ;;  %v719_v48 = vmin.f32 %v3522_v49, 20.0  ;;  %v826_v24 = vmul.f32 1.442695, %v717_v51 }
  0x74   : > { %v518_v63 = vunpack.c.l.bf16 %v3518_v45  ;;  %v877_v58 = vadd.f32 1.0, %v2827_v59  ;;  %v556_v16 = vmul.f32 %v3213_v8, %v486_v55  ;;  %v3532_v0 = vadd.f32 %v3217_v11, %v554_v3 }
  0x75   : > { %v2829_v42 = vpop.eup %2828  ;;  %v586_v1 = vmul.f32 %v3213_v8, %v516_v56  ;;  %v1318_v2 = vpack.c.bf16 %v1262_v60, %v1260_v52  ;;  %2834 = vpow2.f32 %v826_v24  ;;  %v830_v6 = vmul.f32 1.442695, %v719_v48 }
  0x76   : > { %v879_v4 = vadd.f32 1.0, %v2829_v42  ;;  %v2831_v7 = vpop.eup %2830  ;;  %v941_v30 = vmul.f32 %v877_v58, %v877_v58  ;;  %v3536_v9 = vadd.f32 %v3217_v11, %v556_v16  ;;  %v688_v10 = vmin.f32 %v3532_v0, 20.0 }
  0x77   : > { %v588_v12 = vmul.f32 %v3213_v8, %v518_v63  ;;  %1527 = vmatmul.bf16.gmra.mxu0 %v1318_v2  ;;  %v1292_v32 = vmul.f32 %v2831_v7, %v1100_v18  ;;  %2836 = vpow2.f32 %v830_v6  ;;  %v3541_v50 = vadd.f32 %v3217_v11, %v586_v1  ;;  %v3573_v7 = vld [vmem:[%s3211_s21 + $0x58] sm:$0xff] }
  0x78   : > { %v2833_v19 = vpop.eup %2832  ;;  %v943_v22 = vmul.f32 %v879_v4, %v879_v4  ;;  %v2415_v23 = vadd.f32 -1.0, %v941_v30  ;;  %v1133_v5 = vadd.f32 1.0, %v941_v30  ;;  %v690_v26 = vmin.f32 %v3536_v9, 20.0 }
  0x79   : > { %v1294_v27 = vmul.f32 %v2833_v19, %v1102_v44  ;;  %v768_v36 = vmul.f32 1.442695, %v688_v10  ;;  %v3545_v46 = vadd.f32 %v3217_v11, %v588_v12  ;;  %v720_v57 = vmin.f32 %v3541_v50, 20.0 }
  0x7a   : > { %v2417_v20 = vadd.f32 -1.0, %v943_v22  ;;  %v1135_v28 = vadd.f32 1.0, %v943_v22  ;;  %v1069_v38 = vmul.f32 %v2415_v23, %v3488_v61  ;;  %2838 = vrcp.f32 %v1133_v5 }
  0x7b   : > { %v1334_v39 = vpack.c.bf16 %v1294_v27, %v1292_v32  ;;  %v772_v54 = vmul.f32 1.442695, %v690_v26  ;;  %v2835_v29 = vpop.eup %2834  ;;  %v722_v21 = vmin.f32 %v3545_v46, 20.0  ;;  %v485_v62 = vunpack.c.h.bf16 %v3503_v15 }
  0x7c   : > { %v1071_v25 = vmul.f32 %v2417_v20, %v3492_v41  ;;  %2840 = vrcp.f32 %v1135_v28  ;;  %v909_v31 = vadd.f32 1.0, %v2835_v29  ;;  %v487_v37 = vunpack.c.h.bf16 %v3510_v43 }
  0x7d   : > { %1567 = vmatmul.bf16.gmra.mxu2 %v1334_v39  ;;  %2842 = vpow2.f32 %v768_v36  ;;  %v2837_v61 = vpop.eup %2836  ;;  %v832_v34 = vmul.f32 1.442695, %v720_v57  ;;  %v836_v18 = vmul.f32 1.442695, %v722_v21  ;;  %v517_v41 = vunpack.c.h.bf16 %v3513_v33 }
  0x7e   : > { %2844 = vpow2.f32 %v772_v54  ;;  %v911_v35 = vadd.f32 1.0, %v2837_v61  ;;  %v973_v40 = vmul.f32 %v909_v31, %v909_v31  ;;  %v555_v44 = vmul.f32 %v3220_v13, %v485_v62 }
  0x7f   : > { %v557_v51 = vmul.f32 %v3220_v13, %v487_v37  ;;  %2846 = vpow2.f32 %v832_v34  ;;  %v519_v53 = vunpack.c.h.bf16 %v3518_v45  ;;  %v587_v15 = vmul.f32 %v3220_v13, %v517_v41 }
  0x80   : > { %v488_v43 = vunpack.c.l.bf16 %v3554_v47  ;;  %v2839_v52 = vpop.eup %2838  ;;  %v975_v55 = vmul.f32 %v911_v35, %v911_v35  ;;  %v2447_v3 = vadd.f32 -1.0, %v973_v40  ;;  %v1165_v56 = vadd.f32 1.0, %v973_v40 }
  0x81   : > { %2848 = vpow2.f32 %v836_v18  ;;  %v1261_v59 = vmul.f32 %v2839_v52, %v1069_v38  ;;  %v3563_v60 = vadd.f32 %v3222_v14, %v555_v44  ;;  %v3566_v48 = vadd.f32 %v3222_v14, %v557_v51 }
  0x82   : > { %v2841_v33 = vpop.eup %2840  ;;  %v589_v45 = vmul.f32 %v3220_v13, %v519_v53  ;;  %v2449_v42 = vadd.f32 -1.0, %v975_v55  ;;  %v1101_v58 = vmul.f32 %v2447_v3, %v3507_v17  ;;  %v1167_v16 = vadd.f32 1.0, %v975_v55 }
  0x83   : > { %v2843_v24 = vpop.eup %2842  ;;  %v1263_v63 = vmul.f32 %v2841_v33, %v1071_v25  ;;  %2850 = vrcp.f32 %v1165_v56  ;;  %v689_v4 = vmin.f32 %v3563_v60, 20.0  ;;  %v691_v6 = vmin.f32 %v3566_v48, 20.0 }
  0x84   : > { %v2845_v1 = vpop.eup %2844  ;;  %v880_v2 = vadd.f32 1.0, %v2843_v24  ;;  %v1103_v10 = vmul.f32 %v2449_v42, %v3522_v49  ;;  %2852 = vrcp.f32 %v1167_v16  ;;  %v3577_v17 = vadd.f32 %v3222_v14, %v587_v15  ;;  %v3590_v15 = vld [vmem:[%s3211_s21 + $0xd0] sm:$0xff] }
  0x85   : > { %v1319_v30 = vpack.c.bf16 %v1263_v63, %v1261_v59  ;;  %v882_v12 = vadd.f32 1.0, %v2845_v1  ;;  %v2847_v19 = vpop.eup %2846  ;;  %v770_v22 = vmul.f32 1.442695, %v689_v4  ;;  %v774_v27 = vmul.f32 1.442695, %v691_v6 }
  0x86   : > { %v944_v32 = vmul.f32 %v880_v2, %v880_v2  ;;  %v912_v26 = vadd.f32 1.0, %v2847_v19  ;;  %v3580_v20 = vadd.f32 %v3222_v14, %v589_v45  ;;  %v490_v28 = vunpack.c.l.bf16 %v3573_v7  ;;  %v3598_v45 = vld [vmem:[%s3211_s21 + $0xd8] sm:$0xff] }
  0x87   : > { %v2849_v23 = vpop.eup %2848  ;;  %1616 = vmatmul.bf16.gmra.mxu1 %v1319_v30  ;;  %v946_v5 = vmul.f32 %v882_v12, %v882_v12  ;;  %2854 = vpow2.f32 %v770_v22  ;;  %v721_v31 = vmin.f32 %v3577_v17, 20.0  ;;  %v558_v53 = vmul.f32 %v3213_v8, %v488_v43 }
  0x88   : > { %v2418_v36 = vadd.f32 -1.0, %v944_v32  ;;  %v1136_v49 = vadd.f32 1.0, %v944_v32  ;;  %v914_v39 = vadd.f32 1.0, %v2849_v23  ;;  %v976_v29 = vmul.f32 %v912_v26, %v912_v26 }
  0x89   : > { %v2420_v38 = vadd.f32 -1.0, %v946_v5  ;;  %v1138_v54 = vadd.f32 1.0, %v946_v5  ;;  %2856 = vpow2.f32 %v774_v27  ;;  %v2851_v25 = vpop.eup %2850  ;;  %v834_v51 = vmul.f32 1.442695, %v721_v31 }
  0x8a   : > { %v1072_v57 = vmul.f32 %v2418_v36, %v3532_v0  ;;  %2858 = vrcp.f32 %v1136_v49  ;;  %v978_v21 = vmul.f32 %v914_v39, %v914_v39  ;;  %v2853_v62 = vpop.eup %2852  ;;  %v1293_v37 = vmul.f32 %v2851_v25, %v1101_v58 }
  0x8b   : > { %v1074_v61 = vmul.f32 %v2420_v38, %v3536_v9  ;;  %2860 = vrcp.f32 %v1138_v54  ;;  %v2450_v34 = vadd.f32 -1.0, %v976_v29  ;;  %v1295_v18 = vmul.f32 %v2853_v62, %v1103_v10 }
  0x8c   : > { %v2452_v41 = vadd.f32 -1.0, %v978_v21  ;;  %v1168_v35 = vadd.f32 1.0, %v976_v29  ;;  %v1170_v40 = vadd.f32 1.0, %v978_v21  ;;  %v723_v0 = vmin.f32 %v3580_v20, 20.0 }
  0x8d   : > { %v1104_v44 = vmul.f32 %v2450_v34, %v3541_v50  ;;  %v2855_v52 = vpop.eup %2854  ;;  %v1335_v55 = vpack.c.bf16 %v1295_v18, %v1293_v37  ;;  %v560_v3 = vmul.f32 %v3213_v8, %v490_v28  ;;  %v3595_v50 = vadd.f32 %v3217_v11, %v558_v53 }
  0x8e   : > { %v1106_v9 = vmul.f32 %v2452_v41, %v3545_v46  ;;  %2862 = vrcp.f32 %v1168_v35  ;;  %v881_v33 = vadd.f32 1.0, %v2855_v52  ;;  %v838_v59 = vmul.f32 1.442695, %v723_v0 }
  0x8f   : > { %v2857_v56 = vpop.eup %2856  ;;  %2864 = vrcp.f32 %v1170_v40  ;;  %1656 = vmatmul.bf16.gmra.mxu3 %v1335_v55  ;;  %v3601_v63 = vadd.f32 %v3217_v11, %v560_v3  ;;  %v520_v46 = vunpack.c.l.bf16 %v3590_v15  ;;  %v692_v1 = vmin.f32 %v3595_v50, 20.0 }
  0x90   : > { %v2859_v24 = vpop.eup %2858  ;;  %v883_v43 = vadd.f32 1.0, %v2857_v56  ;;  %2866 = vpow2.f32 %v834_v51  ;;  %v945_v16 = vmul.f32 %v881_v33, %v881_v33  ;;  %v522_v30 = vunpack.c.l.bf16 %v3598_v45 }
  0x91   : > { %v2861_v42 = vpop.eup %2860  ;;  %v1264_v58 = vmul.f32 %v2859_v24, %v1072_v57  ;;  %2868 = vpow2.f32 %v838_v59  ;;  %v694_v6 = vmin.f32 %v3601_v63, 20.0  ;;  %v776_v19 = vmul.f32 1.442695, %v692_v1 }
  0x92   : > { %v1266_v2 = vmul.f32 %v2861_v42, %v1074_v61  ;;  %v947_v4 = vmul.f32 %v883_v43, %v883_v43  ;;  %v2419_v10 = vadd.f32 -1.0, %v945_v16  ;;  %v1137_v12 = vadd.f32 1.0, %v945_v16  ;;  %v3637_v16 = vld [vmem:[%s3211_s21 + $0x68] sm:$0xff] }
  0x93   : > { %v590_v32 = vmul.f32 %v3213_v8, %v520_v46  ;;  %v780_v26 = vmul.f32 1.442695, %v694_v6  ;;  %v592_v39 = vmul.f32 %v3213_v8, %v522_v30  ;;  %v491_v18 = vunpack.c.h.bf16 %v3573_v7 }
  0x94   : > { %v2863_v22 = vpop.eup %2862  ;;  %v1320_v27 = vpack.c.bf16 %v1266_v2, %v1264_v58  ;;  %v2421_v23 = vadd.f32 -1.0, %v947_v4  ;;  %v1139_v5 = vadd.f32 1.0, %v947_v4  ;;  %v1073_v49 = vmul.f32 %v2419_v10, %v3563_v60  ;;  %v3634_v58 = vld [vmem:[%s3211_s21 + $0x60] sm:$0xff] }
  0x95   : > { %v2865_v28 = vpop.eup %2864  ;;  %v1296_v36 = vmul.f32 %v2863_v22, %v1104_v44  ;;  %2870 = vrcp.f32 %v1137_v12  ;;  %v3612_v25 = vadd.f32 %v3217_v11, %v590_v32  ;;  %v3615_v31 = vadd.f32 %v3217_v11, %v592_v39 }
  0x96   : > { %v2867_v38 = vpop.eup %2866  ;;  %1532 = vmatmul.bf16.gmra.mxu0 %v1320_v27  ;;  %v1298_v54 = vmul.f32 %v2865_v28, %v1106_v9  ;;  %v1075_v29 = vmul.f32 %v2421_v23, %v3566_v48  ;;  %2872 = vrcp.f32 %v1139_v5  ;;  %v489_v60 = vunpack.c.h.bf16 %v3554_v47 }
  0x97   : > { %v2869_v57 = vpop.eup %2868  ;;  %v913_v21 = vadd.f32 1.0, %v2867_v38  ;;  %2874 = vpow2.f32 %v776_v19  ;;  %v724_v61 = vmin.f32 %v3612_v25, 20.0  ;;  %v726_v48 = vmin.f32 %v3615_v31, 20.0 }
  0x98   : > { %v1336_v62 = vpack.c.bf16 %v1298_v54, %v1296_v36  ;;  %v915_v37 = vadd.f32 1.0, %v2869_v57  ;;  %2876 = vpow2.f32 %v780_v26  ;;  %v559_v41 = vmul.f32 %v3220_v13, %v489_v60 }
  0x99   : > { %v977_v34 = vmul.f32 %v913_v21, %v913_v21  ;;  %v840_v40 = vmul.f32 1.442695, %v724_v61  ;;  %v521_v44 = vunpack.c.h.bf16 %v3590_v15  ;;  %v523_v0 = vunpack.c.h.bf16 %v3598_v45 }
  0x9a   : > { %1572 = vmatmul.bf16.gmra.mxu2 %v1336_v62  ;;  %v979_v35 = vmul.f32 %v915_v37, %v915_v37  ;;  %v844_v52 = vmul.f32 1.442695, %v726_v48  ;;  %v561_v55 = vmul.f32 %v3220_v13, %v491_v18  ;;  %v3627_v15 = vadd.f32 %v3222_v14, %v559_v41  ;;  %v3656_v18 = vld [vmem:[%s3211_s21 + $0xe0] sm:$0xff] }
  0x9b   : > { %v2871_v47 = vpop.eup %2870  ;;  %v2451_v51 = vadd.f32 -1.0, %v977_v34  ;;  %v1169_v53 = vadd.f32 1.0, %v977_v34  ;;  %2878 = vpow2.f32 %v840_v40  ;;  %v591_v30 = vmul.f32 %v3220_v13, %v521_v44 }
  0x9c   : > { %v2873_v9 = vpop.eup %2872  ;;  %v1265_v3 = vmul.f32 %v2871_v47, %v1073_v49  ;;  %v2453_v7 = vadd.f32 -1.0, %v979_v35  ;;  %v1171_v56 = vadd.f32 1.0, %v979_v35  ;;  %v3631_v42 = vadd.f32 %v3222_v14, %v561_v55 }
  0x9d   : > { %v2875_v33 = vpop.eup %2874  ;;  %v1267_v59 = vmul.f32 %v2873_v9, %v1075_v29  ;;  %v1105_v24 = vmul.f32 %v2451_v51, %v3577_v17  ;;  %2880 = vrcp.f32 %v1169_v53  ;;  %v693_v17 = vmin.f32 %v3627_v15, 20.0 }
  0x9e   : > { %v2877_v45 = vpop.eup %2876  ;;  %v1107_v43 = vmul.f32 %v2453_v7, %v3580_v20  ;;  %2882 = vrcp.f32 %v1171_v56  ;;  %v884_v46 = vadd.f32 1.0, %v2875_v33  ;;  %v695_v6 = vmin.f32 %v3631_v42, 20.0  ;;  %v3666_v33 = vld [vmem:[%s3211_s21 + $0xe8] sm:$0xff] }
  0x9f   : > { %v1321_v1 = vpack.c.bf16 %v1267_v59, %v1265_v3  ;;  %v886_v2 = vadd.f32 1.0, %v2877_v45  ;;  %2884 = vpow2.f32 %v844_v52  ;;  %v593_v20 = vmul.f32 %v3220_v13, %v523_v0 }
  0xa0   : > { %v948_v4 = vmul.f32 %v884_v46, %v884_v46  ;;  %v778_v12 = vmul.f32 1.442695, %v693_v17  ;;  %v492_v19 = vunpack.c.l.bf16 %v3634_v58  ;;  %v494_v32 = vunpack.c.l.bf16 %v3637_v16 }
  0xa1   : > { %1621 = vmatmul.bf16.gmra.mxu1 %v1321_v1  ;;  %v950_v10 = vmul.f32 %v886_v2, %v886_v2  ;;  %v2879_v22 = vpop.eup %2878  ;;  %v782_v5 = vmul.f32 1.442695, %v695_v6  ;;  %v3646_v26 = vadd.f32 %v3222_v14, %v591_v30  ;;  %v3650_v57 = vadd.f32 %v3222_v14, %v593_v20 }
  0xa2   : > { %v2422_v27 = vadd.f32 -1.0, %v948_v4  ;;  %v1140_v23 = vadd.f32 1.0, %v948_v4  ;;  %v916_v39 = vadd.f32 1.0, %v2879_v22  ;;  %2886 = vpow2.f32 %v778_v12 }
  0xa3   : > { %v2881_v28 = vpop.eup %2880  ;;  %v2424_v36 = vadd.f32 -1.0, %v950_v10  ;;  %v1142_v49 = vadd.f32 1.0, %v950_v10  ;;  %v725_v34 = vmin.f32 %v3646_v26, 20.0  ;;  %v727_v48 = vmin.f32 %v3650_v57, 20.0 }
  0xa4   : > { %v2883_v38 = vpop.eup %2882  ;;  %v1297_v54 = vmul.f32 %v2881_v28, %v1105_v24  ;;  %v1076_v29 = vmul.f32 %v2422_v27, %v3595_v50  ;;  %2888 = vrcp.f32 %v1140_v23  ;;  %v980_v37 = vmul.f32 %v916_v39, %v916_v39 }
  0xa5   : > { %v2885_v21 = vpop.eup %2884  ;;  %v1299_v60 = vmul.f32 %v2883_v38, %v1107_v43  ;;  %v1078_v62 = vmul.f32 %v2424_v36, %v3601_v63  ;;  %2890 = vrcp.f32 %v1142_v49  ;;  %v562_v40 = vmul.f32 %v3213_v8, %v492_v19 }
  0xa6   : > { %v918_v61 = vadd.f32 1.0, %v2885_v21  ;;  %2892 = vpow2.f32 %v782_v5  ;;  %v2454_v50 = vadd.f32 -1.0, %v980_v37  ;;  %v1172_v35 = vadd.f32 1.0, %v980_v37 }
  0xa7   : > { %v1337_v41 = vpack.c.bf16 %v1299_v60, %v1297_v54  ;;  %v842_v0 = vmul.f32 1.442695, %v725_v34  ;;  %v846_v47 = vmul.f32 1.442695, %v727_v48  ;;  %v564_v63 = vmul.f32 %v3213_v8, %v494_v32 }
  0xa8   : > { %v982_v44 = vmul.f32 %v918_v61, %v918_v61  ;;  %v2887_v51 = vpop.eup %2886  ;;  %v1108_v53 = vmul.f32 %v2454_v50, %v3612_v25  ;;  %2894 = vrcp.f32 %v1172_v35  ;;  %v3662_v52 = vadd.f32 %v3217_v11, %v562_v40 }
  0xa9   : > { %1661 = vmatmul.bf16.gmra.mxu3 %v1337_v41  ;;  %v524_v55 = vunpack.c.l.bf16 %v3656_v18  ;;  %v885_v56 = vadd.f32 1.0, %v2887_v51  ;;  %2896 = vpow2.f32 %v842_v0  ;;  %v3669_v45 = vadd.f32 %v3217_v11, %v564_v63 }
  0xaa   : > { %v2889_v9 = vpop.eup %2888  ;;  %v2456_v3 = vadd.f32 -1.0, %v982_v44  ;;  %v1174_v7 = vadd.f32 1.0, %v982_v44  ;;  %2898 = vpow2.f32 %v846_v47  ;;  %v696_v25 = vmin.f32 %v3662_v52, 20.0 }
  0xab   : > { %v2891_v59 = vpop.eup %2890  ;;  %v1268_v24 = vmul.f32 %v2889_v9, %v1076_v29  ;;  %v949_v2 = vmul.f32 %v885_v56, %v885_v56  ;;  %v698_v4 = vmin.f32 %v3669_v45, 20.0  ;;  %v526_v30 = vunpack.c.l.bf16 %v3666_v33 }
  0xac   : > { %v2893_v43 = vpop.eup %2892  ;;  %v1270_v46 = vmul.f32 %v2891_v59, %v1078_v62  ;;  %v1110_v1 = vmul.f32 %v2456_v3, %v3615_v31  ;;  %2900 = vrcp.f32 %v1174_v7  ;;  %v784_v6 = vmul.f32 1.442695, %v696_v25 }
  0xad   : > { %v887_v17 = vadd.f32 1.0, %v2893_v43  ;;  %v2423_v10 = vadd.f32 -1.0, %v949_v2  ;;  %v1141_v12 = vadd.f32 1.0, %v949_v2  ;;  %v594_v19 = vmul.f32 %v3213_v8, %v524_v55 }
  0xae   : > { %v1322_v20 = vpack.c.bf16 %v1270_v46, %v1268_v24  ;;  %v2895_v32 = vpop.eup %2894  ;;  %2902 = vpow2.f32 %v784_v6  ;;  %v788_v27 = vmul.f32 1.442695, %v698_v4  ;;  %v596_v23 = vmul.f32 %v3213_v8, %v526_v30 }
  0xaf   : > { %v951_v22 = vmul.f32 %v887_v17, %v887_v17  ;;  %v2897_v31 = vpop.eup %2896  ;;  %v1300_v5 = vmul.f32 %v2895_v32, %v1108_v53  ;;  %v1077_v28 = vmul.f32 %v2423_v10, %v3627_v15  ;;  %2904 = vrcp.f32 %v1141_v12 }
  0xb0   : > { %1537 = vmatmul.bf16.gmra.mxu0 %v1322_v20  ;;  %v3679_v36 = vadd.f32 %v3217_v11, %v594_v19  ;;  %v2899_v49 = vpop.eup %2898  ;;  %v917_v54 = vadd.f32 1.0, %v2897_v31  ;;  %2906 = vpow2.f32 %v788_v27  ;;  %v3682_v60 = vadd.f32 %v3217_v11, %v596_v23  ;;  %v3706_v31 = vld [vmem:[%s3211_s21 + $0x70] sm:$0xff] }
  0xb1   : > { %v2425_v39 = vadd.f32 -1.0, %v951_v22  ;;  %v1143_v38 = vadd.f32 1.0, %v951_v22  ;;  %v919_v21 = vadd.f32 1.0, %v2899_v49  ;;  %v493_v37 = vunpack.c.h.bf16 %v3634_v58 }
  0xb2   : > { %v2901_v29 = vpop.eup %2900  ;;  %v728_v62 = vmin.f32 %v3679_v36, 20.0  ;;  %v981_v34 = vmul.f32 %v917_v54, %v917_v54  ;;  %v730_v41 = vmin.f32 %v3682_v60, 20.0  ;;  %v495_v35 = vunpack.c.h.bf16 %v3637_v16 }
  0xb3   : > { %v1302_v61 = vmul.f32 %v2901_v29, %v1110_v1  ;;  %v1079_v15 = vmul.f32 %v2425_v39, %v3631_v42  ;;  %2908 = vrcp.f32 %v1143_v38  ;;  %v983_v48 = vmul.f32 %v919_v21, %v919_v21  ;;  %v3711_v29 = vld [vmem:[%s3211_s21 + $0x78] sm:$0xff] }
  0xb4   : > { %v848_v50 = vmul.f32 1.442695, %v728_v62  ;;  %v2903_v40 = vpop.eup %2902  ;;  %v2455_v0 = vadd.f32 -1.0, %v981_v34  ;;  %v1173_v47 = vadd.f32 1.0, %v981_v34  ;;  %v563_v63 = vmul.f32 %v3220_v13, %v493_v37 }
  0xb5   : > { %v1338_v44 = vpack.c.bf16 %v1302_v61, %v1300_v5  ;;  %v2905_v51 = vpop.eup %2904  ;;  %v2457_v53 = vadd.f32 -1.0, %v983_v48  ;;  %v1175_v58 = vadd.f32 1.0, %v983_v48  ;;  %v888_v55 = vadd.f32 1.0, %v2903_v40  ;;  %v3721_v61 = vld [vmem:[%s3211_s21 + $0xf0] sm:$0xff] }
  0xb6   : > { %2910 = vpow2.f32 %v848_v50  ;;  %v2907_v42 = vpop.eup %2906  ;;  %v1269_v9 = vmul.f32 %v2905_v51, %v1077_v28  ;;  %v1109_v3 = vmul.f32 %v2455_v0, %v3646_v26  ;;  %v852_v7 = vmul.f32 1.442695, %v730_v41 }
  0xb7   : > { %1577 = vmatmul.bf16.gmra.mxu2 %v1338_v44  ;;  %2912 = vrcp.f32 %v1173_v47  ;;  %v1111_v16 = vmul.f32 %v2457_v53, %v3650_v57  ;;  %v890_v56 = vadd.f32 1.0, %v2907_v42  ;;  %v952_v59 = vmul.f32 %v888_v55, %v888_v55  ;;  %v3728_v47 = vld [vmem:[%s3211_s21 + $0xf8] sm:$0xff] }
  0xb8   : > { %2914 = vrcp.f32 %v1175_v58  ;;  %v565_v25 = vmul.f32 %v3220_v13, %v495_v35  ;;  %v3694_v43 = vadd.f32 %v3222_v14, %v563_v63  ;;  %v525_v46 = vunpack.c.h.bf16 %v3656_v18 }
  0xb9   : > { %v2909_v24 = vpop.eup %2908  ;;  %2916 = vpow2.f32 %v852_v7  ;;  %v954_v2 = vmul.f32 %v890_v56, %v890_v56  ;;  %v2426_v17 = vadd.f32 -1.0, %v952_v59  ;;  %v1144_v26 = vadd.f32 1.0, %v952_v59 }
  0xba   : > { %v1271_v1 = vmul.f32 %v2909_v24, %v1079_v15  ;;  %v3698_v4 = vadd.f32 %v3222_v14, %v565_v25  ;;  %v697_v57 = vmin.f32 %v3694_v43, 20.0  ;;  %v527_v6 = vunpack.c.h.bf16 %v3666_v33 }
  0xbb   : > { %v595_v30 = vmul.f32 %v3220_v13, %v525_v46  ;;  %v2428_v12 = vadd.f32 -1.0, %v954_v2  ;;  %v1080_v19 = vmul.f32 %v2426_v17, %v3662_v52  ;;  %v1146_v18 = vadd.f32 1.0, %v954_v2 }
  0xbc   : > { %v2911_v20 = vpop.eup %2910  ;;  %v1323_v10 = vpack.c.bf16 %v1271_v1, %v1269_v9  ;;  %2918 = vrcp.f32 %v1144_v26  ;;  %v699_v27 = vmin.f32 %v3698_v4, 20.0  ;;  %v786_v23 = vmul.f32 1.442695, %v697_v57 }
  0xbd   : > { %v2913_v32 = vpop.eup %2912  ;;  %v920_v22 = vadd.f32 1.0, %v2911_v20  ;;  %v1082_v28 = vmul.f32 %v2428_v12, %v3669_v45  ;;  %2920 = vrcp.f32 %v1146_v18  ;;  %v597_v49 = vmul.f32 %v3220_v13, %v527_v6 }
  0xbe   : > { %v2915_v5 = vpop.eup %2914  ;;  %1626 = vmatmul.bf16.gmra.mxu1 %v1323_v10  ;;  %v1301_v33 = vmul.f32 %v2913_v32, %v1109_v3  ;;  %2922 = vpow2.f32 %v786_v23  ;;  %v790_v54 = vmul.f32 1.442695, %v699_v27  ;;  %v3714_v62 = vadd.f32 %v3222_v14, %v595_v30 }
  0xbf   : > { %v2917_v52 = vpop.eup %2916  ;;  %v1303_v39 = vmul.f32 %v2915_v5, %v1111_v16  ;;  %v984_v38 = vmul.f32 %v920_v22, %v920_v22  ;;  %v3717_v37 = vadd.f32 %v3222_v14, %v597_v49  ;;  %v496_v45 = vunpack.c.l.bf16 %v3706_v31 }
  0xc0   : > { %v922_v21 = vadd.f32 1.0, %v2917_v52  ;;  %2924 = vpow2.f32 %v790_v54  ;;  %v729_v50 = vmin.f32 %v3714_v62, 20.0  ;;  %v498_v40 = vunpack.c.l.bf16 %v3711_v29 }
  0xc1   : > { %v1339_v15 = vpack.c.bf16 %v1303_v39, %v1301_v33  ;;  %v2458_v34 = vadd.f32 -1.0, %v984_v38  ;;  %v1176_v48 = vadd.f32 1.0, %v984_v38  ;;  %v731_v35 = vmin.f32 %v3717_v37, 20.0 }
  0xc2   : > { %v986_v41 = vmul.f32 %v922_v21, %v922_v21  ;;  %v2919_v44 = vpop.eup %2918  ;;  %v566_v0 = vmul.f32 %v3213_v8, %v496_v45  ;;  %v528_v63 = vunpack.c.l.bf16 %v3721_v61  ;;  %v850_v42 = vmul.f32 1.442695, %v729_v50 }
  0xc3   : > { %1666 = vmatmul.bf16.gmra.mxu3 %v1339_v15  ;;  %2926 = vrcp.f32 %v1176_v48  ;;  %v2921_v51 = vpop.eup %2920  ;;  %v1272_v53 = vmul.f32 %v2919_v44, %v1080_v19  ;;  %v854_v7 = vmul.f32 1.442695, %v731_v35  ;;  %v568_v16 = vmul.f32 %v3213_v8, %v498_v40 }
  0xc4   : > { %v2460_v58 = vadd.f32 -1.0, %v986_v41  ;;  %v1178_v55 = vadd.f32 1.0, %v986_v41  ;;  %v2923_v9 = vpop.eup %2922  ;;  %v1274_v3 = vmul.f32 %v2921_v51, %v1082_v28  ;;  %v3733_v56 = vadd.f32 %v3217_v11, %v566_v0 }
  0xc5   : > { %v1112_v59 = vmul.f32 %v2458_v34, %v3679_v36  ;;  %v889_v24 = vadd.f32 1.0, %v2923_v9  ;;  %v530_v25 = vunpack.c.l.bf16 %v3728_v47  ;;  %v3738_v2 = vadd.f32 %v3217_v11, %v568_v16 }
  0xc6   : > { %2928 = vrcp.f32 %v1178_v55  ;;  %v2925_v46 = vpop.eup %2924  ;;  %v1324_v1 = vpack.c.bf16 %v1274_v3, %v1272_v53  ;;  %v700_v17 = vmin.f32 %v3733_v56, 20.0  ;;  %v598_v6 = vmul.f32 %v3213_v8, %v528_v63 }
  0xc7   : > { %2930 = vpow2.f32 %v850_v42  ;;  %v891_v26 = vadd.f32 1.0, %v2925_v46  ;;  %v953_v57 = vmul.f32 %v889_v24, %v889_v24  ;;  %v1114_v36 = vmul.f32 %v2460_v58, %v3682_v60 }
  0xc8   : > { %2932 = vpow2.f32 %v854_v7  ;;  %1542 = vmatmul.bf16.gmra.mxu0 %v1324_v1  ;;  %v702_v20 = vmin.f32 %v3738_v2, 20.0  ;;  %v792_v10 = vmul.f32 1.442695, %v700_v17  ;;  %v600_v12 = vmul.f32 %v3213_v8, %v530_v25 }
  0xc9   : > { %v2927_v30 = vpop.eup %2926  ;;  %v955_v18 = vmul.f32 %v891_v26, %v891_v26  ;;  %v2427_v32 = vadd.f32 -1.0, %v953_v57  ;;  %v1145_v22 = vadd.f32 1.0, %v953_v57  ;;  %v3746_v23 = vadd.f32 %v3217_v11, %v598_v6 }
  0xca   : > { %v1304_v19 = vmul.f32 %v2927_v30, %v1112_v59  ;;  %2934 = vpow2.f32 %v792_v10  ;;  %v796_v27 = vmul.f32 1.442695, %v702_v20  ;;  %v3749_v5 = vadd.f32 %v3217_v11, %v600_v12 }
  0xcb   : > { %v2429_v28 = vadd.f32 -1.0, %v955_v18  ;;  %v1147_v60 = vadd.f32 1.0, %v955_v18  ;;  %2936 = vrcp.f32 %v1145_v22  ;;  %v497_v49 = vunpack.c.h.bf16 %v3706_v31 }
  0xcc   : > { %v2929_v33 = vpop.eup %2928  ;;  %2938 = vpow2.f32 %v796_v27  ;;  %v732_v39 = vmin.f32 %v3746_v23, 20.0  ;;  %v734_v38 = vmin.f32 %v3749_v5, 20.0  ;;  %v1081_v21 = vmul.f32 %v2427_v32, %v3694_v43 }
  0xcd   : > { %v2931_v52 = vpop.eup %2930  ;;  %v1306_v8 = vmul.f32 %v2929_v33, %v1114_v36  ;;  %2940 = vrcp.f32 %v1147_v60  ;;  %v499_v11 = vunpack.c.h.bf16 %v3711_v29  ;;  %v1083_v31 = vmul.f32 %v2429_v28, %v3698_v4  ;;  %v1513_v60 = vpop.f32.mrf.mxu0 }
  0xce   : > { %v2933_v54 = vpop.eup %2932  ;;  %v921_v45 = vadd.f32 1.0, %v2931_v52  ;;  %v856_v48 = vmul.f32 1.442695, %v732_v39  ;;  %v860_v41 = vmul.f32 1.442695, %v734_v38  ;;  %v567_v35 = vmul.f32 %v3220_v13, %v497_v49 }
  0xcf   : > { %v1340_v15 = vpack.c.bf16 %v1306_v8, %v1304_v19  ;;  %v923_v34 = vadd.f32 1.0, %v2933_v54  ;;  %v569_v0 = vmul.f32 %v3220_v13, %v499_v11  ;;  %v529_v43 = vunpack.c.h.bf16 %v3721_v61 }
  0xd0   : > { %v985_v50 = vmul.f32 %v921_v45, %v921_v45  ;;  %v2935_v40 = vpop.eup %2934  ;;  %2942 = vpow2.f32 %v856_v48  ;;  %v3761_v4 = vadd.f32 %v3222_v14, %v567_v35  ;;  %v531_v9 = vunpack.c.h.bf16 %v3728_v47  ;;  %v3791_v35 = vld [vmem:[%s4021_s5] ss:$0 sm:$0xff] }
  0xd1   : > { %1582 = vmatmul.bf16.gmra.mxu2 %v1340_v15  ;;  %v987_v44 = vmul.f32 %v923_v34, %v923_v34  ;;  %v2937_v63 = vpop.eup %2936  ;;  %v892_v53 = vadd.f32 1.0, %v2935_v40  ;;  %2944 = vpow2.f32 %v860_v41  ;;  %v3766_v25 = vadd.f32 %v3222_v14, %v569_v0  ;;  %v1553_v40 = vpop.f32.mrf.mxu2 }
  0xd2   : > { %v2459_v51 = vadd.f32 -1.0, %v985_v50  ;;  %v1177_v29 = vadd.f32 1.0, %v985_v50  ;;  %v2939_v58 = vpop.eup %2938  ;;  %v1273_v55 = vmul.f32 %v2937_v63, %v1081_v21  ;;  %v701_v26 = vmin.f32 %v3761_v4, 20.0  ;;  %v3785_v21 = vld [vmem:[%s4020_s4] ss:$0 sm:$0xff] }
  0xd3   : > { %v1179_v42 = vadd.f32 1.0, %v987_v44  ;;  %v2941_v3 = vpop.eup %2940  ;;  %v2461_v7 = vadd.f32 -1.0, %v987_v44  ;;  %v894_v16 = vadd.f32 1.0, %v2939_v58  ;;  %v956_v59 = vmul.f32 %v892_v53, %v892_v53  ;;  %v1642_v44 = vpop.f32.mrf.mxu3 }
  0xd4   : > { %2946 = vrcp.f32 %v1177_v29  ;;  %v1275_v24 = vmul.f32 %v2941_v3, %v1083_v31  ;;  %v1113_v61 = vmul.f32 %v2459_v51, %v3714_v62  ;;  %v703_v47 = vmin.f32 %v3766_v25, 20.0 }
  0xd5   : > { %2948 = vrcp.f32 %v1179_v42  ;;  %v958_v46 = vmul.f32 %v894_v16, %v894_v16  ;;  %v2430_v1 = vadd.f32 -1.0, %v956_v59  ;;  %v1148_v17 = vadd.f32 1.0, %v956_v59 }
  0xd6   : > { %v2943_v57 = vpop.eup %2942  ;;  %v1325_v6 = vpack.c.bf16 %v1275_v24, %v1273_v55  ;;  %v599_v30 = vmul.f32 %v3220_v13, %v529_v43  ;;  %v601_v36 = vmul.f32 %v3220_v13, %v531_v9  ;;  %v1115_v62 = vmul.f32 %v2461_v7, %v3717_v37  ;;  %v1602_v37 = vpop.f32.mrf.mxu1 }
  0xd7   : > { %v2945_v20 = vpop.eup %2944  ;;  %v2432_v10 = vadd.f32 -1.0, %v958_v46  ;;  %v1150_v12 = vadd.f32 1.0, %v958_v46  ;;  %2950 = vrcp.f32 %v1148_v17  ;;  %v924_v19 = vadd.f32 1.0, %v2943_v57  ;;  %v1515_v7 = vpop.f32.mrf.mxu0 }
  0xd8   : > { %1631 = vmatmul.bf16.gmra.mxu1 %v1325_v6  ;;  %v926_v18 = vadd.f32 1.0, %v2945_v20  ;;  %v794_v32 = vmul.f32 1.442695, %v701_v26  ;;  %v798_v22 = vmul.f32 1.442695, %v703_v47  ;;  %v1084_v33 = vmul.f32 %v2430_v1, %v3733_v56 }
  0xd9   : > { %2952 = vrcp.f32 %v1150_v12  ;;  %v3775_v28 = vadd.f32 %v3222_v14, %v599_v30  ;;  %v3778_v13 = vadd.f32 %v3222_v14, %v601_v36  ;;  %v988_v8 = vmul.f32 %v924_v19, %v924_v19 }
  0xda   : > { %v2947_v27 = vpop.eup %2946  ;;  %v990_v39 = vmul.f32 %v926_v18, %v926_v18  ;;  %2954 = vpow2.f32 %v794_v32  ;;  %v1086_v14 = vmul.f32 %v2432_v10, %v3738_v2  ;;  %v1603_v50 = vadd.f32 %v1602_v37, %v1513_v60  ;;  %v1555_v37 = vpop.f32.mrf.mxu2 }
  0xdb   : > { %v2949_v49 = vpop.eup %2948  ;;  %v1305_v52 = vmul.f32 %v2947_v27, %v1113_v61  ;;  %2956 = vpow2.f32 %v798_v22  ;;  %v733_v54 = vmin.f32 %v3775_v28, 20.0  ;;  %v735_v56 = vmin.f32 %v3778_v13, 20.0 }
  0xdc   : > { %v1307_v38 = vmul.f32 %v2949_v49, %v1115_v62  ;;  %v2462_v45 = vadd.f32 -1.0, %v988_v8  ;;  %v1180_v11 = vadd.f32 1.0, %v988_v8  ;;  %v1182_v15 = vadd.f32 1.0, %v990_v39  ;;  %v1644_v49 = vpop.f32.mrf.mxu3 }
  0xdd   : > { %v2951_v34 = vpop.eup %2950  ;;  %v858_v41 = vmul.f32 1.442695, %v733_v54  ;;  %v862_v31 = vmul.f32 1.442695, %v735_v56  ;;  %v2464_v43 = vadd.f32 -1.0, %v990_v39  ;;  %v1785_v2 = vmul.f32 %v3785_v21, %v1603_v50 }
  0xde   : > { %v1341_v48 = vpack.c.bf16 %v1307_v38, %v1305_v52  ;;  %v1276_v0 = vmul.f32 %v2951_v34, %v1084_v33  ;;  %2958 = vrcp.f32 %v1180_v11  ;;  %v1643_v51 = vadd.f32 %v1642_v44, %v1553_v40  ;;  %v1604_v16 = vpop.f32.mrf.mxu1 }
  0xdf   : > { %v2953_v63 = vpop.eup %2952  ;;  %2960 = vrcp.f32 %v1182_v15  ;;  %v1116_v58 = vmul.f32 %v2462_v45, %v3746_v23  ;;  %v3796_v9 = vadd.f32 %v3791_v35, %v1785_v2  ;;  %v1118_v24 = vmul.f32 %v2464_v43, %v3749_v5  ;;  %v1518_v50 = vpop.f32.mrf.mxu0 }
  0xe0   : > { %1671 = vmatmul.bf16.gmra.mxu3 %v1341_v48  ;;  %v2955_v29 = vpop.eup %2954  ;;  %v1278_v53 = vmul.f32 %v2953_v63, %v1086_v14  ;;  %2962 = vpow2.f32 %v858_v41  ;;  %v1801_v3 = vmul.f32 %v3785_v21, %v1643_v51  ;;  %v1605_v46 = vadd.f32 %v1604_v16, %v1515_v7 }
  0xe1   : > { %v2957_v55 = vpop.eup %2956  ;;  %v893_v42 = vadd.f32 1.0, %v2955_v29  ;;  %2964 = vpow2.f32 %v862_v31  ;;  %v1853_v17 = vmin.f32 %v3796_v9, 20.0  ;;  %v1645_v56 = vadd.f32 %v1644_v49, %v1555_v37 }
  0xe2   : > { %v1326_v59 = vpack.c.bf16 %v1278_v53, %v1276_v0  ;;  %v895_v61 = vadd.f32 1.0, %v2957_v55  ;;  %v3802_v23 = vadd.f32 %v3791_v35, %v1801_v3  ;;  %v1786_v6 = vmul.f32 %v3785_v21, %v1605_v46  ;;  %v1558_v53 = vpop.f32.mrf.mxu2 }
  0xe3   : > { %v957_v1 = vmul.f32 %v893_v42, %v893_v42  ;;  %v1885_v20 = vmul.f32 1.442695, %v1853_v17  ;;  %v1802_v48 = vmul.f32 %v3785_v21, %v1645_v56 }
  0xe4   : > { %v2959_v26 = vpop.eup %2958  ;;  %1547 = vmatmul.bf16.gmra.mxu0 %v1326_v59  ;;  %v959_v57 = vmul.f32 %v895_v61, %v895_v61  ;;  %v1869_v19 = vmin.f32 %v3802_v23, 20.0  ;;  %v3807_v27 = vadd.f32 %v3791_v35, %v1786_v6 }
  0xe5   : > { %v2961_v47 = vpop.eup %2960  ;;  %v1308_v30 = vmul.f32 %v2959_v26, %v1116_v58  ;;  %v1149_v36 = vadd.f32 1.0, %v957_v1  ;;  %v2431_v5 = vadd.f32 -1.0, %v957_v1  ;;  %v1647_v58 = vpop.f32.mrf.mxu3 }
  0xe6   : > { %v2963_v62 = vpop.eup %2962  ;;  %v1310_v10 = vmul.f32 %v2961_v47, %v1118_v24  ;;  %v1151_v12 = vadd.f32 1.0, %v959_v57  ;;  %v2433_v32 = vadd.f32 -1.0, %v959_v57  ;;  %v1917_v8 = vmul.f32 1.442695, %v1869_v19  ;;  %v1607_v40 = vpop.f32.mrf.mxu1 }
  0xe7   : > { %v2965_v18 = vpop.eup %2964  ;;  %2966 = vrcp.f32 %v1149_v36  ;;  %v925_v22 = vadd.f32 1.0, %v2963_v62  ;;  %v1854_v39 = vmin.f32 %v3807_v27, 20.0  ;;  %v1085_v38 = vmul.f32 %v2431_v5, %v3761_v4 }
  0xe8   : > { %v1342_v33 = vpack.c.bf16 %v1310_v10, %v1308_v30  ;;  %2968 = vrcp.f32 %v1151_v12  ;;  %v927_v60 = vadd.f32 1.0, %v2965_v18  ;;  %v1087_v14 = vmul.f32 %v2433_v32, %v3766_v25  ;;  %v1520_v30 = vpop.f32.mrf.mxu0 }
  0xe9   : > { %v989_v52 = vmul.f32 %v925_v22, %v925_v22  ;;  %2970 = vpow2.f32 %v1885_v20  ;;  %v1887_v11 = vmul.f32 1.442695, %v1854_v39  ;;  %v3814_v4 = vadd.f32 %v3791_v35, %v1802_v48 }
  0xea   : > { %1587 = vmatmul.bf16.gmra.mxu2 %v1342_v33  ;;  %v991_v54 = vmul.f32 %v927_v60, %v927_v60  ;;  %2972 = vpow2.f32 %v1917_v8  ;;  %v1608_v63 = vadd.f32 %v1607_v40, %v1518_v50  ;;  %v1648_v16 = vadd.f32 %v1647_v58, %v1558_v53 }
  0xeb   : > { %v1181_v45 = vadd.f32 1.0, %v989_v52  ;;  %v2463_v15 = vadd.f32 -1.0, %v989_v52  ;;  %v1870_v29 = vmin.f32 %v3814_v4, 20.0  ;;  %v1560_v52 = vpop.f32.mrf.mxu2 }
  0xec   : > { %v1183_v34 = vadd.f32 1.0, %v991_v54  ;;  %v2465_v31 = vadd.f32 -1.0, %v991_v54  ;;  %v1787_v7 = vmul.f32 %v3785_v21, %v1608_v63 }
  0xed   : > { %v2967_v41 = vpop.eup %2966  ;;  %2974 = vrcp.f32 %v1181_v45  ;;  %v1117_v2 = vmul.f32 %v2463_v15, %v3775_v28  ;;  %v1919_v61 = vmul.f32 1.442695, %v1870_v29  ;;  %v1803_v28 = vmul.f32 %v3785_v21, %v1648_v16  ;;  %v1649_v8 = vpop.f32.mrf.mxu3 }
  0xee   : > { %v2969_v44 = vpop.eup %2968  ;;  %v1277_v0 = vmul.f32 %v2967_v41, %v1085_v38  ;;  %2976 = vrcp.f32 %v1183_v34  ;;  %v1119_v3 = vmul.f32 %v2465_v31, %v3778_v13  ;;  %v3821_v1 = vadd.f32 %v3791_v35, %v1787_v7  ;;  %v1609_v36 = vpop.f32.mrf.mxu1 }
  0xef   : > { %v2971_v43 = vpop.eup %2970  ;;  %v1279_v25 = vmul.f32 %v2969_v44, %v1087_v14  ;;  %2978 = vpow2.f32 %v1887_v11  ;;  %v3826_v47 = vadd.f32 %v3791_v35, %v1803_v28  ;;  %v1610_v18 = vadd.f32 %v1609_v36, %v1520_v30 }
  0xf0   : > { %v1949_v51 = vadd.f32 1.0, %v2971_v43  ;;  %v2973_v55 = vpop.eup %2972  ;;  %2980 = vpow2.f32 %v1919_v61  ;;  %v1855_v13 = vmin.f32 %v3821_v1, 20.0  ;;  %v1650_v54 = vadd.f32 %v1649_v8, %v1560_v52  ;;  %v1523_v48 = vpop.f32.mrf.mxu0 }
  0xf1   : > { %v1327_v42 = vpack.c.bf16 %v1279_v25, %v1277_v0  ;;  %v1965_v24 = vadd.f32 1.0, %v2973_v55  ;;  %v1871_v19 = vmin.f32 %v3826_v47, 20.0  ;;  %v1788_v33 = vmul.f32 %v3785_v21, %v1610_v18 }
  0xf2   : > { %v1981_v59 = vmul.f32 %v1949_v51, %v1949_v51  ;;  %v1889_v12 = vmul.f32 1.442695, %v1855_v13  ;;  %v1804_v15 = vmul.f32 %v3785_v21, %v1650_v54 }
  0xf3   : > { %v2975_v46 = vpop.eup %2974  ;;  %1636 = vmatmul.bf16.gmra.mxu1 %v1327_v42  ;;  %v1997_v62 = vmul.f32 %v1965_v24, %v1965_v24  ;;  %v1921_v22 = vmul.f32 1.442695, %v1871_v19  ;;  %v3831_v38 = vadd.f32 %v3791_v35, %v1788_v33  ;;  %v1563_v42 = vpop.f32.mrf.mxu2 }
  0xf4   : > { %v2977_v17 = vpop.eup %2976  ;;  %v1309_v26 = vmul.f32 %v2975_v46, %v1117_v2  ;;  %v2077_v20 = vadd.f32 1.0, %v1981_v59  ;;  %2982 = vpow2.f32 %v1889_v12  ;;  %v2530_v56 = vadd.f32 -1.0, %v1981_v59 }
  0xf5   : > { %v2979_v57 = vpop.eup %2978  ;;  %v1311_v6 = vmul.f32 %v2977_v17, %v1119_v3  ;;  %v2093_v37 = vadd.f32 1.0, %v1997_v62  ;;  %v1856_v11 = vmin.f32 %v3831_v38, 20.0  ;;  %v3836_v0 = vadd.f32 %v3791_v35, %v1804_v15 }
  0xf6   : > { %v1950_v5 = vadd.f32 1.0, %v2979_v57  ;;  %v2981_v60 = vpop.eup %2980  ;;  %2984 = vrcp.f32 %v2077_v20  ;;  %v1612_v41 = vpop.f32.mrf.mxu1  ;;  %v2045_v63 = vmul.f32 %v2530_v56, %v3796_v9  ;;  %v2546_v2 = vadd.f32 -1.0, %v1997_v62 }
  0xf7   : > { %v1343_v10 = vpack.c.bf16 %v1311_v6, %v1309_v26  ;;  %v1966_v39 = vadd.f32 1.0, %v2981_v60  ;;  %2986 = vpow2.f32 %v1921_v22  ;;  %v1891_v50 = vmul.f32 1.442695, %v1856_v11  ;;  %v1652_v3 = vpop.f32.mrf.mxu3 }
  0xf8   : > { %v1982_v32 = vmul.f32 %v1950_v5, %v1950_v5  ;;  %v1613_v43 = vadd.f32 %v1612_v41, %v1523_v48  ;;  %v1872_v58 = vmin.f32 %v3836_v0, 20.0  ;;  %v1653_v61 = vadd.f32 %v1652_v3, %v1563_v42  ;;  %v1525_v13 = vpop.f32.mrf.mxu0 }
  0xf9   : > { %1676 = vmatmul.bf16.gmra.mxu3 %v1343_v10  ;;  %v1998_v45 = vmul.f32 %v1966_v39, %v1966_v39  ;;  %v2061_v46 = vmul.f32 %v2546_v2, %v3802_v23 }
  0xfa   : > { %v2078_v49 = vadd.f32 1.0, %v1982_v32  ;;  %v2531_v14 = vadd.f32 -1.0, %v1982_v32  ;;  %v2983_v34 = vpop.eup %2982  ;;  %v1789_v55 = vmul.f32 %v3785_v21, %v1613_v43  ;;  %v1805_v6 = vmul.f32 %v3785_v21, %v1653_v61 }
  0xfb   : > { %v2094_v31 = vadd.f32 1.0, %v1998_v45  ;;  %v1951_v44 = vadd.f32 1.0, %v2983_v34  ;;  %v2547_v53 = vadd.f32 -1.0, %v1998_v45  ;;  %v1565_v60 = vpop.f32.mrf.mxu2 }
  0xfc   : > { %2988 = vrcp.f32 %v2078_v49  ;;  %v2985_v40 = vpop.eup %2984  ;;  %v2046_v51 = vmul.f32 %v2531_v14, %v3807_v27  ;;  %v1923_v27 = vmul.f32 1.442695, %v1872_v58  ;;  %v3849_v24 = vadd.f32 %v3791_v35, %v1789_v55 }
  0xfd   : > { %2990 = vrcp.f32 %v2093_v37  ;;  %v2987_v25 = vpop.eup %2986  ;;  %v2141_v7 = vmul.f32 %v2985_v40, %v2045_v63  ;;  %v1983_v9 = vmul.f32 %v1951_v44, %v1951_v44  ;;  %v2062_v26 = vmul.f32 %v2547_v53, %v3814_v4 }
  0xfe   : > { %2992 = vrcp.f32 %v2094_v31  ;;  %v1967_v17 = vadd.f32 1.0, %v2987_v25  ;;  %v1857_v57 = vmin.f32 %v3849_v24, 20.0  ;;  %v1614_v30 = vpop.f32.mrf.mxu1  ;;  %v3857_v19 = vadd.f32 %v3791_v35, %v1805_v6 }
  0xff   : > { %2994 = vpow2.f32 %v1891_v50  ;;  %v1615_v62 = vadd.f32 %v1614_v30, %v1525_v13  ;;  %v2079_v12 = vadd.f32 1.0, %v1983_v9  ;;  %v1654_v37 = vpop.f32.mrf.mxu3  ;;  %v2532_v15 = vadd.f32 -1.0, %v1983_v9 }
 0x100   : > { %2996 = vpow2.f32 %v1923_v27  ;;  %v1893_v23 = vmul.f32 1.442695, %v1857_v57  ;;  %v1999_v4 = vmul.f32 %v1967_v17, %v1967_v17  ;;  %v1873_v33 = vmin.f32 %v3857_v19, 20.0  ;;  %v1528_v48 = vpop.f32.mrf.mxu0 }
 0x101   : > { %v1790_v32 = vmul.f32 %v3785_v21, %v1615_v62  ;;  %v1655_v8 = vadd.f32 %v1654_v37, %v1565_v60 }
 0x102   : > { %v2989_v29 = vpop.eup %2988  ;;  %2998 = vpow2.f32 %v1893_v23  ;;  %v1925_v54 = vmul.f32 1.442695, %v1873_v33  ;;  %v2095_v56 = vadd.f32 1.0, %v1999_v4  ;;  %v2548_v3 = vadd.f32 -1.0, %v1999_v4 }
 0x103   : > { %v2142_v16 = vmul.f32 %v2989_v29, %v2046_v51  ;;  %v2991_v59 = vpop.eup %2990  ;;  %v3862_v52 = vadd.f32 %v3791_v35, %v1790_v32  ;;  %3000 = vrcp.f32 %v2079_v12  ;;  %v1806_v34 = vmul.f32 %v3785_v21, %v1655_v8  ;;  %v1568_v55 = vpop.f32.mrf.mxu2 }
 0x104   : > { %v2993_v36 = vpop.eup %2992  ;;  %v2157_v20 = vmul.f32 %v2991_v59, %v2061_v46  ;;  %3002 = vpow2.f32 %v1925_v54  ;;  %v2047_v29 = vmul.f32 %v2532_v15, %v3821_v1 }
 0x105   : > { %v2584_v28 = vpack.c.bf16 %v2142_v16, %v2141_v7  ;;  %v2995_v10 = vpop.eup %2994  ;;  %v2158_v5 = vmul.f32 %v2993_v36, %v2062_v26  ;;  %v1858_v11 = vmin.f32 %v3862_v52, 20.0  ;;  %v3868_v43 = vadd.f32 %v3791_v35, %v1806_v34 }
 0x106   : > { %v1952_v18 = vadd.f32 1.0, %v2995_v10  ;;  %v2997_v39 = vpop.eup %2996  ;;  %v1617_v41 = vpop.f32.mrf.mxu1 }
 0x107   : > { %2585 = vst [vmem:[%s3846_s9] sm:$0xff] %v2584_v28   ;;  %v2624_v22 = vpack.c.bf16 %v2158_v5, %v2157_v20  ;;  %v1968_v45 = vadd.f32 1.0, %v2997_v39  ;;  %v1895_v44 = vmul.f32 1.442695, %v1858_v11  ;;  %v1618_v25 = vadd.f32 %v1617_v41, %v1528_v48 }
 0x108   : > { %v1984_v49 = vmul.f32 %v1952_v18, %v1952_v18  ;;  %v2999_v50 = vpop.eup %2998  ;;  %v1874_v53 = vmin.f32 %v3868_v43, 20.0  ;;  %v1530_v13 = vpop.f32.mrf.mxu0 }
 0x109   : > { %2668 = vst [vmem:[%s3846_s9 + $0x40] sm:$0xff] %v2624_v22   ;;  %v2000_v31 = vmul.f32 %v1968_v45, %v1968_v45  ;;  %v1953_v2 = vadd.f32 1.0, %v2999_v50  ;;  %v3001_v51 = vpop.eup %3000  ;;  %v1791_v58 = vmul.f32 %v3785_v21, %v1618_v25 }
 0x10a   : > { %v2080_v14 = vadd.f32 1.0, %v1984_v49  ;;  %v2533_v40 = vadd.f32 -1.0, %v1984_v49  ;;  %v3003_v59 = vpop.eup %3002  ;;  %v1927_v61 = vmul.f32 1.442695, %v1874_v53  ;;  %v2143_v26 = vmul.f32 %v3001_v51, %v2047_v29 }
 0x10b   : > { %v2096_v63 = vadd.f32 1.0, %v2000_v31  ;;  %v2549_v7 = vadd.f32 -1.0, %v2000_v31  ;;  %v1985_v27 = vmul.f32 %v1953_v2, %v1953_v2  ;;  %v3875_v46 = vadd.f32 %v3791_v35, %v1791_v58 }
 0x10c   : > { %3004 = vrcp.f32 %v2080_v14  ;;  %v2048_v9 = vmul.f32 %v2533_v40, %v3831_v38  ;;  %v1969_v28 = vadd.f32 1.0, %v3003_v59  ;;  %v2063_v38 = vmul.f32 %v2548_v3, %v3826_v47 }
 0x10d   : > { %3006 = vrcp.f32 %v2095_v56  ;;  %v1859_v6 = vmin.f32 %v3875_v46, 20.0  ;;  %v2064_v20 = vmul.f32 %v2549_v7, %v3836_v0  ;;  %v2081_v12 = vadd.f32 1.0, %v1985_v27  ;;  %v1570_v0 = vpop.f32.mrf.mxu2 }
 0x10e   : > { %3008 = vpow2.f32 %v1895_v44  ;;  %v1619_v30 = vpop.f32.mrf.mxu1  ;;  %v2001_v32 = vmul.f32 %v1969_v28, %v1969_v28  ;;  %v2534_v40 = vadd.f32 -1.0, %v1985_v27 }
 0x10f   : > { %3010 = vrcp.f32 %v2096_v63  ;;  %v1897_v23 = vmul.f32 1.442695, %v1859_v6  ;;  %v1620_v4 = vadd.f32 %v1619_v30, %v1530_v13 }
 0x110   : > { %3012 = vpow2.f32 %v1927_v61  ;;  %v2097_v11 = vadd.f32 1.0, %v2001_v32  ;;  %v2550_v59 = vadd.f32 -1.0, %v2001_v32 }
 0x111   : > { %3014 = vpow2.f32 %v1897_v23  ;;  %v1792_v47 = vmul.f32 %v3785_v21, %v1620_v4 }
 0x112   : > { %v1657_v42 = vpop.f32.mrf.mxu3  ;;  %v3005_v1 = vpop.eup %3004  ;;  %3016 = vrcp.f32 %v2081_v12 }
 0x113   : > { %v1658_v16 = vadd.f32 %v1657_v42, %v1568_v55  ;;  %v2144_v57 = vmul.f32 %v3005_v1, %v2048_v9  ;;  %v3007_v36 = vpop.eup %3006  ;;  %v3888_v14 = vadd.f32 %v3791_v35, %v1792_v47  ;;  %v1533_v31 = vpop.f32.mrf.mxu0 }
 0x114   : > { %v3009_v10 = vpop.eup %3008  ;;  %v2159_v60 = vmul.f32 %v3007_v36, %v2063_v38 }
 0x115   : > { %v1807_v17 = vmul.f32 %v3785_v21, %v1658_v16  ;;  %v2589_v5 = vpack.c.bf16 %v2144_v57, %v2143_v26  ;;  %v3011_v18 = vpop.eup %3010  ;;  %v1954_v22 = vadd.f32 1.0, %v3009_v10  ;;  %v1860_v48 = vmin.f32 %v3888_v14, 20.0 }
 0x116   : > { %v2160_v37 = vmul.f32 %v3011_v18, %v2064_v20  ;;  %v3013_v54 = vpop.eup %3012  ;;  %v2049_v16 = vmul.f32 %v2534_v40, %v3849_v24  ;;  %v2065_v20 = vmul.f32 %v2550_v59, %v3857_v19 }
 0x117   : > { %v3882_v62 = vadd.f32 %v3791_v35, %v1807_v17  ;;  %2661 = vst [vmem:[%s3846_s9 + $0x8] sm:$0xff] %v2589_v5   ;;  %v1986_v8 = vmul.f32 %v1954_v22, %v1954_v22  ;;  %v1970_v34 = vadd.f32 1.0, %v3013_v54  ;;  %v3015_v63 = vpop.eup %3014  ;;  %v1899_v51 = vmul.f32 1.442695, %v1860_v48 }
 0x118   : > { %v2629_v56 = vpack.c.bf16 %v2160_v37, %v2159_v60  ;;  %v1955_v58 = vadd.f32 1.0, %v3015_v63  ;;  %v3017_v42 = vpop.eup %3016 }
 0x119   : > { %v1875_v33 = vmin.f32 %v3882_v62, 20.0  ;;  %v2082_v15 = vadd.f32 1.0, %v1986_v8  ;;  %v2002_v44 = vmul.f32 %v1970_v34, %v1970_v34  ;;  %v2535_v2 = vadd.f32 -1.0, %v1986_v8 }
 0x11a   : > { %v1659_v49 = vpop.f32.mrf.mxu3  ;;  %2669 = vst [vmem:[%s3846_s9 + $0x48] sm:$0xff] %v2629_v56   ;;  %v1987_v1 = vmul.f32 %v1955_v58, %v1955_v58  ;;  %v2145_v6 = vmul.f32 %v3017_v42, %v2049_v16 }
 0x11b   : > { %v1929_v39 = vmul.f32 1.442695, %v1875_v33  ;;  %v1660_v45 = vadd.f32 %v1659_v49, %v1570_v0  ;;  %v2098_v53 = vadd.f32 1.0, %v2002_v44  ;;  %v2050_v27 = vmul.f32 %v2535_v2, %v3862_v52  ;;  %v1535_v18 = vpop.f32.mrf.mxu0 }
 0x11c   : > { %v2551_v61 = vadd.f32 -1.0, %v2002_v44  ;;  %v2083_v5 = vadd.f32 1.0, %v1987_v1 }
 0x11d   : > { %3018 = vpow2.f32 %v1929_v39  ;;  %v1808_v41 = vmul.f32 %v3785_v21, %v1660_v45  ;;  %v1573_v30 = vpop.f32.mrf.mxu2 }
 0x11e   : > { %v1622_v50 = vpop.f32.mrf.mxu1  ;;  %3020 = vrcp.f32 %v2082_v15  ;;  %v2066_v52 = vmul.f32 %v2551_v61, %v3868_v43  ;;  %v2536_v15 = vadd.f32 -1.0, %v1987_v1 }
 0x11f   : > { %v1623_v25 = vadd.f32 %v1622_v50, %v1533_v31  ;;  %v3894_v29 = vadd.f32 %v3791_v35, %v1808_v41  ;;  %3022 = vrcp.f32 %v2097_v11 }
 0x120   : > { %3024 = vpow2.f32 %v1899_v51 }
 0x121   : > { %v1793_v55 = vmul.f32 %v3785_v21, %v1623_v25  ;;  %v1876_v3 = vmin.f32 %v3894_v29, 20.0  ;;  %3026 = vrcp.f32 %v2098_v53  ;;  %v2051_v53 = vmul.f32 %v2536_v15, %v3875_v46 }
 0x123   : > { %v3019_v7 = vpop.eup %3018  ;;  %v3900_v9 = vadd.f32 %v3791_v35, %v1793_v55  ;;  %v1931_v28 = vmul.f32 1.442695, %v1876_v3 }
 0x124   : > { %v3021_v17 = vpop.eup %3020  ;;  %v1971_v26 = vadd.f32 1.0, %v3019_v7 }
 0x125   : > { %v1861_v57 = vmin.f32 %v3900_v9, 20.0  ;;  %v2146_v13 = vmul.f32 %v3021_v17, %v2050_v27  ;;  %3028 = vpow2.f32 %v1931_v28  ;;  %v3023_v24 = vpop.eup %3022  ;;  %v1575_v50 = vpop.f32.mrf.mxu2 }
 0x126   : > { %v3025_v38 = vpop.eup %3024  ;;  %v2003_v23 = vmul.f32 %v1971_v26, %v1971_v26  ;;  %v1624_v32 = vpop.f32.mrf.mxu1  ;;  %v2161_v22 = vmul.f32 %v3023_v24, %v2065_v20 }
 0x127   : > { %v1901_v36 = vmul.f32 1.442695, %v1861_v57  ;;  %v2594_v10 = vpack.c.bf16 %v2146_v13, %v2145_v6  ;;  %v3027_v12 = vpop.eup %3026  ;;  %v1956_v4 = vadd.f32 1.0, %v3025_v38  ;;  %v1625_v37 = vadd.f32 %v1624_v32, %v1535_v18 }
 0x128   : > { %v2162_v33 = vmul.f32 %v3027_v12, %v2066_v52  ;;  %v2099_v8 = vadd.f32 1.0, %v2003_v23  ;;  %v2552_v42 = vadd.f32 -1.0, %v2003_v23 }
 0x129   : > { %3030 = vpow2.f32 %v1901_v36  ;;  %2662 = vst [vmem:[%s3846_s9 + $0x10] sm:$0xff] %v2594_v10   ;;  %v1988_v47 = vmul.f32 %v1956_v4, %v1956_v4  ;;  %v1794_v43 = vmul.f32 %v3785_v21, %v1625_v37 }
 0x12a   : > { %v2634_v19 = vpack.c.bf16 %v2162_v33, %v2161_v22  ;;  %3032 = vrcp.f32 %v2083_v5  ;;  %v2067_v26 = vmul.f32 %v2552_v42, %v3882_v62 }
 0x12b   : > { %v3029_v49 = vpop.eup %3028  ;;  %v2084_v39 = vadd.f32 1.0, %v1988_v47  ;;  %v3911_v45 = vadd.f32 %v3791_v35, %v1794_v43  ;;  %v2537_v41 = vadd.f32 -1.0, %v1988_v47 }
 0x12c   : > { %v1662_v60 = vpop.f32.mrf.mxu3  ;;  %v1972_v54 = vadd.f32 1.0, %v3029_v49  ;;  %2670 = vst [vmem:[%s3846_s9 + $0x50] sm:$0xff] %v2634_v19  }
 0x12d   : > { %v1663_v0 = vadd.f32 %v1662_v60, %v1573_v30  ;;  %3034 = vrcp.f32 %v2084_v39  ;;  %v1862_v31 = vmin.f32 %v3911_v45, 20.0  ;;  %v2052_v3 = vmul.f32 %v2537_v41, %v3888_v14  ;;  %v1538_v27 = vpop.f32.mrf.mxu0 }
 0x12e   : > { %v2004_v34 = vmul.f32 %v1972_v54, %v1972_v54  ;;  %3036 = vrcp.f32 %v2099_v8 }
 0x12f   : > { %v1809_v56 = vmul.f32 %v3785_v21, %v1663_v0  ;;  %v3031_v11 = vpop.eup %3030  ;;  %v1903_v2 = vmul.f32 1.442695, %v1862_v31 }
 0x130   : > { %v2100_v40 = vadd.f32 1.0, %v2004_v34  ;;  %v3033_v25 = vpop.eup %3032  ;;  %v1957_v63 = vadd.f32 1.0, %v3031_v11  ;;  %v2553_v7 = vadd.f32 -1.0, %v2004_v34 }
 0x131   : > { %v3914_v48 = vadd.f32 %v3791_v35, %v1809_v56  ;;  %v2147_v61 = vmul.f32 %v3033_v25, %v2051_v53 }
 0x132   : > { %3038 = vrcp.f32 %v2100_v40  ;;  %v1989_v28 = vmul.f32 %v1957_v63, %v1957_v63  ;;  %v2068_v14 = vmul.f32 %v2553_v7, %v3894_v29 }
 0x133   : > { %v1877_v44 = vmin.f32 %v3914_v48, 20.0  ;;  %3040 = vpow2.f32 %v1903_v2  ;;  %v3035_v16 = vpop.eup %3034 }
 0x134   : > { %v1664_v51 = vpop.f32.mrf.mxu3  ;;  %v2148_v1 = vmul.f32 %v3035_v16, %v2052_v3  ;;  %v3037_v17 = vpop.eup %3036  ;;  %v2085_v20 = vadd.f32 1.0, %v1989_v28  ;;  %v2538_v47 = vadd.f32 -1.0, %v1989_v28 }
 0x135   : > { %v1933_v58 = vmul.f32 1.442695, %v1877_v44  ;;  %v1665_v55 = vadd.f32 %v1664_v51, %v1575_v50  ;;  %v2163_v36 = vmul.f32 %v3037_v17, %v2067_v26  ;;  %v1540_v22 = vpop.f32.mrf.mxu0 }
 0x136   : > { %v2599_v57 = vpack.c.bf16 %v2148_v1, %v2147_v61  ;;  %v2053_v34 = vmul.f32 %v2538_v47, %v3900_v9 }
 0x137   : > { %3042 = vpow2.f32 %v1933_v58  ;;  %v1810_v59 = vmul.f32 %v3785_v21, %v1665_v55 }
 0x138   : > { %v3039_v6 = vpop.eup %3038  ;;  %2663 = vst [vmem:[%s3846_s9 + $0x18] sm:$0xff] %v2599_v57  }
 0x139   : > { %v3922_v46 = vadd.f32 %v3791_v35, %v1810_v59  ;;  %v3041_v24 = vpop.eup %3040  ;;  %v2164_v38 = vmul.f32 %v3039_v6, %v2068_v14 }
 0x13a   : > { %v1958_v5 = vadd.f32 1.0, %v3041_v24  ;;  %v1578_v37 = vpop.f32.mrf.mxu2 }
 0x13b   : > { %v1878_v13 = vmin.f32 %v3922_v46, 20.0  ;;  %v1627_v30 = vpop.f32.mrf.mxu1  ;;  %v2639_v23 = vpack.c.bf16 %v2164_v38, %v2163_v36 }
 0x13c   : > { %v1628_v10 = vadd.f32 %v1627_v30, %v1538_v27  ;;  %v1990_v18 = vmul.f32 %v1958_v5, %v1958_v5 }
 0x13d   : > { %v3043_v52 = vpop.eup %3042  ;;  %v1935_v12 = vmul.f32 1.442695, %v1878_v13  ;;  %2671 = vst [vmem:[%s3846_s9 + $0x58] sm:$0xff] %v2639_v23  }
 0x13e   : > { %v1973_v4 = vadd.f32 1.0, %v3043_v52  ;;  %v1795_v62 = vmul.f32 %v3785_v21, %v1628_v10  ;;  %v2086_v32 = vadd.f32 1.0, %v1990_v18  ;;  %v2539_v49 = vadd.f32 -1.0, %v1990_v18 }
 0x13f   : > { %3044 = vpow2.f32 %v1935_v12 }
 0x140   : > { %3046 = vrcp.f32 %v2085_v20  ;;  %v3931_v29 = vadd.f32 %v3791_v35, %v1795_v62  ;;  %v2005_v33 = vmul.f32 %v1973_v4, %v1973_v4  ;;  %v2054_v31 = vmul.f32 %v2539_v49, %v3911_v45 }
 0x141   : > { %3048 = vrcp.f32 %v2086_v32 }
 0x142   : > { %v1863_v60 = vmin.f32 %v3931_v29, 20.0  ;;  %v2101_v54 = vadd.f32 1.0, %v2005_v33  ;;  %v1580_v42 = vpop.f32.mrf.mxu2  ;;  %v2554_v3 = vadd.f32 -1.0, %v2005_v33 }
 0x143   : > { %v1629_v0 = vpop.f32.mrf.mxu1 }
 0x144   : > { %v1905_v19 = vmul.f32 1.442695, %v1863_v60  ;;  %v1630_v43 = vadd.f32 %v1629_v0, %v1540_v22  ;;  %v2069_v26 = vmul.f32 %v2554_v3, %v3914_v48 }
 0x145   : > { %v3045_v8 = vpop.eup %3044  ;;  %v1543_v13 = vpop.f32.mrf.mxu0 }
 0x146   : > { %v3047_v39 = vpop.eup %3046  ;;  %v1974_v56 = vadd.f32 1.0, %v3045_v8  ;;  %3050 = vpow2.f32 %v1905_v19  ;;  %v1667_v11 = vpop.f32.mrf.mxu3  ;;  %v1796_v15 = vmul.f32 %v3785_v21, %v1630_v43 }
 0x147   : > { %v1668_v41 = vadd.f32 %v1667_v11, %v1578_v37  ;;  %v3049_v44 = vpop.eup %3048  ;;  %v2149_v25 = vmul.f32 %v3047_v39, %v2053_v34  ;;  %3052 = vrcp.f32 %v2101_v54 }
 0x148   : > { %v2006_v50 = vmul.f32 %v1974_v56, %v1974_v56  ;;  %v3938_v40 = vadd.f32 %v3791_v35, %v1796_v15  ;;  %v2150_v2 = vmul.f32 %v3049_v44, %v2054_v31 }
 0x149   : > { %v1811_v63 = vmul.f32 %v3785_v21, %v1668_v41 }
 0x14a   : > { %v2102_v51 = vadd.f32 1.0, %v2006_v50  ;;  %v1864_v53 = vmin.f32 %v3938_v40, 20.0  ;;  %v2604_v55 = vpack.c.bf16 %v2150_v2, %v2149_v25  ;;  %v2555_v7 = vadd.f32 -1.0, %v2006_v50 }
 0x14b   : > { %v3943_v58 = vadd.f32 %v3791_v35, %v1811_v63 }
 0x14c   : > { %v3051_v9 = vpop.eup %3050  ;;  %3054 = vrcp.f32 %v2102_v51  ;;  %v1907_v45 = vmul.f32 1.442695, %v1864_v53  ;;  %2664 = vst [vmem:[%s3846_s9 + $0x20] sm:$0xff] %v2604_v55   ;;  %v2070_v57 = vmul.f32 %v2555_v7, %v3922_v46 }
 0x14d   : > { %v1959_v16 = vadd.f32 1.0, %v3051_v9  ;;  %v1879_v59 = vmin.f32 %v3943_v58, 20.0  ;;  %v3053_v28 = vpop.eup %3052  ;;  %v1545_v47 = vpop.f32.mrf.mxu0 }
 0x14e   : > { %3056 = vpow2.f32 %v1907_v45  ;;  %v1669_v27 = vpop.f32.mrf.mxu3  ;;  %v2165_v30 = vmul.f32 %v3053_v28, %v2069_v26 }
 0x14f   : > { %v1937_v61 = vmul.f32 1.442695, %v1879_v59  ;;  %v1670_v1 = vadd.f32 %v1669_v27, %v1580_v42  ;;  %v1991_v17 = vmul.f32 %v1959_v16, %v1959_v16 }
 0x151   : > { %3058 = vpow2.f32 %v1937_v61  ;;  %v1812_v14 = vmul.f32 %v3785_v21, %v1670_v1  ;;  %v2087_v20 = vadd.f32 1.0, %v1991_v17  ;;  %v2540_v33 = vadd.f32 -1.0, %v1991_v17 }
 0x152   : > { %v3055_v6 = vpop.eup %3054 }
 0x153   : > { %v2166_v24 = vmul.f32 %v3055_v6, %v2070_v57  ;;  %v1848_v36 = vadd.f32 %v3791_v35, %v1812_v14  ;;  %3060 = vrcp.f32 %v2087_v20  ;;  %v2055_v56 = vmul.f32 %v2540_v33, %v3931_v29 }
 0x154   : > { %v3057_v38 = vpop.eup %3056  ;;  %v1583_v39 = vpop.f32.mrf.mxu2 }
 0x155   : > { %v2644_v10 = vpack.c.bf16 %v2166_v24, %v2165_v30  ;;  %v1960_v52 = vadd.f32 1.0, %v3057_v38  ;;  %v1880_v5 = vmin.f32 %v1848_v36, 20.0  ;;  %v1632_v12 = vpop.f32.mrf.mxu1 }
 0x156   : > { %v1633_v46 = vadd.f32 %v1632_v12, %v1543_v13 }
 0x157   : > { %v3059_v23 = vpop.eup %3058  ;;  %2672 = vst [vmem:[%s3846_s9 + $0x60] sm:$0xff] %v2644_v10   ;;  %v1992_v48 = vmul.f32 %v1960_v52, %v1960_v52  ;;  %v1939_v4 = vmul.f32 1.442695, %v1880_v5  ;;  %v3980_v10 = vld [vmem:[%s4021_s5] ss:$0 sm:$0xff] }
 0x158   : > { %v1975_v62 = vadd.f32 1.0, %v3059_v23  ;;  %v1797_v32 = vmul.f32 %v3785_v21, %v1633_v46 }
 0x159   : > { %v2088_v18 = vadd.f32 1.0, %v1992_v48  ;;  %3062 = vpow2.f32 %v1939_v4  ;;  %v2541_v37 = vadd.f32 -1.0, %v1992_v48  ;;  %v3061_v49 = vpop.eup %3060 }
 0x15a   : > { %v3954_v22 = vadd.f32 %v3791_v35, %v1797_v32  ;;  %v2007_v60 = vmul.f32 %v1975_v62, %v1975_v62  ;;  %v2151_v50 = vmul.f32 %v3061_v49, %v2055_v56 }
 0x15b   : > { %3064 = vrcp.f32 %v2088_v18  ;;  %v2056_v15 = vmul.f32 %v2541_v37, %v3938_v40 }
 0x15c   : > { %v1865_v0 = vmin.f32 %v3954_v22, 20.0  ;;  %v2103_v11 = vadd.f32 1.0, %v2007_v60  ;;  %v2556_v45 = vadd.f32 -1.0, %v2007_v60  ;;  %v1585_v59 = vpop.f32.mrf.mxu2 }
 0x15d   : > { %v1634_v19 = vpop.f32.mrf.mxu1 }
 0x15e   : > { %v1909_v8 = vmul.f32 1.442695, %v1865_v0  ;;  %v1635_v54 = vadd.f32 %v1634_v19, %v1545_v47  ;;  %v2071_v1 = vmul.f32 %v2556_v45, %v3943_v58 }
 0x15f   : > { %v3063_v43 = vpop.eup %3062 }
 0x160   : > { %v1976_v34 = vadd.f32 1.0, %v3063_v43  ;;  %3066 = vpow2.f32 %v1909_v8  ;;  %v1798_v31 = vmul.f32 %v3785_v21, %v1635_v54 }
 0x161   : > { %v3065_v41 = vpop.eup %3064  ;;  %3068 = vrcp.f32 %v2103_v11  ;;  %v1548_v30 = vpop.f32.mrf.mxu0 }
 0x162   : > { %v2152_v44 = vmul.f32 %v3065_v41, %v2056_v15  ;;  %v2008_v25 = vmul.f32 %v1976_v34, %v1976_v34  ;;  %v3961_v2 = vadd.f32 %v3791_v35, %v1798_v31 }
 0x163   : > { %v1672_v63 = vpop.f32.mrf.mxu3 }
 0x164   : > { %v2609_v51 = vpack.c.bf16 %v2152_v44, %v2151_v50  ;;  %v2104_v53 = vadd.f32 1.0, %v2008_v25  ;;  %v1673_v29 = vadd.f32 %v1672_v63, %v1583_v39  ;;  %v1866_v9 = vmin.f32 %v3961_v2, 20.0 }
 0x165   : > { %v2557_v42 = vadd.f32 -1.0, %v2008_v25 }
 0x166   : > { %2665 = vst [vmem:[%s3846_s9 + $0x28] sm:$0xff] %v2609_v51   ;;  %3070 = vrcp.f32 %v2104_v53  ;;  %v1813_v40 = vmul.f32 %v3785_v21, %v1673_v29  ;;  %v3067_v55 = vpop.eup %3066  ;;  %v1911_v3 = vmul.f32 1.442695, %v1866_v9 }
 0x167   : > { %v1961_v7 = vadd.f32 1.0, %v3067_v55  ;;  %v3069_v27 = vpop.eup %3068  ;;  %v2072_v28 = vmul.f32 %v2557_v42, %v1848_v36 }
 0x168   : > { %v3967_v16 = vadd.f32 %v3791_v35, %v1813_v40  ;;  %3072 = vpow2.f32 %v1911_v3  ;;  %v2167_v6 = vmul.f32 %v3069_v27, %v2071_v1  ;;  %v3974_v35 = vld [vmem:[%s4020_s4] ss:$0 sm:$0xff] }
 0x169   : > { %v1993_v21 = vmul.f32 %v1961_v7, %v1961_v7  ;;  %v1550_v47 = vpop.f32.mrf.mxu0 }
 0x16a   : > { %v1881_v61 = vmin.f32 %v3967_v16, 20.0 }
 0x16b   : > { %v1674_v17 = vpop.f32.mrf.mxu3  ;;  %v2089_v58 = vadd.f32 1.0, %v1993_v21  ;;  %v2542_v60 = vadd.f32 -1.0, %v1993_v21 }
 0x16c   : > { %v3071_v26 = vpop.eup %3070  ;;  %v1941_v57 = vmul.f32 1.442695, %v1881_v61  ;;  %v1675_v14 = vadd.f32 %v1674_v17, %v1585_v59 }
 0x16d   : > { %v2168_v13 = vmul.f32 %v3071_v26, %v2072_v28  ;;  %v1588_v49 = vpop.f32.mrf.mxu2  ;;  %v2057_v56 = vmul.f32 %v2542_v60, %v3954_v22 }
 0x16e   : > { %v1814_v24 = vmul.f32 %v3974_v35, %v1675_v14  ;;  %v3073_v38 = vpop.eup %3072  ;;  %3074 = vpow2.f32 %v1941_v57 }
 0x16f   : > { %v2649_v20 = vpack.c.bf16 %v2168_v13, %v2167_v6  ;;  %v1962_v36 = vadd.f32 1.0, %v3073_v38  ;;  %3076 = vrcp.f32 %v2089_v58 }
 0x170   : > { %v3983_v52 = vadd.f32 %v3980_v10, %v1814_v24  ;;  %v1637_v5 = vpop.f32.mrf.mxu1 }
 0x171   : > { %2673 = vst [vmem:[%s3846_s9 + $0x68] sm:$0xff] %v2649_v20   ;;  %v1994_v12 = vmul.f32 %v1962_v36, %v1962_v36  ;;  %v1638_v48 = vadd.f32 %v1637_v5, %v1548_v30 }
 0x172   : > { %v1882_v23 = vmin.f32 %v3983_v52, 20.0 }
 0x173   : > { %v2090_v4 = vadd.f32 1.0, %v1994_v12  ;;  %v1799_v62 = vmul.f32 %v3974_v35, %v1638_v48  ;;  %v2543_v37 = vadd.f32 -1.0, %v1994_v12 }
 0x174   : > { %v1943_v46 = vmul.f32 1.442695, %v1882_v23  ;;  %v3075_v18 = vpop.eup %3074 }
 0x175   : > { %v1977_v32 = vadd.f32 1.0, %v3075_v18  ;;  %3078 = vrcp.f32 %v2090_v4  ;;  %v3989_v33 = vadd.f32 %v3980_v10, %v1799_v62  ;;  %v3077_v43 = vpop.eup %3076  ;;  %v2058_v11 = vmul.f32 %v2543_v37, %v3961_v2  ;;  %v1590_v3 = vpop.f32.mrf.mxu2 }
 0x176   : > { %3080 = vpow2.f32 %v1943_v46  ;;  %v2153_v31 = vmul.f32 %v3077_v43, %v2057_v56 }
 0x177   : > { %v1867_v0 = vmin.f32 %v3989_v33, 20.0  ;;  %v2009_v8 = vmul.f32 %v1977_v32, %v1977_v32 }
 0x178   : > { %v1639_v19 = vpop.f32.mrf.mxu1 }
 0x179   : > { %v1913_v39 = vmul.f32 1.442695, %v1867_v0  ;;  %v1640_v54 = vadd.f32 %v1639_v19, %v1550_v47  ;;  %v2105_v25 = vadd.f32 1.0, %v2009_v8  ;;  %v2558_v27 = vadd.f32 -1.0, %v2009_v8 }
 0x17b   : > { %v3079_v15 = vpop.eup %3078  ;;  %v1800_v34 = vmul.f32 %v3974_v35, %v1640_v54  ;;  %3082 = vpow2.f32 %v1913_v39  ;;  %v2073_v14 = vmul.f32 %v2558_v27, %v3967_v16 }
 0x17c   : > { %v3081_v41 = vpop.eup %3080  ;;  %v2154_v50 = vmul.f32 %v3079_v15, %v2058_v11  ;;  %v1677_v44 = vpop.f32.mrf.mxu3  ;;  %3084 = vrcp.f32 %v2105_v25 }
 0x17d   : > { %v1978_v63 = vadd.f32 1.0, %v3081_v41  ;;  %v1678_v51 = vadd.f32 %v1677_v44, %v1588_v49  ;;  %v1836_v53 = vadd.f32 %v3980_v10, %v1800_v34 }
 0x17e   : > { %v2614_v29 = vpack.c.bf16 %v2154_v50, %v2153_v31 }
 0x17f   : > { %v2010_v9 = vmul.f32 %v1978_v63, %v1978_v63  ;;  %v1815_v22 = vmul.f32 %v3974_v35, %v1678_v51  ;;  %v1868_v40 = vmin.f32 %v1836_v53, 20.0 }
 0x180   : > { %2666 = vst [vmem:[%s3846_s9 + $0x30] sm:$0xff] %v2614_v29  }
 0x181   : > { %v2106_v2 = vadd.f32 1.0, %v2010_v9  ;;  %v1851_v55 = vadd.f32 %v3980_v10, %v1815_v22  ;;  %v1915_v45 = vmul.f32 1.442695, %v1868_v40  ;;  %v3083_v42 = vpop.eup %3082  ;;  %v2559_v61 = vadd.f32 -1.0, %v2010_v9 }
 0x182   : > { %v1963_v7 = vadd.f32 1.0, %v3083_v42  ;;  %v3085_v21 = vpop.eup %3084 }
 0x183   : > { %3086 = vrcp.f32 %v2106_v2  ;;  %v1883_v59 = vmin.f32 %v1851_v55, 20.0  ;;  %v2074_v6 = vmul.f32 %v2559_v61, %v3983_v52  ;;  %v2169_v38 = vmul.f32 %v3085_v21, %v2073_v14 }
 0x184   : > { %3088 = vpow2.f32 %v1915_v45  ;;  %v1679_v1 = vpop.f32.mrf.mxu3  ;;  %v1995_v26 = vmul.f32 %v1963_v7, %v1963_v7 }
 0x185   : > { %v1945_v28 = vmul.f32 1.442695, %v1883_v59  ;;  %v1680_v17 = vadd.f32 %v1679_v1, %v1590_v3 }
 0x186   : > { %v2091_v58 = vadd.f32 1.0, %v1995_v26  ;;  %v2544_v16 = vadd.f32 -1.0, %v1995_v26 }
 0x187   : > { %3090 = vpow2.f32 %v1945_v28  ;;  %v1816_v57 = vmul.f32 %v3974_v35, %v1680_v17 }
 0x188   : > { %3092 = vrcp.f32 %v2091_v58  ;;  %v2059_v32 = vmul.f32 %v2544_v16, %v3989_v33 }
 0x189   : > { %v3087_v13 = vpop.eup %3086  ;;  %v1852_v30 = vadd.f32 %v3980_v10, %v1816_v57 }
 0x18a   : > { %v3089_v24 = vpop.eup %3088  ;;  %v2170_v20 = vmul.f32 %v3087_v13, %v2074_v6 }
 0x18b   : > { %v1964_v36 = vadd.f32 1.0, %v3089_v24  ;;  %v1884_v5 = vmin.f32 %v1852_v30, 20.0 }
 0x18c   : > { %v2654_v12 = vpack.c.bf16 %v2170_v20, %v2169_v38 }
 0x18d   : > { %v3091_v23 = vpop.eup %3090  ;;  %v1996_v48 = vmul.f32 %v1964_v36, %v1964_v36  ;;  %v1947_v4 = vmul.f32 1.442695, %v1884_v5 }
 0x18e   : > { %2674 = vst [vmem:[%s3846_s9 + $0x70] sm:$0xff] %v2654_v12   ;;  %v1979_v35 = vadd.f32 1.0, %v3091_v23  ;;  %v3093_v62 = vpop.eup %3092 }
 0x18f   : > { %v2092_v46 = vadd.f32 1.0, %v1996_v48  ;;  %3094 = vpow2.f32 %v1947_v4  ;;  %v2545_v10 = vadd.f32 -1.0, %v1996_v48  ;;  %v2155_v49 = vmul.f32 %v3093_v62, %v2059_v32 }
 0x190   : > { %v2011_v52 = vmul.f32 %v1979_v35, %v1979_v35 }
 0x191   : > { %3096 = vrcp.f32 %v2092_v46  ;;  %v2060_v37 = vmul.f32 %v2545_v10, %v1836_v53 }
 0x192   : > { %v2107_v60 = vadd.f32 1.0, %v2011_v52  ;;  %v2560_v54 = vadd.f32 -1.0, %v2011_v52 }
 0x194   : > { %3098 = vrcp.f32 %v2107_v60  ;;  %v2075_v15 = vmul.f32 %v2560_v54, %v1851_v55 }
 0x195   : > { %v3095_v18 = vpop.eup %3094 }
 0x196   : > { %v1980_v47 = vadd.f32 1.0, %v3095_v18 }
 0x197   : > { %v3097_v0 = vpop.eup %3096 }
 0x198   : > { %v2156_v19 = vmul.f32 %v3097_v0, %v2060_v37  ;;  %v2012_v43 = vmul.f32 %v1980_v47, %v1980_v47 }
 0x19a   : > { %v2619_v8 = vpack.c.bf16 %v2156_v19, %v2155_v49  ;;  %v2108_v39 = vadd.f32 1.0, %v2012_v43  ;;  %v2561_v56 = vadd.f32 -1.0, %v2012_v43  ;;  %v3099_v11 = vpop.eup %3098 }
 0x19b   : > { %v2171_v33 = vmul.f32 %v3099_v11, %v2075_v15 }
 0x19c   : > { %2667 = vst [vmem:[%s3846_s9 + $0x38] sm:$0xff] %v2619_v8   ;;  %3100 = vrcp.f32 %v2108_v39  ;;  %v2076_v34 = vmul.f32 %v2561_v56, %v1852_v30 }
 0x1a2   : > { %v3101_v41 = vpop.eup %3100 }
 0x1a3   : > { %v2172_v31 = vmul.f32 %v3101_v41, %v2076_v34 }
 0x1a5   : > { %v2659_v50 = vpack.c.bf16 %v2172_v31, %v2171_v33 }
 0x1a7   : > { %2675 = vst [vmem:[%s3846_s9 + $0x78] sm:$0xff] %v2659_v50  }
 0x1a8 PF: > { %s16_s23 = sadd.s32 1, %s3126_s23   ;;  %s4023_s21 = smov %s3122_s22 }
 0x1a9   : > { %p13_p5 = scmp.ge.s32.totalorder %s16_s23, 4   ;;  %s4024_s22 = smov %s4026_s24 }
 0x1ab   :  { %15 = sbr.rel (!%p13_p5) target bundleno = 2 (0x2), region = 97 }

</bundles_post_ra>
